<compile_context>
chip_gen: v7x
topology: tpu7x:2x2x1
jax: 0.10.0
libtpu: 0.0.40
codegen_flags: <defaults>
</compile_context>

<pallas_src>
import functools
import numpy as np
import jax
import jax.numpy as jnp
from jax.experimental import pallas as pl
from jax.experimental.pallas import tpu as pltpu

# ----------------------------- static config ---------------------------------
ATOM_TYPE = [3, 14]                    # config['atomType'] -> types Li, Si
NTYPES = len(ATOM_TYPE)
PHYS_PROP = ["atomic_number", "atomic_mass", "atomic_radius"]
P = len(PHYS_PROP)                     # type_embedding_net.network_size == [] -> type_feat_num = P
MAXNEI = 8                             # maxNeighborNum
K = MAXNEI * NTYPES                    # neighbor slots per atom (16)
M2 = 4
RMIN, RMAX = 0.5, 3.0                  # atomType[0].Rm, Rc_M
EMB_IN = 1 + P                         # embedding-net input dim (S_Rij + type features) = 4
EMB_SIZES = [EMB_IN, 8, 16]            # embedding_net network_size = [8, 16]
E_OUT = EMB_SIZES[-1]
FIT_SIZES = [M2 * E_OUT, 16, 16, 1]    # fitting_net network_size = [16, 16, 1]
ENERGY_SHIFT = [-3.37, -4.20]

MAX_ATOM_TILE = 1024                   # atoms per grid step (lane axis); multiple of 128

# deterministic stand-in for get_normalized_data_list(atom_type, physical_property)
TYPE_VECTOR = {3:  np.array([0.10, 0.35, 0.60], np.float32),
               14: np.array([0.80, 0.55, 0.30], np.float32)}

# packed-parameter blob geometry
EMB_SMEM_ROWS = E_OUT + 1              # rows 0..15: [W1^T | b1]; row 16: layer-0 S_Rij weights
EMB_SMEM_COLS = 16
KCONST_ROWS = 4 + 4 + EMB_SIZES[1] + EMB_SIZES[1]   # davg | 1/dstd | layer0 eff. bias | skip const
FIT_ROWS, FIT_COLS = 48, 72            # [W0^T|b0] rows 0:16, [W1^T|b1] rows 16:32, w2/b2 rows 32:48
# kernel consumes DR features in m-major order; permute fitting layer-0 weights to match
FIT_PERM = np.array([e * M2 + m for m in range(M2) for e in range(E_OUT)], np.int32)


# ----------------------------- helpers (host side) ----------------------------
def get_train_2body_type(type_map):
    idxs = [ATOM_TYPE.index(int(a)) for a in type_map if int(a) in ATOM_TYPE]
    emb_list = [[[i, j] for j in idxs] for i in idxs]
    return emb_list, len(idxs)


def build_type_emb_feat(jtypes):
    feats, neigh_index = [], []
    for j in jtypes:
        neigh_index.extend(range(j * MAXNEI, (j + 1) * MAXNEI))
        feats.append(np.tile(TYPE_VECTOR[ATOM_TYPE[j]][None, :], (MAXNEI, 1)))
    return np.concatenate(feats, 0).astype(np.float32), np.array(neigh_index, np.int32)


def pack_emb_smem(emb_w, emb_b):
    """Embedding-net weights as one small SMEM blob (type-invariant), read as scalars in-kernel."""
    blob = jnp.zeros((EMB_SMEM_ROWS, EMB_SMEM_COLS), jnp.float32)
    blob = blob.at[0:E_OUT, 0:EMB_SIZES[1]].set(emb_w[1].T)          # layer-1 W^T
    blob = blob.at[0:E_OUT, EMB_SIZES[1]].set(emb_b[1][0])           # layer-1 bias
    blob = blob.at[E_OUT, 0:EMB_SIZES[1]].set(emb_w[0][0, :])        # layer-0 weights of S_Rij input
    return blob


def pack_kconst(davg_row, dstd_row, temb, emb_w, emb_b):
    """Per-type constant blob (KCONST_ROWS, K, 1):
       rows 0:4   davg
       rows 4:8   1/dstd                 (assumes dstd has no zeros; clamp if trained stats may)
       rows 8:16  layer-0 effective bias (constant type-embedding features folded in)
       rows 16:24 layer-0 resnet-skip constants (type-feature part of the cat([x,x]) skip)."""
    temb = jnp.asarray(temb, jnp.float32)                            # (K, P)
    b0eff = emb_b[0][0][None, :] + temb @ emb_w[0][1:, :]            # (K, 8)
    skip_rows = []
    for o in range(EMB_SIZES[1]):
        if o % EMB_IN == 0:
            skip_rows.append(jnp.zeros((temb.shape[0],), jnp.float32))
        else:
            skip_rows.append(temb[:, (o % EMB_IN) - 1])
    hskip = jnp.stack(skip_rows, axis=0)                             # (8, K)
    blob = jnp.concatenate([davg_row.T, (1.0 / dstd_row).T, b0eff.T, hskip], axis=0)
    return blob[:, :, None].astype(jnp.float32)                      # (KCONST_ROWS, K, 1)


def pack_fit_blob(ws, bs):
    """Per-type fitting-net params as one (FIT_ROWS, FIT_COLS) blob."""
    f0, f1, f2 = FIT_SIZES[0], FIT_SIZES[1], FIT_SIZES[2]
    blob = jnp.zeros((FIT_ROWS, FIT_COLS), jnp.float32)
    w0 = ws[0][FIT_PERM, :]                      # reorder inputs to the kernel's m-major DR order
    blob = blob.at[0:f1, 0:f0].set(w0.T)
    blob = blob.at[0:f1, f0].set(bs[0][0])
    blob = blob.at[16:16 + f2, 0:f1].set(ws[1].T)
    blob = blob.at[16:16 + f2, f1].set(bs[1][0])
    blob = blob.at[32:32 + f2, 0].set(ws[2][:, 0])                   # last layer as a column (VPU)
    blob = blob.at[32, 1].set(bs[2][0, 0])                           # energy-shift bias
    return blob


def _cdiv(a, b):
    return -(-a // b)


def _round_up(a, b):
    return _cdiv(a, b) * b


def pick_tile(na, min_tiles=1):
    """Atom tile on the lane axis: full-array block when small, else 128-multiples up to 1024."""
    if na <= 128 and min_tiles <= 1:
        return na, na
    ntiles = max(min_tiles, _cdiv(na, MAX_ATOM_TILE))
    tile = _round_up(_cdiv(na, ntiles), 128)
    return tile, tile * ntiles


# ----------------------------- fused Pallas kernel ---------------------------------
def fused_typedp_kernel(imdr_ref, kconst_ref, fitw_ref, embw_ref, ei_ref, *,
                        rmin, rmax, inv_scale):
    d = imdr_ref[0]                                      # (4, K, T): channel, neigh-slot, atom
    kc = kconst_ref[0]                                   # (KCONST_ROWS, K, 1)

    # --- descriptor: Srij smooth cutoff, Ri build, (davg, 1/dstd) normalisation (VPU) ---
    r = d[0]
    nz = jnp.abs(r) > 1e-12
    inv_r = jnp.where(nz, 1.0 / jnp.where(nz, r, 1.0), 0.0)
    u = (r - rmin) / (rmax - rmin)
    poly = u ** 3 * (-6.0 * u * u + 15.0 * u - 10.0) + 1.0
    # strict inequalities / thresholds match the PyTorch masks exactly
    srij = jnp.where((r > 0.0) & (r < rmin), inv_r,
                     jnp.where((r > rmin) & (r < rmax), inv_r * poly, 0.0))
    sor = jnp.where(jnp.abs(r) > 1e-5, srij * inv_r, 0.0)
    ri = jnp.concatenate([srij[None], d[1:4] * sor[None]], axis=0)   # (4, K, T)
    ri = (ri - kc[0:4]) * kc[4:8]                                    # normalised Ri

    ri0 = ri[0:1]                                        # (1, K, T) normalised S_Rij
    b0eff = kc[8:8 + EMB_SIZES[1]]                       # (8, K, 1) folded layer-0 bias
    hskip = kc[8 + EMB_SIZES[1]:8 + 2 * EMB_SIZES[1]]    # (8, K, 1) constant resnet-skip part

    # --- embedding layer 0: one FMA of the S_Rij feature (type features folded into bias) ---
    hrows = []
    for o in range(EMB_SIZES[1]):
        pre = ri0 * embw_ref[E_OUT, o] + b0eff[o:o + 1]
        h_o = jnp.tanh(pre) + (ri0 if (o % EMB_IN) == 0 else hskip[o:o + 1])
        hrows.append(h_o)
    h = jnp.concatenate(hrows, axis=0)                   # (8, K, T)

    # --- embedding layer 1 fused with the xyz_scater contraction over K (G never materialised) ---
    a_rows = [[], [], [], []]
    for e in range(E_OUT):
        acc = h[0:1] * embw_ref[e, 0]
        for i in range(1, EMB_SIZES[1]):
            acc = acc + h[i:i + 1] * embw_ref[e, i]
        g_e = (jnp.tanh(acc + embw_ref[e, EMB_SIZES[1]])
               + h[e % EMB_SIZES[1]:e % EMB_SIZES[1] + 1])            # (1, K, T), resnet cat-skip
        for f in range(4):
            a_rows[f].append(jnp.sum(ri[f:f + 1] * g_e, axis=1) * inv_scale)   # (1, T)
    a = [jnp.concatenate(a_rows[f], axis=0) for f in range(4)]                  # 4 x (E_OUT, T)

    # --- DR combine (m-major; fitting layer-0 weights pre-permuted on host to match) ---
    dr_rows = []
    for m in range(M2):
        dm = a[0] * a[0][m:m + 1, :]
        for f in range(1, 4):
            dm = dm + a[f] * a[f][m:m + 1, :]
        dr_rows.append(dm)                                            # (E_OUT, T)
    dr = jnp.concatenate(dr_rows, axis=0)                             # (M2*E_OUT, T)

    # --- fitting net: MXU for the two hidden layers, VPU reduce for the 1-row output layer ---
    fw = fitw_ref[0]
    f0, f1, f2 = FIT_SIZES[0], FIT_SIZES[1], FIT_SIZES[2]
    w0 = fw[0:f1, 0:f0]
    b0 = fw[0:f1, f0:f0 + 1]
    w1 = fw[16:16 + f2, 0:f1]
    b1 = fw[16:16 + f2, f1:f1 + 1]
    w2c = fw[32:32 + f2, 0:1]
    b2 = fw[32:33, 1:2]
    h1 = jnp.tanh(jnp.dot(w0, dr, preferred_element_type=jnp.float32) + b0)        # (16, T)
    h2 = jnp.tanh(jnp.dot(w1, h1, preferred_element_type=jnp.float32) + b1) + h1   # resnet skip
    ei = jnp.sum(w2c * h2, axis=0, keepdims=True) + b2                              # (1, T)
    ei_ref[...] = ei[None]                                                          # (1, 1, T)


# ----------------------------- parameters ---------------------------------
def init_params(key):
    params = {}
    k = key

    def nxt():
        nonlocal k
        k, sub = jax.random.split(k)
        return sub

    params['davg'] = 0.05 * jax.random.normal(nxt(), (NTYPES, K, 4), jnp.float32)
    params['dstd'] = 1.0 + 0.1 * jnp.abs(jax.random.normal(nxt(), (NTYPES, K, 4), jnp.float32))

    emb_w, emb_b = [], []
    for i in range(len(EMB_SIZES) - 1):
        emb_w.append(0.2 * jax.random.normal(nxt(), (EMB_SIZES[i], EMB_SIZES[i + 1]), jnp.float32))
        emb_b.append(0.1 * jax.random.normal(nxt(), (1, EMB_SIZES[i + 1]), jnp.float32))
    params['emb_w'], params['emb_b'] = emb_w, emb_b

    fit = []
    for t in range(NTYPES):
        ws, bs = [], []
        for i in range(len(FIT_SIZES) - 1):
            ws.append(0.2 * jax.random.normal(nxt(), (FIT_SIZES[i], FIT_SIZES[i + 1]), jnp.float32))
            if i == len(FIT_SIZES) - 2:
                bs.append(jnp.full((1, 1), ENERGY_SHIFT[t], jnp.float32))   # last bias = energy_shift
            else:
                bs.append(0.1 * jax.random.normal(nxt(), (1, FIT_SIZES[i + 1]), jnp.float32))
        fit.append((ws, bs))
    params['fit'] = fit
    return params


# ----------------------------- forward (Pallas) ---------------------------------
def typedp_forward(ImageDR, Imagetype_map, type_map, params):
    B, N, Kk, _ = ImageDR.shape
    emb_list, type_nums = get_train_2body_type(type_map)
    inv_scale = 1.0 / float(MAXNEI * type_nums)
    emb_smem = pack_emb_smem(params['emb_w'], params['emb_b'])

    # --- per-type layout plumbing (single gather + single transpose per type) ---
    groups = []
    identity = np.arange(Kk)
    for type_emb in emb_list:
        itype = type_emb[0][0]
        jtypes = [p[1] for p in type_emb]
        idx = np.where(np.asarray(Imagetype_map) == itype)[0]
        if idx.size == 0:
            continue
        temb, neigh_index = build_type_emb_feat(jtypes)
        na = int(idx.size)
        NA = B * na
        imdr_sel = ImageDR[:, idx]                                    # (B, na, K, 4)
        if not np.array_equal(neigh_index, identity):                 # skip gather when identity
            imdr_sel = imdr_sel[:, :, neigh_index]
        imdr_t = jnp.transpose(imdr_sel, (3, 2, 0, 1)).reshape(4, Kk, NA)   # (4, K, NA) lane-dense
        kconst = pack_kconst(params['davg'][itype][neigh_index],
                             params['dstd'][itype][neigh_index],
                             temb, params['emb_w'], params['emb_b'])
        ws, bs = params['fit'][itype]
        groups.append(dict(itype=itype, na=na, NA=NA, imdr=imdr_t,
                           kconst=kconst, fit=pack_fit_blob(ws, bs)))

    NTp = len(groups)
    max_na = max(g['NA'] for g in groups)
    # with >=2 types the type grid axis already gives both v7x cores work; otherwise force 2 tiles
    min_tiles = 2 if (NTp == 1 and max_na > 256) else 1
    tile, na_pad = pick_tile(max_na, min_tiles)

    # stacked per-type inputs (padded atoms produce finite garbage Ei that is sliced off below;
    # they would need masking if the force/virial custom-VJP path is ever added)
    imdr_all = jnp.stack([jnp.pad(g['imdr'], ((0, 0), (0, 0), (0, na_pad - g['NA'])))
                          for g in groups], axis=0)                   # (NTp, 4, K, na_pad)
    kconst_all = jnp.stack([g['kconst'] for g in groups], axis=0)     # (NTp, KCONST_ROWS, K, 1)
    fit_all = jnp.stack([g['fit'] for g in groups], axis=0)           # (NTp, FIT_ROWS, FIT_COLS)

    kern = functools.partial(fused_typedp_kernel, rmin=RMIN, rmax=RMAX, inv_scale=inv_scale)
    out = pl.pallas_call(
        kern,
        out_shape=jax.ShapeDtypeStruct((NTp, 1, na_pad), jnp.float32),
        grid=(NTp, na_pad // tile),
        in_specs=[
            pl.BlockSpec((1, 4, Kk, tile), lambda t, i: (t, 0, 0, i)),
            pl.BlockSpec((1, KCONST_ROWS, Kk, 1), lambda t, i: (t, 0, 0, 0)),
            pl.BlockSpec((1, FIT_ROWS, FIT_COLS), lambda t, i: (t, 0, 0)),
            pl.BlockSpec(memory_space=pltpu.MemorySpace.SMEM),        # embedding weights as scalars
        ],
        out_specs=pl.BlockSpec((1, 1, tile), lambda t, i: (t, 0, i)),
        compiler_params=pltpu.CompilerParams(
            dimension_semantics=("parallel", "parallel"),             # types x atom tiles
            vmem_limit_bytes=32 * 1024 * 1024),
    )(imdr_all, kconst_all, fit_all, emb_smem)

    Ei = None
    for g_i, g in enumerate(groups):
        ei = out[g_i, 0, :g['NA']].reshape(B, g['na'], 1)
        Ei = ei if Ei is None else jnp.concatenate([Ei, ei], axis=1)

    Etot = jnp.sum(Ei, axis=1)                            # (B, 1)
    Ei_out = jnp.squeeze(Ei, 2)                           # (B, natoms), grouped by atom type (as PyTorch)
    # TODO(synk): Force/Egroup/Virial need autograd of Etot w.r.t. Ri through the fused kernel
    # (custom VJP); not implemented — forward matches is_calc_f=False. Egroup weights are None here.
    Force, Egroup, Virial = None, None, None
    return Etot, Ei_out, Force, Egroup, Virial


# ----------------------------- pure-JAX reference ---------------------------------
def _mlp_ref(x, ws, bs, sizes, last_linear):
    n = len(sizes) - 1
    for l in range(n):
        y = jnp.dot(x, ws[l], precision=jax.lax.Precision.HIGHEST) + bs[l]
        if not (last_linear and l == n - 1):
            y = jnp.tanh(y)
            if sizes[l + 1] == sizes[l]:
                y = x + y
            elif sizes[l + 1] == 2 * sizes[l]:
                y = jnp.concatenate([x, x], axis=-1) + y
        x = y
    return x


def _descriptor_ref(imdr, davg_g, dstd_g):
    r = imdr[..., 0]
    nz = jnp.abs(r) > 1e-12
    inv_r = jnp.where(nz, 1.0 / jnp.where(nz, r, 1.0), 0.0)
    u = (r - RMIN) / (RMAX - RMIN)
    poly = u ** 3 * (-6.0 * u * u + 15.0 * u - 10.0) + 1.0
    srij = jnp.where((r > 0) & (r < RMIN), inv_r,
                     jnp.where((r > RMIN) & (r < RMAX), inv_r * poly, 0.0))
    sor = jnp.where(jnp.abs(r) > 1e-5, srij * inv_r, 0.0)
    ri = jnp.concatenate([srij[..., None], imdr[..., 1:4] * sor[..., None]], axis=-1)
    return (ri - davg_g) / dstd_g


def reference_forward(ImageDR, Imagetype_map, type_map, params):
    B, N, Kk, _ = ImageDR.shape
    emb_list, type_nums = get_train_2body_type(type_map)
    Ri = _descriptor_ref(ImageDR, params['davg'][Imagetype_map], params['dstd'][Imagetype_map])
    Ei = None
    for type_emb in emb_list:
        itype = type_emb[0][0]
        jtypes = [p[1] for p in type_emb]
        idx = np.where(np.asarray(Imagetype_map) == itype)[0]
        if idx.size == 0:
            continue
        temb, neigh_index = build_type_emb_feat(jtypes)
        ri_t = Ri[:, idx][:, :, neigh_index]
        na = idx.size
        x = jnp.concatenate(
            [ri_t[..., 0:1],
             jnp.broadcast_to(jnp.asarray(temb)[None, None], (B, na, Kk, P))], axis=-1)
        g = _mlp_ref(x.reshape(-1, EMB_IN), params['emb_w'], params['emb_b'], EMB_SIZES, False)
        g = g.reshape(B, na, Kk, E_OUT)
        tmp_a = jnp.swapaxes(ri_t, -1, -2)
        a = jnp.einsum('bnfk,bnke->bnfe', tmp_a, g,
                       precision=jax.lax.Precision.HIGHEST) / (MAXNEI * type_nums)
        dr = jnp.einsum('bnfe,bnfm->bnem', a, a[..., :M2], precision=jax.lax.Precision.HIGHEST)
        ws, bs = params['fit'][itype]
        ei = _mlp_ref(dr.reshape(B * na, E_OUT * M2), ws, bs, FIT_SIZES, True).reshape(B, na, 1)
        Ei = ei if Ei is None else jnp.concatenate([Ei, ei], axis=1)
    return jnp.sum(Ei, axis=1), jnp.squeeze(Ei, 2)


# ----------------------------- main ---------------------------------
if __name__ == "__main__":
    B = 2
    natoms = 8
    Imagetype_map = np.array([0, 0, 0, 0, 1, 1, 1, 1], np.int32)
    type_map = [3, 14]

    key = jax.random.PRNGKey(0)
    kparams, kdata = jax.random.split(key)
    params = init_params(kparams)

    dxyz = jax.random.uniform(kdata, (B, natoms, K, 3), jnp.float32, minval=-2.2, maxval=2.2)
    r = jnp.linalg.norm(dxyz, axis=-1, keepdims=True)
    pad = np.ones((K,), np.float32)                 # emulate missing-neighbor padding (rij = 0)
    pad[MAXNEI - 2:MAXNEI] = 0.0
    pad[K - 2:K] = 0.0
    ImageDR = jnp.concatenate([r, dxyz], axis=-1) * jnp.asarray(pad)[None, None, :, None]

    Etot, Ei, Force, Egroup, Virial = typedp_forward(ImageDR, Imagetype_map, type_map, params)
    jax.block_until_ready((Etot, Ei))

    Etot_r, Ei_r = reference_forward(ImageDR, Imagetype_map, type_map, params)
    np.testing.assert_allclose(np.asarray(Ei), np.asarray(Ei_r), rtol=1e-4, atol=1e-4)
    np.testing.assert_allclose(np.asarray(Etot), np.asarray(Etot_r), rtol=1e-4, atol=1e-4)

    print("KERNEL_OK")
</pallas_src>

<mosaic_0001>
module attributes {stable_mosaic.version = 11 : i64} {
  func.func @fused_typedp_kernel(%arg0: i32, %arg1: i32, %arg2: memref<1x4x16x8xf32, #tpu.memory_space<vmem>>, %arg3: memref<1x24x16x1xf32, #tpu.memory_space<vmem>>, %arg4: memref<1x48x72xf32, #tpu.memory_space<vmem>>, %arg5: memref<17x16xf32, #tpu.memory_space<smem>>, %arg6: memref<1x1x8xf32, #tpu.memory_space<vmem>>) attributes {dimension_semantics = [#tpu.dimension_semantics<parallel>, #tpu.dimension_semantics<parallel>], iteration_bounds = array<i64: 2, 1>, scalar_prefetch = 0 : i64, scratch_operands = 0 : i64, tpu.core_type = #tpu.core_type<tc>, window_params = [{transform_indices = @transform_0, window_bounds = array<i64: 1, 4, 16, 8>}, {transform_indices = @transform_1, window_bounds = array<i64: 1, 24, 16, 1>}, {transform_indices = @transform_2, window_bounds = array<i64: 1, 48, 72>}, {transform_indices = @transform_3, window_bounds = array<i64: 17, 16>}, {transform_indices = @transform_4, window_bounds = array<i64: 1, 1, 8>}]} {
    %c0 = arith.constant 0 : index
    %c0_0 = arith.constant 0 : index
    %c0_1 = arith.constant 0 : index
    %c0_2 = arith.constant 0 : index
    %0 = vector.load %arg2[%c0, %c0_0, %c0_1, %c0_2] : memref<1x4x16x8xf32, #tpu.memory_space<vmem>>, vector<1x4x16x8xf32>
    %1 = vector.shape_cast %0 : vector<1x4x16x8xf32> to vector<4x16x8xf32>
    %c0_3 = arith.constant 0 : index
    %c0_4 = arith.constant 0 : index
    %c0_5 = arith.constant 0 : index
    %c0_6 = arith.constant 0 : index
    %2 = vector.load %arg3[%c0_3, %c0_4, %c0_5, %c0_6] : memref<1x24x16x1xf32, #tpu.memory_space<vmem>>, vector<1x24x16x1xf32>
    %3 = vector.shape_cast %2 : vector<1x24x16x1xf32> to vector<24x16x1xf32>
    %4 = vector.extract_strided_slice %1 {offsets = [0, 0, 0], sizes = [1, 16, 8], strides = [1, 1, 1]} : vector<4x16x8xf32> to vector<1x16x8xf32>
    %5 = vector.shape_cast %4 : vector<1x16x8xf32> to vector<16x8xf32>
    %6 = math.absf %5 : vector<16x8xf32>
    %cst = arith.constant 9.99999996E-13 : f32
    %7 = vector.broadcast %cst : f32 to vector<16x8xf32>
    %8 = arith.cmpf ogt, %6, %7 : vector<16x8xf32>
    %cst_7 = arith.constant 1.000000e+00 : f32
    %9 = vector.broadcast %cst_7 : f32 to vector<16x8xf32>
    %10 = arith.select %8, %5, %9 : vector<16x8xi1>, vector<16x8xf32>
    %cst_8 = arith.constant 1.000000e+00 : f32
    %11 = vector.broadcast %cst_8 : f32 to vector<16x8xf32>
    %12 = arith.divf %11, %10 : vector<16x8xf32>
    %cst_9 = arith.constant 0.000000e+00 : f32
    %13 = vector.broadcast %cst_9 : f32 to vector<16x8xf32>
    %14 = arith.select %8, %12, %13 : vector<16x8xi1>, vector<16x8xf32>
    %cst_10 = arith.constant 5.000000e-01 : f32
    %15 = vector.broadcast %cst_10 : f32 to vector<16x8xf32>
    %16 = arith.subf %5, %15 : vector<16x8xf32>
    %cst_11 = arith.constant 2.500000e+00 : f32
    %17 = vector.broadcast %cst_11 : f32 to vector<16x8xf32>
    %18 = arith.divf %16, %17 : vector<16x8xf32>
    %19 = arith.mulf %18, %18 : vector<16x8xf32>
    %20 = arith.mulf %18, %19 : vector<16x8xf32>
    %cst_12 = arith.constant -6.000000e+00 : f32
    %21 = vector.broadcast %cst_12 : f32 to vector<16x8xf32>
    %22 = arith.mulf %21, %18 : vector<16x8xf32>
    %23 = arith.mulf %22, %18 : vector<16x8xf32>
    %cst_13 = arith.constant 1.500000e+01 : f32
    %24 = vector.broadcast %cst_13 : f32 to vector<16x8xf32>
    %25 = arith.mulf %24, %18 : vector<16x8xf32>
    %26 = arith.addf %23, %25 : vector<16x8xf32>
    %cst_14 = arith.constant 1.000000e+01 : f32
    %27 = vector.broadcast %cst_14 : f32 to vector<16x8xf32>
    %28 = arith.subf %26, %27 : vector<16x8xf32>
    %29 = arith.mulf %20, %28 : vector<16x8xf32>
    %cst_15 = arith.constant 1.000000e+00 : f32
    %30 = vector.broadcast %cst_15 : f32 to vector<16x8xf32>
    %31 = arith.addf %29, %30 : vector<16x8xf32>
    %cst_16 = arith.constant 0.000000e+00 : f32
    %32 = vector.broadcast %cst_16 : f32 to vector<16x8xf32>
    %33 = arith.cmpf ogt, %5, %32 : vector<16x8xf32>
    %cst_17 = arith.constant 5.000000e-01 : f32
    %34 = vector.broadcast %cst_17 : f32 to vector<16x8xf32>
    %35 = arith.cmpf olt, %5, %34 : vector<16x8xf32>
    %36 = arith.andi %33, %35 : vector<16x8xi1>
    %cst_18 = arith.constant 5.000000e-01 : f32
    %37 = vector.broadcast %cst_18 : f32 to vector<16x8xf32>
    %38 = arith.cmpf ogt, %5, %37 : vector<16x8xf32>
    %cst_19 = arith.constant 3.000000e+00 : f32
    %39 = vector.broadcast %cst_19 : f32 to vector<16x8xf32>
    %40 = arith.cmpf olt, %5, %39 : vector<16x8xf32>
    %41 = arith.andi %38, %40 : vector<16x8xi1>
    %42 = arith.mulf %14, %31 : vector<16x8xf32>
    %cst_20 = arith.constant 0.000000e+00 : f32
    %43 = vector.broadcast %cst_20 : f32 to vector<16x8xf32>
    %44 = arith.select %41, %42, %43 : vector<16x8xi1>, vector<16x8xf32>
    %45 = arith.select %36, %14, %44 : vector<16x8xi1>, vector<16x8xf32>
    %46 = math.absf %5 : vector<16x8xf32>
    %cst_21 = arith.constant 9.99999974E-6 : f32
    %47 = vector.broadcast %cst_21 : f32 to vector<16x8xf32>
    %48 = arith.cmpf ogt, %46, %47 : vector<16x8xf32>
    %49 = arith.mulf %45, %14 : vector<16x8xf32>
    %cst_22 = arith.constant 0.000000e+00 : f32
    %50 = vector.broadcast %cst_22 : f32 to vector<16x8xf32>
    %51 = arith.select %48, %49, %50 : vector<16x8xi1>, vector<16x8xf32>
    %52 = vector.shape_cast %45 : vector<16x8xf32> to vector<1x16x8xf32>
    %53 = vector.extract_strided_slice %1 {offsets = [1, 0, 0], sizes = [3, 16, 8], strides = [1, 1, 1]} : vector<4x16x8xf32> to vector<3x16x8xf32>
    %54 = vector.shape_cast %51 : vector<16x8xf32> to vector<1x16x8xf32>
    %55 = vector.broadcast %54 : vector<1x16x8xf32> to vector<3x16x8xf32>
    %56 = arith.mulf %53, %55 : vector<3x16x8xf32>
    %57 = tpu.concatenate %52, %56 in 0 : vector<1x16x8xf32>, vector<3x16x8xf32> -> vector<4x16x8xf32>
    %58 = vector.extract_strided_slice %3 {offsets = [0, 0, 0], sizes = [4, 16, 1], strides = [1, 1, 1]} : vector<24x16x1xf32> to vector<4x16x1xf32>
    %59 = vector.broadcast %58 : vector<4x16x1xf32> to vector<4x16x8xf32>
    %60 = arith.subf %57, %59 : vector<4x16x8xf32>
    %61 = vector.extract_strided_slice %3 {offsets = [4, 0, 0], sizes = [4, 16, 1], strides = [1, 1, 1]} : vector<24x16x1xf32> to vector<4x16x1xf32>
    %62 = vector.broadcast %61 : vector<4x16x1xf32> to vector<4x16x8xf32>
    %63 = arith.mulf %60, %62 : vector<4x16x8xf32>
    %64 = vector.extract_strided_slice %63 {offsets = [0, 0, 0], sizes = [1, 16, 8], strides = [1, 1, 1]} : vector<4x16x8xf32> to vector<1x16x8xf32>
    %65 = vector.extract_strided_slice %3 {offsets = [8, 0, 0], sizes = [8, 16, 1], strides = [1, 1, 1]} : vector<24x16x1xf32> to vector<8x16x1xf32>
    %66 = vector.extract_strided_slice %3 {offsets = [16, 0, 0], sizes = [8, 16, 1], strides = [1, 1, 1]} : vector<24x16x1xf32> to vector<8x16x1xf32>
    %c16 = arith.constant 16 : index
    %c0_23 = arith.constant 0 : index
    %67 = memref.load %arg5[%c16, %c0_23] : memref<17x16xf32, #tpu.memory_space<smem>>
    %68 = vector.broadcast %67 : f32 to vector<1x16x8xf32>
    %69 = arith.mulf %64, %68 : vector<1x16x8xf32>
    %70 = vector.extract_strided_slice %65 {offsets = [0, 0, 0], sizes = [1, 16, 1], strides = [1, 1, 1]} : vector<8x16x1xf32> to vector<1x16x1xf32>
    %71 = vector.broadcast %70 : vector<1x16x1xf32> to vector<1x16x8xf32>
    %72 = arith.addf %69, %71 : vector<1x16x8xf32>
    %73 = math.tanh %72 : vector<1x16x8xf32>
    %74 = arith.addf %73, %64 : vector<1x16x8xf32>
    %c16_24 = arith.constant 16 : index
    %c1 = arith.constant 1 : index
    %75 = memref.load %arg5[%c16_24, %c1] : memref<17x16xf32, #tpu.memory_space<smem>>
    %76 = vector.broadcast %75 : f32 to vector<1x16x8xf32>
    %77 = arith.mulf %64, %76 : vector<1x16x8xf32>
    %78 = vector.extract_strided_slice %65 {offsets = [1, 0, 0], sizes = [1, 16, 1], strides = [1, 1, 1]} : vector<8x16x1xf32> to vector<1x16x1xf32>
    %79 = vector.broadcast %78 : vector<1x16x1xf32> to vector<1x16x8xf32>
    %80 = arith.addf %77, %79 : vector<1x16x8xf32>
    %81 = math.tanh %80 : vector<1x16x8xf32>
    %82 = vector.extract_strided_slice %66 {offsets = [1, 0, 0], sizes = [1, 16, 1], strides = [1, 1, 1]} : vector<8x16x1xf32> to vector<1x16x1xf32>
    %83 = vector.broadcast %82 : vector<1x16x1xf32> to vector<1x16x8xf32>
    %84 = arith.addf %81, %83 : vector<1x16x8xf32>
    %c16_25 = arith.constant 16 : index
    %c2 = arith.constant 2 : index
    %85 = memref.load %arg5[%c16_25, %c2] : memref<17x16xf32, #tpu.memory_space<smem>>
    %86 = vector.broadcast %85 : f32 to vector<1x16x8xf32>
    %87 = arith.mulf %64, %86 : vector<1x16x8xf32>
    %88 = vector.extract_strided_slice %65 {offsets = [2, 0, 0], sizes = [1, 16, 1], strides = [1, 1, 1]} : vector<8x16x1xf32> to vector<1x16x1xf32>
    %89 = vector.broadcast %88 : vector<1x16x1xf32> to vector<1x16x8xf32>
    %90 = arith.addf %87, %89 : vector<1x16x8xf32>
    %91 = math.tanh %90 : vector<1x16x8xf32>
    %92 = vector.extract_strided_slice %66 {offsets = [2, 0, 0], sizes = [1, 16, 1], strides = [1, 1, 1]} : vector<8x16x1xf32> to vector<1x16x1xf32>
    %93 = vector.broadcast %92 : vector<1x16x1xf32> to vector<1x16x8xf32>
    %94 = arith.addf %91, %93 : vector<1x16x8xf32>
    %c16_26 = arith.constant 16 : index
    %c3 = arith.constant 3 : index
    %95 = memref.load %arg5[%c16_26, %c3] : memref<17x16xf32, #tpu.memory_space<smem>>
    %96 = vector.broadcast %95 : f32 to vector<1x16x8xf32>
    %97 = arith.mulf %64, %96 : vector<1x16x8xf32>
    %98 = vector.extract_strided_slice %65 {offsets = [3, 0, 0], sizes = [1, 16, 1], strides = [1, 1, 1]} : vector<8x16x1xf32> to vector<1x16x1xf32>
    %99 = vector.broadcast %98 : vector<1x16x1xf32> to vector<1x16x8xf32>
    %100 = arith.addf %97, %99 : vector<1x16x8xf32>
    %101 = math.tanh %100 : vector<1x16x8xf32>
    %102 = vector.extract_strided_slice %66 {offsets = [3, 0, 0], sizes = [1, 16, 1], strides = [1, 1, 1]} : vector<8x16x1xf32> to vector<1x16x1xf32>
    %103 = vector.broadcast %102 : vector<1x16x1xf32> to vector<1x16x8xf32>
    %104 = arith.addf %101, %103 : vector<1x16x8xf32>
    %c16_27 = arith.constant 16 : index
    %c4 = arith.constant 4 : index
    %105 = memref.load %arg5[%c16_27, %c4] : memref<17x16xf32, #tpu.memory_space<smem>>
    %106 = vector.broadcast %105 : f32 to vector<1x16x8xf32>
    %107 = arith.mulf %64, %106 : vector<1x16x8xf32>
    %108 = vector.extract_strided_slice %65 {offsets = [4, 0, 0], sizes = [1, 16, 1], strides = [1, 1, 1]} : vector<8x16x1xf32> to vector<1x16x1xf32>
    %109 = vector.broadcast %108 : vector<1x16x1xf32> to vector<1x16x8xf32>
    %110 = arith.addf %107, %109 : vector<1x16x8xf32>
    %111 = math.tanh %110 : vector<1x16x8xf32>
    %112 = arith.addf %111, %64 : vector<1x16x8xf32>
    %c16_28 = arith.constant 16 : index
    %c5 = arith.constant 5 : index
    %113 = memref.load %arg5[%c16_28, %c5] : memref<17x16xf32, #tpu.memory_space<smem>>
    %114 = vector.broadcast %113 : f32 to vector<1x16x8xf32>
    %115 = arith.mulf %64, %114 : vector<1x16x8xf32>
    %116 = vector.extract_strided_slice %65 {offsets = [5, 0, 0], sizes = [1, 16, 1], strides = [1, 1, 1]} : vector<8x16x1xf32> to vector<1x16x1xf32>
    %117 = vector.broadcast %116 : vector<1x16x1xf32> to vector<1x16x8xf32>
    %118 = arith.addf %115, %117 : vector<1x16x8xf32>
    %119 = math.tanh %118 : vector<1x16x8xf32>
    %120 = vector.extract_strided_slice %66 {offsets = [5, 0, 0], sizes = [1, 16, 1], strides = [1, 1, 1]} : vector<8x16x1xf32> to vector<1x16x1xf32>
    %121 = vector.broadcast %120 : vector<1x16x1xf32> to vector<1x16x8xf32>
    %122 = arith.addf %119, %121 : vector<1x16x8xf32>
    %c16_29 = arith.constant 16 : index
    %c6 = arith.constant 6 : index
    %123 = memref.load %arg5[%c16_29, %c6] : memref<17x16xf32, #tpu.memory_space<smem>>
    %124 = vector.broadcast %123 : f32 to vector<1x16x8xf32>
    %125 = arith.mulf %64, %124 : vector<1x16x8xf32>
    %126 = vector.extract_strided_slice %65 {offsets = [6, 0, 0], sizes = [1, 16, 1], strides = [1, 1, 1]} : vector<8x16x1xf32> to vector<1x16x1xf32>
    %127 = vector.broadcast %126 : vector<1x16x1xf32> to vector<1x16x8xf32>
    %128 = arith.addf %125, %127 : vector<1x16x8xf32>
    %129 = math.tanh %128 : vector<1x16x8xf32>
    %130 = vector.extract_strided_slice %66 {offsets = [6, 0, 0], sizes = [1, 16, 1], strides = [1, 1, 1]} : vector<8x16x1xf32> to vector<1x16x1xf32>
    %131 = vector.broadcast %130 : vector<1x16x1xf32> to vector<1x16x8xf32>
    %132 = arith.addf %129, %131 : vector<1x16x8xf32>
    %c16_30 = arith.constant 16 : index
    %c7 = arith.constant 7 : index
    %133 = memref.load %arg5[%c16_30, %c7] : memref<17x16xf32, #tpu.memory_space<smem>>
    %134 = vector.broadcast %133 : f32 to vector<1x16x8xf32>
    %135 = arith.mulf %64, %134 : vector<1x16x8xf32>
    %136 = vector.extract_strided_slice %65 {offsets = [7, 0, 0], sizes = [1, 16, 1], strides = [1, 1, 1]} : vector<8x16x1xf32> to vector<1x16x1xf32>
    %137 = vector.broadcast %136 : vector<1x16x1xf32> to vector<1x16x8xf32>
    %138 = arith.addf %135, %137 : vector<1x16x8xf32>
    %139 = math.tanh %138 : vector<1x16x8xf32>
    %140 = vector.extract_strided_slice %66 {offsets = [7, 0, 0], sizes = [1, 16, 1], strides = [1, 1, 1]} : vector<8x16x1xf32> to vector<1x16x1xf32>
    %141 = vector.broadcast %140 : vector<1x16x1xf32> to vector<1x16x8xf32>
    %142 = arith.addf %139, %141 : vector<1x16x8xf32>
    %143 = tpu.concatenate %74, %84, %94, %104, %112, %122, %132, %142 in 0 : vector<1x16x8xf32>, vector<1x16x8xf32>, vector<1x16x8xf32>, vector<1x16x8xf32>, vector<1x16x8xf32>, vector<1x16x8xf32>, vector<1x16x8xf32>, vector<1x16x8xf32> -> vector<8x16x8xf32>
    %144 = vector.extract_strided_slice %143 {offsets = [0, 0, 0], sizes = [1, 16, 8], strides = [1, 1, 1]} : vector<8x16x8xf32> to vector<1x16x8xf32>
    %c0_31 = arith.constant 0 : index
    %c0_32 = arith.constant 0 : index
    %145 = memref.load %arg5[%c0_31, %c0_32] : memref<17x16xf32, #tpu.memory_space<smem>>
    %146 = vector.broadcast %145 : f32 to vector<1x16x8xf32>
    %147 = arith.mulf %144, %146 : vector<1x16x8xf32>
    %148 = vector.extract_strided_slice %143 {offsets = [1, 0, 0], sizes = [1, 16, 8], strides = [1, 1, 1]} : vector<8x16x8xf32> to vector<1x16x8xf32>
    %c0_33 = arith.constant 0 : index
    %c1_34 = arith.constant 1 : index
    %149 = memref.load %arg5[%c0_33, %c1_34] : memref<17x16xf32, #tpu.memory_space<smem>>
    %150 = vector.broadcast %149 : f32 to vector<1x16x8xf32>
    %151 = arith.mulf %148, %150 : vector<1x16x8xf32>
    %152 = arith.addf %147, %151 : vector<1x16x8xf32>
    %153 = vector.extract_strided_slice %143 {offsets = [2, 0, 0], sizes = [1, 16, 8], strides = [1, 1, 1]} : vector<8x16x8xf32> to vector<1x16x8xf32>
    %c0_35 = arith.constant 0 : index
    %c2_36 = arith.constant 2 : index
    %154 = memref.load %arg5[%c0_35, %c2_36] : memref<17x16xf32, #tpu.memory_space<smem>>
    %155 = vector.broadcast %154 : f32 to vector<1x16x8xf32>
    %156 = arith.mulf %153, %155 : vector<1x16x8xf32>
    %157 = arith.addf %152, %156 : vector<1x16x8xf32>
    %158 = vector.extract_strided_slice %143 {offsets = [3, 0, 0], sizes = [1, 16, 8], strides = [1, 1, 1]} : vector<8x16x8xf32> to vector<1x16x8xf32>
    %c0_37 = arith.constant 0 : index
    %c3_38 = arith.constant 3 : index
    %159 = memref.load %arg5[%c0_37, %c3_38] : memref<17x16xf32, #tpu.memory_space<smem>>
    %160 = vector.broadcast %159 : f32 to vector<1x16x8xf32>
    %161 = arith.mulf %158, %160 : vector<1x16x8xf32>
    %162 = arith.addf %157, %161 : vector<1x16x8xf32>
    %163 = vector.extract_strided_slice %143 {offsets = [4, 0, 0], sizes = [1, 16, 8], strides = [1, 1, 1]} : vector<8x16x8xf32> to vector<1x16x8xf32>
    %c0_39 = arith.constant 0 : index
    %c4_40 = arith.constant 4 : index
    %164 = memref.load %arg5[%c0_39, %c4_40] : memref<17x16xf32, #tpu.memory_space<smem>>
    %165 = vector.broadcast %164 : f32 to vector<1x16x8xf32>
    %166 = arith.mulf %163, %165 : vector<1x16x8xf32>
    %167 = arith.addf %162, %166 : vector<1x16x8xf32>
    %168 = vector.extract_strided_slice %143 {offsets = [5, 0, 0], sizes = [1, 16, 8], strides = [1, 1, 1]} : vector<8x16x8xf32> to vector<1x16x8xf32>
    %c0_41 = arith.constant 0 : index
    %c5_42 = arith.constant 5 : index
    %169 = memref.load %arg5[%c0_41, %c5_42] : memref<17x16xf32, #tpu.memory_space<smem>>
    %170 = vector.broadcast %169 : f32 to vector<1x16x8xf32>
    %171 = arith.mulf %168, %170 : vector<1x16x8xf32>
    %172 = arith.addf %167, %171 : vector<1x16x8xf32>
    %173 = vector.extract_strided_slice %143 {offsets = [6, 0, 0], sizes = [1, 16, 8], strides = [1, 1, 1]} : vector<8x16x8xf32> to vector<1x16x8xf32>
    %c0_43 = arith.constant 0 : index
    %c6_44 = arith.constant 6 : index
    %174 = memref.load %arg5[%c0_43, %c6_44] : memref<17x16xf32, #tpu.memory_space<smem>>
    %175 = vector.broadcast %174 : f32 to vector<1x16x8xf32>
    %176 = arith.mulf %173, %175 : vector<1x16x8xf32>
    %177 = arith.addf %172, %176 : vector<1x16x8xf32>
    %178 = vector.extract_strided_slice %143 {offsets = [7, 0, 0], sizes = [1, 16, 8], strides = [1, 1, 1]} : vector<8x16x8xf32> to vector<1x16x8xf32>
    %c0_45 = arith.constant 0 : index
    %c7_46 = arith.constant 7 : index
    %179 = memref.load %arg5[%c0_45, %c7_46] : memref<17x16xf32, #tpu.memory_space<smem>>
    %180 = vector.broadcast %179 : f32 to vector<1x16x8xf32>
    %181 = arith.mulf %178, %180 : vector<1x16x8xf32>
    %182 = arith.addf %177, %181 : vector<1x16x8xf32>
    %c0_47 = arith.constant 0 : index
    %c8 = arith.constant 8 : index
    %183 = memref.load %arg5[%c0_47, %c8] : memref<17x16xf32, #tpu.memory_space<smem>>
    %184 = vector.broadcast %183 : f32 to vector<1x16x8xf32>
    %185 = arith.addf %182, %184 : vector<1x16x8xf32>
    %186 = math.tanh %185 : vector<1x16x8xf32>
    %187 = vector.extract_strided_slice %143 {offsets = [0, 0, 0], sizes = [1, 16, 8], strides = [1, 1, 1]} : vector<8x16x8xf32> to vector<1x16x8xf32>
    %188 = arith.addf %186, %187 : vector<1x16x8xf32>
    %189 = vector.extract_strided_slice %63 {offsets = [0, 0, 0], sizes = [1, 16, 8], strides = [1, 1, 1]} : vector<4x16x8xf32> to vector<1x16x8xf32>
    %190 = arith.mulf %189, %188 : vector<1x16x8xf32>
    %cst_48 = arith.constant dense<0.000000e+00> : vector<1x8xf32>
    %191 = vector.multi_reduction <add>, %190, %cst_48 [1] : vector<1x16x8xf32> to vector<1x8xf32>
    %cst_49 = arith.constant 6.250000e-02 : f32
    %192 = vector.broadcast %cst_49 : f32 to vector<1x8xf32>
    %193 = arith.mulf %191, %192 : vector<1x8xf32>
    %194 = vector.extract_strided_slice %63 {offsets = [1, 0, 0], sizes = [1, 16, 8], strides = [1, 1, 1]} : vector<4x16x8xf32> to vector<1x16x8xf32>
    %195 = arith.mulf %194, %188 : vector<1x16x8xf32>
    %cst_50 = arith.constant dense<0.000000e+00> : vector<1x8xf32>
    %196 = vector.multi_reduction <add>, %195, %cst_50 [1] : vector<1x16x8xf32> to vector<1x8xf32>
    %cst_51 = arith.constant 6.250000e-02 : f32
    %197 = vector.broadcast %cst_51 : f32 to vector<1x8xf32>
    %198 = arith.mulf %196, %197 : vector<1x8xf32>
    %199 = vector.extract_strided_slice %63 {offsets = [2, 0, 0], sizes = [1, 16, 8], strides = [1, 1, 1]} : vector<4x16x8xf32> to vector<1x16x8xf32>
    %200 = arith.mulf %199, %188 : vector<1x16x8xf32>
    %cst_52 = arith.constant dense<0.000000e+00> : vector<1x8xf32>
    %201 = vector.multi_reduction <add>, %200, %cst_52 [1] : vector<1x16x8xf32> to vector<1x8xf32>
    %cst_53 = arith.constant 6.250000e-02 : f32
    %202 = vector.broadcast %cst_53 : f32 to vector<1x8xf32>
    %203 = arith.mulf %201, %202 : vector<1x8xf32>
    %204 = vector.extract_strided_slice %63 {offsets = [3, 0, 0], sizes = [1, 16, 8], strides = [1, 1, 1]} : vector<4x16x8xf32> to vector<1x16x8xf32>
    %205 = arith.mulf %204, %188 : vector<1x16x8xf32>
    %cst_54 = arith.constant dense<0.000000e+00> : vector<1x8xf32>
    %206 = vector.multi_reduction <add>, %205, %cst_54 [1] : vector<1x16x8xf32> to vector<1x8xf32>
    %cst_55 = arith.constant 6.250000e-02 : f32
    %207 = vector.broadcast %cst_55 : f32 to vector<1x8xf32>
    %208 = arith.mulf %206, %207 : vector<1x8xf32>
    %209 = vector.extract_strided_slice %143 {offsets = [0, 0, 0], sizes = [1, 16, 8], strides = [1, 1, 1]} : vector<8x16x8xf32> to vector<1x16x8xf32>
    %c1_56 = arith.constant 1 : index
    %c0_57 = arith.constant 0 : index
    %210 = memref.load %arg5[%c1_56, %c0_57] : memref<17x16xf32, #tpu.memory_space<smem>>
    %211 = vector.broadcast %210 : f32 to vector<1x16x8xf32>
    %212 = arith.mulf %209, %211 : vector<1x16x8xf32>
    %213 = vector.extract_strided_slice %143 {offsets = [1, 0, 0], sizes = [1, 16, 8], strides = [1, 1, 1]} : vector<8x16x8xf32> to vector<1x16x8xf32>
    %c1_58 = arith.constant 1 : index
    %c1_59 = arith.constant 1 : index
    %214 = memref.load %arg5[%c1_58, %c1_59] : memref<17x16xf32, #tpu.memory_space<smem>>
    %215 = vector.broadcast %214 : f32 to vector<1x16x8xf32>
    %216 = arith.mulf %213, %215 : vector<1x16x8xf32>
    %217 = arith.addf %212, %216 : vector<1x16x8xf32>
    %218 = vector.extract_strided_slice %143 {offsets = [2, 0, 0], sizes = [1, 16, 8], strides = [1, 1, 1]} : vector<8x16x8xf32> to vector<1x16x8xf32>
    %c1_60 = arith.constant 1 : index
    %c2_61 = arith.constant 2 : index
    %219 = memref.load %arg5[%c1_60, %c2_61] : memref<17x16xf32, #tpu.memory_space<smem>>
    %220 = vector.broadcast %219 : f32 to vector<1x16x8xf32>
    %221 = arith.mulf %218, %220 : vector<1x16x8xf32>
    %222 = arith.addf %217, %221 : vector<1x16x8xf32>
    %223 = vector.extract_strided_slice %143 {offsets = [3, 0, 0], sizes = [1, 16, 8], strides = [1, 1, 1]} : vector<8x16x8xf32> to vector<1x16x8xf32>
    %c1_62 = arith.constant 1 : index
    %c3_63 = arith.constant 3 : index
    %224 = memref.load %arg5[%c1_62, %c3_63] : memref<17x16xf32, #tpu.memory_space<smem>>
    %225 = vector.broadcast %224 : f32 to vector<1x16x8xf32>
    %226 = arith.mulf %223, %225 : vector<1x16x8xf32>
    %227 = arith.addf %222, %226 : vector<1x16x8xf32>
    %228 = vector.extract_strided_slice %143 {offsets = [4, 0, 0], sizes = [1, 16, 8], strides = [1, 1, 1]} : vector<8x16x8xf32> to vector<1x16x8xf32>
    %c1_64 = arith.constant 1 : index
    %c4_65 = arith.constant 4 : index
    %229 = memref.load %arg5[%c1_64, %c4_65] : memref<17x16xf32, #tpu.memory_space<smem>>
    %230 = vector.broadcast %229 : f32 to vector<1x16x8xf32>
    %231 = arith.mulf %228, %230 : vector<1x16x8xf32>
    %232 = arith.addf %227, %231 : vector<1x16x8xf32>
    %233 = vector.extract_strided_slice %143 {offsets = [5, 0, 0], sizes = [1, 16, 8], strides = [1, 1, 1]} : vector<8x16x8xf32> to vector<1x16x8xf32>
    %c1_66 = arith.constant 1 : index
    %c5_67 = arith.constant 5 : index
    %234 = memref.load %arg5[%c1_66, %c5_67] : memref<17x16xf32, #tpu.memory_space<smem>>
    %235 = vector.broadcast %234 : f32 to vector<1x16x8xf32>
    %236 = arith.mulf %233, %235 : vector<1x16x8xf32>
    %237 = arith.addf %232, %236 : vector<1x16x8xf32>
    %238 = vector.extract_strided_slice %143 {offsets = [6, 0, 0], sizes = [1, 16, 8], strides = [1, 1, 1]} : vector<8x16x8xf32> to vector<1x16x8xf32>
    %c1_68 = arith.constant 1 : index
    %c6_69 = arith.constant 6 : index
    %239 = memref.load %arg5[%c1_68, %c6_69] : memref<17x16xf32, #tpu.memory_space<smem>>
    %240 = vector.broadcast %239 : f32 to vector<1x16x8xf32>
    %241 = arith.mulf %238, %240 : vector<1x16x8xf32>
    %242 = arith.addf %237, %241 : vector<1x16x8xf32>
    %243 = vector.extract_strided_slice %143 {offsets = [7, 0, 0], sizes = [1, 16, 8], strides = [1, 1, 1]} : vector<8x16x8xf32> to vector<1x16x8xf32>
    %c1_70 = arith.constant 1 : index
    %c7_71 = arith.constant 7 : index
    %244 = memref.load %arg5[%c1_70, %c7_71] : memref<17x16xf32, #tpu.memory_space<smem>>
    %245 = vector.broadcast %244 : f32 to vector<1x16x8xf32>
    %246 = arith.mulf %243, %245 : vector<1x16x8xf32>
    %247 = arith.addf %242, %246 : vector<1x16x8xf32>
    %c1_72 = arith.constant 1 : index
    %c8_73 = arith.constant 8 : index
    %248 = memref.load %arg5[%c1_72, %c8_73] : memref<17x16xf32, #tpu.memory_space<smem>>
    %249 = vector.broadcast %248 : f32 to vector<1x16x8xf32>
    %250 = arith.addf %247, %249 : vector<1x16x8xf32>
    %251 = math.tanh %250 : vector<1x16x8xf32>
    %252 = vector.extract_strided_slice %143 {offsets = [1, 0, 0], sizes = [1, 16, 8], strides = [1, 1, 1]} : vector<8x16x8xf32> to vector<1x16x8xf32>
    %253 = arith.addf %251, %252 : vector<1x16x8xf32>
    %254 = vector.extract_strided_slice %63 {offsets = [0, 0, 0], sizes = [1, 16, 8], strides = [1, 1, 1]} : vector<4x16x8xf32> to vector<1x16x8xf32>
    %255 = arith.mulf %254, %253 : vector<1x16x8xf32>
    %cst_74 = arith.constant dense<0.000000e+00> : vector<1x8xf32>
    %256 = vector.multi_reduction <add>, %255, %cst_74 [1] : vector<1x16x8xf32> to vector<1x8xf32>
    %cst_75 = arith.constant 6.250000e-02 : f32
    %257 = vector.broadcast %cst_75 : f32 to vector<1x8xf32>
    %258 = arith.mulf %256, %257 : vector<1x8xf32>
    %259 = vector.extract_strided_slice %63 {offsets = [1, 0, 0], sizes = [1, 16, 8], strides = [1, 1, 1]} : vector<4x16x8xf32> to vector<1x16x8xf32>
    %260 = arith.mulf %259, %253 : vector<1x16x8xf32>
    %cst_76 = arith.constant dense<0.000000e+00> : vector<1x8xf32>
    %261 = vector.multi_reduction <add>, %260, %cst_76 [1] : vector<1x16x8xf32> to vector<1x8xf32>
    %cst_77 = arith.constant 6.250000e-02 : f32
    %262 = vector.broadcast %cst_77 : f32 to vector<1x8xf32>
    %263 = arith.mulf %261, %262 : vector<1x8xf32>
    %264 = vector.extract_strided_slice %63 {offsets = [2, 0, 0], sizes = [1, 16, 8], strides = [1, 1, 1]} : vector<4x16x8xf32> to vector<1x16x8xf32>
    %265 = arith.mulf %264, %253 : vector<1x16x8xf32>
    %cst_78 = arith.constant dense<0.000000e+00> : vector<1x8xf32>
    %266 = vector.multi_reduction <add>, %265, %cst_78 [1] : vector<1x16x8xf32> to vector<1x8xf32>
    %cst_79 = arith.constant 6.250000e-02 : f32
    %267 = vector.broadcast %cst_79 : f32 to vector<1x8xf32>
    %268 = arith.mulf %266, %267 : vector<1x8xf32>
    %269 = vector.extract_strided_slice %63 {offsets = [3, 0, 0], sizes = [1, 16, 8], strides = [1, 1, 1]} : vector<4x16x8xf32> to vector<1x16x8xf32>
    %270 = arith.mulf %269, %253 : vector<1x16x8xf32>
    %cst_80 = arith.constant dense<0.000000e+00> : vector<1x8xf32>
    %271 = vector.multi_reduction <add>, %270, %cst_80 [1] : vector<1x16x8xf32> to vector<1x8xf32>
    %cst_81 = arith.constant 6.250000e-02 : f32
    %272 = vector.broadcast %cst_81 : f32 to vector<1x8xf32>
    %273 = arith.mulf %271, %272 : vector<1x8xf32>
    %274 = vector.extract_strided_slice %143 {offsets = [0, 0, 0], sizes = [1, 16, 8], strides = [1, 1, 1]} : vector<8x16x8xf32> to vector<1x16x8xf32>
    %c2_82 = arith.constant 2 : index
    %c0_83 = arith.constant 0 : index
    %275 = memref.load %arg5[%c2_82, %c0_83] : memref<17x16xf32, #tpu.memory_space<smem>>
    %276 = vector.broadcast %275 : f32 to vector<1x16x8xf32>
    %277 = arith.mulf %274, %276 : vector<1x16x8xf32>
    %278 = vector.extract_strided_slice %143 {offsets = [1, 0, 0], sizes = [1, 16, 8], strides = [1, 1, 1]} : vector<8x16x8xf32> to vector<1x16x8xf32>
    %c2_84 = arith.constant 2 : index
    %c1_85 = arith.constant 1 : index
    %279 = memref.load %arg5[%c2_84, %c1_85] : memref<17x16xf32, #tpu.memory_space<smem>>
    %280 = vector.broadcast %279 : f32 to vector<1x16x8xf32>
    %281 = arith.mulf %278, %280 : vector<1x16x8xf32>
    %282 = arith.addf %277, %281 : vector<1x16x8xf32>
    %283 = vector.extract_strided_slice %143 {offsets = [2, 0, 0], sizes = [1, 16, 8], strides = [1, 1, 1]} : vector<8x16x8xf32> to vector<1x16x8xf32>
    %c2_86 = arith.constant 2 : index
    %c2_87 = arith.constant 2 : index
    %284 = memref.load %arg5[%c2_86, %c2_87] : memref<17x16xf32, #tpu.memory_space<smem>>
    %285 = vector.broadcast %284 : f32 to vector<1x16x8xf32>
    %286 = arith.mulf %283, %285 : vector<1x16x8xf32>
    %287 = arith.addf %282, %286 : vector<1x16x8xf32>
    %288 = vector.extract_strided_slice %143 {offsets = [3, 0, 0], sizes = [1, 16, 8], strides = [1, 1, 1]} : vector<8x16x8xf32> to vector<1x16x8xf32>
    %c2_88 = arith.constant 2 : index
    %c3_89 = arith.constant 3 : index
    %289 = memref.load %arg5[%c2_88, %c3_89] : memref<17x16xf32, #tpu.memory_space<smem>>
    %290 = vector.broadcast %289 : f32 to vector<1x16x8xf32>
    %291 = arith.mulf %288, %290 : vector<1x16x8xf32>
    %292 = arith.addf %287, %291 : vector<1x16x8xf32>
    %293 = vector.extract_strided_slice %143 {offsets = [4, 0, 0], sizes = [1, 16, 8], strides = [1, 1, 1]} : vector<8x16x8xf32> to vector<1x16x8xf32>
    %c2_90 = arith.constant 2 : index
    %c4_91 = arith.constant 4 : index
    %294 = memref.load %arg5[%c2_90, %c4_91] : memref<17x16xf32, #tpu.memory_space<smem>>
    %295 = vector.broadcast %294 : f32 to vector<1x16x8xf32>
    %296 = arith.mulf %293, %295 : vector<1x16x8xf32>
    %297 = arith.addf %292, %296 : vector<1x16x8xf32>
    %298 = vector.extract_strided_slice %143 {offsets = [5, 0, 0], sizes = [1, 16, 8], strides = [1, 1, 1]} : vector<8x16x8xf32> to vector<1x16x8xf32>
    %c2_92 = arith.constant 2 : index
    %c5_93 = arith.constant 5 : index
    %299 = memref.load %arg5[%c2_92, %c5_93] : memref<17x16xf32, #tpu.memory_space<smem>>
    %300 = vector.broadcast %299 : f32 to vector<1x16x8xf32>
    %301 = arith.mulf %298, %300 : vector<1x16x8xf32>
    %302 = arith.addf %297, %301 : vector<1x16x8xf32>
    %303 = vector.extract_strided_slice %143 {offsets = [6, 0, 0], sizes = [1, 16, 8], strides = [1, 1, 1]} : vector<8x16x8xf32> to vector<1x16x8xf32>
    %c2_94 = arith.constant 2 : index
    %c6_95 = arith.constant 6 : index
    %304 = memref.load %arg5[%c2_94, %c6_95] : memref<17x16xf32, #tpu.memory_space<smem>>
    %305 = vector.broadcast %304 : f32 to vector<1x16x8xf32>
    %306 = arith.mulf %303, %305 : vector<1x16x8xf32>
    %307 = arith.addf %302, %306 : vector<1x16x8xf32>
    %308 = vector.extract_strided_slice %143 {offsets = [7, 0, 0], sizes = [1, 16, 8], strides = [1, 1, 1]} : vector<8x16x8xf32> to vector<1x16x8xf32>
    %c2_96 = arith.constant 2 : index
    %c7_97 = arith.constant 7 : index
    %309 = memref.load %arg5[%c2_96, %c7_97] : memref<17x16xf32, #tpu.memory_space<smem>>
    %310 = vector.broadcast %309 : f32 to vector<1x16x8xf32>
    %311 = arith.mulf %308, %310 : vector<1x16x8xf32>
    %312 = arith.addf %307, %311 : vector<1x16x8xf32>
    %c2_98 = arith.constant 2 : index
    %c8_99 = arith.constant 8 : index
    %313 = memref.load %arg5[%c2_98, %c8_99] : memref<17x16xf32, #tpu.memory_space<smem>>
    %314 = vector.broadcast %313 : f32 to vector<1x16x8xf32>
    %315 = arith.addf %312, %314 : vector<1x16x8xf32>
    %316 = math.tanh %315 : vector<1x16x8xf32>
    %317 = vector.extract_strided_slice %143 {offsets = [2, 0, 0], sizes = [1, 16, 8], strides = [1, 1, 1]} : vector<8x16x8xf32> to vector<1x16x8xf32>
    %318 = arith.addf %316, %317 : vector<1x16x8xf32>
    %319 = vector.extract_strided_slice %63 {offsets = [0, 0, 0], sizes = [1, 16, 8], strides = [1, 1, 1]} : vector<4x16x8xf32> to vector<1x16x8xf32>
    %320 = arith.mulf %319, %318 : vector<1x16x8xf32>
    %cst_100 = arith.constant dense<0.000000e+00> : vector<1x8xf32>
    %321 = vector.multi_reduction <add>, %320, %cst_100 [1] : vector<1x16x8xf32> to vector<1x8xf32>
    %cst_101 = arith.constant 6.250000e-02 : f32
    %322 = vector.broadcast %cst_101 : f32 to vector<1x8xf32>
    %323 = arith.mulf %321, %322 : vector<1x8xf32>
    %324 = vector.extract_strided_slice %63 {offsets = [1, 0, 0], sizes = [1, 16, 8], strides = [1, 1, 1]} : vector<4x16x8xf32> to vector<1x16x8xf32>
    %325 = arith.mulf %324, %318 : vector<1x16x8xf32>
    %cst_102 = arith.constant dense<0.000000e+00> : vector<1x8xf32>
    %326 = vector.multi_reduction <add>, %325, %cst_102 [1] : vector<1x16x8xf32> to vector<1x8xf32>
    %cst_103 = arith.constant 6.250000e-02 : f32
    %327 = vector.broadcast %cst_103 : f32 to vector<1x8xf32>
    %328 = arith.mulf %326, %327 : vector<1x8xf32>
    %329 = vector.extract_strided_slice %63 {offsets = [2, 0, 0], sizes = [1, 16, 8], strides = [1, 1, 1]} : vector<4x16x8xf32> to vector<1x16x8xf32>
    %330 = arith.mulf %329, %318 : vector<1x16x8xf32>
    %cst_104 = arith.constant dense<0.000000e+00> : vector<1x8xf32>
    %331 = vector.multi_reduction <add>, %330, %cst_104 [1] : vector<1x16x8xf32> to vector<1x8xf32>
    %cst_105 = arith.constant 6.250000e-02 : f32
    %332 = vector.broadcast %cst_105 : f32 to vector<1x8xf32>
    %333 = arith.mulf %331, %332 : vector<1x8xf32>
    %334 = vector.extract_strided_slice %63 {offsets = [3, 0, 0], sizes = [1, 16, 8], strides = [1, 1, 1]} : vector<4x16x8xf32> to vector<1x16x8xf32>
    %335 = arith.mulf %334, %318 : vector<1x16x8xf32>
    %cst_106 = arith.constant dense<0.000000e+00> : vector<1x8xf32>
    %336 = vector.multi_reduction <add>, %335, %cst_106 [1] : vector<1x16x8xf32> to vector<1x8xf32>
    %cst_107 = arith.constant 6.250000e-02 : f32
    %337 = vector.broadcast %cst_107 : f32 to vector<1x8xf32>
    %338 = arith.mulf %336, %337 : vector<1x8xf32>
    %339 = vector.extract_strided_slice %143 {offsets = [0, 0, 0], sizes = [1, 16, 8], strides = [1, 1, 1]} : vector<8x16x8xf32> to vector<1x16x8xf32>
    %c3_108 = arith.constant 3 : index
    %c0_109 = arith.constant 0 : index
    %340 = memref.load %arg5[%c3_108, %c0_109] : memref<17x16xf32, #tpu.memory_space<smem>>
    %341 = vector.broadcast %340 : f32 to vector<1x16x8xf32>
    %342 = arith.mulf %339, %341 : vector<1x16x8xf32>
    %343 = vector.extract_strided_slice %143 {offsets = [1, 0, 0], sizes = [1, 16, 8], strides = [1, 1, 1]} : vector<8x16x8xf32> to vector<1x16x8xf32>
    %c3_110 = arith.constant 3 : index
    %c1_111 = arith.constant 1 : index
    %344 = memref.load %arg5[%c3_110, %c1_111] : memref<17x16xf32, #tpu.memory_space<smem>>
    %345 = vector.broadcast %344 : f32 to vector<1x16x8xf32>
    %346 = arith.mulf %343, %345 : vector<1x16x8xf32>
    %347 = arith.addf %342, %346 : vector<1x16x8xf32>
    %348 = vector.extract_strided_slice %143 {offsets = [2, 0, 0], sizes = [1, 16, 8], strides = [1, 1, 1]} : vector<8x16x8xf32> to vector<1x16x8xf32>
    %c3_112 = arith.constant 3 : index
    %c2_113 = arith.constant 2 : index
    %349 = memref.load %arg5[%c3_112, %c2_113] : memref<17x16xf32, #tpu.memory_space<smem>>
    %350 = vector.broadcast %349 : f32 to vector<1x16x8xf32>
    %351 = arith.mulf %348, %350 : vector<1x16x8xf32>
    %352 = arith.addf %347, %351 : vector<1x16x8xf32>
    %353 = vector.extract_strided_slice %143 {offsets = [3, 0, 0], sizes = [1, 16, 8], strides = [1, 1, 1]} : vector<8x16x8xf32> to vector<1x16x8xf32>
    %c3_114 = arith.constant 3 : index
    %c3_115 = arith.constant 3 : index
    %354 = memref.load %arg5[%c3_114, %c3_115] : memref<17x16xf32, #tpu.memory_space<smem>>
    %355 = vector.broadcast %354 : f32 to vector<1x16x8xf32>
    %356 = arith.mulf %353, %355 : vector<1x16x8xf32>
    %357 = arith.addf %352, %356 : vector<1x16x8xf32>
    %358 = vector.extract_strided_slice %143 {offsets = [4, 0, 0], sizes = [1, 16, 8], strides = [1, 1, 1]} : vector<8x16x8xf32> to vector<1x16x8xf32>
    %c3_116 = arith.constant 3 : index
    %c4_117 = arith.constant 4 : index
    %359 = memref.load %arg5[%c3_116, %c4_117] : memref<17x16xf32, #tpu.memory_space<smem>>
    %360 = vector.broadcast %359 : f32 to vector<1x16x8xf32>
    %361 = arith.mulf %358, %360 : vector<1x16x8xf32>
    %362 = arith.addf %357, %361 : vector<1x16x8xf32>
    %363 = vector.extract_strided_slice %143 {offsets = [5, 0, 0], sizes = [1, 16, 8], strides = [1, 1, 1]} : vector<8x16x8xf32> to vector<1x16x8xf32>
    %c3_118 = arith.constant 3 : index
    %c5_119 = arith.constant 5 : index
    %364 = memref.load %arg5[%c3_118, %c5_119] : memref<17x16xf32, #tpu.memory_space<smem>>
    %365 = vector.broadcast %364 : f32 to vector<1x16x8xf32>
    %366 = arith.mulf %363, %365 : vector<1x16x8xf32>
    %367 = arith.addf %362, %366 : vector<1x16x8xf32>
    %368 = vector.extract_strided_slice %143 {offsets = [6, 0, 0], sizes = [1, 16, 8], strides = [1, 1, 1]} : vector<8x16x8xf32> to vector<1x16x8xf32>
    %c3_120 = arith.constant 3 : index
    %c6_121 = arith.constant 6 : index
    %369 = memref.load %arg5[%c3_120, %c6_121] : memref<17x16xf32, #tpu.memory_space<smem>>
    %370 = vector.broadcast %369 : f32 to vector<1x16x8xf32>
    %371 = arith.mulf %368, %370 : vector<1x16x8xf32>
    %372 = arith.addf %367, %371 : vector<1x16x8xf32>
    %373 = vector.extract_strided_slice %143 {offsets = [7, 0, 0], sizes = [1, 16, 8], strides = [1, 1, 1]} : vector<8x16x8xf32> to vector<1x16x8xf32>
    %c3_122 = arith.constant 3 : index
    %c7_123 = arith.constant 7 : index
    %374 = memref.load %arg5[%c3_122, %c7_123] : memref<17x16xf32, #tpu.memory_space<smem>>
    %375 = vector.broadcast %374 : f32 to vector<1x16x8xf32>
    %376 = arith.mulf %373, %375 : vector<1x16x8xf32>
    %377 = arith.addf %372, %376 : vector<1x16x8xf32>
    %c3_124 = arith.constant 3 : index
    %c8_125 = arith.constant 8 : index
    %378 = memref.load %arg5[%c3_124, %c8_125] : memref<17x16xf32, #tpu.memory_space<smem>>
    %379 = vector.broadcast %378 : f32 to vector<1x16x8xf32>
    %380 = arith.addf %377, %379 : vector<1x16x8xf32>
    %381 = math.tanh %380 : vector<1x16x8xf32>
    %382 = vector.extract_strided_slice %143 {offsets = [3, 0, 0], sizes = [1, 16, 8], strides = [1, 1, 1]} : vector<8x16x8xf32> to vector<1x16x8xf32>
    %383 = arith.addf %381, %382 : vector<1x16x8xf32>
    %384 = vector.extract_strided_slice %63 {offsets = [0, 0, 0], sizes = [1, 16, 8], strides = [1, 1, 1]} : vector<4x16x8xf32> to vector<1x16x8xf32>
    %385 = arith.mulf %384, %383 : vector<1x16x8xf32>
    %cst_126 = arith.constant dense<0.000000e+00> : vector<1x8xf32>
    %386 = vector.multi_reduction <add>, %385, %cst_126 [1] : vector<1x16x8xf32> to vector<1x8xf32>
    %cst_127 = arith.constant 6.250000e-02 : f32
    %387 = vector.broadcast %cst_127 : f32 to vector<1x8xf32>
    %388 = arith.mulf %386, %387 : vector<1x8xf32>
    %389 = vector.extract_strided_slice %63 {offsets = [1, 0, 0], sizes = [1, 16, 8], strides = [1, 1, 1]} : vector<4x16x8xf32> to vector<1x16x8xf32>
    %390 = arith.mulf %389, %383 : vector<1x16x8xf32>
    %cst_128 = arith.constant dense<0.000000e+00> : vector<1x8xf32>
    %391 = vector.multi_reduction <add>, %390, %cst_128 [1] : vector<1x16x8xf32> to vector<1x8xf32>
    %cst_129 = arith.constant 6.250000e-02 : f32
    %392 = vector.broadcast %cst_129 : f32 to vector<1x8xf32>
    %393 = arith.mulf %391, %392 : vector<1x8xf32>
    %394 = vector.extract_strided_slice %63 {offsets = [2, 0, 0], sizes = [1, 16, 8], strides = [1, 1, 1]} : vector<4x16x8xf32> to vector<1x16x8xf32>
    %395 = arith.mulf %394, %383 : vector<1x16x8xf32>
    %cst_130 = arith.constant dense<0.000000e+00> : vector<1x8xf32>
    %396 = vector.multi_reduction <add>, %395, %cst_130 [1] : vector<1x16x8xf32> to vector<1x8xf32>
    %cst_131 = arith.constant 6.250000e-02 : f32
    %397 = vector.broadcast %cst_131 : f32 to vector<1x8xf32>
    %398 = arith.mulf %396, %397 : vector<1x8xf32>
    %399 = vector.extract_strided_slice %63 {offsets = [3, 0, 0], sizes = [1, 16, 8], strides = [1, 1, 1]} : vector<4x16x8xf32> to vector<1x16x8xf32>
    %400 = arith.mulf %399, %383 : vector<1x16x8xf32>
    %cst_132 = arith.constant dense<0.000000e+00> : vector<1x8xf32>
    %401 = vector.multi_reduction <add>, %400, %cst_132 [1] : vector<1x16x8xf32> to vector<1x8xf32>
    %cst_133 = arith.constant 6.250000e-02 : f32
    %402 = vector.broadcast %cst_133 : f32 to vector<1x8xf32>
    %403 = arith.mulf %401, %402 : vector<1x8xf32>
    %404 = vector.extract_strided_slice %143 {offsets = [0, 0, 0], sizes = [1, 16, 8], strides = [1, 1, 1]} : vector<8x16x8xf32> to vector<1x16x8xf32>
    %c4_134 = arith.constant 4 : index
    %c0_135 = arith.constant 0 : index
    %405 = memref.load %arg5[%c4_134, %c0_135] : memref<17x16xf32, #tpu.memory_space<smem>>
    %406 = vector.broadcast %405 : f32 to vector<1x16x8xf32>
    %407 = arith.mulf %404, %406 : vector<1x16x8xf32>
    %408 = vector.extract_strided_slice %143 {offsets = [1, 0, 0], sizes = [1, 16, 8], strides = [1, 1, 1]} : vector<8x16x8xf32> to vector<1x16x8xf32>
    %c4_136 = arith.constant 4 : index
    %c1_137 = arith.constant 1 : index
    %409 = memref.load %arg5[%c4_136, %c1_137] : memref<17x16xf32, #tpu.memory_space<smem>>
    %410 = vector.broadcast %409 : f32 to vector<1x16x8xf32>
    %411 = arith.mulf %408, %410 : vector<1x16x8xf32>
    %412 = arith.addf %407, %411 : vector<1x16x8xf32>
    %413 = vector.extract_strided_slice %143 {offsets = [2, 0, 0], sizes = [1, 16, 8], strides = [1, 1, 1]} : vector<8x16x8xf32> to vector<1x16x8xf32>
    %c4_138 = arith.constant 4 : index
    %c2_139 = arith.constant 2 : index
    %414 = memref.load %arg5[%c4_138, %c2_139] : memref<17x16xf32, #tpu.memory_space<smem>>
    %415 = vector.broadcast %414 : f32 to vector<1x16x8xf32>
    %416 = arith.mulf %413, %415 : vector<1x16x8xf32>
    %417 = arith.addf %412, %416 : vector<1x16x8xf32>
    %418 = vector.extract_strided_slice %143 {offsets = [3, 0, 0], sizes = [1, 16, 8], strides = [1, 1, 1]} : vector<8x16x8xf32> to vector<1x16x8xf32>
    %c4_140 = arith.constant 4 : index
    %c3_141 = arith.constant 3 : index
    %419 = memref.load %arg5[%c4_140, %c3_141] : memref<17x16xf32, #tpu.memory_space<smem>>
    %420 = vector.broadcast %419 : f32 to vector<1x16x8xf32>
    %421 = arith.mulf %418, %420 : vector<1x16x8xf32>
    %422 = arith.addf %417, %421 : vector<1x16x8xf32>
    %423 = vector.extract_strided_slice %143 {offsets = [4, 0, 0], sizes = [1, 16, 8], strides = [1, 1, 1]} : vector<8x16x8xf32> to vector<1x16x8xf32>
    %c4_142 = arith.constant 4 : index
    %c4_143 = arith.constant 4 : index
    %424 = memref.load %arg5[%c4_142, %c4_143] : memref<17x16xf32, #tpu.memory_space<smem>>
    %425 = vector.broadcast %424 : f32 to vector<1x16x8xf32>
    %426 = arith.mulf %423, %425 : vector<1x16x8xf32>
    %427 = arith.addf %422, %426 : vector<1x16x8xf32>
    %428 = vector.extract_strided_slice %143 {offsets = [5, 0, 0], sizes = [1, 16, 8], strides = [1, 1, 1]} : vector<8x16x8xf32> to vector<1x16x8xf32>
    %c4_144 = arith.constant 4 : index
    %c5_145 = arith.constant 5 : index
    %429 = memref.load %arg5[%c4_144, %c5_145] : memref<17x16xf32, #tpu.memory_space<smem>>
    %430 = vector.broadcast %429 : f32 to vector<1x16x8xf32>
    %431 = arith.mulf %428, %430 : vector<1x16x8xf32>
    %432 = arith.addf %427, %431 : vector<1x16x8xf32>
    %433 = vector.extract_strided_slice %143 {offsets = [6, 0, 0], sizes = [1, 16, 8], strides = [1, 1, 1]} : vector<8x16x8xf32> to vector<1x16x8xf32>
    %c4_146 = arith.constant 4 : index
    %c6_147 = arith.constant 6 : index
    %434 = memref.load %arg5[%c4_146, %c6_147] : memref<17x16xf32, #tpu.memory_space<smem>>
    %435 = vector.broadcast %434 : f32 to vector<1x16x8xf32>
    %436 = arith.mulf %433, %435 : vector<1x16x8xf32>
    %437 = arith.addf %432, %436 : vector<1x16x8xf32>
    %438 = vector.extract_strided_slice %143 {offsets = [7, 0, 0], sizes = [1, 16, 8], strides = [1, 1, 1]} : vector<8x16x8xf32> to vector<1x16x8xf32>
    %c4_148 = arith.constant 4 : index
    %c7_149 = arith.constant 7 : index
    %439 = memref.load %arg5[%c4_148, %c7_149] : memref<17x16xf32, #tpu.memory_space<smem>>
    %440 = vector.broadcast %439 : f32 to vector<1x16x8xf32>
    %441 = arith.mulf %438, %440 : vector<1x16x8xf32>
    %442 = arith.addf %437, %441 : vector<1x16x8xf32>
    %c4_150 = arith.constant 4 : index
    %c8_151 = arith.constant 8 : index
    %443 = memref.load %arg5[%c4_150, %c8_151] : memref<17x16xf32, #tpu.memory_space<smem>>
    %444 = vector.broadcast %443 : f32 to vector<1x16x8xf32>
    %445 = arith.addf %442, %444 : vector<1x16x8xf32>
    %446 = math.tanh %445 : vector<1x16x8xf32>
    %447 = vector.extract_strided_slice %143 {offsets = [4, 0, 0], sizes = [1, 16, 8], strides = [1, 1, 1]} : vector<8x16x8xf32> to vector<1x16x8xf32>
    %448 = arith.addf %446, %447 : vector<1x16x8xf32>
    %449 = vector.extract_strided_slice %63 {offsets = [0, 0, 0], sizes = [1, 16, 8], strides = [1, 1, 1]} : vector<4x16x8xf32> to vector<1x16x8xf32>
    %450 = arith.mulf %449, %448 : vector<1x16x8xf32>
    %cst_152 = arith.constant dense<0.000000e+00> : vector<1x8xf32>
    %451 = vector.multi_reduction <add>, %450, %cst_152 [1] : vector<1x16x8xf32> to vector<1x8xf32>
    %cst_153 = arith.constant 6.250000e-02 : f32
    %452 = vector.broadcast %cst_153 : f32 to vector<1x8xf32>
    %453 = arith.mulf %451, %452 : vector<1x8xf32>
    %454 = vector.extract_strided_slice %63 {offsets = [1, 0, 0], sizes = [1, 16, 8], strides = [1, 1, 1]} : vector<4x16x8xf32> to vector<1x16x8xf32>
    %455 = arith.mulf %454, %448 : vector<1x16x8xf32>
    %cst_154 = arith.constant dense<0.000000e+00> : vector<1x8xf32>
    %456 = vector.multi_reduction <add>, %455, %cst_154 [1] : vector<1x16x8xf32> to vector<1x8xf32>
    %cst_155 = arith.constant 6.250000e-02 : f32
    %457 = vector.broadcast %cst_155 : f32 to vector<1x8xf32>
    %458 = arith.mulf %456, %457 : vector<1x8xf32>
    %459 = vector.extract_strided_slice %63 {offsets = [2, 0, 0], sizes = [1, 16, 8], strides = [1, 1, 1]} : vector<4x16x8xf32> to vector<1x16x8xf32>
    %460 = arith.mulf %459, %448 : vector<1x16x8xf32>
    %cst_156 = arith.constant dense<0.000000e+00> : vector<1x8xf32>
    %461 = vector.multi_reduction <add>, %460, %cst_156 [1] : vector<1x16x8xf32> to vector<1x8xf32>
    %cst_157 = arith.constant 6.250000e-02 : f32
    %462 = vector.broadcast %cst_157 : f32 to vector<1x8xf32>
    %463 = arith.mulf %461, %462 : vector<1x8xf32>
    %464 = vector.extract_strided_slice %63 {offsets = [3, 0, 0], sizes = [1, 16, 8], strides = [1, 1, 1]} : vector<4x16x8xf32> to vector<1x16x8xf32>
    %465 = arith.mulf %464, %448 : vector<1x16x8xf32>
    %cst_158 = arith.constant dense<0.000000e+00> : vector<1x8xf32>
    %466 = vector.multi_reduction <add>, %465, %cst_158 [1] : vector<1x16x8xf32> to vector<1x8xf32>
    %cst_159 = arith.constant 6.250000e-02 : f32
    %467 = vector.broadcast %cst_159 : f32 to vector<1x8xf32>
    %468 = arith.mulf %466, %467 : vector<1x8xf32>
    %469 = vector.extract_strided_slice %143 {offsets = [0, 0, 0], sizes = [1, 16, 8], strides = [1, 1, 1]} : vector<8x16x8xf32> to vector<1x16x8xf32>
    %c5_160 = arith.constant 5 : index
    %c0_161 = arith.constant 0 : index
    %470 = memref.load %arg5[%c5_160, %c0_161] : memref<17x16xf32, #tpu.memory_space<smem>>
    %471 = vector.broadcast %470 : f32 to vector<1x16x8xf32>
    %472 = arith.mulf %469, %471 : vector<1x16x8xf32>
    %473 = vector.extract_strided_slice %143 {offsets = [1, 0, 0], sizes = [1, 16, 8], strides = [1, 1, 1]} : vector<8x16x8xf32> to vector<1x16x8xf32>
    %c5_162 = arith.constant 5 : index
    %c1_163 = arith.constant 1 : index
    %474 = memref.load %arg5[%c5_162, %c1_163] : memref<17x16xf32, #tpu.memory_space<smem>>
    %475 = vector.broadcast %474 : f32 to vector<1x16x8xf32>
    %476 = arith.mulf %473, %475 : vector<1x16x8xf32>
    %477 = arith.addf %472, %476 : vector<1x16x8xf32>
    %478 = vector.extract_strided_slice %143 {offsets = [2, 0, 0], sizes = [1, 16, 8], strides = [1, 1, 1]} : vector<8x16x8xf32> to vector<1x16x8xf32>
    %c5_164 = arith.constant 5 : index
    %c2_165 = arith.constant 2 : index
    %479 = memref.load %arg5[%c5_164, %c2_165] : memref<17x16xf32, #tpu.memory_space<smem>>
    %480 = vector.broadcast %479 : f32 to vector<1x16x8xf32>
    %481 = arith.mulf %478, %480 : vector<1x16x8xf32>
    %482 = arith.addf %477, %481 : vector<1x16x8xf32>
    %483 = vector.extract_strided_slice %143 {offsets = [3, 0, 0], sizes = [1, 16, 8], strides = [1, 1, 1]} : vector<8x16x8xf32> to vector<1x16x8xf32>
    %c5_166 = arith.constant 5 : index
    %c3_167 = arith.constant 3 : index
    %484 = memref.load %arg5[%c5_166, %c3_167] : memref<17x16xf32, #tpu.memory_space<smem>>
    %485 = vector.broadcast %484 : f32 to vector<1x16x8xf32>
    %486 = arith.mulf %483, %485 : vector<1x16x8xf32>
    %487 = arith.addf %482, %486 : vector<1x16x8xf32>
    %488 = vector.extract_strided_slice %143 {offsets = [4, 0, 0], sizes = [1, 16, 8], strides = [1, 1, 1]} : vector<8x16x8xf32> to vector<1x16x8xf32>
    %c5_168 = arith.constant 5 : index
    %c4_169 = arith.constant 4 : index
    %489 = memref.load %arg5[%c5_168, %c4_169] : memref<17x16xf32, #tpu.memory_space<smem>>
    %490 = vector.broadcast %489 : f32 to vector<1x16x8xf32>
    %491 = arith.mulf %488, %490 : vector<1x16x8xf32>
    %492 = arith.addf %487, %491 : vector<1x16x8xf32>
    %493 = vector.extract_strided_slice %143 {offsets = [5, 0, 0], sizes = [1, 16, 8], strides = [1, 1, 1]} : vector<8x16x8xf32> to vector<1x16x8xf32>
    %c5_170 = arith.constant 5 : index
    %c5_171 = arith.constant 5 : index
    %494 = memref.load %arg5[%c5_170, %c5_171] : memref<17x16xf32, #tpu.memory_space<smem>>
    %495 = vector.broadcast %494 : f32 to vector<1x16x8xf32>
    %496 = arith.mulf %493, %495 : vector<1x16x8xf32>
    %497 = arith.addf %492, %496 : vector<1x16x8xf32>
    %498 = vector.extract_strided_slice %143 {offsets = [6, 0, 0], sizes = [1, 16, 8], strides = [1, 1, 1]} : vector<8x16x8xf32> to vector<1x16x8xf32>
    %c5_172 = arith.constant 5 : index
    %c6_173 = arith.constant 6 : index
    %499 = memref.load %arg5[%c5_172, %c6_173] : memref<17x16xf32, #tpu.memory_space<smem>>
    %500 = vector.broadcast %499 : f32 to vector<1x16x8xf32>
    %501 = arith.mulf %498, %500 : vector<1x16x8xf32>
    %502 = arith.addf %497, %501 : vector<1x16x8xf32>
    %503 = vector.extract_strided_slice %143 {offsets = [7, 0, 0], sizes = [1, 16, 8], strides = [1, 1, 1]} : vector<8x16x8xf32> to vector<1x16x8xf32>
    %c5_174 = arith.constant 5 : index
    %c7_175 = arith.constant 7 : index
    %504 = memref.load %arg5[%c5_174, %c7_175] : memref<17x16xf32, #tpu.memory_space<smem>>
    %505 = vector.broadcast %504 : f32 to vector<1x16x8xf32>
    %506 = arith.mulf %503, %505 : vector<1x16x8xf32>
    %507 = arith.addf %502, %506 : vector<1x16x8xf32>
    %c5_176 = arith.constant 5 : index
    %c8_177 = arith.constant 8 : index
    %508 = memref.load %arg5[%c5_176, %c8_177] : memref<17x16xf32, #tpu.memory_space<smem>>
    %509 = vector.broadcast %508 : f32 to vector<1x16x8xf32>
    %510 = arith.addf %507, %509 : vector<1x16x8xf32>
    %511 = math.tanh %510 : vector<1x16x8xf32>
    %512 = vector.extract_strided_slice %143 {offsets = [5, 0, 0], sizes = [1, 16, 8], strides = [1, 1, 1]} : vector<8x16x8xf32> to vector<1x16x8xf32>
    %513 = arith.addf %511, %512 : vector<1x16x8xf32>
    %514 = vector.extract_strided_slice %63 {offsets = [0, 0, 0], sizes = [1, 16, 8], strides = [1, 1, 1]} : vector<4x16x8xf32> to vector<1x16x8xf32>
    %515 = arith.mulf %514, %513 : vector<1x16x8xf32>
    %cst_178 = arith.constant dense<0.000000e+00> : vector<1x8xf32>
    %516 = vector.multi_reduction <add>, %515, %cst_178 [1] : vector<1x16x8xf32> to vector<1x8xf32>
    %cst_179 = arith.constant 6.250000e-02 : f32
    %517 = vector.broadcast %cst_179 : f32 to vector<1x8xf32>
    %518 = arith.mulf %516, %517 : vector<1x8xf32>
    %519 = vector.extract_strided_slice %63 {offsets = [1, 0, 0], sizes = [1, 16, 8], strides = [1, 1, 1]} : vector<4x16x8xf32> to vector<1x16x8xf32>
    %520 = arith.mulf %519, %513 : vector<1x16x8xf32>
    %cst_180 = arith.constant dense<0.000000e+00> : vector<1x8xf32>
    %521 = vector.multi_reduction <add>, %520, %cst_180 [1] : vector<1x16x8xf32> to vector<1x8xf32>
    %cst_181 = arith.constant 6.250000e-02 : f32
    %522 = vector.broadcast %cst_181 : f32 to vector<1x8xf32>
    %523 = arith.mulf %521, %522 : vector<1x8xf32>
    %524 = vector.extract_strided_slice %63 {offsets = [2, 0, 0], sizes = [1, 16, 8], strides = [1, 1, 1]} : vector<4x16x8xf32> to vector<1x16x8xf32>
    %525 = arith.mulf %524, %513 : vector<1x16x8xf32>
    %cst_182 = arith.constant dense<0.000000e+00> : vector<1x8xf32>
    %526 = vector.multi_reduction <add>, %525, %cst_182 [1] : vector<1x16x8xf32> to vector<1x8xf32>
    %cst_183 = arith.constant 6.250000e-02 : f32
    %527 = vector.broadcast %cst_183 : f32 to vector<1x8xf32>
    %528 = arith.mulf %526, %527 : vector<1x8xf32>
    %529 = vector.extract_strided_slice %63 {offsets = [3, 0, 0], sizes = [1, 16, 8], strides = [1, 1, 1]} : vector<4x16x8xf32> to vector<1x16x8xf32>
    %530 = arith.mulf %529, %513 : vector<1x16x8xf32>
    %cst_184 = arith.constant dense<0.000000e+00> : vector<1x8xf32>
    %531 = vector.multi_reduction <add>, %530, %cst_184 [1] : vector<1x16x8xf32> to vector<1x8xf32>
    %cst_185 = arith.constant 6.250000e-02 : f32
    %532 = vector.broadcast %cst_185 : f32 to vector<1x8xf32>
    %533 = arith.mulf %531, %532 : vector<1x8xf32>
    %534 = vector.extract_strided_slice %143 {offsets = [0, 0, 0], sizes = [1, 16, 8], strides = [1, 1, 1]} : vector<8x16x8xf32> to vector<1x16x8xf32>
    %c6_186 = arith.constant 6 : index
    %c0_187 = arith.constant 0 : index
    %535 = memref.load %arg5[%c6_186, %c0_187] : memref<17x16xf32, #tpu.memory_space<smem>>
    %536 = vector.broadcast %535 : f32 to vector<1x16x8xf32>
    %537 = arith.mulf %534, %536 : vector<1x16x8xf32>
    %538 = vector.extract_strided_slice %143 {offsets = [1, 0, 0], sizes = [1, 16, 8], strides = [1, 1, 1]} : vector<8x16x8xf32> to vector<1x16x8xf32>
    %c6_188 = arith.constant 6 : index
    %c1_189 = arith.constant 1 : index
    %539 = memref.load %arg5[%c6_188, %c1_189] : memref<17x16xf32, #tpu.memory_space<smem>>
    %540 = vector.broadcast %539 : f32 to vector<1x16x8xf32>
    %541 = arith.mulf %538, %540 : vector<1x16x8xf32>
    %542 = arith.addf %537, %541 : vector<1x16x8xf32>
    %543 = vector.extract_strided_slice %143 {offsets = [2, 0, 0], sizes = [1, 16, 8], strides = [1, 1, 1]} : vector<8x16x8xf32> to vector<1x16x8xf32>
    %c6_190 = arith.constant 6 : index
    %c2_191 = arith.constant 2 : index
    %544 = memref.load %arg5[%c6_190, %c2_191] : memref<17x16xf32, #tpu.memory_space<smem>>
    %545 = vector.broadcast %544 : f32 to vector<1x16x8xf32>
    %546 = arith.mulf %543, %545 : vector<1x16x8xf32>
    %547 = arith.addf %542, %546 : vector<1x16x8xf32>
    %548 = vector.extract_strided_slice %143 {offsets = [3, 0, 0], sizes = [1, 16, 8], strides = [1, 1, 1]} : vector<8x16x8xf32> to vector<1x16x8xf32>
    %c6_192 = arith.constant 6 : index
    %c3_193 = arith.constant 3 : index
    %549 = memref.load %arg5[%c6_192, %c3_193] : memref<17x16xf32, #tpu.memory_space<smem>>
    %550 = vector.broadcast %549 : f32 to vector<1x16x8xf32>
    %551 = arith.mulf %548, %550 : vector<1x16x8xf32>
    %552 = arith.addf %547, %551 : vector<1x16x8xf32>
    %553 = vector.extract_strided_slice %143 {offsets = [4, 0, 0], sizes = [1, 16, 8], strides = [1, 1, 1]} : vector<8x16x8xf32> to vector<1x16x8xf32>
    %c6_194 = arith.constant 6 : index
    %c4_195 = arith.constant 4 : index
    %554 = memref.load %arg5[%c6_194, %c4_195] : memref<17x16xf32, #tpu.memory_space<smem>>
    %555 = vector.broadcast %554 : f32 to vector<1x16x8xf32>
    %556 = arith.mulf %553, %555 : vector<1x16x8xf32>
    %557 = arith.addf %552, %556 : vector<1x16x8xf32>
    %558 = vector.extract_strided_slice %143 {offsets = [5, 0, 0], sizes = [1, 16, 8], strides = [1, 1, 1]} : vector<8x16x8xf32> to vector<1x16x8xf32>
    %c6_196 = arith.constant 6 : index
    %c5_197 = arith.constant 5 : index
    %559 = memref.load %arg5[%c6_196, %c5_197] : memref<17x16xf32, #tpu.memory_space<smem>>
    %560 = vector.broadcast %559 : f32 to vector<1x16x8xf32>
    %561 = arith.mulf %558, %560 : vector<1x16x8xf32>
    %562 = arith.addf %557, %561 : vector<1x16x8xf32>
    %563 = vector.extract_strided_slice %143 {offsets = [6, 0, 0], sizes = [1, 16, 8], strides = [1, 1, 1]} : vector<8x16x8xf32> to vector<1x16x8xf32>
    %c6_198 = arith.constant 6 : index
    %c6_199 = arith.constant 6 : index
    %564 = memref.load %arg5[%c6_198, %c6_199] : memref<17x16xf32, #tpu.memory_space<smem>>
    %565 = vector.broadcast %564 : f32 to vector<1x16x8xf32>
    %566 = arith.mulf %563, %565 : vector<1x16x8xf32>
    %567 = arith.addf %562, %566 : vector<1x16x8xf32>
    %568 = vector.extract_strided_slice %143 {offsets = [7, 0, 0], sizes = [1, 16, 8], strides = [1, 1, 1]} : vector<8x16x8xf32> to vector<1x16x8xf32>
    %c6_200 = arith.constant 6 : index
    %c7_201 = arith.constant 7 : index
    %569 = memref.load %arg5[%c6_200, %c7_201] : memref<17x16xf32, #tpu.memory_space<smem>>
    %570 = vector.broadcast %569 : f32 to vector<1x16x8xf32>
    %571 = arith.mulf %568, %570 : vector<1x16x8xf32>
    %572 = arith.addf %567, %571 : vector<1x16x8xf32>
    %c6_202 = arith.constant 6 : index
    %c8_203 = arith.constant 8 : index
    %573 = memref.load %arg5[%c6_202, %c8_203] : memref<17x16xf32, #tpu.memory_space<smem>>
    %574 = vector.broadcast %573 : f32 to vector<1x16x8xf32>
    %575 = arith.addf %572, %574 : vector<1x16x8xf32>
    %576 = math.tanh %575 : vector<1x16x8xf32>
    %577 = vector.extract_strided_slice %143 {offsets = [6, 0, 0], sizes = [1, 16, 8], strides = [1, 1, 1]} : vector<8x16x8xf32> to vector<1x16x8xf32>
    %578 = arith.addf %576, %577 : vector<1x16x8xf32>
    %579 = vector.extract_strided_slice %63 {offsets = [0, 0, 0], sizes = [1, 16, 8], strides = [1, 1, 1]} : vector<4x16x8xf32> to vector<1x16x8xf32>
    %580 = arith.mulf %579, %578 : vector<1x16x8xf32>
    %cst_204 = arith.constant dense<0.000000e+00> : vector<1x8xf32>
    %581 = vector.multi_reduction <add>, %580, %cst_204 [1] : vector<1x16x8xf32> to vector<1x8xf32>
    %cst_205 = arith.constant 6.250000e-02 : f32
    %582 = vector.broadcast %cst_205 : f32 to vector<1x8xf32>
    %583 = arith.mulf %581, %582 : vector<1x8xf32>
    %584 = vector.extract_strided_slice %63 {offsets = [1, 0, 0], sizes = [1, 16, 8], strides = [1, 1, 1]} : vector<4x16x8xf32> to vector<1x16x8xf32>
    %585 = arith.mulf %584, %578 : vector<1x16x8xf32>
    %cst_206 = arith.constant dense<0.000000e+00> : vector<1x8xf32>
    %586 = vector.multi_reduction <add>, %585, %cst_206 [1] : vector<1x16x8xf32> to vector<1x8xf32>
    %cst_207 = arith.constant 6.250000e-02 : f32
    %587 = vector.broadcast %cst_207 : f32 to vector<1x8xf32>
    %588 = arith.mulf %586, %587 : vector<1x8xf32>
    %589 = vector.extract_strided_slice %63 {offsets = [2, 0, 0], sizes = [1, 16, 8], strides = [1, 1, 1]} : vector<4x16x8xf32> to vector<1x16x8xf32>
    %590 = arith.mulf %589, %578 : vector<1x16x8xf32>
    %cst_208 = arith.constant dense<0.000000e+00> : vector<1x8xf32>
    %591 = vector.multi_reduction <add>, %590, %cst_208 [1] : vector<1x16x8xf32> to vector<1x8xf32>
    %cst_209 = arith.constant 6.250000e-02 : f32
    %592 = vector.broadcast %cst_209 : f32 to vector<1x8xf32>
    %593 = arith.mulf %591, %592 : vector<1x8xf32>
    %594 = vector.extract_strided_slice %63 {offsets = [3, 0, 0], sizes = [1, 16, 8], strides = [1, 1, 1]} : vector<4x16x8xf32> to vector<1x16x8xf32>
    %595 = arith.mulf %594, %578 : vector<1x16x8xf32>
    %cst_210 = arith.constant dense<0.000000e+00> : vector<1x8xf32>
    %596 = vector.multi_reduction <add>, %595, %cst_210 [1] : vector<1x16x8xf32> to vector<1x8xf32>
    %cst_211 = arith.constant 6.250000e-02 : f32
    %597 = vector.broadcast %cst_211 : f32 to vector<1x8xf32>
    %598 = arith.mulf %596, %597 : vector<1x8xf32>
    %599 = vector.extract_strided_slice %143 {offsets = [0, 0, 0], sizes = [1, 16, 8], strides = [1, 1, 1]} : vector<8x16x8xf32> to vector<1x16x8xf32>
    %c7_212 = arith.constant 7 : index
    %c0_213 = arith.constant 0 : index
    %600 = memref.load %arg5[%c7_212, %c0_213] : memref<17x16xf32, #tpu.memory_space<smem>>
    %601 = vector.broadcast %600 : f32 to vector<1x16x8xf32>
    %602 = arith.mulf %599, %601 : vector<1x16x8xf32>
    %603 = vector.extract_strided_slice %143 {offsets = [1, 0, 0], sizes = [1, 16, 8], strides = [1, 1, 1]} : vector<8x16x8xf32> to vector<1x16x8xf32>
    %c7_214 = arith.constant 7 : index
    %c1_215 = arith.constant 1 : index
    %604 = memref.load %arg5[%c7_214, %c1_215] : memref<17x16xf32, #tpu.memory_space<smem>>
    %605 = vector.broadcast %604 : f32 to vector<1x16x8xf32>
    %606 = arith.mulf %603, %605 : vector<1x16x8xf32>
    %607 = arith.addf %602, %606 : vector<1x16x8xf32>
    %608 = vector.extract_strided_slice %143 {offsets = [2, 0, 0], sizes = [1, 16, 8], strides = [1, 1, 1]} : vector<8x16x8xf32> to vector<1x16x8xf32>
    %c7_216 = arith.constant 7 : index
    %c2_217 = arith.constant 2 : index
    %609 = memref.load %arg5[%c7_216, %c2_217] : memref<17x16xf32, #tpu.memory_space<smem>>
    %610 = vector.broadcast %609 : f32 to vector<1x16x8xf32>
    %611 = arith.mulf %608, %610 : vector<1x16x8xf32>
    %612 = arith.addf %607, %611 : vector<1x16x8xf32>
    %613 = vector.extract_strided_slice %143 {offsets = [3, 0, 0], sizes = [1, 16, 8], strides = [1, 1, 1]} : vector<8x16x8xf32> to vector<1x16x8xf32>
    %c7_218 = arith.constant 7 : index
    %c3_219 = arith.constant 3 : index
    %614 = memref.load %arg5[%c7_218, %c3_219] : memref<17x16xf32, #tpu.memory_space<smem>>
    %615 = vector.broadcast %614 : f32 to vector<1x16x8xf32>
    %616 = arith.mulf %613, %615 : vector<1x16x8xf32>
    %617 = arith.addf %612, %616 : vector<1x16x8xf32>
    %618 = vector.extract_strided_slice %143 {offsets = [4, 0, 0], sizes = [1, 16, 8], strides = [1, 1, 1]} : vector<8x16x8xf32> to vector<1x16x8xf32>
    %c7_220 = arith.constant 7 : index
    %c4_221 = arith.constant 4 : index
    %619 = memref.load %arg5[%c7_220, %c4_221] : memref<17x16xf32, #tpu.memory_space<smem>>
    %620 = vector.broadcast %619 : f32 to vector<1x16x8xf32>
    %621 = arith.mulf %618, %620 : vector<1x16x8xf32>
    %622 = arith.addf %617, %621 : vector<1x16x8xf32>
    %623 = vector.extract_strided_slice %143 {offsets = [5, 0, 0], sizes = [1, 16, 8], strides = [1, 1, 1]} : vector<8x16x8xf32> to vector<1x16x8xf32>
    %c7_222 = arith.constant 7 : index
    %c5_223 = arith.constant 5 : index
    %624 = memref.load %arg5[%c7_222, %c5_223] : memref<17x16xf32, #tpu.memory_space<smem>>
    %625 = vector.broadcast %624 : f32 to vector<1x16x8xf32>
    %626 = arith.mulf %623, %625 : vector<1x16x8xf32>
    %627 = arith.addf %622, %626 : vector<1x16x8xf32>
    %628 = vector.extract_strided_slice %143 {offsets = [6, 0, 0], sizes = [1, 16, 8], strides = [1, 1, 1]} : vector<8x16x8xf32> to vector<1x16x8xf32>
    %c7_224 = arith.constant 7 : index
    %c6_225 = arith.constant 6 : index
    %629 = memref.load %arg5[%c7_224, %c6_225] : memref<17x16xf32, #tpu.memory_space<smem>>
    %630 = vector.broadcast %629 : f32 to vector<1x16x8xf32>
    %631 = arith.mulf %628, %630 : vector<1x16x8xf32>
    %632 = arith.addf %627, %631 : vector<1x16x8xf32>
    %633 = vector.extract_strided_slice %143 {offsets = [7, 0, 0], sizes = [1, 16, 8], strides = [1, 1, 1]} : vector<8x16x8xf32> to vector<1x16x8xf32>
    %c7_226 = arith.constant 7 : index
    %c7_227 = arith.constant 7 : index
    %634 = memref.load %arg5[%c7_226, %c7_227] : memref<17x16xf32, #tpu.memory_space<smem>>
    %635 = vector.broadcast %634 : f32 to vector<1x16x8xf32>
    %636 = arith.mulf %633, %635 : vector<1x16x8xf32>
    %637 = arith.addf %632, %636 : vector<1x16x8xf32>
    %c7_228 = arith.constant 7 : index
    %c8_229 = arith.constant 8 : index
    %638 = memref.load %arg5[%c7_228, %c8_229] : memref<17x16xf32, #tpu.memory_space<smem>>
    %639 = vector.broadcast %638 : f32 to vector<1x16x8xf32>
    %640 = arith.addf %637, %639 : vector<1x16x8xf32>
    %641 = math.tanh %640 : vector<1x16x8xf32>
    %642 = vector.extract_strided_slice %143 {offsets = [7, 0, 0], sizes = [1, 16, 8], strides = [1, 1, 1]} : vector<8x16x8xf32> to vector<1x16x8xf32>
    %643 = arith.addf %641, %642 : vector<1x16x8xf32>
    %644 = vector.extract_strided_slice %63 {offsets = [0, 0, 0], sizes = [1, 16, 8], strides = [1, 1, 1]} : vector<4x16x8xf32> to vector<1x16x8xf32>
    %645 = arith.mulf %644, %643 : vector<1x16x8xf32>
    %cst_230 = arith.constant dense<0.000000e+00> : vector<1x8xf32>
    %646 = vector.multi_reduction <add>, %645, %cst_230 [1] : vector<1x16x8xf32> to vector<1x8xf32>
    %cst_231 = arith.constant 6.250000e-02 : f32
    %647 = vector.broadcast %cst_231 : f32 to vector<1x8xf32>
    %648 = arith.mulf %646, %647 : vector<1x8xf32>
    %649 = vector.extract_strided_slice %63 {offsets = [1, 0, 0], sizes = [1, 16, 8], strides = [1, 1, 1]} : vector<4x16x8xf32> to vector<1x16x8xf32>
    %650 = arith.mulf %649, %643 : vector<1x16x8xf32>
    %cst_232 = arith.constant dense<0.000000e+00> : vector<1x8xf32>
    %651 = vector.multi_reduction <add>, %650, %cst_232 [1] : vector<1x16x8xf32> to vector<1x8xf32>
    %cst_233 = arith.constant 6.250000e-02 : f32
    %652 = vector.broadcast %cst_233 : f32 to vector<1x8xf32>
    %653 = arith.mulf %651, %652 : vector<1x8xf32>
    %654 = vector.extract_strided_slice %63 {offsets = [2, 0, 0], sizes = [1, 16, 8], strides = [1, 1, 1]} : vector<4x16x8xf32> to vector<1x16x8xf32>
    %655 = arith.mulf %654, %643 : vector<1x16x8xf32>
    %cst_234 = arith.constant dense<0.000000e+00> : vector<1x8xf32>
    %656 = vector.multi_reduction <add>, %655, %cst_234 [1] : vector<1x16x8xf32> to vector<1x8xf32>
    %cst_235 = arith.constant 6.250000e-02 : f32
    %657 = vector.broadcast %cst_235 : f32 to vector<1x8xf32>
    %658 = arith.mulf %656, %657 : vector<1x8xf32>
    %659 = vector.extract_strided_slice %63 {offsets = [3, 0, 0], sizes = [1, 16, 8], strides = [1, 1, 1]} : vector<4x16x8xf32> to vector<1x16x8xf32>
    %660 = arith.mulf %659, %643 : vector<1x16x8xf32>
    %cst_236 = arith.constant dense<0.000000e+00> : vector<1x8xf32>
    %661 = vector.multi_reduction <add>, %660, %cst_236 [1] : vector<1x16x8xf32> to vector<1x8xf32>
    %cst_237 = arith.constant 6.250000e-02 : f32
    %662 = vector.broadcast %cst_237 : f32 to vector<1x8xf32>
    %663 = arith.mulf %661, %662 : vector<1x8xf32>
    %664 = vector.extract_strided_slice %143 {offsets = [0, 0, 0], sizes = [1, 16, 8], strides = [1, 1, 1]} : vector<8x16x8xf32> to vector<1x16x8xf32>
    %c8_238 = arith.constant 8 : index
    %c0_239 = arith.constant 0 : index
    %665 = memref.load %arg5[%c8_238, %c0_239] : memref<17x16xf32, #tpu.memory_space<smem>>
    %666 = vector.broadcast %665 : f32 to vector<1x16x8xf32>
    %667 = arith.mulf %664, %666 : vector<1x16x8xf32>
    %668 = vector.extract_strided_slice %143 {offsets = [1, 0, 0], sizes = [1, 16, 8], strides = [1, 1, 1]} : vector<8x16x8xf32> to vector<1x16x8xf32>
    %c8_240 = arith.constant 8 : index
    %c1_241 = arith.constant 1 : index
    %669 = memref.load %arg5[%c8_240, %c1_241] : memref<17x16xf32, #tpu.memory_space<smem>>
    %670 = vector.broadcast %669 : f32 to vector<1x16x8xf32>
    %671 = arith.mulf %668, %670 : vector<1x16x8xf32>
    %672 = arith.addf %667, %671 : vector<1x16x8xf32>
    %673 = vector.extract_strided_slice %143 {offsets = [2, 0, 0], sizes = [1, 16, 8], strides = [1, 1, 1]} : vector<8x16x8xf32> to vector<1x16x8xf32>
    %c8_242 = arith.constant 8 : index
    %c2_243 = arith.constant 2 : index
    %674 = memref.load %arg5[%c8_242, %c2_243] : memref<17x16xf32, #tpu.memory_space<smem>>
    %675 = vector.broadcast %674 : f32 to vector<1x16x8xf32>
    %676 = arith.mulf %673, %675 : vector<1x16x8xf32>
    %677 = arith.addf %672, %676 : vector<1x16x8xf32>
    %678 = vector.extract_strided_slice %143 {offsets = [3, 0, 0], sizes = [1, 16, 8], strides = [1, 1, 1]} : vector<8x16x8xf32> to vector<1x16x8xf32>
    %c8_244 = arith.constant 8 : index
    %c3_245 = arith.constant 3 : index
    %679 = memref.load %arg5[%c8_244, %c3_245] : memref<17x16xf32, #tpu.memory_space<smem>>
    %680 = vector.broadcast %679 : f32 to vector<1x16x8xf32>
    %681 = arith.mulf %678, %680 : vector<1x16x8xf32>
    %682 = arith.addf %677, %681 : vector<1x16x8xf32>
    %683 = vector.extract_strided_slice %143 {offsets = [4, 0, 0], sizes = [1, 16, 8], strides = [1, 1, 1]} : vector<8x16x8xf32> to vector<1x16x8xf32>
    %c8_246 = arith.constant 8 : index
    %c4_247 = arith.constant 4 : index
    %684 = memref.load %arg5[%c8_246, %c4_247] : memref<17x16xf32, #tpu.memory_space<smem>>
    %685 = vector.broadcast %684 : f32 to vector<1x16x8xf32>
    %686 = arith.mulf %683, %685 : vector<1x16x8xf32>
    %687 = arith.addf %682, %686 : vector<1x16x8xf32>
    %688 = vector.extract_strided_slice %143 {offsets = [5, 0, 0], sizes = [1, 16, 8], strides = [1, 1, 1]} : vector<8x16x8xf32> to vector<1x16x8xf32>
    %c8_248 = arith.constant 8 : index
    %c5_249 = arith.constant 5 : index
    %689 = memref.load %arg5[%c8_248, %c5_249] : memref<17x16xf32, #tpu.memory_space<smem>>
    %690 = vector.broadcast %689 : f32 to vector<1x16x8xf32>
    %691 = arith.mulf %688, %690 : vector<1x16x8xf32>
    %692 = arith.addf %687, %691 : vector<1x16x8xf32>
    %693 = vector.extract_strided_slice %143 {offsets = [6, 0, 0], sizes = [1, 16, 8], strides = [1, 1, 1]} : vector<8x16x8xf32> to vector<1x16x8xf32>
    %c8_250 = arith.constant 8 : index
    %c6_251 = arith.constant 6 : index
    %694 = memref.load %arg5[%c8_250, %c6_251] : memref<17x16xf32, #tpu.memory_space<smem>>
    %695 = vector.broadcast %694 : f32 to vector<1x16x8xf32>
    %696 = arith.mulf %693, %695 : vector<1x16x8xf32>
    %697 = arith.addf %692, %696 : vector<1x16x8xf32>
    %698 = vector.extract_strided_slice %143 {offsets = [7, 0, 0], sizes = [1, 16, 8], strides = [1, 1, 1]} : vector<8x16x8xf32> to vector<1x16x8xf32>
    %c8_252 = arith.constant 8 : index
    %c7_253 = arith.constant 7 : index
    %699 = memref.load %arg5[%c8_252, %c7_253] : memref<17x16xf32, #tpu.memory_space<smem>>
    %700 = vector.broadcast %699 : f32 to vector<1x16x8xf32>
    %701 = arith.mulf %698, %700 : vector<1x16x8xf32>
    %702 = arith.addf %697, %701 : vector<1x16x8xf32>
    %c8_254 = arith.constant 8 : index
    %c8_255 = arith.constant 8 : index
    %703 = memref.load %arg5[%c8_254, %c8_255] : memref<17x16xf32, #tpu.memory_space<smem>>
    %704 = vector.broadcast %703 : f32 to vector<1x16x8xf32>
    %705 = arith.addf %702, %704 : vector<1x16x8xf32>
    %706 = math.tanh %705 : vector<1x16x8xf32>
    %707 = vector.extract_strided_slice %143 {offsets = [0, 0, 0], sizes = [1, 16, 8], strides = [1, 1, 1]} : vector<8x16x8xf32> to vector<1x16x8xf32>
    %708 = arith.addf %706, %707 : vector<1x16x8xf32>
    %709 = vector.extract_strided_slice %63 {offsets = [0, 0, 0], sizes = [1, 16, 8], strides = [1, 1, 1]} : vector<4x16x8xf32> to vector<1x16x8xf32>
    %710 = arith.mulf %709, %708 : vector<1x16x8xf32>
    %cst_256 = arith.constant dense<0.000000e+00> : vector<1x8xf32>
    %711 = vector.multi_reduction <add>, %710, %cst_256 [1] : vector<1x16x8xf32> to vector<1x8xf32>
    %cst_257 = arith.constant 6.250000e-02 : f32
    %712 = vector.broadcast %cst_257 : f32 to vector<1x8xf32>
    %713 = arith.mulf %711, %712 : vector<1x8xf32>
    %714 = vector.extract_strided_slice %63 {offsets = [1, 0, 0], sizes = [1, 16, 8], strides = [1, 1, 1]} : vector<4x16x8xf32> to vector<1x16x8xf32>
    %715 = arith.mulf %714, %708 : vector<1x16x8xf32>
    %cst_258 = arith.constant dense<0.000000e+00> : vector<1x8xf32>
    %716 = vector.multi_reduction <add>, %715, %cst_258 [1] : vector<1x16x8xf32> to vector<1x8xf32>
    %cst_259 = arith.constant 6.250000e-02 : f32
    %717 = vector.broadcast %cst_259 : f32 to vector<1x8xf32>
    %718 = arith.mulf %716, %717 : vector<1x8xf32>
    %719 = vector.extract_strided_slice %63 {offsets = [2, 0, 0], sizes = [1, 16, 8], strides = [1, 1, 1]} : vector<4x16x8xf32> to vector<1x16x8xf32>
    %720 = arith.mulf %719, %708 : vector<1x16x8xf32>
    %cst_260 = arith.constant dense<0.000000e+00> : vector<1x8xf32>
    %721 = vector.multi_reduction <add>, %720, %cst_260 [1] : vector<1x16x8xf32> to vector<1x8xf32>
    %cst_261 = arith.constant 6.250000e-02 : f32
    %722 = vector.broadcast %cst_261 : f32 to vector<1x8xf32>
    %723 = arith.mulf %721, %722 : vector<1x8xf32>
    %724 = vector.extract_strided_slice %63 {offsets = [3, 0, 0], sizes = [1, 16, 8], strides = [1, 1, 1]} : vector<4x16x8xf32> to vector<1x16x8xf32>
    %725 = arith.mulf %724, %708 : vector<1x16x8xf32>
    %cst_262 = arith.constant dense<0.000000e+00> : vector<1x8xf32>
    %726 = vector.multi_reduction <add>, %725, %cst_262 [1] : vector<1x16x8xf32> to vector<1x8xf32>
    %cst_263 = arith.constant 6.250000e-02 : f32
    %727 = vector.broadcast %cst_263 : f32 to vector<1x8xf32>
    %728 = arith.mulf %726, %727 : vector<1x8xf32>
    %729 = vector.extract_strided_slice %143 {offsets = [0, 0, 0], sizes = [1, 16, 8], strides = [1, 1, 1]} : vector<8x16x8xf32> to vector<1x16x8xf32>
    %c9 = arith.constant 9 : index
    %c0_264 = arith.constant 0 : index
    %730 = memref.load %arg5[%c9, %c0_264] : memref<17x16xf32, #tpu.memory_space<smem>>
    %731 = vector.broadcast %730 : f32 to vector<1x16x8xf32>
    %732 = arith.mulf %729, %731 : vector<1x16x8xf32>
    %733 = vector.extract_strided_slice %143 {offsets = [1, 0, 0], sizes = [1, 16, 8], strides = [1, 1, 1]} : vector<8x16x8xf32> to vector<1x16x8xf32>
    %c9_265 = arith.constant 9 : index
    %c1_266 = arith.constant 1 : index
    %734 = memref.load %arg5[%c9_265, %c1_266] : memref<17x16xf32, #tpu.memory_space<smem>>
    %735 = vector.broadcast %734 : f32 to vector<1x16x8xf32>
    %736 = arith.mulf %733, %735 : vector<1x16x8xf32>
    %737 = arith.addf %732, %736 : vector<1x16x8xf32>
    %738 = vector.extract_strided_slice %143 {offsets = [2, 0, 0], sizes = [1, 16, 8], strides = [1, 1, 1]} : vector<8x16x8xf32> to vector<1x16x8xf32>
    %c9_267 = arith.constant 9 : index
    %c2_268 = arith.constant 2 : index
    %739 = memref.load %arg5[%c9_267, %c2_268] : memref<17x16xf32, #tpu.memory_space<smem>>
    %740 = vector.broadcast %739 : f32 to vector<1x16x8xf32>
    %741 = arith.mulf %738, %740 : vector<1x16x8xf32>
    %742 = arith.addf %737, %741 : vector<1x16x8xf32>
    %743 = vector.extract_strided_slice %143 {offsets = [3, 0, 0], sizes = [1, 16, 8], strides = [1, 1, 1]} : vector<8x16x8xf32> to vector<1x16x8xf32>
    %c9_269 = arith.constant 9 : index
    %c3_270 = arith.constant 3 : index
    %744 = memref.load %arg5[%c9_269, %c3_270] : memref<17x16xf32, #tpu.memory_space<smem>>
    %745 = vector.broadcast %744 : f32 to vector<1x16x8xf32>
    %746 = arith.mulf %743, %745 : vector<1x16x8xf32>
    %747 = arith.addf %742, %746 : vector<1x16x8xf32>
    %748 = vector.extract_strided_slice %143 {offsets = [4, 0, 0], sizes = [1, 16, 8], strides = [1, 1, 1]} : vector<8x16x8xf32> to vector<1x16x8xf32>
    %c9_271 = arith.constant 9 : index
    %c4_272 = arith.constant 4 : index
    %749 = memref.load %arg5[%c9_271, %c4_272] : memref<17x16xf32, #tpu.memory_space<smem>>
    %750 = vector.broadcast %749 : f32 to vector<1x16x8xf32>
    %751 = arith.mulf %748, %750 : vector<1x16x8xf32>
    %752 = arith.addf %747, %751 : vector<1x16x8xf32>
    %753 = vector.extract_strided_slice %143 {offsets = [5, 0, 0], sizes = [1, 16, 8], strides = [1, 1, 1]} : vector<8x16x8xf32> to vector<1x16x8xf32>
    %c9_273 = arith.constant 9 : index
    %c5_274 = arith.constant 5 : index
    %754 = memref.load %arg5[%c9_273, %c5_274] : memref<17x16xf32, #tpu.memory_space<smem>>
    %755 = vector.broadcast %754 : f32 to vector<1x16x8xf32>
    %756 = arith.mulf %753, %755 : vector<1x16x8xf32>
    %757 = arith.addf %752, %756 : vector<1x16x8xf32>
    %758 = vector.extract_strided_slice %143 {offsets = [6, 0, 0], sizes = [1, 16, 8], strides = [1, 1, 1]} : vector<8x16x8xf32> to vector<1x16x8xf32>
    %c9_275 = arith.constant 9 : index
    %c6_276 = arith.constant 6 : index
    %759 = memref.load %arg5[%c9_275, %c6_276] : memref<17x16xf32, #tpu.memory_space<smem>>
    %760 = vector.broadcast %759 : f32 to vector<1x16x8xf32>
    %761 = arith.mulf %758, %760 : vector<1x16x8xf32>
    %762 = arith.addf %757, %761 : vector<1x16x8xf32>
    %763 = vector.extract_strided_slice %143 {offsets = [7, 0, 0], sizes = [1, 16, 8], strides = [1, 1, 1]} : vector<8x16x8xf32> to vector<1x16x8xf32>
    %c9_277 = arith.constant 9 : index
    %c7_278 = arith.constant 7 : index
    %764 = memref.load %arg5[%c9_277, %c7_278] : memref<17x16xf32, #tpu.memory_space<smem>>
    %765 = vector.broadcast %764 : f32 to vector<1x16x8xf32>
    %766 = arith.mulf %763, %765 : vector<1x16x8xf32>
    %767 = arith.addf %762, %766 : vector<1x16x8xf32>
    %c9_279 = arith.constant 9 : index
    %c8_280 = arith.constant 8 : index
    %768 = memref.load %arg5[%c9_279, %c8_280] : memref<17x16xf32, #tpu.memory_space<smem>>
    %769 = vector.broadcast %768 : f32 to vector<1x16x8xf32>
    %770 = arith.addf %767, %769 : vector<1x16x8xf32>
    %771 = math.tanh %770 : vector<1x16x8xf32>
    %772 = vector.extract_strided_slice %143 {offsets = [1, 0, 0], sizes = [1, 16, 8], strides = [1, 1, 1]} : vector<8x16x8xf32> to vector<1x16x8xf32>
    %773 = arith.addf %771, %772 : vector<1x16x8xf32>
    %774 = vector.extract_strided_slice %63 {offsets = [0, 0, 0], sizes = [1, 16, 8], strides = [1, 1, 1]} : vector<4x16x8xf32> to vector<1x16x8xf32>
    %775 = arith.mulf %774, %773 : vector<1x16x8xf32>
    %cst_281 = arith.constant dense<0.000000e+00> : vector<1x8xf32>
    %776 = vector.multi_reduction <add>, %775, %cst_281 [1] : vector<1x16x8xf32> to vector<1x8xf32>
    %cst_282 = arith.constant 6.250000e-02 : f32
    %777 = vector.broadcast %cst_282 : f32 to vector<1x8xf32>
    %778 = arith.mulf %776, %777 : vector<1x8xf32>
    %779 = vector.extract_strided_slice %63 {offsets = [1, 0, 0], sizes = [1, 16, 8], strides = [1, 1, 1]} : vector<4x16x8xf32> to vector<1x16x8xf32>
    %780 = arith.mulf %779, %773 : vector<1x16x8xf32>
    %cst_283 = arith.constant dense<0.000000e+00> : vector<1x8xf32>
    %781 = vector.multi_reduction <add>, %780, %cst_283 [1] : vector<1x16x8xf32> to vector<1x8xf32>
    %cst_284 = arith.constant 6.250000e-02 : f32
    %782 = vector.broadcast %cst_284 : f32 to vector<1x8xf32>
    %783 = arith.mulf %781, %782 : vector<1x8xf32>
    %784 = vector.extract_strided_slice %63 {offsets = [2, 0, 0], sizes = [1, 16, 8], strides = [1, 1, 1]} : vector<4x16x8xf32> to vector<1x16x8xf32>
    %785 = arith.mulf %784, %773 : vector<1x16x8xf32>
    %cst_285 = arith.constant dense<0.000000e+00> : vector<1x8xf32>
    %786 = vector.multi_reduction <add>, %785, %cst_285 [1] : vector<1x16x8xf32> to vector<1x8xf32>
    %cst_286 = arith.constant 6.250000e-02 : f32
    %787 = vector.broadcast %cst_286 : f32 to vector<1x8xf32>
    %788 = arith.mulf %786, %787 : vector<1x8xf32>
    %789 = vector.extract_strided_slice %63 {offsets = [3, 0, 0], sizes = [1, 16, 8], strides = [1, 1, 1]} : vector<4x16x8xf32> to vector<1x16x8xf32>
    %790 = arith.mulf %789, %773 : vector<1x16x8xf32>
    %cst_287 = arith.constant dense<0.000000e+00> : vector<1x8xf32>
    %791 = vector.multi_reduction <add>, %790, %cst_287 [1] : vector<1x16x8xf32> to vector<1x8xf32>
    %cst_288 = arith.constant 6.250000e-02 : f32
    %792 = vector.broadcast %cst_288 : f32 to vector<1x8xf32>
    %793 = arith.mulf %791, %792 : vector<1x8xf32>
    %794 = vector.extract_strided_slice %143 {offsets = [0, 0, 0], sizes = [1, 16, 8], strides = [1, 1, 1]} : vector<8x16x8xf32> to vector<1x16x8xf32>
    %c10 = arith.constant 10 : index
    %c0_289 = arith.constant 0 : index
    %795 = memref.load %arg5[%c10, %c0_289] : memref<17x16xf32, #tpu.memory_space<smem>>
    %796 = vector.broadcast %795 : f32 to vector<1x16x8xf32>
    %797 = arith.mulf %794, %796 : vector<1x16x8xf32>
    %798 = vector.extract_strided_slice %143 {offsets = [1, 0, 0], sizes = [1, 16, 8], strides = [1, 1, 1]} : vector<8x16x8xf32> to vector<1x16x8xf32>
    %c10_290 = arith.constant 10 : index
    %c1_291 = arith.constant 1 : index
    %799 = memref.load %arg5[%c10_290, %c1_291] : memref<17x16xf32, #tpu.memory_space<smem>>
    %800 = vector.broadcast %799 : f32 to vector<1x16x8xf32>
    %801 = arith.mulf %798, %800 : vector<1x16x8xf32>
    %802 = arith.addf %797, %801 : vector<1x16x8xf32>
    %803 = vector.extract_strided_slice %143 {offsets = [2, 0, 0], sizes = [1, 16, 8], strides = [1, 1, 1]} : vector<8x16x8xf32> to vector<1x16x8xf32>
    %c10_292 = arith.constant 10 : index
    %c2_293 = arith.constant 2 : index
    %804 = memref.load %arg5[%c10_292, %c2_293] : memref<17x16xf32, #tpu.memory_space<smem>>
    %805 = vector.broadcast %804 : f32 to vector<1x16x8xf32>
    %806 = arith.mulf %803, %805 : vector<1x16x8xf32>
    %807 = arith.addf %802, %806 : vector<1x16x8xf32>
    %808 = vector.extract_strided_slice %143 {offsets = [3, 0, 0], sizes = [1, 16, 8], strides = [1, 1, 1]} : vector<8x16x8xf32> to vector<1x16x8xf32>
    %c10_294 = arith.constant 10 : index
    %c3_295 = arith.constant 3 : index
    %809 = memref.load %arg5[%c10_294, %c3_295] : memref<17x16xf32, #tpu.memory_space<smem>>
    %810 = vector.broadcast %809 : f32 to vector<1x16x8xf32>
    %811 = arith.mulf %808, %810 : vector<1x16x8xf32>
    %812 = arith.addf %807, %811 : vector<1x16x8xf32>
    %813 = vector.extract_strided_slice %143 {offsets = [4, 0, 0], sizes = [1, 16, 8], strides = [1, 1, 1]} : vector<8x16x8xf32> to vector<1x16x8xf32>
    %c10_296 = arith.constant 10 : index
    %c4_297 = arith.constant 4 : index
    %814 = memref.load %arg5[%c10_296, %c4_297] : memref<17x16xf32, #tpu.memory_space<smem>>
    %815 = vector.broadcast %814 : f32 to vector<1x16x8xf32>
    %816 = arith.mulf %813, %815 : vector<1x16x8xf32>
    %817 = arith.addf %812, %816 : vector<1x16x8xf32>
    %818 = vector.extract_strided_slice %143 {offsets = [5, 0, 0], sizes = [1, 16, 8], strides = [1, 1, 1]} : vector<8x16x8xf32> to vector<1x16x8xf32>
    %c10_298 = arith.constant 10 : index
    %c5_299 = arith.constant 5 : index
    %819 = memref.load %arg5[%c10_298, %c5_299] : memref<17x16xf32, #tpu.memory_space<smem>>
    %820 = vector.broadcast %819 : f32 to vector<1x16x8xf32>
    %821 = arith.mulf %818, %820 : vector<1x16x8xf32>
    %822 = arith.addf %817, %821 : vector<1x16x8xf32>
    %823 = vector.extract_strided_slice %143 {offsets = [6, 0, 0], sizes = [1, 16, 8], strides = [1, 1, 1]} : vector<8x16x8xf32> to vector<1x16x8xf32>
    %c10_300 = arith.constant 10 : index
    %c6_301 = arith.constant 6 : index
    %824 = memref.load %arg5[%c10_300, %c6_301] : memref<17x16xf32, #tpu.memory_space<smem>>
    %825 = vector.broadcast %824 : f32 to vector<1x16x8xf32>
    %826 = arith.mulf %823, %825 : vector<1x16x8xf32>
    %827 = arith.addf %822, %826 : vector<1x16x8xf32>
    %828 = vector.extract_strided_slice %143 {offsets = [7, 0, 0], sizes = [1, 16, 8], strides = [1, 1, 1]} : vector<8x16x8xf32> to vector<1x16x8xf32>
    %c10_302 = arith.constant 10 : index
    %c7_303 = arith.constant 7 : index
    %829 = memref.load %arg5[%c10_302, %c7_303] : memref<17x16xf32, #tpu.memory_space<smem>>
    %830 = vector.broadcast %829 : f32 to vector<1x16x8xf32>
    %831 = arith.mulf %828, %830 : vector<1x16x8xf32>
    %832 = arith.addf %827, %831 : vector<1x16x8xf32>
    %c10_304 = arith.constant 10 : index
    %c8_305 = arith.constant 8 : index
    %833 = memref.load %arg5[%c10_304, %c8_305] : memref<17x16xf32, #tpu.memory_space<smem>>
    %834 = vector.broadcast %833 : f32 to vector<1x16x8xf32>
    %835 = arith.addf %832, %834 : vector<1x16x8xf32>
    %836 = math.tanh %835 : vector<1x16x8xf32>
    %837 = vector.extract_strided_slice %143 {offsets = [2, 0, 0], sizes = [1, 16, 8], strides = [1, 1, 1]} : vector<8x16x8xf32> to vector<1x16x8xf32>
    %838 = arith.addf %836, %837 : vector<1x16x8xf32>
    %839 = vector.extract_strided_slice %63 {offsets = [0, 0, 0], sizes = [1, 16, 8], strides = [1, 1, 1]} : vector<4x16x8xf32> to vector<1x16x8xf32>
    %840 = arith.mulf %839, %838 : vector<1x16x8xf32>
    %cst_306 = arith.constant dense<0.000000e+00> : vector<1x8xf32>
    %841 = vector.multi_reduction <add>, %840, %cst_306 [1] : vector<1x16x8xf32> to vector<1x8xf32>
    %cst_307 = arith.constant 6.250000e-02 : f32
    %842 = vector.broadcast %cst_307 : f32 to vector<1x8xf32>
    %843 = arith.mulf %841, %842 : vector<1x8xf32>
    %844 = vector.extract_strided_slice %63 {offsets = [1, 0, 0], sizes = [1, 16, 8], strides = [1, 1, 1]} : vector<4x16x8xf32> to vector<1x16x8xf32>
    %845 = arith.mulf %844, %838 : vector<1x16x8xf32>
    %cst_308 = arith.constant dense<0.000000e+00> : vector<1x8xf32>
    %846 = vector.multi_reduction <add>, %845, %cst_308 [1] : vector<1x16x8xf32> to vector<1x8xf32>
    %cst_309 = arith.constant 6.250000e-02 : f32
    %847 = vector.broadcast %cst_309 : f32 to vector<1x8xf32>
    %848 = arith.mulf %846, %847 : vector<1x8xf32>
    %849 = vector.extract_strided_slice %63 {offsets = [2, 0, 0], sizes = [1, 16, 8], strides = [1, 1, 1]} : vector<4x16x8xf32> to vector<1x16x8xf32>
    %850 = arith.mulf %849, %838 : vector<1x16x8xf32>
    %cst_310 = arith.constant dense<0.000000e+00> : vector<1x8xf32>
    %851 = vector.multi_reduction <add>, %850, %cst_310 [1] : vector<1x16x8xf32> to vector<1x8xf32>
    %cst_311 = arith.constant 6.250000e-02 : f32
    %852 = vector.broadcast %cst_311 : f32 to vector<1x8xf32>
    %853 = arith.mulf %851, %852 : vector<1x8xf32>
    %854 = vector.extract_strided_slice %63 {offsets = [3, 0, 0], sizes = [1, 16, 8], strides = [1, 1, 1]} : vector<4x16x8xf32> to vector<1x16x8xf32>
    %855 = arith.mulf %854, %838 : vector<1x16x8xf32>
    %cst_312 = arith.constant dense<0.000000e+00> : vector<1x8xf32>
    %856 = vector.multi_reduction <add>, %855, %cst_312 [1] : vector<1x16x8xf32> to vector<1x8xf32>
    %cst_313 = arith.constant 6.250000e-02 : f32
    %857 = vector.broadcast %cst_313 : f32 to vector<1x8xf32>
    %858 = arith.mulf %856, %857 : vector<1x8xf32>
    %859 = vector.extract_strided_slice %143 {offsets = [0, 0, 0], sizes = [1, 16, 8], strides = [1, 1, 1]} : vector<8x16x8xf32> to vector<1x16x8xf32>
    %c11 = arith.constant 11 : index
    %c0_314 = arith.constant 0 : index
    %860 = memref.load %arg5[%c11, %c0_314] : memref<17x16xf32, #tpu.memory_space<smem>>
    %861 = vector.broadcast %860 : f32 to vector<1x16x8xf32>
    %862 = arith.mulf %859, %861 : vector<1x16x8xf32>
    %863 = vector.extract_strided_slice %143 {offsets = [1, 0, 0], sizes = [1, 16, 8], strides = [1, 1, 1]} : vector<8x16x8xf32> to vector<1x16x8xf32>
    %c11_315 = arith.constant 11 : index
    %c1_316 = arith.constant 1 : index
    %864 = memref.load %arg5[%c11_315, %c1_316] : memref<17x16xf32, #tpu.memory_space<smem>>
    %865 = vector.broadcast %864 : f32 to vector<1x16x8xf32>
    %866 = arith.mulf %863, %865 : vector<1x16x8xf32>
    %867 = arith.addf %862, %866 : vector<1x16x8xf32>
    %868 = vector.extract_strided_slice %143 {offsets = [2, 0, 0], sizes = [1, 16, 8], strides = [1, 1, 1]} : vector<8x16x8xf32> to vector<1x16x8xf32>
    %c11_317 = arith.constant 11 : index
    %c2_318 = arith.constant 2 : index
    %869 = memref.load %arg5[%c11_317, %c2_318] : memref<17x16xf32, #tpu.memory_space<smem>>
    %870 = vector.broadcast %869 : f32 to vector<1x16x8xf32>
    %871 = arith.mulf %868, %870 : vector<1x16x8xf32>
    %872 = arith.addf %867, %871 : vector<1x16x8xf32>
    %873 = vector.extract_strided_slice %143 {offsets = [3, 0, 0], sizes = [1, 16, 8], strides = [1, 1, 1]} : vector<8x16x8xf32> to vector<1x16x8xf32>
    %c11_319 = arith.constant 11 : index
    %c3_320 = arith.constant 3 : index
    %874 = memref.load %arg5[%c11_319, %c3_320] : memref<17x16xf32, #tpu.memory_space<smem>>
    %875 = vector.broadcast %874 : f32 to vector<1x16x8xf32>
    %876 = arith.mulf %873, %875 : vector<1x16x8xf32>
    %877 = arith.addf %872, %876 : vector<1x16x8xf32>
    %878 = vector.extract_strided_slice %143 {offsets = [4, 0, 0], sizes = [1, 16, 8], strides = [1, 1, 1]} : vector<8x16x8xf32> to vector<1x16x8xf32>
    %c11_321 = arith.constant 11 : index
    %c4_322 = arith.constant 4 : index
    %879 = memref.load %arg5[%c11_321, %c4_322] : memref<17x16xf32, #tpu.memory_space<smem>>
    %880 = vector.broadcast %879 : f32 to vector<1x16x8xf32>
    %881 = arith.mulf %878, %880 : vector<1x16x8xf32>
    %882 = arith.addf %877, %881 : vector<1x16x8xf32>
    %883 = vector.extract_strided_slice %143 {offsets = [5, 0, 0], sizes = [1, 16, 8], strides = [1, 1, 1]} : vector<8x16x8xf32> to vector<1x16x8xf32>
    %c11_323 = arith.constant 11 : index
    %c5_324 = arith.constant 5 : index
    %884 = memref.load %arg5[%c11_323, %c5_324] : memref<17x16xf32, #tpu.memory_space<smem>>
    %885 = vector.broadcast %884 : f32 to vector<1x16x8xf32>
    %886 = arith.mulf %883, %885 : vector<1x16x8xf32>
    %887 = arith.addf %882, %886 : vector<1x16x8xf32>
    %888 = vector.extract_strided_slice %143 {offsets = [6, 0, 0], sizes = [1, 16, 8], strides = [1, 1, 1]} : vector<8x16x8xf32> to vector<1x16x8xf32>
    %c11_325 = arith.constant 11 : index
    %c6_326 = arith.constant 6 : index
    %889 = memref.load %arg5[%c11_325, %c6_326] : memref<17x16xf32, #tpu.memory_space<smem>>
    %890 = vector.broadcast %889 : f32 to vector<1x16x8xf32>
    %891 = arith.mulf %888, %890 : vector<1x16x8xf32>
    %892 = arith.addf %887, %891 : vector<1x16x8xf32>
    %893 = vector.extract_strided_slice %143 {offsets = [7, 0, 0], sizes = [1, 16, 8], strides = [1, 1, 1]} : vector<8x16x8xf32> to vector<1x16x8xf32>
    %c11_327 = arith.constant 11 : index
    %c7_328 = arith.constant 7 : index
    %894 = memref.load %arg5[%c11_327, %c7_328] : memref<17x16xf32, #tpu.memory_space<smem>>
    %895 = vector.broadcast %894 : f32 to vector<1x16x8xf32>
    %896 = arith.mulf %893, %895 : vector<1x16x8xf32>
    %897 = arith.addf %892, %896 : vector<1x16x8xf32>
    %c11_329 = arith.constant 11 : index
    %c8_330 = arith.constant 8 : index
    %898 = memref.load %arg5[%c11_329, %c8_330] : memref<17x16xf32, #tpu.memory_space<smem>>
    %899 = vector.broadcast %898 : f32 to vector<1x16x8xf32>
    %900 = arith.addf %897, %899 : vector<1x16x8xf32>
    %901 = math.tanh %900 : vector<1x16x8xf32>
    %902 = vector.extract_strided_slice %143 {offsets = [3, 0, 0], sizes = [1, 16, 8], strides = [1, 1, 1]} : vector<8x16x8xf32> to vector<1x16x8xf32>
    %903 = arith.addf %901, %902 : vector<1x16x8xf32>
    %904 = vector.extract_strided_slice %63 {offsets = [0, 0, 0], sizes = [1, 16, 8], strides = [1, 1, 1]} : vector<4x16x8xf32> to vector<1x16x8xf32>
    %905 = arith.mulf %904, %903 : vector<1x16x8xf32>
    %cst_331 = arith.constant dense<0.000000e+00> : vector<1x8xf32>
    %906 = vector.multi_reduction <add>, %905, %cst_331 [1] : vector<1x16x8xf32> to vector<1x8xf32>
    %cst_332 = arith.constant 6.250000e-02 : f32
    %907 = vector.broadcast %cst_332 : f32 to vector<1x8xf32>
    %908 = arith.mulf %906, %907 : vector<1x8xf32>
    %909 = vector.extract_strided_slice %63 {offsets = [1, 0, 0], sizes = [1, 16, 8], strides = [1, 1, 1]} : vector<4x16x8xf32> to vector<1x16x8xf32>
    %910 = arith.mulf %909, %903 : vector<1x16x8xf32>
    %cst_333 = arith.constant dense<0.000000e+00> : vector<1x8xf32>
    %911 = vector.multi_reduction <add>, %910, %cst_333 [1] : vector<1x16x8xf32> to vector<1x8xf32>
    %cst_334 = arith.constant 6.250000e-02 : f32
    %912 = vector.broadcast %cst_334 : f32 to vector<1x8xf32>
    %913 = arith.mulf %911, %912 : vector<1x8xf32>
    %914 = vector.extract_strided_slice %63 {offsets = [2, 0, 0], sizes = [1, 16, 8], strides = [1, 1, 1]} : vector<4x16x8xf32> to vector<1x16x8xf32>
    %915 = arith.mulf %914, %903 : vector<1x16x8xf32>
    %cst_335 = arith.constant dense<0.000000e+00> : vector<1x8xf32>
    %916 = vector.multi_reduction <add>, %915, %cst_335 [1] : vector<1x16x8xf32> to vector<1x8xf32>
    %cst_336 = arith.constant 6.250000e-02 : f32
    %917 = vector.broadcast %cst_336 : f32 to vector<1x8xf32>
    %918 = arith.mulf %916, %917 : vector<1x8xf32>
    %919 = vector.extract_strided_slice %63 {offsets = [3, 0, 0], sizes = [1, 16, 8], strides = [1, 1, 1]} : vector<4x16x8xf32> to vector<1x16x8xf32>
    %920 = arith.mulf %919, %903 : vector<1x16x8xf32>
    %cst_337 = arith.constant dense<0.000000e+00> : vector<1x8xf32>
    %921 = vector.multi_reduction <add>, %920, %cst_337 [1] : vector<1x16x8xf32> to vector<1x8xf32>
    %cst_338 = arith.constant 6.250000e-02 : f32
    %922 = vector.broadcast %cst_338 : f32 to vector<1x8xf32>
    %923 = arith.mulf %921, %922 : vector<1x8xf32>
    %924 = vector.extract_strided_slice %143 {offsets = [0, 0, 0], sizes = [1, 16, 8], strides = [1, 1, 1]} : vector<8x16x8xf32> to vector<1x16x8xf32>
    %c12 = arith.constant 12 : index
    %c0_339 = arith.constant 0 : index
    %925 = memref.load %arg5[%c12, %c0_339] : memref<17x16xf32, #tpu.memory_space<smem>>
    %926 = vector.broadcast %925 : f32 to vector<1x16x8xf32>
    %927 = arith.mulf %924, %926 : vector<1x16x8xf32>
    %928 = vector.extract_strided_slice %143 {offsets = [1, 0, 0], sizes = [1, 16, 8], strides = [1, 1, 1]} : vector<8x16x8xf32> to vector<1x16x8xf32>
    %c12_340 = arith.constant 12 : index
    %c1_341 = arith.constant 1 : index
    %929 = memref.load %arg5[%c12_340, %c1_341] : memref<17x16xf32, #tpu.memory_space<smem>>
    %930 = vector.broadcast %929 : f32 to vector<1x16x8xf32>
    %931 = arith.mulf %928, %930 : vector<1x16x8xf32>
    %932 = arith.addf %927, %931 : vector<1x16x8xf32>
    %933 = vector.extract_strided_slice %143 {offsets = [2, 0, 0], sizes = [1, 16, 8], strides = [1, 1, 1]} : vector<8x16x8xf32> to vector<1x16x8xf32>
    %c12_342 = arith.constant 12 : index
    %c2_343 = arith.constant 2 : index
    %934 = memref.load %arg5[%c12_342, %c2_343] : memref<17x16xf32, #tpu.memory_space<smem>>
    %935 = vector.broadcast %934 : f32 to vector<1x16x8xf32>
    %936 = arith.mulf %933, %935 : vector<1x16x8xf32>
    %937 = arith.addf %932, %936 : vector<1x16x8xf32>
    %938 = vector.extract_strided_slice %143 {offsets = [3, 0, 0], sizes = [1, 16, 8], strides = [1, 1, 1]} : vector<8x16x8xf32> to vector<1x16x8xf32>
    %c12_344 = arith.constant 12 : index
    %c3_345 = arith.constant 3 : index
    %939 = memref.load %arg5[%c12_344, %c3_345] : memref<17x16xf32, #tpu.memory_space<smem>>
    %940 = vector.broadcast %939 : f32 to vector<1x16x8xf32>
    %941 = arith.mulf %938, %940 : vector<1x16x8xf32>
    %942 = arith.addf %937, %941 : vector<1x16x8xf32>
    %943 = vector.extract_strided_slice %143 {offsets = [4, 0, 0], sizes = [1, 16, 8], strides = [1, 1, 1]} : vector<8x16x8xf32> to vector<1x16x8xf32>
    %c12_346 = arith.constant 12 : index
    %c4_347 = arith.constant 4 : index
    %944 = memref.load %arg5[%c12_346, %c4_347] : memref<17x16xf32, #tpu.memory_space<smem>>
    %945 = vector.broadcast %944 : f32 to vector<1x16x8xf32>
    %946 = arith.mulf %943, %945 : vector<1x16x8xf32>
    %947 = arith.addf %942, %946 : vector<1x16x8xf32>
    %948 = vector.extract_strided_slice %143 {offsets = [5, 0, 0], sizes = [1, 16, 8], strides = [1, 1, 1]} : vector<8x16x8xf32> to vector<1x16x8xf32>
    %c12_348 = arith.constant 12 : index
    %c5_349 = arith.constant 5 : index
    %949 = memref.load %arg5[%c12_348, %c5_349] : memref<17x16xf32, #tpu.memory_space<smem>>
    %950 = vector.broadcast %949 : f32 to vector<1x16x8xf32>
    %951 = arith.mulf %948, %950 : vector<1x16x8xf32>
    %952 = arith.addf %947, %951 : vector<1x16x8xf32>
    %953 = vector.extract_strided_slice %143 {offsets = [6, 0, 0], sizes = [1, 16, 8], strides = [1, 1, 1]} : vector<8x16x8xf32> to vector<1x16x8xf32>
    %c12_350 = arith.constant 12 : index
    %c6_351 = arith.constant 6 : index
    %954 = memref.load %arg5[%c12_350, %c6_351] : memref<17x16xf32, #tpu.memory_space<smem>>
    %955 = vector.broadcast %954 : f32 to vector<1x16x8xf32>
    %956 = arith.mulf %953, %955 : vector<1x16x8xf32>
    %957 = arith.addf %952, %956 : vector<1x16x8xf32>
    %958 = vector.extract_strided_slice %143 {offsets = [7, 0, 0], sizes = [1, 16, 8], strides = [1, 1, 1]} : vector<8x16x8xf32> to vector<1x16x8xf32>
    %c12_352 = arith.constant 12 : index
    %c7_353 = arith.constant 7 : index
    %959 = memref.load %arg5[%c12_352, %c7_353] : memref<17x16xf32, #tpu.memory_space<smem>>
    %960 = vector.broadcast %959 : f32 to vector<1x16x8xf32>
    %961 = arith.mulf %958, %960 : vector<1x16x8xf32>
    %962 = arith.addf %957, %961 : vector<1x16x8xf32>
    %c12_354 = arith.constant 12 : index
    %c8_355 = arith.constant 8 : index
    %963 = memref.load %arg5[%c12_354, %c8_355] : memref<17x16xf32, #tpu.memory_space<smem>>
    %964 = vector.broadcast %963 : f32 to vector<1x16x8xf32>
    %965 = arith.addf %962, %964 : vector<1x16x8xf32>
    %966 = math.tanh %965 : vector<1x16x8xf32>
    %967 = vector.extract_strided_slice %143 {offsets = [4, 0, 0], sizes = [1, 16, 8], strides = [1, 1, 1]} : vector<8x16x8xf32> to vector<1x16x8xf32>
    %968 = arith.addf %966, %967 : vector<1x16x8xf32>
    %969 = vector.extract_strided_slice %63 {offsets = [0, 0, 0], sizes = [1, 16, 8], strides = [1, 1, 1]} : vector<4x16x8xf32> to vector<1x16x8xf32>
    %970 = arith.mulf %969, %968 : vector<1x16x8xf32>
    %cst_356 = arith.constant dense<0.000000e+00> : vector<1x8xf32>
    %971 = vector.multi_reduction <add>, %970, %cst_356 [1] : vector<1x16x8xf32> to vector<1x8xf32>
    %cst_357 = arith.constant 6.250000e-02 : f32
    %972 = vector.broadcast %cst_357 : f32 to vector<1x8xf32>
    %973 = arith.mulf %971, %972 : vector<1x8xf32>
    %974 = vector.extract_strided_slice %63 {offsets = [1, 0, 0], sizes = [1, 16, 8], strides = [1, 1, 1]} : vector<4x16x8xf32> to vector<1x16x8xf32>
    %975 = arith.mulf %974, %968 : vector<1x16x8xf32>
    %cst_358 = arith.constant dense<0.000000e+00> : vector<1x8xf32>
    %976 = vector.multi_reduction <add>, %975, %cst_358 [1] : vector<1x16x8xf32> to vector<1x8xf32>
    %cst_359 = arith.constant 6.250000e-02 : f32
    %977 = vector.broadcast %cst_359 : f32 to vector<1x8xf32>
    %978 = arith.mulf %976, %977 : vector<1x8xf32>
    %979 = vector.extract_strided_slice %63 {offsets = [2, 0, 0], sizes = [1, 16, 8], strides = [1, 1, 1]} : vector<4x16x8xf32> to vector<1x16x8xf32>
    %980 = arith.mulf %979, %968 : vector<1x16x8xf32>
    %cst_360 = arith.constant dense<0.000000e+00> : vector<1x8xf32>
    %981 = vector.multi_reduction <add>, %980, %cst_360 [1] : vector<1x16x8xf32> to vector<1x8xf32>
    %cst_361 = arith.constant 6.250000e-02 : f32
    %982 = vector.broadcast %cst_361 : f32 to vector<1x8xf32>
    %983 = arith.mulf %981, %982 : vector<1x8xf32>
    %984 = vector.extract_strided_slice %63 {offsets = [3, 0, 0], sizes = [1, 16, 8], strides = [1, 1, 1]} : vector<4x16x8xf32> to vector<1x16x8xf32>
    %985 = arith.mulf %984, %968 : vector<1x16x8xf32>
    %cst_362 = arith.constant dense<0.000000e+00> : vector<1x8xf32>
    %986 = vector.multi_reduction <add>, %985, %cst_362 [1] : vector<1x16x8xf32> to vector<1x8xf32>
    %cst_363 = arith.constant 6.250000e-02 : f32
    %987 = vector.broadcast %cst_363 : f32 to vector<1x8xf32>
    %988 = arith.mulf %986, %987 : vector<1x8xf32>
    %989 = vector.extract_strided_slice %143 {offsets = [0, 0, 0], sizes = [1, 16, 8], strides = [1, 1, 1]} : vector<8x16x8xf32> to vector<1x16x8xf32>
    %c13 = arith.constant 13 : index
    %c0_364 = arith.constant 0 : index
    %990 = memref.load %arg5[%c13, %c0_364] : memref<17x16xf32, #tpu.memory_space<smem>>
    %991 = vector.broadcast %990 : f32 to vector<1x16x8xf32>
    %992 = arith.mulf %989, %991 : vector<1x16x8xf32>
    %993 = vector.extract_strided_slice %143 {offsets = [1, 0, 0], sizes = [1, 16, 8], strides = [1, 1, 1]} : vector<8x16x8xf32> to vector<1x16x8xf32>
    %c13_365 = arith.constant 13 : index
    %c1_366 = arith.constant 1 : index
    %994 = memref.load %arg5[%c13_365, %c1_366] : memref<17x16xf32, #tpu.memory_space<smem>>
    %995 = vector.broadcast %994 : f32 to vector<1x16x8xf32>
    %996 = arith.mulf %993, %995 : vector<1x16x8xf32>
    %997 = arith.addf %992, %996 : vector<1x16x8xf32>
    %998 = vector.extract_strided_slice %143 {offsets = [2, 0, 0], sizes = [1, 16, 8], strides = [1, 1, 1]} : vector<8x16x8xf32> to vector<1x16x8xf32>
    %c13_367 = arith.constant 13 : index
    %c2_368 = arith.constant 2 : index
    %999 = memref.load %arg5[%c13_367, %c2_368] : memref<17x16xf32, #tpu.memory_space<smem>>
    %1000 = vector.broadcast %999 : f32 to vector<1x16x8xf32>
    %1001 = arith.mulf %998, %1000 : vector<1x16x8xf32>
    %1002 = arith.addf %997, %1001 : vector<1x16x8xf32>
    %1003 = vector.extract_strided_slice %143 {offsets = [3, 0, 0], sizes = [1, 16, 8], strides = [1, 1, 1]} : vector<8x16x8xf32> to vector<1x16x8xf32>
    %c13_369 = arith.constant 13 : index
    %c3_370 = arith.constant 3 : index
    %1004 = memref.load %arg5[%c13_369, %c3_370] : memref<17x16xf32, #tpu.memory_space<smem>>
    %1005 = vector.broadcast %1004 : f32 to vector<1x16x8xf32>
    %1006 = arith.mulf %1003, %1005 : vector<1x16x8xf32>
    %1007 = arith.addf %1002, %1006 : vector<1x16x8xf32>
    %1008 = vector.extract_strided_slice %143 {offsets = [4, 0, 0], sizes = [1, 16, 8], strides = [1, 1, 1]} : vector<8x16x8xf32> to vector<1x16x8xf32>
    %c13_371 = arith.constant 13 : index
    %c4_372 = arith.constant 4 : index
    %1009 = memref.load %arg5[%c13_371, %c4_372] : memref<17x16xf32, #tpu.memory_space<smem>>
    %1010 = vector.broadcast %1009 : f32 to vector<1x16x8xf32>
    %1011 = arith.mulf %1008, %1010 : vector<1x16x8xf32>
    %1012 = arith.addf %1007, %1011 : vector<1x16x8xf32>
    %1013 = vector.extract_strided_slice %143 {offsets = [5, 0, 0], sizes = [1, 16, 8], strides = [1, 1, 1]} : vector<8x16x8xf32> to vector<1x16x8xf32>
    %c13_373 = arith.constant 13 : index
    %c5_374 = arith.constant 5 : index
    %1014 = memref.load %arg5[%c13_373, %c5_374] : memref<17x16xf32, #tpu.memory_space<smem>>
    %1015 = vector.broadcast %1014 : f32 to vector<1x16x8xf32>
    %1016 = arith.mulf %1013, %1015 : vector<1x16x8xf32>
    %1017 = arith.addf %1012, %1016 : vector<1x16x8xf32>
    %1018 = vector.extract_strided_slice %143 {offsets = [6, 0, 0], sizes = [1, 16, 8], strides = [1, 1, 1]} : vector<8x16x8xf32> to vector<1x16x8xf32>
    %c13_375 = arith.constant 13 : index
    %c6_376 = arith.constant 6 : index
    %1019 = memref.load %arg5[%c13_375, %c6_376] : memref<17x16xf32, #tpu.memory_space<smem>>
    %1020 = vector.broadcast %1019 : f32 to vector<1x16x8xf32>
    %1021 = arith.mulf %1018, %1020 : vector<1x16x8xf32>
    %1022 = arith.addf %1017, %1021 : vector<1x16x8xf32>
    %1023 = vector.extract_strided_slice %143 {offsets = [7, 0, 0], sizes = [1, 16, 8], strides = [1, 1, 1]} : vector<8x16x8xf32> to vector<1x16x8xf32>
    %c13_377 = arith.constant 13 : index
    %c7_378 = arith.constant 7 : index
    %1024 = memref.load %arg5[%c13_377, %c7_378] : memref<17x16xf32, #tpu.memory_space<smem>>
    %1025 = vector.broadcast %1024 : f32 to vector<1x16x8xf32>
    %1026 = arith.mulf %1023, %1025 : vector<1x16x8xf32>
    %1027 = arith.addf %1022, %1026 : vector<1x16x8xf32>
    %c13_379 = arith.constant 13 : index
    %c8_380 = arith.constant 8 : index
    %1028 = memref.load %arg5[%c13_379, %c8_380] : memref<17x16xf32, #tpu.memory_space<smem>>
    %1029 = vector.broadcast %1028 : f32 to vector<1x16x8xf32>
    %1030 = arith.addf %1027, %1029 : vector<1x16x8xf32>
    %1031 = math.tanh %1030 : vector<1x16x8xf32>
    %1032 = vector.extract_strided_slice %143 {offsets = [5, 0, 0], sizes = [1, 16, 8], strides = [1, 1, 1]} : vector<8x16x8xf32> to vector<1x16x8xf32>
    %1033 = arith.addf %1031, %1032 : vector<1x16x8xf32>
    %1034 = vector.extract_strided_slice %63 {offsets = [0, 0, 0], sizes = [1, 16, 8], strides = [1, 1, 1]} : vector<4x16x8xf32> to vector<1x16x8xf32>
    %1035 = arith.mulf %1034, %1033 : vector<1x16x8xf32>
    %cst_381 = arith.constant dense<0.000000e+00> : vector<1x8xf32>
    %1036 = vector.multi_reduction <add>, %1035, %cst_381 [1] : vector<1x16x8xf32> to vector<1x8xf32>
    %cst_382 = arith.constant 6.250000e-02 : f32
    %1037 = vector.broadcast %cst_382 : f32 to vector<1x8xf32>
    %1038 = arith.mulf %1036, %1037 : vector<1x8xf32>
    %1039 = vector.extract_strided_slice %63 {offsets = [1, 0, 0], sizes = [1, 16, 8], strides = [1, 1, 1]} : vector<4x16x8xf32> to vector<1x16x8xf32>
    %1040 = arith.mulf %1039, %1033 : vector<1x16x8xf32>
    %cst_383 = arith.constant dense<0.000000e+00> : vector<1x8xf32>
    %1041 = vector.multi_reduction <add>, %1040, %cst_383 [1] : vector<1x16x8xf32> to vector<1x8xf32>
    %cst_384 = arith.constant 6.250000e-02 : f32
    %1042 = vector.broadcast %cst_384 : f32 to vector<1x8xf32>
    %1043 = arith.mulf %1041, %1042 : vector<1x8xf32>
    %1044 = vector.extract_strided_slice %63 {offsets = [2, 0, 0], sizes = [1, 16, 8], strides = [1, 1, 1]} : vector<4x16x8xf32> to vector<1x16x8xf32>
    %1045 = arith.mulf %1044, %1033 : vector<1x16x8xf32>
    %cst_385 = arith.constant dense<0.000000e+00> : vector<1x8xf32>
    %1046 = vector.multi_reduction <add>, %1045, %cst_385 [1] : vector<1x16x8xf32> to vector<1x8xf32>
    %cst_386 = arith.constant 6.250000e-02 : f32
    %1047 = vector.broadcast %cst_386 : f32 to vector<1x8xf32>
    %1048 = arith.mulf %1046, %1047 : vector<1x8xf32>
    %1049 = vector.extract_strided_slice %63 {offsets = [3, 0, 0], sizes = [1, 16, 8], strides = [1, 1, 1]} : vector<4x16x8xf32> to vector<1x16x8xf32>
    %1050 = arith.mulf %1049, %1033 : vector<1x16x8xf32>
    %cst_387 = arith.constant dense<0.000000e+00> : vector<1x8xf32>
    %1051 = vector.multi_reduction <add>, %1050, %cst_387 [1] : vector<1x16x8xf32> to vector<1x8xf32>
    %cst_388 = arith.constant 6.250000e-02 : f32
    %1052 = vector.broadcast %cst_388 : f32 to vector<1x8xf32>
    %1053 = arith.mulf %1051, %1052 : vector<1x8xf32>
    %1054 = vector.extract_strided_slice %143 {offsets = [0, 0, 0], sizes = [1, 16, 8], strides = [1, 1, 1]} : vector<8x16x8xf32> to vector<1x16x8xf32>
    %c14 = arith.constant 14 : index
    %c0_389 = arith.constant 0 : index
    %1055 = memref.load %arg5[%c14, %c0_389] : memref<17x16xf32, #tpu.memory_space<smem>>
    %1056 = vector.broadcast %1055 : f32 to vector<1x16x8xf32>
    %1057 = arith.mulf %1054, %1056 : vector<1x16x8xf32>
    %1058 = vector.extract_strided_slice %143 {offsets = [1, 0, 0], sizes = [1, 16, 8], strides = [1, 1, 1]} : vector<8x16x8xf32> to vector<1x16x8xf32>
    %c14_390 = arith.constant 14 : index
    %c1_391 = arith.constant 1 : index
    %1059 = memref.load %arg5[%c14_390, %c1_391] : memref<17x16xf32, #tpu.memory_space<smem>>
    %1060 = vector.broadcast %1059 : f32 to vector<1x16x8xf32>
    %1061 = arith.mulf %1058, %1060 : vector<1x16x8xf32>
    %1062 = arith.addf %1057, %1061 : vector<1x16x8xf32>
    %1063 = vector.extract_strided_slice %143 {offsets = [2, 0, 0], sizes = [1, 16, 8], strides = [1, 1, 1]} : vector<8x16x8xf32> to vector<1x16x8xf32>
    %c14_392 = arith.constant 14 : index
    %c2_393 = arith.constant 2 : index
    %1064 = memref.load %arg5[%c14_392, %c2_393] : memref<17x16xf32, #tpu.memory_space<smem>>
    %1065 = vector.broadcast %1064 : f32 to vector<1x16x8xf32>
    %1066 = arith.mulf %1063, %1065 : vector<1x16x8xf32>
    %1067 = arith.addf %1062, %1066 : vector<1x16x8xf32>
    %1068 = vector.extract_strided_slice %143 {offsets = [3, 0, 0], sizes = [1, 16, 8], strides = [1, 1, 1]} : vector<8x16x8xf32> to vector<1x16x8xf32>
    %c14_394 = arith.constant 14 : index
    %c3_395 = arith.constant 3 : index
    %1069 = memref.load %arg5[%c14_394, %c3_395] : memref<17x16xf32, #tpu.memory_space<smem>>
    %1070 = vector.broadcast %1069 : f32 to vector<1x16x8xf32>
    %1071 = arith.mulf %1068, %1070 : vector<1x16x8xf32>
    %1072 = arith.addf %1067, %1071 : vector<1x16x8xf32>
    %1073 = vector.extract_strided_slice %143 {offsets = [4, 0, 0], sizes = [1, 16, 8], strides = [1, 1, 1]} : vector<8x16x8xf32> to vector<1x16x8xf32>
    %c14_396 = arith.constant 14 : index
    %c4_397 = arith.constant 4 : index
    %1074 = memref.load %arg5[%c14_396, %c4_397] : memref<17x16xf32, #tpu.memory_space<smem>>
    %1075 = vector.broadcast %1074 : f32 to vector<1x16x8xf32>
    %1076 = arith.mulf %1073, %1075 : vector<1x16x8xf32>
    %1077 = arith.addf %1072, %1076 : vector<1x16x8xf32>
    %1078 = vector.extract_strided_slice %143 {offsets = [5, 0, 0], sizes = [1, 16, 8], strides = [1, 1, 1]} : vector<8x16x8xf32> to vector<1x16x8xf32>
    %c14_398 = arith.constant 14 : index
    %c5_399 = arith.constant 5 : index
    %1079 = memref.load %arg5[%c14_398, %c5_399] : memref<17x16xf32, #tpu.memory_space<smem>>
    %1080 = vector.broadcast %1079 : f32 to vector<1x16x8xf32>
    %1081 = arith.mulf %1078, %1080 : vector<1x16x8xf32>
    %1082 = arith.addf %1077, %1081 : vector<1x16x8xf32>
    %1083 = vector.extract_strided_slice %143 {offsets = [6, 0, 0], sizes = [1, 16, 8], strides = [1, 1, 1]} : vector<8x16x8xf32> to vector<1x16x8xf32>
    %c14_400 = arith.constant 14 : index
    %c6_401 = arith.constant 6 : index
    %1084 = memref.load %arg5[%c14_400, %c6_401] : memref<17x16xf32, #tpu.memory_space<smem>>
    %1085 = vector.broadcast %1084 : f32 to vector<1x16x8xf32>
    %1086 = arith.mulf %1083, %1085 : vector<1x16x8xf32>
    %1087 = arith.addf %1082, %1086 : vector<1x16x8xf32>
    %1088 = vector.extract_strided_slice %143 {offsets = [7, 0, 0], sizes = [1, 16, 8], strides = [1, 1, 1]} : vector<8x16x8xf32> to vector<1x16x8xf32>
    %c14_402 = arith.constant 14 : index
    %c7_403 = arith.constant 7 : index
    %1089 = memref.load %arg5[%c14_402, %c7_403] : memref<17x16xf32, #tpu.memory_space<smem>>
    %1090 = vector.broadcast %1089 : f32 to vector<1x16x8xf32>
    %1091 = arith.mulf %1088, %1090 : vector<1x16x8xf32>
    %1092 = arith.addf %1087, %1091 : vector<1x16x8xf32>
    %c14_404 = arith.constant 14 : index
    %c8_405 = arith.constant 8 : index
    %1093 = memref.load %arg5[%c14_404, %c8_405] : memref<17x16xf32, #tpu.memory_space<smem>>
    %1094 = vector.broadcast %1093 : f32 to vector<1x16x8xf32>
    %1095 = arith.addf %1092, %1094 : vector<1x16x8xf32>
    %1096 = math.tanh %1095 : vector<1x16x8xf32>
    %1097 = vector.extract_strided_slice %143 {offsets = [6, 0, 0], sizes = [1, 16, 8], strides = [1, 1, 1]} : vector<8x16x8xf32> to vector<1x16x8xf32>
    %1098 = arith.addf %1096, %1097 : vector<1x16x8xf32>
    %1099 = vector.extract_strided_slice %63 {offsets = [0, 0, 0], sizes = [1, 16, 8], strides = [1, 1, 1]} : vector<4x16x8xf32> to vector<1x16x8xf32>
    %1100 = arith.mulf %1099, %1098 : vector<1x16x8xf32>
    %cst_406 = arith.constant dense<0.000000e+00> : vector<1x8xf32>
    %1101 = vector.multi_reduction <add>, %1100, %cst_406 [1] : vector<1x16x8xf32> to vector<1x8xf32>
    %cst_407 = arith.constant 6.250000e-02 : f32
    %1102 = vector.broadcast %cst_407 : f32 to vector<1x8xf32>
    %1103 = arith.mulf %1101, %1102 : vector<1x8xf32>
    %1104 = vector.extract_strided_slice %63 {offsets = [1, 0, 0], sizes = [1, 16, 8], strides = [1, 1, 1]} : vector<4x16x8xf32> to vector<1x16x8xf32>
    %1105 = arith.mulf %1104, %1098 : vector<1x16x8xf32>
    %cst_408 = arith.constant dense<0.000000e+00> : vector<1x8xf32>
    %1106 = vector.multi_reduction <add>, %1105, %cst_408 [1] : vector<1x16x8xf32> to vector<1x8xf32>
    %cst_409 = arith.constant 6.250000e-02 : f32
    %1107 = vector.broadcast %cst_409 : f32 to vector<1x8xf32>
    %1108 = arith.mulf %1106, %1107 : vector<1x8xf32>
    %1109 = vector.extract_strided_slice %63 {offsets = [2, 0, 0], sizes = [1, 16, 8], strides = [1, 1, 1]} : vector<4x16x8xf32> to vector<1x16x8xf32>
    %1110 = arith.mulf %1109, %1098 : vector<1x16x8xf32>
    %cst_410 = arith.constant dense<0.000000e+00> : vector<1x8xf32>
    %1111 = vector.multi_reduction <add>, %1110, %cst_410 [1] : vector<1x16x8xf32> to vector<1x8xf32>
    %cst_411 = arith.constant 6.250000e-02 : f32
    %1112 = vector.broadcast %cst_411 : f32 to vector<1x8xf32>
    %1113 = arith.mulf %1111, %1112 : vector<1x8xf32>
    %1114 = vector.extract_strided_slice %63 {offsets = [3, 0, 0], sizes = [1, 16, 8], strides = [1, 1, 1]} : vector<4x16x8xf32> to vector<1x16x8xf32>
    %1115 = arith.mulf %1114, %1098 : vector<1x16x8xf32>
    %cst_412 = arith.constant dense<0.000000e+00> : vector<1x8xf32>
    %1116 = vector.multi_reduction <add>, %1115, %cst_412 [1] : vector<1x16x8xf32> to vector<1x8xf32>
    %cst_413 = arith.constant 6.250000e-02 : f32
    %1117 = vector.broadcast %cst_413 : f32 to vector<1x8xf32>
    %1118 = arith.mulf %1116, %1117 : vector<1x8xf32>
    %1119 = vector.extract_strided_slice %143 {offsets = [0, 0, 0], sizes = [1, 16, 8], strides = [1, 1, 1]} : vector<8x16x8xf32> to vector<1x16x8xf32>
    %c15 = arith.constant 15 : index
    %c0_414 = arith.constant 0 : index
    %1120 = memref.load %arg5[%c15, %c0_414] : memref<17x16xf32, #tpu.memory_space<smem>>
    %1121 = vector.broadcast %1120 : f32 to vector<1x16x8xf32>
    %1122 = arith.mulf %1119, %1121 : vector<1x16x8xf32>
    %1123 = vector.extract_strided_slice %143 {offsets = [1, 0, 0], sizes = [1, 16, 8], strides = [1, 1, 1]} : vector<8x16x8xf32> to vector<1x16x8xf32>
    %c15_415 = arith.constant 15 : index
    %c1_416 = arith.constant 1 : index
    %1124 = memref.load %arg5[%c15_415, %c1_416] : memref<17x16xf32, #tpu.memory_space<smem>>
    %1125 = vector.broadcast %1124 : f32 to vector<1x16x8xf32>
    %1126 = arith.mulf %1123, %1125 : vector<1x16x8xf32>
    %1127 = arith.addf %1122, %1126 : vector<1x16x8xf32>
    %1128 = vector.extract_strided_slice %143 {offsets = [2, 0, 0], sizes = [1, 16, 8], strides = [1, 1, 1]} : vector<8x16x8xf32> to vector<1x16x8xf32>
    %c15_417 = arith.constant 15 : index
    %c2_418 = arith.constant 2 : index
    %1129 = memref.load %arg5[%c15_417, %c2_418] : memref<17x16xf32, #tpu.memory_space<smem>>
    %1130 = vector.broadcast %1129 : f32 to vector<1x16x8xf32>
    %1131 = arith.mulf %1128, %1130 : vector<1x16x8xf32>
    %1132 = arith.addf %1127, %1131 : vector<1x16x8xf32>
    %1133 = vector.extract_strided_slice %143 {offsets = [3, 0, 0], sizes = [1, 16, 8], strides = [1, 1, 1]} : vector<8x16x8xf32> to vector<1x16x8xf32>
    %c15_419 = arith.constant 15 : index
    %c3_420 = arith.constant 3 : index
    %1134 = memref.load %arg5[%c15_419, %c3_420] : memref<17x16xf32, #tpu.memory_space<smem>>
    %1135 = vector.broadcast %1134 : f32 to vector<1x16x8xf32>
    %1136 = arith.mulf %1133, %1135 : vector<1x16x8xf32>
    %1137 = arith.addf %1132, %1136 : vector<1x16x8xf32>
    %1138 = vector.extract_strided_slice %143 {offsets = [4, 0, 0], sizes = [1, 16, 8], strides = [1, 1, 1]} : vector<8x16x8xf32> to vector<1x16x8xf32>
    %c15_421 = arith.constant 15 : index
    %c4_422 = arith.constant 4 : index
    %1139 = memref.load %arg5[%c15_421, %c4_422] : memref<17x16xf32, #tpu.memory_space<smem>>
    %1140 = vector.broadcast %1139 : f32 to vector<1x16x8xf32>
    %1141 = arith.mulf %1138, %1140 : vector<1x16x8xf32>
    %1142 = arith.addf %1137, %1141 : vector<1x16x8xf32>
    %1143 = vector.extract_strided_slice %143 {offsets = [5, 0, 0], sizes = [1, 16, 8], strides = [1, 1, 1]} : vector<8x16x8xf32> to vector<1x16x8xf32>
    %c15_423 = arith.constant 15 : index
    %c5_424 = arith.constant 5 : index
    %1144 = memref.load %arg5[%c15_423, %c5_424] : memref<17x16xf32, #tpu.memory_space<smem>>
    %1145 = vector.broadcast %1144 : f32 to vector<1x16x8xf32>
    %1146 = arith.mulf %1143, %1145 : vector<1x16x8xf32>
    %1147 = arith.addf %1142, %1146 : vector<1x16x8xf32>
    %1148 = vector.extract_strided_slice %143 {offsets = [6, 0, 0], sizes = [1, 16, 8], strides = [1, 1, 1]} : vector<8x16x8xf32> to vector<1x16x8xf32>
    %c15_425 = arith.constant 15 : index
    %c6_426 = arith.constant 6 : index
    %1149 = memref.load %arg5[%c15_425, %c6_426] : memref<17x16xf32, #tpu.memory_space<smem>>
    %1150 = vector.broadcast %1149 : f32 to vector<1x16x8xf32>
    %1151 = arith.mulf %1148, %1150 : vector<1x16x8xf32>
    %1152 = arith.addf %1147, %1151 : vector<1x16x8xf32>
    %1153 = vector.extract_strided_slice %143 {offsets = [7, 0, 0], sizes = [1, 16, 8], strides = [1, 1, 1]} : vector<8x16x8xf32> to vector<1x16x8xf32>
    %c15_427 = arith.constant 15 : index
    %c7_428 = arith.constant 7 : index
    %1154 = memref.load %arg5[%c15_427, %c7_428] : memref<17x16xf32, #tpu.memory_space<smem>>
    %1155 = vector.broadcast %1154 : f32 to vector<1x16x8xf32>
    %1156 = arith.mulf %1153, %1155 : vector<1x16x8xf32>
    %1157 = arith.addf %1152, %1156 : vector<1x16x8xf32>
    %c15_429 = arith.constant 15 : index
    %c8_430 = arith.constant 8 : index
    %1158 = memref.load %arg5[%c15_429, %c8_430] : memref<17x16xf32, #tpu.memory_space<smem>>
    %1159 = vector.broadcast %1158 : f32 to vector<1x16x8xf32>
    %1160 = arith.addf %1157, %1159 : vector<1x16x8xf32>
    %1161 = math.tanh %1160 : vector<1x16x8xf32>
    %1162 = vector.extract_strided_slice %143 {offsets = [7, 0, 0], sizes = [1, 16, 8], strides = [1, 1, 1]} : vector<8x16x8xf32> to vector<1x16x8xf32>
    %1163 = arith.addf %1161, %1162 : vector<1x16x8xf32>
    %1164 = vector.extract_strided_slice %63 {offsets = [0, 0, 0], sizes = [1, 16, 8], strides = [1, 1, 1]} : vector<4x16x8xf32> to vector<1x16x8xf32>
    %1165 = arith.mulf %1164, %1163 : vector<1x16x8xf32>
    %cst_431 = arith.constant dense<0.000000e+00> : vector<1x8xf32>
    %1166 = vector.multi_reduction <add>, %1165, %cst_431 [1] : vector<1x16x8xf32> to vector<1x8xf32>
    %cst_432 = arith.constant 6.250000e-02 : f32
    %1167 = vector.broadcast %cst_432 : f32 to vector<1x8xf32>
    %1168 = arith.mulf %1166, %1167 : vector<1x8xf32>
    %1169 = vector.extract_strided_slice %63 {offsets = [1, 0, 0], sizes = [1, 16, 8], strides = [1, 1, 1]} : vector<4x16x8xf32> to vector<1x16x8xf32>
    %1170 = arith.mulf %1169, %1163 : vector<1x16x8xf32>
    %cst_433 = arith.constant dense<0.000000e+00> : vector<1x8xf32>
    %1171 = vector.multi_reduction <add>, %1170, %cst_433 [1] : vector<1x16x8xf32> to vector<1x8xf32>
    %cst_434 = arith.constant 6.250000e-02 : f32
    %1172 = vector.broadcast %cst_434 : f32 to vector<1x8xf32>
    %1173 = arith.mulf %1171, %1172 : vector<1x8xf32>
    %1174 = vector.extract_strided_slice %63 {offsets = [2, 0, 0], sizes = [1, 16, 8], strides = [1, 1, 1]} : vector<4x16x8xf32> to vector<1x16x8xf32>
    %1175 = arith.mulf %1174, %1163 : vector<1x16x8xf32>
    %cst_435 = arith.constant dense<0.000000e+00> : vector<1x8xf32>
    %1176 = vector.multi_reduction <add>, %1175, %cst_435 [1] : vector<1x16x8xf32> to vector<1x8xf32>
    %cst_436 = arith.constant 6.250000e-02 : f32
    %1177 = vector.broadcast %cst_436 : f32 to vector<1x8xf32>
    %1178 = arith.mulf %1176, %1177 : vector<1x8xf32>
    %1179 = vector.extract_strided_slice %63 {offsets = [3, 0, 0], sizes = [1, 16, 8], strides = [1, 1, 1]} : vector<4x16x8xf32> to vector<1x16x8xf32>
    %1180 = arith.mulf %1179, %1163 : vector<1x16x8xf32>
    %cst_437 = arith.constant dense<0.000000e+00> : vector<1x8xf32>
    %1181 = vector.multi_reduction <add>, %1180, %cst_437 [1] : vector<1x16x8xf32> to vector<1x8xf32>
    %cst_438 = arith.constant 6.250000e-02 : f32
    %1182 = vector.broadcast %cst_438 : f32 to vector<1x8xf32>
    %1183 = arith.mulf %1181, %1182 : vector<1x8xf32>
    %1184 = tpu.concatenate %193, %258, %323, %388, %453, %518, %583, %648, %713, %778, %843, %908, %973, %1038, %1103, %1168 in 0 : vector<1x8xf32>, vector<1x8xf32>, vector<1x8xf32>, vector<1x8xf32>, vector<1x8xf32>, vector<1x8xf32>, vector<1x8xf32>, vector<1x8xf32>, vector<1x8xf32>, vector<1x8xf32>, vector<1x8xf32>, vector<1x8xf32>, vector<1x8xf32>, vector<1x8xf32>, vector<1x8xf32>, vector<1x8xf32> -> vector<16x8xf32>
    %1185 = tpu.concatenate %198, %263, %328, %393, %458, %523, %588, %653, %718, %783, %848, %913, %978, %1043, %1108, %1173 in 0 : vector<1x8xf32>, vector<1x8xf32>, vector<1x8xf32>, vector<1x8xf32>, vector<1x8xf32>, vector<1x8xf32>, vector<1x8xf32>, vector<1x8xf32>, vector<1x8xf32>, vector<1x8xf32>, vector<1x8xf32>, vector<1x8xf32>, vector<1x8xf32>, vector<1x8xf32>, vector<1x8xf32>, vector<1x8xf32> -> vector<16x8xf32>
    %1186 = tpu.concatenate %203, %268, %333, %398, %463, %528, %593, %658, %723, %788, %853, %918, %983, %1048, %1113, %1178 in 0 : vector<1x8xf32>, vector<1x8xf32>, vector<1x8xf32>, vector<1x8xf32>, vector<1x8xf32>, vector<1x8xf32>, vector<1x8xf32>, vector<1x8xf32>, vector<1x8xf32>, vector<1x8xf32>, vector<1x8xf32>, vector<1x8xf32>, vector<1x8xf32>, vector<1x8xf32>, vector<1x8xf32>, vector<1x8xf32> -> vector<16x8xf32>
    %1187 = tpu.concatenate %208, %273, %338, %403, %468, %533, %598, %663, %728, %793, %858, %923, %988, %1053, %1118, %1183 in 0 : vector<1x8xf32>, vector<1x8xf32>, vector<1x8xf32>, vector<1x8xf32>, vector<1x8xf32>, vector<1x8xf32>, vector<1x8xf32>, vector<1x8xf32>, vector<1x8xf32>, vector<1x8xf32>, vector<1x8xf32>, vector<1x8xf32>, vector<1x8xf32>, vector<1x8xf32>, vector<1x8xf32>, vector<1x8xf32> -> vector<16x8xf32>
    %1188 = vector.extract_strided_slice %1184 {offsets = [0, 0], sizes = [1, 8], strides = [1, 1]} : vector<16x8xf32> to vector<1x8xf32>
    %1189 = vector.broadcast %1188 : vector<1x8xf32> to vector<16x8xf32>
    %1190 = arith.mulf %1184, %1189 : vector<16x8xf32>
    %1191 = vector.extract_strided_slice %1185 {offsets = [0, 0], sizes = [1, 8], strides = [1, 1]} : vector<16x8xf32> to vector<1x8xf32>
    %1192 = vector.broadcast %1191 : vector<1x8xf32> to vector<16x8xf32>
    %1193 = arith.mulf %1185, %1192 : vector<16x8xf32>
    %1194 = arith.addf %1190, %1193 : vector<16x8xf32>
    %1195 = vector.extract_strided_slice %1186 {offsets = [0, 0], sizes = [1, 8], strides = [1, 1]} : vector<16x8xf32> to vector<1x8xf32>
    %1196 = vector.broadcast %1195 : vector<1x8xf32> to vector<16x8xf32>
    %1197 = arith.mulf %1186, %1196 : vector<16x8xf32>
    %1198 = arith.addf %1194, %1197 : vector<16x8xf32>
    %1199 = vector.extract_strided_slice %1187 {offsets = [0, 0], sizes = [1, 8], strides = [1, 1]} : vector<16x8xf32> to vector<1x8xf32>
    %1200 = vector.broadcast %1199 : vector<1x8xf32> to vector<16x8xf32>
    %1201 = arith.mulf %1187, %1200 : vector<16x8xf32>
    %1202 = arith.addf %1198, %1201 : vector<16x8xf32>
    %1203 = vector.extract_strided_slice %1184 {offsets = [1, 0], sizes = [1, 8], strides = [1, 1]} : vector<16x8xf32> to vector<1x8xf32>
    %1204 = vector.broadcast %1203 : vector<1x8xf32> to vector<16x8xf32>
    %1205 = arith.mulf %1184, %1204 : vector<16x8xf32>
    %1206 = vector.extract_strided_slice %1185 {offsets = [1, 0], sizes = [1, 8], strides = [1, 1]} : vector<16x8xf32> to vector<1x8xf32>
    %1207 = vector.broadcast %1206 : vector<1x8xf32> to vector<16x8xf32>
    %1208 = arith.mulf %1185, %1207 : vector<16x8xf32>
    %1209 = arith.addf %1205, %1208 : vector<16x8xf32>
    %1210 = vector.extract_strided_slice %1186 {offsets = [1, 0], sizes = [1, 8], strides = [1, 1]} : vector<16x8xf32> to vector<1x8xf32>
    %1211 = vector.broadcast %1210 : vector<1x8xf32> to vector<16x8xf32>
    %1212 = arith.mulf %1186, %1211 : vector<16x8xf32>
    %1213 = arith.addf %1209, %1212 : vector<16x8xf32>
    %1214 = vector.extract_strided_slice %1187 {offsets = [1, 0], sizes = [1, 8], strides = [1, 1]} : vector<16x8xf32> to vector<1x8xf32>
    %1215 = vector.broadcast %1214 : vector<1x8xf32> to vector<16x8xf32>
    %1216 = arith.mulf %1187, %1215 : vector<16x8xf32>
    %1217 = arith.addf %1213, %1216 : vector<16x8xf32>
    %1218 = vector.extract_strided_slice %1184 {offsets = [2, 0], sizes = [1, 8], strides = [1, 1]} : vector<16x8xf32> to vector<1x8xf32>
    %1219 = vector.broadcast %1218 : vector<1x8xf32> to vector<16x8xf32>
    %1220 = arith.mulf %1184, %1219 : vector<16x8xf32>
    %1221 = vector.extract_strided_slice %1185 {offsets = [2, 0], sizes = [1, 8], strides = [1, 1]} : vector<16x8xf32> to vector<1x8xf32>
    %1222 = vector.broadcast %1221 : vector<1x8xf32> to vector<16x8xf32>
    %1223 = arith.mulf %1185, %1222 : vector<16x8xf32>
    %1224 = arith.addf %1220, %1223 : vector<16x8xf32>
    %1225 = vector.extract_strided_slice %1186 {offsets = [2, 0], sizes = [1, 8], strides = [1, 1]} : vector<16x8xf32> to vector<1x8xf32>
    %1226 = vector.broadcast %1225 : vector<1x8xf32> to vector<16x8xf32>
    %1227 = arith.mulf %1186, %1226 : vector<16x8xf32>
    %1228 = arith.addf %1224, %1227 : vector<16x8xf32>
    %1229 = vector.extract_strided_slice %1187 {offsets = [2, 0], sizes = [1, 8], strides = [1, 1]} : vector<16x8xf32> to vector<1x8xf32>
    %1230 = vector.broadcast %1229 : vector<1x8xf32> to vector<16x8xf32>
    %1231 = arith.mulf %1187, %1230 : vector<16x8xf32>
    %1232 = arith.addf %1228, %1231 : vector<16x8xf32>
    %1233 = vector.extract_strided_slice %1184 {offsets = [3, 0], sizes = [1, 8], strides = [1, 1]} : vector<16x8xf32> to vector<1x8xf32>
    %1234 = vector.broadcast %1233 : vector<1x8xf32> to vector<16x8xf32>
    %1235 = arith.mulf %1184, %1234 : vector<16x8xf32>
    %1236 = vector.extract_strided_slice %1185 {offsets = [3, 0], sizes = [1, 8], strides = [1, 1]} : vector<16x8xf32> to vector<1x8xf32>
    %1237 = vector.broadcast %1236 : vector<1x8xf32> to vector<16x8xf32>
    %1238 = arith.mulf %1185, %1237 : vector<16x8xf32>
    %1239 = arith.addf %1235, %1238 : vector<16x8xf32>
    %1240 = vector.extract_strided_slice %1186 {offsets = [3, 0], sizes = [1, 8], strides = [1, 1]} : vector<16x8xf32> to vector<1x8xf32>
    %1241 = vector.broadcast %1240 : vector<1x8xf32> to vector<16x8xf32>
    %1242 = arith.mulf %1186, %1241 : vector<16x8xf32>
    %1243 = arith.addf %1239, %1242 : vector<16x8xf32>
    %1244 = vector.extract_strided_slice %1187 {offsets = [3, 0], sizes = [1, 8], strides = [1, 1]} : vector<16x8xf32> to vector<1x8xf32>
    %1245 = vector.broadcast %1244 : vector<1x8xf32> to vector<16x8xf32>
    %1246 = arith.mulf %1187, %1245 : vector<16x8xf32>
    %1247 = arith.addf %1243, %1246 : vector<16x8xf32>
    %1248 = tpu.concatenate %1202, %1217, %1232, %1247 in 0 : vector<16x8xf32>, vector<16x8xf32>, vector<16x8xf32>, vector<16x8xf32> -> vector<64x8xf32>
    %c0_439 = arith.constant 0 : index
    %c0_440 = arith.constant 0 : index
    %c0_441 = arith.constant 0 : index
    %1249 = vector.load %arg4[%c0_439, %c0_440, %c0_441] : memref<1x48x72xf32, #tpu.memory_space<vmem>>, vector<1x48x72xf32>
    %1250 = vector.shape_cast %1249 : vector<1x48x72xf32> to vector<48x72xf32>
    %1251 = vector.extract_strided_slice %1250 {offsets = [0, 0], sizes = [16, 64], strides = [1, 1]} : vector<48x72xf32> to vector<16x64xf32>
    %1252 = vector.extract_strided_slice %1250 {offsets = [0, 64], sizes = [16, 1], strides = [1, 1]} : vector<48x72xf32> to vector<16x1xf32>
    %1253 = vector.extract_strided_slice %1250 {offsets = [16, 0], sizes = [16, 16], strides = [1, 1]} : vector<48x72xf32> to vector<16x16xf32>
    %1254 = vector.extract_strided_slice %1250 {offsets = [16, 16], sizes = [16, 1], strides = [1, 1]} : vector<48x72xf32> to vector<16x1xf32>
    %1255 = vector.extract_strided_slice %1250 {offsets = [32, 0], sizes = [16, 1], strides = [1, 1]} : vector<48x72xf32> to vector<16x1xf32>
    %1256 = vector.extract_strided_slice %1250 {offsets = [32, 1], sizes = [1, 1], strides = [1, 1]} : vector<48x72xf32> to vector<1x1xf32>
    %cst_442 = arith.constant dense<0.000000e+00> : vector<16x8xf32>
    %1257 = tpu.matmul %1251, %1248, %cst_442 {dimension_numbers = #tpu.dot_dimension_numbers<[1], [0], [0], [1], [0, 0, 1, 1], [], []>} : vector<16x64xf32>, vector<64x8xf32>, vector<16x8xf32> -> vector<16x8xf32>
    %1258 = vector.broadcast %1252 : vector<16x1xf32> to vector<16x8xf32>
    %1259 = arith.addf %1257, %1258 : vector<16x8xf32>
    %1260 = math.tanh %1259 : vector<16x8xf32>
    %cst_443 = arith.constant dense<0.000000e+00> : vector<16x8xf32>
    %1261 = tpu.matmul %1253, %1260, %cst_443 {dimension_numbers = #tpu.dot_dimension_numbers<[1], [0], [0], [1], [0, 0, 1, 1], [], []>} : vector<16x16xf32>, vector<16x8xf32>, vector<16x8xf32> -> vector<16x8xf32>
    %1262 = vector.broadcast %1254 : vector<16x1xf32> to vector<16x8xf32>
    %1263 = arith.addf %1261, %1262 : vector<16x8xf32>
    %1264 = math.tanh %1263 : vector<16x8xf32>
    %1265 = arith.addf %1264, %1260 : vector<16x8xf32>
    %1266 = vector.broadcast %1255 : vector<16x1xf32> to vector<16x8xf32>
    %1267 = arith.mulf %1266, %1265 : vector<16x8xf32>
    %cst_444 = arith.constant dense<0.000000e+00> : vector<8xf32>
    %1268 = vector.multi_reduction <add>, %1267, %cst_444 [0] : vector<16x8xf32> to vector<8xf32>
    %1269 = vector.shape_cast %1268 : vector<8xf32> to vector<1x8xf32>
    %1270 = vector.broadcast %1256 : vector<1x1xf32> to vector<1x8xf32>
    %1271 = arith.addf %1269, %1270 : vector<1x8xf32>
    %1272 = vector.shape_cast %1271 : vector<1x8xf32> to vector<1x1x8xf32>
    %c0_445 = arith.constant 0 : index
    %c0_446 = arith.constant 0 : index
    %c0_447 = arith.constant 0 : index
    %1273 = vector.load %arg6[%c0_445, %c0_446, %c0_447] : memref<1x1x8xf32, #tpu.memory_space<vmem>>, vector<1x1x8xf32>
    tpu.vector_store %arg6[%c0_445, %c0_446, %c0_447], %1272 {strides = array<i32>} : memref<1x1x8xf32, #tpu.memory_space<vmem>>, vector<1x1x8xf32>,
    return
  }
  func.func @transform_0(%arg0: i32, %arg1: i32) -> (i32, i32, i32, i32) {
    %c0_i32 = arith.constant 0 : i32
    %c0_i32_0 = arith.constant 0 : i32
    %c0_i32_1 = arith.constant 0 : i32
    return %arg0, %c0_i32, %c0_i32_0, %arg1 : i32, i32, i32, i32
  }
  func.func @transform_1(%arg0: i32, %arg1: i32) -> (i32, i32, i32, i32) {
    %c0_i32 = arith.constant 0 : i32
    %c0_i32_0 = arith.constant 0 : i32
    %c0_i32_1 = arith.constant 0 : i32
    %c0_i32_2 = arith.constant 0 : i32
    return %arg0, %c0_i32, %c0_i32_0, %c0_i32_1 : i32, i32, i32, i32
  }
  func.func @transform_2(%arg0: i32, %arg1: i32) -> (i32, i32, i32) {
    %c0_i32 = arith.constant 0 : i32
    %c0_i32_0 = arith.constant 0 : i32
    %c0_i32_1 = arith.constant 0 : i32
    return %arg0, %c0_i32, %c0_i32_0 : i32, i32, i32
  }
  func.func @transform_3(%arg0: i32, %arg1: i32) -> (i32, i32) {
    %c0_i32 = arith.constant 0 : i32
    %c0_i32_0 = arith.constant 0 : i32
    %c0_i32_1 = arith.constant 0 : i32
    return %c0_i32, %c0_i32_0 : i32, i32
  }
  func.func @transform_4(%arg0: i32, %arg1: i32) -> (i32, i32, i32) {
    %c0_i32 = arith.constant 0 : i32
    %c0_i32_0 = arith.constant 0 : i32
    return %arg0, %c0_i32, %arg1 : i32, i32, i32
  }
}

</mosaic_0001>

<bundles_post_ra>
// kernel: tpu_custom_call.1
= control target key start
LH: loop header
LB: loop body
LE: loop exit
PB: predicated region body
PF: predicated region fallthrough
CT: control target
= control target key end

     0   :  { %s5516_s0 = inlined_call_operand.vmem [shape: f32[2,4,16,8], index: 0, kind: input, shape index: {}]   ;;  %s5517_s1 = inlined_call_operand.vmem [shape: f32[2,24,16,1], index: 1, kind: input, shape index: {}]   ;;  %s5518_s2 = inlined_call_operand.vmem [shape: f32[2,48,72], index: 2, kind: input, shape index: {}]   ;;  %s5519_s3 = inlined_call_operand.vmem [shape: f32[17,16], index: 3, kind: input, shape index: {}]   ;;  %s5520_s4 = inlined_call_operand.hbm [shape: f32[2,1,8], index: 4, kind: output, shape index: {}]  }
   0x1   :  { %5625 = sst [smem:[#allocation103_spill]] %s5516_s0 }
   0x2   :  { %5626 = sst [smem:[#allocation104_spill]] %s5517_s1 }
   0x3   :  { %5627 = sst [smem:[#allocation105_spill]] %s5518_s2 }
   0x4   :  { %5628 = sst [smem:[#allocation106_spill]] %s5519_s3 }
   0x5   :  { %5629 = sst [smem:[#allocation107_spill]] %s5520_s4 }
   0x6   :  { %9 = vsyncpa [#allocation4], 0 }
   0x7   :  { %10 = vsyncpa [#allocation3], 0 }
   0x8   :  { %12 = vsyncpa [#allocation3 + $0x1], 0  ;;  %s3421_s15 = smov 0   ;;  %s3423_s16 = smov 0  }
   0x9   :  { %s3425_s17 = smov 0   ;;  %s3427_s18 = smov 0  }
   0xa   :  { %s3429_s19 = smov 0   ;;  %s3431_s20 = smov 0  }
   0xb LB: > { %5630 = sst [smem:[#allocation8_spill]] %s3366_s15  ;;  %s2865_s21 = sadd.s32 4294967295, %s3386_s20   ;;  %s3386_s20 = sphi %s3431_s20, %s18_s20   ;;  %s3382_s19 = sphi %s3429_s19, %s5965_s19   ;;  %s3378_s18 = sphi %s3427_s18, %s5964_s18   ;;  %s3374_s17 = sphi %s3425_s17, %s5963_s17   ;;  %s3370_s16 = sphi %s3423_s16, %s5962_s16   ;;  %s3366_s15 = sphi %s3421_s15, %s5961_s15  }
   0xc   : > { %5631 = sst [smem:[#allocation9_spill]] %s3370_s16  ;;  %s2866_s22 = sadd.s32 4294967294, %s3386_s20  }
   0xd   : > { %5632 = sst [smem:[#allocation10_spill]] %s3374_s17  ;;  %s30_s23 = sadd.s32 1, %s3382_s19 }
   0xe   : > { %5633 = sst [smem:[#allocation11_spill]] %s3378_s18  ;;  %s140_s24 = sadd.s32 1, %s3374_s17 }
   0xf   : > { %5634 = sst [smem:[#allocation12_spill]] %s3382_s19  ;;  %p32_p0 = scmp.ge.s32.totalorder %s30_s23, 2 }
  0x10   : > { %5635 = sst [smem:[#allocation13_spill]] %s3386_s20  ;;  %p150_p1 = scmp.ne.s32.totalorder %s3374_s17, %s3370_s16 }
  0x11   : > { %p151_p2 = scmp.eq.s32.totalorder %s2865_s21, 1  ;;  %p156_p3 = scmp.ne.s32.totalorder %s3370_s16, %s3366_s15 }
  0x12   : > { %s5967_s23 = smov (%p32_p0, %s30_s23), 0  ;;  %p157_p5 = scmp.eq.s32.totalorder %s2866_s22, 1 }
  0x13   : > { %5636 = sst [smem:[#allocation14_spill]] %s5967_s23  ;;  %p3461_p4 = por %p151_p2, %p150_p1 }
  0x14   : > { %s135_s26 = ssub.s32 %s3382_s19, %s5967_s23  ;;  %p2867_p6 = scmp.ge.s32.totalorder %s3386_s20, 1 }
  0x15   : > { %s5637_s25 = scalar_select %p3461_p4, 1, 0 }
  0x16   : > { %p138_p7 = scmp.eq.s32.totalorder %s135_s26, 0  ;;  %p3468_p8 = por %p157_p5, %p156_p3 }
  0x17   : > { %5638 = sst [smem:[#allocation15_spill]] %s5637_s25  ;;  %p164_p9 = scmp.lt.s32.totalorder %s3386_s20, 3 }
  0x18   : > { %s5639_s27 = scalar_select %p3468_p8, 1, 0 }
  0x19   : > { %s3474_s28 = scalar_select %p138_p7, %s3374_s17, %s140_s24  }
  0x1a   : > { %5640 = sst [smem:[#allocation16_spill]] %s5639_s27  ;;  %p3476_p10 = pnand %p2867_p6, %p164_p9 }
  0x1b   : > { %5641 = sst [smem:[#allocation17_spill]] %s3474_s28  ;;  %p3480_p11 = scmp.eq.s32.totalorder %s2865_s21, 0 }
  0x1c   : > { %s5644_s3 = sld [smem:[#allocation106_spill]]  ;;  %p3107_p12 = pneg %p3476_p10 }
  0x1e   : > { %p3491_p13 = pnand %p3480_p11, %p3107_p12 }
  0x20   : > { %p3291_p1 = pneg %p3491_p13 }
  0x22   : > { %s176_s7 = sshll.u32 %s5644_s3, 4  ;;  %s177_s7 = int_to_ptr.vmem [resolvable:$true] %s176_s7 }
  0x23   : > { %s3289_s9 = scalar_lea.vmem %s177_s7, 384  ;;  %p3297_p5 = scmp.lt.s32.totalorder %s177_s7, %s177_s7 }
  0x24   : > { %p3290_p0 = scmp.ne.s32.totalorder %s177_s7, %s3289_s9  ;;  %p3298_p6 = scmp.lt.s32.totalorder %s3289_s9, %s3289_s9 }
  0x26   : > { %p3292_p2 = pnand %p3291_p1, %p3290_p0  ;;  %p3299_p7 = por %p3298_p6, %p3297_p5 }
  0x28   : > { %p3293_p3 = pneg %p3292_p2 }
  0x2a   : > { %p3300_p9 = pnand %p3299_p7, %p3293_p3 }
  0x2c   : > { %3303 = shalt.err (!%p3300_p9)
}
  0x2d   : > { %s3388_s10 = smov [#allocation2]   ;;  %s3389_s11 = smov 128  }
  0x2e   : > { %s3390_s12 = smov 8   ;;  %219 = sbr.rel (%p3476_p10) target bundleno = 1151 (0x47f), region = 36 }
  0x2f   : > { %3110 = dma.vmem_to_smem (!%p3491_p13), %s177_s7, 384, %s3388_s10, [#allocation4], %s3389_s11, %s3389_s11, %s3390_s12  }
  0x35   : > { %3357 = dma.done.wait (%p3480_p11), [#allocation4], 384  }
  0x36   : > { %3359 = vsyncadd (%p3480_p11), [#allocation4], 4294966912 }
  0x37   : > { %225 = sfence }
  0x38   : > { %p258_p12 = scmp.lt.s32.totalorder %s3378_s18, 1  ;;  %v5585_v0 = vmov 0   ;;  %s5647_s1 = sld [smem:[#allocation104_spill]] }
  0x39   : > { %3174 = vset.pattern.permute.xlu1 %v5585_v0  ;;  %3173 = vset.pattern.permute.xlu0 %v5585_v0  ;;  %s5648_s0 = sld [smem:[#allocation103_spill]]  ;;  %s3595_s6 = sld [smem:[#allocation2 + $0x800]] }
  0x3a   : > { %s3509_s13 = scalar_select %p258_p12, %s3378_s18, 1 }
  0x3b   : > { %s3597_s7 = sld [smem:[#allocation2 + $0x801]]  ;;  %s3599_s8 = sld [smem:[#allocation2 + $0x802]] }
  0x3c   : > { %5646 = sst [smem:[#allocation18_spill]] %s3509_s13  ;;  %s3099_s14 = smul.u32 384, %s3509_s13 }
  0x3d   : > { %s3038_s26 = sshll.u32 %s3509_s13, 6  ;;  %s3606_s9 = sld [smem:[#allocation2 + $0x803]] }
  0x3e   : > { %s3515_s24 = scalar_lea.vmem %s5647_s1, %s3099_s14  ;;  %s3608_s10 = sld [smem:[#allocation2 + $0x804]] }
  0x3f   : > { %v292_v1 = vld [vmem:[%s3515_s24 + $0x40] sm:$0xff]  ;;  %v293_v3 = vld [vmem:[%s3515_s24 + $0x48] sm:$0xff]  ;;  %v303_v7 = vld [vmem:[%s3515_s24 + $0x98] sm:$0xff]  ;;  %s3563_s5 = scalar_lea.vmem %s5648_s0, %s3038_s26  ;;  %s3611_s11 = sld [smem:[#allocation2 + $0x805]] }
  0x40   : > { %v284_v2 = vld [vmem:[%s3515_s24] sm:$0xff]  ;;  %443 = vperm.xlu1 %3174, %v292_v1   ;;  %v285_v4 = vld [vmem:[%s3515_s24 + $0x8] sm:$0xff]  ;;  %v302_v8 = vld [vmem:[%s3515_s24 + $0x90] sm:$0xff]  ;;  %s3613_s12 = sld [smem:[#allocation2 + $0x806]]  ;;  %s3617_s14 = sld [smem:[#allocation2 + $0x807]] }
  0x41   : > { %395 = vperm.xlu0 %3173, %v284_v2   ;;  %v301_v5 = vld [vmem:[%s3515_s24 + $0x88] sm:$0xff]  ;;  %v300_v6 = vld [vmem:[%s3515_s24 + $0x80] sm:$0xff]  ;;  %v307_v11 = vld [vmem:[%s3515_s24 + $0xb8] sm:$0xff]  ;;  %s3619_s21 = sld [smem:[#allocation2]]  ;;  %s3636_s26 = sld [smem:[#allocation2 + $0x4]] }
  0x42   : > { %v305_v9 = vld [vmem:[%s3515_s24 + $0xa8] sm:$0xff]  ;;  %v304_v10 = vld [vmem:[%s3515_s24 + $0xa0] sm:$0xff]  ;;  %v306_v12 = vld [vmem:[%s3515_s24 + $0xb0] sm:$0xff]  ;;  %s3624_s22 = sld [smem:[#allocation2 + $0x80]]  ;;  %s3638_s29 = sld [smem:[#allocation2 + $0x84]] }
  0x43   : > { %v309_v13 = vld [vmem:[%s3515_s24 + $0xc8] sm:$0xff]  ;;  %v308_v14 = vld [vmem:[%s3515_s24 + $0xc0] sm:$0xff]  ;;  %v311_v15 = vld [vmem:[%s3515_s24 + $0xd8] sm:$0xff]  ;;  %5653 = sst [smem:[#allocation19_spill]] %s3606_s9  ;;  %s3640_s30 = sld [smem:[#allocation2 + $0x1]] }
  0x44   : > { %448 = vperm.xlu1 %3174, %v293_v3   ;;  %v310_v16 = vld [vmem:[%s3515_s24 + $0xd0] sm:$0xff]  ;;  %v313_v17 = vld [vmem:[%s3515_s24 + $0xe8] sm:$0xff]  ;;  %v312_v18 = vld [vmem:[%s3515_s24 + $0xe0] sm:$0xff]  ;;  %5654 = sst [smem:[#allocation20_spill]] %s3608_s10  ;;  %s3642_s0 = sld [smem:[#allocation2 + $0x81]] }
  0x45   : > { %400 = vperm.xlu0 %3173, %v285_v4   ;;  %v315_v19 = vld [vmem:[%s3515_s24 + $0xf8] sm:$0xff]  ;;  %v314_v20 = vld [vmem:[%s3515_s24 + $0xf0] sm:$0xff]  ;;  %v319_v23 = vld [vmem:[%s3515_s24 + $0x128] sm:$0xff]  ;;  %5655 = sst [smem:[#allocation21_spill]] %s3611_s11  ;;  %s3650_s1 = sld [smem:[#allocation2 + $0x2]] }
  0x46   : > { %v317_v21 = vld [vmem:[%s3515_s24 + $0x118] sm:$0xff]  ;;  %v316_v22 = vld [vmem:[%s3515_s24 + $0x110] sm:$0xff]  ;;  %v318_v24 = vld [vmem:[%s3515_s24 + $0x120] sm:$0xff]  ;;  %5656 = sst [smem:[#allocation22_spill]] %s3613_s12  ;;  %s3652_s3 = sld [smem:[#allocation2 + $0x82]] }
  0x47   : > { %v321_v25 = vld [vmem:[%s3515_s24 + $0x138] sm:$0xff]  ;;  %v320_v26 = vld [vmem:[%s3515_s24 + $0x130] sm:$0xff]  ;;  %v325_v29 = vld [vmem:[%s3515_s24 + $0x168] sm:$0xff]  ;;  %5657 = sst [smem:[#allocation23_spill]] %s3617_s14  ;;  %s3656_s23 = sld [smem:[#allocation2 + $0x104]] }
  0x48   : > { %500 = vperm.xlu1 %3174, %v301_v5   ;;  %v323_v27 = vld [vmem:[%s3515_s24 + $0x158] sm:$0xff]  ;;  %v322_v28 = vld [vmem:[%s3515_s24 + $0x150] sm:$0xff]  ;;  %v324_v30 = vld [vmem:[%s3515_s24 + $0x160] sm:$0xff]  ;;  %5658 = sst [smem:[#allocation24_spill]] %s3619_s21  ;;  %s3660_s28 = sld [smem:[#allocation2 + $0x3]] }
  0x49   : > { %495 = vperm.xlu0 %3173, %v300_v6   ;;  %v327_v31 = vld [vmem:[%s3515_s24 + $0x178] sm:$0xff]  ;;  %v326_v32 = vld [vmem:[%s3515_s24 + $0x170] sm:$0xff]  ;;  %v289_v35 = vld [vmem:[%s3515_s24 + $0x28] sm:$0xff]  ;;  %5659 = sst [smem:[#allocation25_spill]] %s3624_s22  ;;  %s3658_s19 = sld [smem:[#allocation2 + $0x180]] }
  0x4a   : > { %v287_v33 = vld [vmem:[%s3515_s24 + $0x18] sm:$0xff]  ;;  %v286_v34 = vld [vmem:[%s3515_s24 + $0x10] sm:$0xff]  ;;  %v288_v36 = vld [vmem:[%s3515_s24 + $0x20] sm:$0xff]  ;;  %5663 = sst [smem:[#allocation27_spill]] %s3636_s26  ;;  %s3666_s27 = sld [smem:[#allocation2 + $0x5]] }
  0x4b   : > { %v295_v37 = vld [vmem:[%s3515_s24 + $0x58] sm:$0xff]  ;;  %v294_v38 = vld [vmem:[%s3515_s24 + $0x50] sm:$0xff]  ;;  %v297_v41 = vld [vmem:[%s3515_s24 + $0x68] sm:$0xff]  ;;  %5664 = sst [smem:[#allocation28_spill]] %s3638_s29  ;;  %s3662_s17 = sld [smem:[#allocation2 + $0x83]] }
  0x4c   : > { %520 = vperm.xlu1 %3174, %v303_v7   ;;  %v291_v39 = vld [vmem:[%s3515_s24 + $0x38] sm:$0xff]  ;;  %v290_v40 = vld [vmem:[%s3515_s24 + $0x30] sm:$0xff]  ;;  %v296_v42 = vld [vmem:[%s3515_s24 + $0x60] sm:$0xff]  ;;  %5665 = sst [smem:[#allocation29_spill]] %s3640_s30  ;;  %s3668_s15 = sld [smem:[#allocation2 + $0x101]] }
  0x4d   : > { %515 = vperm.xlu0 %3173, %v302_v8   ;;  %v299_v43 = vld [vmem:[%s3515_s24 + $0x78] sm:$0xff]  ;;  %v298_v44 = vld [vmem:[%s3515_s24 + $0x70] sm:$0xff]  ;;  %v3568_v45 = vld [vmem:[%s3563_s5] sm:$0xff]  ;;  %s3626_s24 = sld [smem:[#allocation2 + $0x100]]  ;;  %5666 = sst [smem:[#allocation30_spill]] %s3642_s0 }
  0x4e   : > { %v3571_v46 = vld [vmem:[%s3563_s5 + $0x8] sm:$0xff]  ;;  %v2876_v47 = vadd.f32 -0.5, %v3568_v45  ;;  %v328_v50 = vand.u32 2147483647, %v3568_v45  ;;  %vm369_vm2 = vcmp.gt.f32.partialorder %v3568_v45, 0.5  ;;  %vm371_vm3 = vcmp.lt.f32.partialorder %v3568_v45, 3.0 }
  0x4f   : > { %v2877_v48 = vadd.f32 -0.5, %v3571_v46  ;;  %v329_v53 = vand.u32 2147483647, %v3571_v46  ;;  %vm370_vm4 = vcmp.gt.f32.partialorder %v3571_v46, 0.5  ;;  %vm372_vm5 = vcmp.lt.f32.partialorder %v3571_v46, 3.0  ;;  %vm3632_vm8 = vmand %vm369_vm2, %vm371_vm3  ;;  %5669 = sst [smem:[#allocation31_spill]] %s3650_s1 }
  0x50   : > { %550 = vperm.xlu1 %3174, %v305_v9   ;;  %v343_v49 = vmul.f32 0.4, %v2876_v47  ;;  %vm3579_vm0 = vcmp.gt.f32.partialorder %v328_v50, 1e-12  ;;  %vm363_vm6 = vcmp.gt.f32.partialorder %v3568_v45, 0.0  ;;  %vm365_vm7 = vcmp.lt.f32.partialorder %v3568_v45, 0.5  ;;  %vm3646_vm11 = vmand %vm370_vm4, %vm372_vm5 }
  0x51   : > { %545 = vperm.xlu0 %3173, %v304_v10   ;;  %v344_v51 = vmul.f32 0.4, %v2877_v48  ;;  %vm3585_vm1 = vcmp.gt.f32.partialorder %v329_v53, 1e-12  ;;  %v332_v59 = vsel %vm3579_vm0, %v3568_v45, 1.0  ;;  %vm364_vm9 = vcmp.gt.f32.partialorder %v3571_v46, 0.0  ;;  %vm367_vm12 = vmand %vm363_vm6, %vm365_vm7 }
  0x52   : > { %v349_v52 = vmul.f32 -6.0, %v343_v49  ;;  %v353_v57 = vmul.f32 15.0, %v343_v49  ;;  %v333_v62 = vsel %vm3585_vm1, %v3571_v46, 1.0  ;;  %3181 = vrcp.f32 %v332_v59  ;;  %5670 = sst [smem:[#allocation32_spill]] %s3652_s3  ;;  %s3671_s20 = sld [smem:[#allocation2 + $0x85]] }
  0x53   : > { %v350_v55 = vmul.f32 -6.0, %v344_v51  ;;  %v354_v61 = vmul.f32 15.0, %v344_v51  ;;  %v345_v63 = vmul.f32 %v343_v49, %v343_v49  ;;  %3183 = vrcp.f32 %v333_v62  ;;  %5660 = sst [smem:[#allocation26_spill]] %s3626_s24  ;;  %s3675_s25 = sld [smem:[#allocation2 + $0x6]] }
  0x54   : > { %580 = vperm.xlu1 %3174, %v307_v11   ;;  %v351_v56 = vmul.f32 %v349_v52, %v343_v49  ;;  %v346_v2 = vmul.f32 %v344_v51, %v344_v51  ;;  %vm366_vm10 = vcmp.lt.f32.partialorder %v3571_v46, 0.5  ;;  %5671 = sst [smem:[#allocation33_spill]] %s3656_s23  ;;  %s3673_s4 = sld [smem:[#allocation2 + $0x102]]  ;;  %vm3685_vm14 = vcmp.gt.f32.partialorder %v328_v50, 1e-05 }
  0x55   : > { %575 = vperm.xlu0 %3173, %v306_v12   ;;  %v352_v60 = vmul.f32 %v350_v55, %v344_v51  ;;  %v347_v4 = vmul.f32 %v345_v63, %v343_v49  ;;  %5672 = sst [smem:[#allocation34_spill]] %s3658_s19  ;;  %vm368_vm13 = vmand %vm364_vm9, %vm366_vm10  ;;  %s3677_s18 = sld [smem:[#allocation2 + $0x86]]  ;;  %vm3695_vm15 = vcmp.gt.f32.partialorder %v329_v53, 1e-05  ;;  %v813_v45 = vstv %s3624_s22  ;;  %v279_v63 = vld [vmem:[%s3563_s5 + $0x18] sm:$0xff] }
  0x56   : > { %v355_v1 = vadd.f32 %v353_v57, %v351_v56  ;;  %v348_v6 = vmul.f32 %v346_v2, %v344_v51  ;;  %5673 = sst [smem:[#allocation35_spill]] %s3660_s28  ;;  %s3679_s16 = sld [smem:[#allocation2 + $0x7]]  ;;  %v915_v46 = vstv %s3626_s24  ;;  %v714_v47 = vstv %s3640_s30 }
  0x57   : > { %v356_v3 = vadd.f32 %v354_v61, %v352_v60  ;;  %5674 = sst [smem:[#allocation36_spill]] %s3662_s17  ;;  %s3681_s2 = sld [smem:[#allocation2 + $0x103]]  ;;  %v732_v48 = vstv %s3636_s26  ;;  %v817_v49 = vstv %s3642_s0  ;;  %v835_v50 = vstv %s3638_s29 }
  0x58   : > { %610 = vperm.xlu1 %3174, %v309_v13   ;;  %v2878_v5 = vadd.f32 -10.0, %v355_v1  ;;  %5675 = sst [smem:[#allocation37_spill]] %s3666_s27  ;;  %s3689_s13 = sld [smem:[#allocation2 + $0x87]]  ;;  %v937_v59 = vstv %s3656_s23  ;;  %v1017_v60 = vstv %s3658_s19  ;;  %v919_v2 = vstv %s3668_s15 }
  0x59   : > { %605 = vperm.xlu0 %3173, %v308_v14   ;;  %v2879_v7 = vadd.f32 -10.0, %v356_v3  ;;  %5676 = sst [smem:[#allocation38_spill]] %s3671_s20  ;;  %s3746_s24 = sld [smem:[#allocation2 + $0x185]]  ;;  %vm2344_vm2 = vcmask 1041408   ;;  %vm2346_vm3 = vcmask 1042432   ;;  %vm2348_vm4 = vcmask 1043456  }
  0x5a   : > { %v359_v8 = vmul.f32 %v2878_v5, %v347_v4  ;;  %5677 = sst [smem:[#allocation39_spill]] %s3675_s25  ;;  %s3748_s30 = sld [smem:[#allocation2 + $0x204]]  ;;  %v278_v4 = vld [vmem:[%s3563_s5 + $0x10] sm:$0xff]  ;;  %vm2350_vm5 = vcmask 1044480   ;;  %vm2352_vm6 = vcmask 1045504   ;;  %vm2354_vm7 = vcmask 1046528  }
  0x5b   : > { %v360_v10 = vmul.f32 %v2879_v7, %v348_v6  ;;  %5678 = sst [smem:[#allocation40_spill]] %s3677_s18  ;;  %s3691_s18 = sld [smem:[#allocation2 + $0x184]]  ;;  %vm2633_vm9 = vcmask 130048   ;;  %vm2743_vm10 = vcmask 57344  }
  0x5c   : > { %630 = vperm.xlu1 %3174, %v311_v15   ;;  %v3182_v9 = vpop.eup %3181  ;;  %v361_v12 = vadd.f32 1.0, %v359_v8  ;;  %5679 = sst [smem:[#allocation41_spill]] %s3679_s16  ;;  %s3704_s16 = sld [smem:[#allocation2 + $0x200]] }
  0x5d   : > { %625 = vperm.xlu0 %3173, %v310_v16   ;;  %v3184_v11 = vpop.eup %3183  ;;  %v3603_v13 = vsel %vm3579_vm0, %v3182_v9, 0.0  ;;  %v362_v14 = vadd.f32 1.0, %v360_v10  ;;  %5680 = sst [smem:[#allocation42_spill]] %s3681_s2  ;;  %s3702_s2 = sld [smem:[#allocation2 + $0x105]]  ;;  %v281_v9 = vld [vmem:[%s3563_s5 + $0x28] sm:$0xff]  ;;  %vm765_vm0 = vcmask 64512  }
  0x5e   : > { %v339_v15 = vsel %vm3585_vm1, %v3184_v11, 0.0  ;;  %v375_v16 = vmul.f32 %v361_v12, %v3603_v13  ;;  %5683 = sst [smem:[#allocation43_spill]] %s3689_s13  ;;  %s3713_s13 = sld [smem:[#allocation2 + $0x181]]  ;;  %vm2342_vm1 = vcmask 1040384  }
  0x5f   : > { %5689 = sst [smem:[#allocation47_spill]] %s3746_s24  ;;  %s3754_s0 = sld [smem:[#allocation2 + $0x186]] }
  0x60   : > { %660 = vperm.xlu1 %3174, %v313_v17   ;;  %s3756_s29 = sld [smem:[#allocation2 + $0x201]]  ;;  %s5693_s26 = sld [smem:[#allocation42_spill]] }
  0x61   : > { %655 = vperm.xlu0 %3173, %v312_v18   ;;  %v376_v18 = vmul.f32 %v362_v14, %v339_v15  ;;  %5684 = sst [smem:[#allocation44_spill]] %s3691_s18  ;;  %s3711_s18 = sld [smem:[#allocation2 + $0x8]] }
  0x62   : > { %s3762_s28 = sld [smem:[#allocation2 + $0x187]]  ;;  %s3764_s17 = sld [smem:[#allocation2 + $0x280]] }
  0x63   : > { %5687 = sst [smem:[#allocation45_spill]] %s3702_s2  ;;  %s5696_s19 = sld [smem:[#allocation44_spill]] }
  0x64   : > { %690 = vperm.xlu1 %3174, %v315_v19   ;;  %s3772_s22 = sld [smem:[#allocation2 + $0x188]]  ;;  %s3780_s27 = sld [smem:[#allocation2 + $0x203]] }
  0x65   : > { %685 = vperm.xlu0 %3173, %v314_v20   ;;  %v377_v20 = vsel %vm3632_vm8, %v375_v16, 0.0  ;;  %s3782_s25 = sld [smem:[#allocation2 + $0x281]]  ;;  %v280_v16 = vld [vmem:[%s3563_s5 + $0x20] sm:$0xff]  ;;  %s3791_s3 = sld [smem:[#allocation2 + $0x205]]  ;;  %vm2541_vm8 = vcmask 523264  }
  0x66   : > { %5690 = sst [smem:[#allocation48_spill]] %s3756_s29  ;;  %s3801_s20 = sld [smem:[#allocation2 + $0x206]] }
  0x67   : > { %s3793_s1 = sld [smem:[#allocation2 + $0x300]]  ;;  %s3803_s23 = sld [smem:[#allocation2 + $0x284]] }
  0x68   : > { %534 = vperm.xlu1 %3174, %v317_v21   ;;  %v378_v21 = vsel %vm3646_vm11, %v376_v18, 0.0  ;;  %5694 = sst [smem:[#allocation42_spill]] %s3762_s28  ;;  %s3810_s2 = sld [smem:[#allocation2 + $0x207]] }
  0x69   : > { %529 = vperm.xlu0 %3173, %v316_v22   ;;  %v379_v22 = vsel %vm367_vm12, %v3603_v13, %v377_v20  ;;  %v1039_v19 = vstv %s5696_s19  ;;  %s3845_s24 = sld [smem:[#allocation2 + $0x283]]  ;;  %s3852_s28 = sld [smem:[#allocation2 + $0x301]] }
  0x6a   : > { %5697 = sst [smem:[#allocation44_spill]] %s3772_s22  ;;  %s3888_s29 = sld [smem:[#allocation2 + $0x286]] }
  0x6b   : > { %5699 = sst [smem:[#allocation50_spill]] %s3780_s27  ;;  %s3857_s22 = sld [smem:[#allocation2 + $0x304]] }
  0x6c   : > { %564 = vperm.xlu1 %3174, %v319_v23   ;;  %5700 = sst [smem:[#allocation51_spill]] %s3782_s25  ;;  %s3864_s25 = sld [smem:[#allocation2 + $0x285]] }
  0x6d   : > { %559 = vperm.xlu0 %3173, %v318_v24   ;;  %5701 = sst [smem:[#allocation52_spill]] %s3791_s3  ;;  %v1323_v0 = vstv %s3793_s1  ;;  %s3910_s27 = sld [smem:[#allocation2 + $0x303]] }
  0x6e   : > { %5702 = sst [smem:[#allocation53_spill]] %s3801_s20  ;;  %s3928_s20 = sld [smem:[#allocation2 + $0x288]] }
  0x6f   : > { %5703 = sst [smem:[#allocation54_spill]] %s3803_s23  ;;  %s3930_s23 = sld [smem:[#allocation2 + $0x400]] }
  0x70   : > { %594 = vperm.xlu1 %3174, %v321_v25   ;;  %v380_v25 = vsel %vm368_vm13, %v339_v15, %v378_v21  ;;  %v283_v21 = vld [vmem:[%s3563_s5 + $0x38] sm:$0xff]  ;;  %5704 = sst [smem:[#allocation55_spill]] %s3810_s2  ;;  %s3899_s2 = sld [smem:[#allocation2 + $0x302]] }
  0x71   : > { %589 = vperm.xlu0 %3173, %v320_v26   ;;  %5707 = sst [smem:[#allocation58_spill]] %s3845_s24  ;;  %s5733_s19 = sld [smem:[#allocation31_spill]] }
  0x72   : > { %s5734_s24 = sld [smem:[#allocation32_spill]]  ;;  %s5739_s15 = sld [smem:[#allocation35_spill]] }
  0x73   : > { %s5767_s1 = sld [smem:[#allocation43_spill]] }
  0x74   : > { %644 = vperm.xlu1 %3174, %v323_v27  }
  0x75   : > { %639 = vperm.xlu0 %3173, %v322_v28   ;;  %v384_v28 = vmul.f32 %v380_v25, %v339_v15 }
  0x78   : > { %674 = vperm.xlu1 %3174, %v325_v29   ;;  %v1527_v29 = vstv %s3930_s23  ;;  %s5766_s23 = sld [smem:[#allocation41_spill]] }
  0x79   : > { %669 = vperm.xlu0 %3173, %v324_v30   ;;  %v490_v30 = vstv %s3595_s6  ;;  %s3719_s6 = sld [smem:[#allocation2 + $0x88]] }
  0x7c   : > { %704 = vperm.xlu1 %3174, %v327_v31   ;;  %v510_v31 = vstv %s3597_s7  ;;  %s5759_s7 = sld [smem:[#allocation45_spill]] }
  0x7d   : > { %699 = vperm.xlu0 %3173, %v326_v32   ;;  %v540_v32 = vstv %s3599_s8  ;;  %s3915_s8 = sld [smem:[#allocation2 + $0x381]] }
  0x7f   : > { %5688 = sst [smem:[#allocation46_spill]] %s3719_s6  ;;  %s3826_s6 = sld [smem:[#allocation2 + $0x282]] }
  0x80   : > { %410 = vperm.xlu1 %3174, %v287_v33  }
  0x81   : > { %405 = vperm.xlu0 %3173, %v286_v34   ;;  %v570_v34 = vstv %s3606_s9  ;;  %s3731_s9 = sld [smem:[#allocation2 + $0x182]] }
  0x84   : > { %420 = vperm.xlu1 %3174, %v289_v35   ;;  %v600_v35 = vstv %s3608_s10  ;;  %s3721_s10 = sld [smem:[#allocation2 + $0x106]] }
  0x85   : > { %415 = vperm.xlu0 %3173, %v288_v36   ;;  %v620_v36 = vstv %s3611_s11  ;;  %s3729_s11 = sld [smem:[#allocation2 + $0x107]]  ;;  %5706 = sst [smem:[#allocation57_spill]] %s3826_s6 }
  0x86   : > { %s3897_s6 = sld [smem:[#allocation2 + $0x287]] }
  0x88   : > { %458 = vperm.xlu1 %3174, %v295_v37   ;;  %v383_v37 = vmul.f32 %v379_v22, %v3603_v13 }
  0x89   : > { %453 = vperm.xlu0 %3173, %v294_v38  }
  0x8a   : > { %v385_v3 = vsel %vm3685_vm14, %v383_v37, 0.0 }
  0x8b   : > { %v3795_v20 = vmul.f32 %v385_v3, %v278_v4  ;;  %v5614_v4 = vstv %s3748_s30 }
  0x8c   : > { %430 = vperm.xlu1 %3174, %v291_v39  }
  0x8d   : > { %425 = vperm.xlu0 %3173, %v290_v40   ;;  %v650_v40 = vstv %s3613_s12  ;;  %s3774_s12 = sld [smem:[#allocation2 + $0x202]] }
  0x90   : > { %468 = vperm.xlu1 %3174, %v297_v41   ;;  %v680_v41 = vstv %s3617_s14  ;;  %s3739_s14 = sld [smem:[#allocation2 + $0x183]] }
  0x91   : > { %463 = vperm.xlu0 %3173, %v296_v42   ;;  %v710_v42 = vstv %s3619_s21  ;;  %s3737_s21 = sld [smem:[#allocation2 + $0x108]] }
  0x93   : > { %5698 = sst [smem:[#allocation49_spill]] %s3774_s12  ;;  %s3859_s12 = sld [smem:[#allocation2 + $0x380]] }
  0x94   : > { %478 = vperm.xlu1 %3174, %v299_v43   ;;  %v3725_v43 = vsel %vm3695_vm15, %v384_v28, 0.0  ;;  %v3814_v28 = vmul.f32 %v385_v3, %v280_v16  ;;  %s5794_s3 = sld [smem:[#allocation49_spill]] }
  0x95   : > { %473 = vperm.xlu0 %3173, %v298_v44   ;;  %v3785_v15 = vmul.f32 %v3725_v43, %v279_v63 }
  0xbf   : > { %v444_v23 = vpop.permute.xlu1 %443 }
  0xc0   : > { %v396_v24 = vpop.permute.xlu0 %395 }
  0xc1   : > { %v433_v27 = vsub.f32 %v379_v22, %v396_v24  ;;  %v282_v22 = vld [vmem:[%s3563_s5 + $0x30] sm:$0xff]  ;;  %v1119_v24 = vstv %s3704_s16  ;;  %s3812_s5 = sld [smem:[#allocation2 + $0x208]]  ;;  %s5804_s16 = sld [smem:[#allocation53_spill]] }
  0xc3   : > { %v3706_v33 = vmul.f32 %v444_v23, %v433_v27  ;;  %v449_v38 = vpop.permute.xlu1 %448  ;;  %v1021_v23 = vstv %s3713_s13  ;;  %s5742_s13 = sld [smem:[#allocation36_spill]] }
  0xc4   : > { %v401_v39 = vpop.permute.xlu0 %400 }
  0xc5   : > { %v434_v44 = vsub.f32 %v380_v25, %v401_v39  ;;  %v491_v52 = vmul.f32 %v490_v30, %v3706_v33  ;;  %v3806_v25 = vmul.f32 %v3725_v43, %v281_v9  ;;  %v1221_v9 = vstv %s3764_s17  ;;  %s5808_s17 = sld [smem:[#allocation44_spill]] }
  0xc7   : > { %v3741_v51 = vmul.f32 %v449_v38, %v434_v44  ;;  %v501_v55 = vpop.permute.xlu1 %500  ;;  %5705 = sst [smem:[#allocation56_spill]] %s3812_s5  ;;  %v3820_v44 = vmul.f32 %v3725_v43, %v283_v21  ;;  %v511_v43 = vmul.f32 %v510_v31, %v3706_v33  ;;  %s5752_s5 = sld [smem:[#allocation38_spill]] }
  0xc8   : > { %v496_v56 = vpop.permute.xlu0 %495 }
  0xc9   : > { %v492_v61 = vmul.f32 %v490_v30, %v3741_v51  ;;  %v503_v62 = vadd.f32 %v496_v56, %v491_v52  ;;  %v3822_v52 = vmul.f32 %v385_v3, %v282_v22  ;;  %v542_v21 = vmul.f32 %v540_v32, %v3741_v51 }
  0xca   : > { %v601_v22 = vmul.f32 %v600_v35, %v3706_v33 }
  0xcb   : > { %v504_v8 = vadd.f32 %v501_v55, %v492_v61  ;;  %v521_v13 = vpop.permute.xlu1 %520  ;;  %3185 = vtanh.f32 %v503_v62  ;;  %v512_v61 = vmul.f32 %v510_v31, %v3741_v51  ;;  %v541_v31 = vmul.f32 %v540_v32, %v3706_v33 }
  0xcc   : > { %v516_v14 = vpop.permute.xlu0 %515 }
  0xcd   : > { %3187 = vtanh.f32 %v504_v8  ;;  %v524_v16 = vadd.f32 %v521_v13, %v512_v61  ;;  %v523_v63 = vadd.f32 %v516_v14, %v511_v43 }
  0xcf   : > { %v551_v38 = vpop.permute.xlu1 %550  ;;  %3189 = vtanh.f32 %v524_v16  ;;  %v621_v16 = vmul.f32 %v620_v36, %v3706_v33 }
  0xd0   : > { %v546_v39 = vpop.permute.xlu0 %545  ;;  %v554_v13 = vadd.f32 %v551_v38, %v542_v21  ;;  %v572_v38 = vmul.f32 %v570_v34, %v3741_v51  ;;  %v602_v21 = vmul.f32 %v600_v35, %v3741_v51  ;;  %3191 = vtanh.f32 %v523_v63 }
  0xd1   : > { %v553_v32 = vadd.f32 %v546_v39, %v541_v31  ;;  %v571_v39 = vmul.f32 %v570_v34, %v3706_v33  ;;  %v651_v63 = vmul.f32 %v650_v40, %v3706_v33 }
  0xd2   : > { %3193 = vtanh.f32 %v554_v13 }
  0xd3   : > { %v581_v8 = vpop.permute.xlu1 %580  ;;  %3195 = vtanh.f32 %v553_v32 }
  0xd4   : > { %v576_v3 = vpop.permute.xlu0 %575  ;;  %v584_v14 = vadd.f32 %v581_v8, %v572_v38 }
  0xd5   : > { %v3186_v56 = vpop.eup %3185  ;;  %v583_v34 = vadd.f32 %v576_v3, %v571_v39  ;;  %v622_v3 = vmul.f32 %v620_v36, %v3741_v51 }
  0xd6   : > { %v3883_v35 = vadd.f32 %v3186_v56, %v3706_v33 }
  0xd7   : > { %v3188_v61 = vpop.eup %3187  ;;  %v611_v31 = vpop.permute.xlu1 %610 }
  0xd8   : > { %v606_v62 = vpop.permute.xlu0 %605  ;;  %v614_v55 = vadd.f32 %v611_v31, %v602_v21  ;;  %5713 = vst [vmem:[#allocation59_spill] sm:$0xff] %v3883_v35  ;;  %v3891_v13 = vadd.f32 %v3188_v61, %v3741_v51  ;;  %v682_v61 = vmul.f32 %v680_v41, %v3741_v51  ;;  %v3920_v36 = vmul.f32 %v710_v42, %v3883_v35 }
  0xd9   : > { %v613_v27 = vadd.f32 %v606_v62, %v601_v22  ;;  %v681_v62 = vmul.f32 %v680_v41, %v3706_v33  ;;  %v3940_v39 = vmul.f32 %v915_v46, %v3883_v35  ;;  %v3945_v31 = vmul.f32 %v1017_v60, %v3883_v35  ;;  %v3190_v41 = vpop.eup %3189 }
  0xda   : > { %5714 = vst [vmem:[#allocation60_spill] sm:$0xff] %v3891_v13  ;;  %3197 = vtanh.f32 %v614_v55  ;;  %v652_v55 = vmul.f32 %v650_v40, %v3741_v51  ;;  %v3925_v40 = vmul.f32 %v813_v45, %v3883_v35  ;;  %v3935_v21 = vmul.f32 %v710_v42, %v3891_v13 }
  0xdb   : > { %3199 = vtanh.f32 %v613_v27  ;;  %v631_v8 = vpop.permute.xlu1 %630  ;;  %v1425_v27 = vstv %s3859_s12  ;;  %v3955_v42 = vmul.f32 %v915_v46, %v3891_v13  ;;  %v3975_v46 = vmul.f32 %v1221_v9, %v3883_v35  ;;  %s5821_s12 = sld [smem:[#allocation51_spill]] }
  0xdc   : > { %v626_v22 = vpop.permute.xlu0 %625  ;;  %3201 = vtanh.f32 %v584_v14  ;;  %v634_v14 = vadd.f32 %v631_v8, %v622_v3  ;;  %v3950_v8 = vmul.f32 %v813_v45, %v3891_v13  ;;  %v3960_v3 = vmul.f32 %v1017_v60, %v3891_v13 }
  0xdd   : > { %3203 = vtanh.f32 %v583_v34  ;;  %v633_v34 = vadd.f32 %v626_v22, %v621_v16  ;;  %v3965_v16 = vmul.f32 %v1119_v24, %v3883_v35  ;;  %v3970_v45 = vmul.f32 %v1119_v24, %v3891_v13  ;;  %5719 = vst [vmem:[#allocation61_spill] sm:$0xff] %v3975_v46  ;;  %v3192_v22 = vpop.eup %3191 }
  0xde   : > { %v3980_v60 = vmul.f32 %v1221_v9, %v3891_v13  ;;  %v3194_v26 = vpop.eup %3193  ;;  %3205 = vtanh.f32 %v634_v14  ;;  %v3992_v30 = vmul.f32 %v1323_v0, %v3891_v13 }
  0xdf   : > { %v661_v38 = vpop.permute.xlu1 %660  ;;  %v3196_v10 = vpop.eup %3195  ;;  %3207 = vtanh.f32 %v633_v34 }
  0xe0   : > { %v656_v32 = vpop.permute.xlu0 %655  ;;  %v664_v56 = vadd.f32 %v661_v38, %v652_v55  ;;  %5720 = vst [vmem:[#allocation62_spill] sm:$0xff] %v3980_v60  ;;  %v3986_v38 = vmul.f32 %v1323_v0, %v3883_v35  ;;  %5722 = vst [vmem:[#allocation64_spill] sm:$0xff] %v3992_v30  ;;  %v3997_v55 = vmul.f32 %v1425_v27, %v3883_v35 }
  0xe1   : > { %v663_v43 = vadd.f32 %v656_v32, %v651_v63  ;;  %v4001_v0 = vmul.f32 %v1425_v27, %v3891_v13 }
  0xe2   : > { %5721 = vst [vmem:[#allocation63_spill] sm:$0xff] %v3986_v38  ;;  %5723 = vst [vmem:[#allocation65_spill] sm:$0xff] %v3997_v55  ;;  %3209 = vtanh.f32 %v664_v56 }
  0xe3   : > { %v691_v63 = vpop.permute.xlu1 %690  ;;  %5725 = vst [vmem:[#allocation66_spill] sm:$0xff] %v4001_v0  ;;  %3211 = vtanh.f32 %v663_v43 }
  0xe4   : > { %v686_v9 = vpop.permute.xlu0 %685  ;;  %v3198_v18 = vpop.eup %3197  ;;  %v694_v14 = vadd.f32 %v691_v63, %v682_v61 }
  0xe5   : > { %v693_v24 = vadd.f32 %v686_v9, %v681_v62  ;;  %v3200_v17 = vpop.eup %3199  ;;  %v4004_v34 = vadd.f32 %v3198_v18, %v3741_v51  ;;  %v4012_v62 = vmul.f32 %v1527_v29, %v3883_v35  ;;  %v4015_v18 = vmul.f32 %v1527_v29, %v3891_v13 }
  0xe6   : > { %v3202_v5 = vpop.eup %3201  ;;  %v4009_v56 = vadd.f32 %v3200_v17, %v3706_v33  ;;  %3213 = vtanh.f32 %v694_v14 }
  0xe7   : > { %5729 = vst [vmem:[#allocation68_spill] sm:$0xff] %v4012_v62  ;;  %5730 = vst [vmem:[#allocation69_spill] sm:$0xff] %v4015_v18  ;;  %v3204_v43 = vpop.eup %3203  ;;  %3215 = vtanh.f32 %v693_v24  ;;  %v535_v61 = vpop.permute.xlu1 %534  ;;  %v4020_v17 = vmul.f32 %v732_v48, %v4004_v34  ;;  %v4025_v63 = vmul.f32 %v835_v50, %v4004_v34  ;;  %v4030_v29 = vmul.f32 %v937_v59, %v4004_v34 }
  0xe8   : > { %5728 = vst [vmem:[#allocation67_spill] sm:$0xff] %v4009_v56  ;;  %v530_v27 = vpop.permute.xlu0 %529  ;;  %v4032_v9 = vadd.f32 %v3190_v41, %v535_v61  ;;  %v4039_v14 = vmul.f32 %v732_v48, %v4009_v56  ;;  %v4044_v11 = vmul.f32 %v835_v50, %v4009_v56  ;;  %v4049_v32 = vmul.f32 %v937_v59, %v4009_v56  ;;  %v3206_v12 = vpop.eup %3205 }
  0xe9   : > { %v4034_v24 = vadd.f32 %v3192_v22, %v530_v27  ;;  %v4054_v41 = vmul.f32 %v1039_v19, %v4009_v56  ;;  %v4059_v22 = vmul.f32 %v1039_v19, %v4004_v34  ;;  %v4064_v48 = vmul.f32 %v5614_v4, %v4009_v56 }
  0xea   : > { %v716_v61 = vmul.f32 %v714_v47, %v4032_v9  ;;  %v819_v27 = vmul.f32 %v817_v49, %v4032_v9  ;;  %v921_v4 = vmul.f32 %v919_v2, %v4032_v9  ;;  %v1023_v37 = vmul.f32 %v1021_v23, %v4032_v9 }
  0xeb   : > { %v715_v50 = vmul.f32 %v714_v47, %v4034_v24  ;;  %v818_v59 = vmul.f32 %v817_v49, %v4034_v24  ;;  %v565_v6 = vpop.permute.xlu1 %564  ;;  %v920_v19 = vmul.f32 %v919_v2, %v4034_v24  ;;  %v1022_v47 = vmul.f32 %v1021_v23, %v4034_v24  ;;  %v3208_v2 = vpop.eup %3207 }
  0xec   : > { %v560_v1 = vpop.permute.xlu0 %559  ;;  %v4090_v49 = vadd.f32 %v3194_v26, %v565_v6  ;;  %v718_v7 = vadd.f32 %v716_v61, %v3935_v21  ;;  %v821_v53 = vadd.f32 %v819_v27, %v3950_v8  ;;  %v923_v23 = vadd.f32 %v921_v4, %v3955_v42  ;;  %v3210_v62 = vpop.eup %3209 }
  0xed   : > { %v4092_v58 = vadd.f32 %v3196_v10, %v560_v1  ;;  %v717_v57 = vadd.f32 %v715_v50, %v3920_v36  ;;  %v820_v54 = vadd.f32 %v818_v59, %v3925_v40  ;;  %v922_v18 = vadd.f32 %v920_v19, %v3940_v39  ;;  %v3212_v40 = vpop.eup %3211 }
  0xee   : > { %v5735_v6 = vstv %s5733_s19  ;;  %v5737_v36 = vstv %s5734_s24  ;;  %v5740_v39 = vstv %s3673_s4  ;;  %v4119_v19 = vadd.f32 %v1022_v47, %v3945_v31  ;;  %s5747_s4 = sld [smem:[#allocation37_spill]]  ;;  %s5824_s19 = sld [smem:[#allocation56_spill]] }
  0xef   : > { %v721_v1 = vmul.f32 %v5735_v6, %v4092_v58  ;;  %v5736_v10 = vmov %v5735_v6  ;;  %v824_v50 = vmul.f32 %v5737_v36, %v4092_v58  ;;  %v5738_v21 = vmov %v5737_v36  ;;  %v595_v59 = vpop.permute.xlu1 %594  ;;  %s5829_s24 = sld [smem:[#allocation57_spill]] }
  0xf0   : > { %v722_v26 = vmul.f32 %v5736_v10, %v4090_v49  ;;  %v825_v61 = vmul.f32 %v5738_v21, %v4090_v49  ;;  %v590_v8 = vpop.permute.xlu0 %589  ;;  %v926_v4 = vmul.f32 %v5740_v39, %v4092_v58  ;;  %v5741_v42 = vmov %v5740_v39  ;;  %v3214_v10 = vpop.eup %3213 }
  0xf1   : > { %v927_v27 = vmul.f32 %v5741_v42, %v4090_v49  ;;  %v4122_v6 = vadd.f32 %v1023_v37, %v3960_v3  ;;  %v4124_v36 = vadd.f32 %v3202_v5, %v595_v59  ;;  %v4126_v21 = vadd.f32 %v3204_v43, %v590_v8  ;;  %v3216_v55 = vpop.eup %3215 }
  0xf2   : > { %v723_v39 = vadd.f32 %v721_v1, %v717_v57  ;;  %v724_v0 = vadd.f32 %v722_v26, %v718_v7  ;;  %v826_v42 = vadd.f32 %v824_v50, %v820_v54  ;;  %v827_v30 = vadd.f32 %v825_v61, %v821_v53 }
  0xf3   : > { %v928_v38 = vadd.f32 %v926_v4, %v922_v18  ;;  %v929_v31 = vadd.f32 %v927_v27, %v923_v23  ;;  %v5743_v47 = vstv %s5739_s15  ;;  %v5745_v5 = vstv %s5742_s13  ;;  %v645_v57 = vpop.permute.xlu1 %644  ;;  %s5833_s15 = sld [smem:[#allocation58_spill]]  ;;  %s5837_s13 = sld [smem:[#allocation54_spill]] }
  0xf4   : > { %v727_v37 = vmul.f32 %v5743_v47, %v4126_v21  ;;  %v5744_v3 = vmov %v5743_v47  ;;  %v830_v59 = vmul.f32 %v5745_v5, %v4126_v21  ;;  %v5746_v43 = vmov %v5745_v5  ;;  %v640_v7 = vpop.permute.xlu0 %639 }
  0xf5   : > { %v728_v56 = vmul.f32 %v5744_v3, %v4124_v36  ;;  %v831_v8 = vmul.f32 %v5746_v43, %v4124_v36  ;;  %v5748_v54 = vstv %s5693_s26  ;;  %v5750_v1 = vstv %s3731_s9  ;;  %s5755_s9 = sld [smem:[#allocation39_spill]]  ;;  %s5756_s26 = sld [smem:[#allocation40_spill]] }
  0xf6   : > { %v932_v53 = vmul.f32 %v5748_v54, %v4126_v21  ;;  %v5749_v18 = vmov %v5748_v54  ;;  %v4149_v26 = vmul.f32 %v5750_v1, %v4092_v58  ;;  %v5751_v50 = vmov %v5750_v1 }
  0xf7   : > { %v933_v23 = vmul.f32 %v5749_v18, %v4124_v36  ;;  %v4154_v61 = vmul.f32 %v5751_v50, %v4090_v49  ;;  %v4156_v4 = vadd.f32 %v3206_v12, %v645_v57  ;;  %v4158_v27 = vadd.f32 %v3208_v2, %v640_v7  ;;  %v675_v2 = vpop.permute.xlu1 %674 }
  0xf8   : > { %v729_v47 = vadd.f32 %v727_v37, %v723_v39  ;;  %v730_v3 = vadd.f32 %v728_v56, %v724_v0  ;;  %v832_v5 = vadd.f32 %v830_v59, %v826_v42  ;;  %v833_v43 = vadd.f32 %v831_v8, %v827_v30  ;;  %v670_v39 = vpop.permute.xlu0 %669 }
  0xf9   : > { %v934_v54 = vadd.f32 %v932_v53, %v928_v38  ;;  %v935_v18 = vadd.f32 %v933_v23, %v929_v31  ;;  %v5753_v46 = vstv %s5747_s4  ;;  %v5757_v0 = vstv %s5752_s5  ;;  %s4632_s4 = sld [smem:[#allocation2 + $0x386]]  ;;  %s4635_s5 = sld [smem:[#allocation2 + $0x387]] }
  0xfa   : > { %v735_v60 = vadd.f32 %v4039_v14, %v729_v47  ;;  %v736_v1 = vadd.f32 %v4020_v17, %v730_v3  ;;  %v739_v50 = vmul.f32 %v5753_v46, %v4158_v27  ;;  %v5754_v12 = vmov %v5753_v46 }
  0xfb   : > { %v740_v57 = vmul.f32 %v5754_v12, %v4156_v4  ;;  %v838_v30 = vadd.f32 %v4044_v11, %v832_v5  ;;  %v839_v38 = vadd.f32 %v4025_v63, %v833_v43  ;;  %v842_v56 = vmul.f32 %v5757_v0, %v4158_v27  ;;  %v705_v5 = vpop.permute.xlu1 %704 }
  0xfc   : > { %v5758_v17 = vmov %v5757_v0  ;;  %v4176_v14 = vadd.f32 %v3210_v62, %v675_v2  ;;  %v4178_v42 = vadd.f32 %v3212_v40, %v670_v39  ;;  %v741_v31 = vadd.f32 %v739_v50, %v735_v60  ;;  %v700_v43 = vpop.permute.xlu0 %699 }
  0xfd   : > { %v843_v46 = vmul.f32 %v5758_v17, %v4156_v4  ;;  %v742_v37 = vadd.f32 %v740_v57, %v736_v1  ;;  %v844_v59 = vadd.f32 %v842_v56, %v838_v30  ;;  %v940_v63 = vadd.f32 %v4049_v32, %v934_v54 }
  0xfe   : > { %5760 = vst [vmem:[#allocation70_spill] sm:$0xff] %v4176_v14  ;;  %5761 = vst [vmem:[#allocation71_spill] sm:$0xff] %v4178_v42  ;;  %v941_v8 = vadd.f32 %v4030_v29, %v935_v18  ;;  %v5762_v7 = vstv %s5755_s9  ;;  %v5764_v62 = vstv %s5756_s26  ;;  %v5768_v32 = vstv %s5759_s7  ;;  %s4642_s9 = sld [smem:[#allocation2 + $0x401]]  ;;  %s4644_s26 = sld [smem:[#allocation2 + $0x402]] }
  0xff   : > { %v845_v11 = vadd.f32 %v843_v46, %v839_v38  ;;  %v745_v53 = vmul.f32 %v5762_v7, %v4178_v42  ;;  %v5763_v23 = vmov %v5762_v7  ;;  %v848_v3 = vmul.f32 %v5764_v62, %v4178_v42  ;;  %s4686_s7 = sld [smem:[#allocation2 + $0x403]] }
 0x100   : > { %v746_v47 = vmul.f32 %v5763_v23, %v4176_v14  ;;  %v5765_v40 = vmov %v5764_v62  ;;  %v944_v29 = vmul.f32 %v5768_v32, %v4158_v27  ;;  %v5769_v54 = vmov %v5768_v32 }
 0x101   : > { %v849_v60 = vmul.f32 %v5765_v40, %v4176_v14  ;;  %v945_v18 = vmul.f32 %v5769_v54, %v4156_v4  ;;  %v5770_v1 = vstv %s3721_s10  ;;  %v4206_v2 = vadd.f32 %v3214_v10, %v705_v5  ;;  %s5778_s10 = sld [smem:[#allocation46_spill]] }
 0x102   : > { %v950_v50 = vmul.f32 %v5770_v1, %v4178_v42  ;;  %v5771_v12 = vmov %v5770_v1  ;;  %v4208_v39 = vadd.f32 %v3216_v55, %v700_v43  ;;  %v747_v30 = vadd.f32 %v745_v53, %v741_v31  ;;  %v411_v31 = vpop.permute.xlu1 %410 }
 0x103   : > { %v951_v57 = vmul.f32 %v5771_v12, %v4176_v14  ;;  %v748_v38 = vadd.f32 %v746_v47, %v742_v37  ;;  %v850_v0 = vadd.f32 %v848_v3, %v844_v59  ;;  %v851_v56 = vadd.f32 %v849_v60, %v845_v11  ;;  %v406_v37 = vpop.permute.xlu0 %405 }
 0x104   : > { %v946_v17 = vadd.f32 %v944_v29, %v940_v63  ;;  %v947_v46 = vadd.f32 %v945_v18, %v941_v8  ;;  %v5772_v7 = vstv %s5766_s23  ;;  %v5774_v32 = vstv %s5767_s1  ;;  %s4688_s23 = sld [smem:[#allocation2 + $0x404]]  ;;  %s4700_s1 = sld [smem:[#allocation2 + $0x405]] }
 0x105   : > { %v751_v23 = vmul.f32 %v5772_v7, %v4208_v39  ;;  %v5773_v62 = vmov %v5772_v7  ;;  %v854_v10 = vmul.f32 %v5774_v32, %v4208_v39  ;;  %v5775_v5 = vmov %v5774_v32 }
 0x106   : > { %v752_v40 = vmul.f32 %v5773_v62, %v4206_v2  ;;  %v855_v55 = vmul.f32 %v5775_v5, %v4206_v2  ;;  %v952_v59 = vadd.f32 %v950_v50, %v946_v17  ;;  %v953_v11 = vadd.f32 %v951_v57, %v947_v46 }
 0x107   : > { %v5776_v63 = vstv %s3729_s11  ;;  %v436_v3 = vsub.f32 %v3785_v15, %v411_v31  ;;  %v435_v60 = vsub.f32 %v3795_v20, %v406_v37  ;;  %v753_v43 = vadd.f32 %v751_v23, %v747_v30  ;;  %s5781_s11 = sld [smem:[#allocation47_spill]]  ;;  %v4238_v30 = vpop.permute.xlu1 %420 }
 0x108   : > { %v956_v8 = vmul.f32 %v5776_v63, %v4208_v39  ;;  %v5777_v53 = vmov %v5776_v63  ;;  %v754_v29 = vadd.f32 %v752_v40, %v748_v38  ;;  %v856_v54 = vadd.f32 %v854_v10, %v850_v0  ;;  %v4240_v38 = vpop.permute.xlu0 %415 }
 0x109   : > { %v957_v47 = vmul.f32 %v5777_v53, %v4206_v2  ;;  %v857_v18 = vadd.f32 %v855_v55, %v851_v56  ;;  %v5779_v12 = vstv %s3711_s18  ;;  %v1030_v15 = vadd.f32 %v4149_v26, %v4119_v19  ;;  %s5786_s18 = sld [smem:[#allocation42_spill]] }
 0x10a   : > { %v958_v1 = vadd.f32 %v956_v8, %v952_v59  ;;  %v757_v57 = vadd.f32 %v5779_v12, %v753_v43  ;;  %v5780_v17 = vmov %v5779_v12  ;;  %v1031_v20 = vadd.f32 %v4154_v61, %v4122_v6 }
 0x10b   : > { %v959_v50 = vadd.f32 %v957_v47, %v953_v11  ;;  %v758_v46 = vadd.f32 %v5780_v17, %v754_v29  ;;  %v5782_v0 = vstv %s5778_s10  ;;  %v5784_v62 = vstv %s3737_s21  ;;  %s5792_s21 = sld [smem:[#allocation48_spill]]  ;;  %v459_v47 = vpop.permute.xlu1 %458  ;;  %s4702_s10 = sld [smem:[#allocation2 + $0x406]] }
 0x10c   : > { %v860_v56 = vadd.f32 %v5782_v0, %v856_v54  ;;  %v5783_v7 = vmov %v5782_v0  ;;  %v962_v40 = vadd.f32 %v5784_v62, %v958_v1  ;;  %v5785_v32 = vmov %v5784_v62  ;;  %v454_v43 = vpop.permute.xlu0 %453 }
 0x10d   : > { %v861_v23 = vadd.f32 %v5783_v7, %v857_v18  ;;  %v963_v10 = vadd.f32 %v5785_v32, %v959_v50  ;;  %v438_v19 = vsub.f32 %v3806_v25, %v4238_v30  ;;  %v437_v6 = vsub.f32 %v3814_v28, %v4240_v38 }
 0x10e   : > { %3217 = vtanh.f32 %v757_v57  ;;  %v5787_v26 = vstv %s3739_s14  ;;  %v5789_v31 = vstv %s5781_s11  ;;  %v5791_v63 = vstv %s3754_s0  ;;  %s5795_s14 = sld [smem:[#allocation50_spill]]  ;;  %s5802_s0 = sld [smem:[#allocation52_spill]] }
 0x10f   : > { %v1034_v61 = vmul.f32 %v5787_v26, %v4126_v21  ;;  %3219 = vtanh.f32 %v758_v46  ;;  %v5788_v5 = vmov %v5787_v26  ;;  %v1046_v37 = vmul.f32 %v5789_v31, %v4158_v27  ;;  %v431_v62 = vpop.permute.xlu1 %430  ;;  %s4709_s11 = sld [smem:[#allocation2 + $0x407]] }
 0x110   : > { %v1035_v55 = vmul.f32 %v5788_v5, %v4124_v36  ;;  %v5790_v59 = vmov %v5789_v31  ;;  %3221 = vtanh.f32 %v860_v56  ;;  %v1052_v28 = vmul.f32 %v5791_v63, %v4178_v42 }
 0x111   : > { %v1047_v11 = vmul.f32 %v5790_v59, %v4156_v4  ;;  %v1036_v25 = vadd.f32 %v1034_v61, %v1030_v15  ;;  %v5793_v8 = vmov %v5791_v63  ;;  %3223 = vtanh.f32 %v861_v23 }
 0x112   : > { %v1053_v53 = vmul.f32 %v5793_v8, %v4176_v14  ;;  %v1037_v29 = vadd.f32 %v1035_v55, %v1031_v20  ;;  %v5796_v54 = vstv %s5786_s18  ;;  %v4278_v12 = vmul.f32 %v459_v47, %v436_v3  ;;  %s4711_s18 = sld [smem:[#allocation2 + $0x408]] }
 0x113   : > { %v1058_v18 = vmul.f32 %v5796_v54, %v4208_v39  ;;  %v5797_v1 = vmov %v5796_v54  ;;  %v4280_v57 = vmul.f32 %v454_v43, %v435_v60  ;;  %3225 = vtanh.f32 %v962_v40 }
 0x114   : > { %v1059_v50 = vmul.f32 %v5797_v1, %v4206_v2  ;;  %v1042_v17 = vadd.f32 %v4054_v41, %v1036_v25  ;;  %3227 = vtanh.f32 %v963_v10  ;;  %v1043_v46 = vadd.f32 %v4059_v22, %v1037_v29  ;;  %v426_v22 = vpop.permute.xlu0 %425  ;;  %v469_v1 = vpop.permute.xlu1 %468 }
 0x115   : > { %v5798_v15 = vstv %s5792_s21  ;;  %v5800_v3 = vstv %s5794_s3  ;;  %v5803_v41 = vstv %s5795_s14  ;;  %v440_v5 = vsub.f32 %v3820_v44, %v431_v62  ;;  %s4713_s21 = sld [smem:[#allocation2 + $0x480]]  ;;  %s4715_s3 = sld [smem:[#allocation2 + $0x481]] }
 0x116   : > { %v1124_v20 = vmul.f32 %v5798_v15, %v4034_v24  ;;  %v5799_v30 = vmov %v5798_v15  ;;  %v1048_v0 = vadd.f32 %v1046_v37, %v1042_v17  ;;  %v1130_v60 = vmul.f32 %v5800_v3, %v4092_v58  ;;  %s4718_s14 = sld [smem:[#allocation2 + $0x482]] }
 0x117   : > { %v1125_v38 = vmul.f32 %v5799_v30, %v4032_v9  ;;  %v5801_v56 = vmov %v5800_v3  ;;  %v1136_v23 = vmul.f32 %v5803_v41, %v4126_v21  ;;  %v1049_v40 = vadd.f32 %v1047_v11, %v1043_v46 }
 0x118   : > { %v1131_v7 = vmul.f32 %v5801_v56, %v4090_v49  ;;  %v1126_v32 = vadd.f32 %v1124_v20, %v3965_v16  ;;  %v5805_v26 = vmov %v5803_v41  ;;  %v439_v55 = vsub.f32 %v3822_v52, %v426_v22  ;;  %v464_v17 = vpop.permute.xlu0 %463 }
 0x119   : > { %v1127_v10 = vadd.f32 %v1125_v38, %v3970_v45  ;;  %v1137_v61 = vmul.f32 %v5805_v26, %v4124_v36  ;;  %v1054_v31 = vadd.f32 %v1052_v28, %v1048_v0  ;;  %v5806_v37 = vstv %s3748_s30  ;;  %v3218_v45 = vpop.eup %3217  ;;  %s5820_s30 = sld [smem:[#allocation55_spill]] }
 0x11a   : > { %v4309_v59 = vmul.f32 %v5806_v37, %v4004_v34  ;;  %v1055_v25 = vadd.f32 %v1053_v53, %v1049_v40  ;;  %v1132_v63 = vadd.f32 %v1130_v60, %v1126_v32  ;;  %v5807_v8 = vstv %s5802_s0  ;;  %v3220_v54 = vpop.eup %3219  ;;  %s4748_s0 = sld [smem:[#allocation2 + $0x483]] }
 0x11b   : > { %v1133_v11 = vadd.f32 %v1131_v7, %v1127_v10  ;;  %v4314_v16 = vmul.f32 %v5807_v8, %v4158_v27  ;;  %v1060_v47 = vadd.f32 %v1058_v18, %v1054_v31  ;;  %v5809_v43 = vmov %v5807_v8  ;;  %v3222_v30 = vpop.eup %3221 }
 0x11c   : > { %v4319_v44 = vmul.f32 %v5809_v43, %v4156_v4  ;;  %v5810_v52 = vstv %s5804_s16  ;;  %v761_v46 = vadd.f32 %v3218_v45, %v3883_v35  ;;  %v1061_v15 = vadd.f32 %v1059_v50, %v1055_v25  ;;  %v3224_v7 = vpop.eup %3223  ;;  %v474_v31 = vpop.permute.xlu0 %473  ;;  %s4755_s16 = sld [smem:[#allocation2 + $0x484]] }
 0x11d   : > { %v4324_v28 = vmul.f32 %v5810_v52, %v4178_v42  ;;  %v5811_v29 = vmov %v5810_v52  ;;  %v4332_v18 = vadd.f32 %v1136_v23, %v1132_v63  ;;  %v4334_v20 = vadd.f32 %v1137_v61, %v1133_v11  ;;  %v4352_v40 = vpop.eup %3225  ;;  %v479_v61 = vpop.permute.xlu1 %478 }
 0x11e   : > { %v4329_v53 = vmul.f32 %v5811_v29, %v4176_v14  ;;  %v4336_v38 = vmul.f32 %v469_v1, %v438_v19  ;;  %v4338_v0 = vmul.f32 %v464_v17, %v437_v6  ;;  %v762_v3 = vadd.f32 %v3220_v54, %v3891_v13  ;;  %v4358_v26 = vpop.eup %3227 }
 0x11f   : > { %v5812_v60 = vstv %s5808_s17  ;;  %v763_v41 = vmul.f32 %v761_v46, %v3706_v33  ;;  %v776_v62 = vmul.f32 %v761_v46, %v4280_v57  ;;  %v864_v50 = vadd.f32 %v3222_v30, %v4034_v24  ;;  %s4757_s17 = sld [smem:[#allocation2 + $0x485]] }
 0x120   : > { %v4343_v56 = vadd.f32 %v5812_v60, %v1060_v47  ;;  %v5813_v23 = vmov %v5812_v60  ;;  %v764_v19 = vmul.f32 %v762_v3, %v3741_v51  ;;  %v777_v6 = vmul.f32 %v762_v3, %v4278_v12 }
 0x121   : > { %v4350_v22 = vadd.f32 %v5813_v23, %v1061_v15  ;;  %v788_v32 = vmul.f32 %v761_v46, %v4338_v0  ;;  %v789_v10 = vmul.f32 %v762_v3, %v4336_v38  ;;  %v766_v37 = vsel %vm765_vm0, %v763_v41, 0.0 }
 0x122   : > { %v778_v25 = vsel %vm765_vm0, %v776_v62, 0.0  ;;  %v865_v63 = vadd.f32 %v3224_v7, %v4032_v9  ;;  %v866_v11 = vmul.f32 %v864_v50, %v3706_v33  ;;  %v4364_v8 = vmul.f32 %v479_v61, %v440_v5 }
 0x123   : > { %v4366_v45 = vmul.f32 %v474_v31, %v439_v55  ;;  %v767_v47 = vsel %vm765_vm0, %v764_v19, 0.0  ;;  %v779_v43 = vsel %vm765_vm0, %v777_v6, 0.0  ;;  %v790_v54 = vsel %vm765_vm0, %v788_v32, 0.0 }
 0x124   : > { %v768_v52 = vadd.f32 %v767_v47, %v766_v37  ;;  %v780_v29 = vadd.f32 %v779_v43, %v778_v25  ;;  %v791_v1 = vsel %vm765_vm0, %v789_v10, 0.0  ;;  %v801_v30 = vmul.f32 %v762_v3, %v4364_v8 }
 0x125   : > { %v792_v17 = vadd.f32 %v791_v1, %v790_v54  ;;  %v800_v15 = vmul.f32 %v761_v46, %v4366_v45  ;;  %v867_v5 = vmul.f32 %v865_v63, %v3741_v51  ;;  %v868_v7 = vsel %vm765_vm0, %v866_v11, 0.0 }
 0x126   : > { %v769_v60 = vrot.slane %v768_v52, 4  ;;  %v781_v55 = vrot.slane %v780_v29, 4  ;;  %v878_v41 = vmul.f32 %v864_v50, %v4280_v57  ;;  %v803_v19 = vsel %vm765_vm0, %v801_v30, 0.0 }
 0x127   : > { %v793_v62 = vrot.slane %v792_v17, 4  ;;  %v802_v23 = vsel %vm765_vm0, %v800_v15, 0.0  ;;  %v869_v6 = vsel %vm765_vm0, %v867_v5, 0.0  ;;  %v879_v31 = vmul.f32 %v865_v63, %v4278_v12 }
 0x128   : > { %v770_v32 = vadd.f32 %v769_v60, %v768_v52  ;;  %v782_v10 = vadd.f32 %v781_v55, %v780_v29  ;;  %v804_v46 = vadd.f32 %v803_v19, %v802_v23  ;;  %v870_v61 = vadd.f32 %v869_v6, %v868_v7 }
 0x129   : > { %v794_v3 = vadd.f32 %v793_v62, %v792_v17  ;;  %v880_v37 = vsel %vm765_vm0, %v878_v41, 0.0  ;;  %v890_v25 = vmul.f32 %v864_v50, %v4338_v0  ;;  %v881_v15 = vsel %vm765_vm0, %v879_v31, 0.0 }
 0x12a   : > { %v771_v11 = vrot.slane %v770_v32, 2  ;;  %v783_v47 = vrot.slane %v782_v10, 2  ;;  %v805_v43 = vrot.slane %v804_v46, 4  ;;  %v871_v54 = vrot.slane %v870_v61, 4 }
 0x12b   : > { %v795_v1 = vrot.slane %v794_v3, 2  ;;  %v891_v30 = vmul.f32 %v865_v63, %v4336_v38  ;;  %v892_v52 = vsel %vm765_vm0, %v890_v25, 0.0  ;;  %v882_v7 = vadd.f32 %v881_v15, %v880_v37 }
 0x12c   : > { %v772_v29 = vadd.f32 %v771_v11, %v770_v32  ;;  %v784_v5 = vadd.f32 %v783_v47, %v782_v10  ;;  %v806_v17 = vadd.f32 %v805_v43, %v804_v46  ;;  %v872_v60 = vadd.f32 %v871_v54, %v870_v61 }
 0x12d   : > { %v796_v55 = vadd.f32 %v795_v1, %v794_v3  ;;  %v893_v41 = vsel %vm765_vm0, %v891_v30, 0.0  ;;  %v902_v62 = vmul.f32 %v864_v50, %v4366_v45  ;;  %v883_v31 = vrot.slane %v882_v7, 4 }
 0x12e   : > { %v773_v23 = vrot.slane %v772_v29, 1  ;;  %v785_v19 = vrot.slane %v784_v5, 1  ;;  %v807_v6 = vrot.slane %v806_v17, 2  ;;  %v873_v13 = vrot.slane %v872_v60, 2 }
 0x12f   : > { %v797_v35 = vrot.slane %v796_v55, 1  ;;  %v894_v14 = vadd.f32 %v893_v41, %v892_v52  ;;  %v903_v42 = vmul.f32 %v865_v63, %v4364_v8  ;;  %v884_v3 = vadd.f32 %v883_v31, %v882_v7 }
 0x130   : > { %v774_v25 = vadd.f32 %v773_v23, %v772_v29  ;;  %v786_v32 = vadd.f32 %v785_v19, %v784_v5  ;;  %v808_v10 = vadd.f32 %v807_v6, %v806_v17  ;;  %v874_v46 = vadd.f32 %v873_v13, %v872_v60 }
 0x131   : > { %v798_v61 = vadd.f32 %v797_v35, %v796_v55  ;;  %v895_v37 = vrot.slane %v894_v14, 4  ;;  %v904_v11 = vsel %vm765_vm0, %v902_v62, 0.0  ;;  %v885_v15 = vrot.slane %v884_v3, 2 }
 0x132   : > { %v4390_v47 = vmul.f32 0.0625, %v774_v25  ;;  %v4392_v50 = vmul.f32 0.0625, %v786_v32  ;;  %v809_v43 = vrot.slane %v808_v10, 1  ;;  %v875_v54 = vrot.slane %v874_v46, 1 }
 0x133   : > { %v4394_v1 = vmul.f32 0.0625, %v798_v61  ;;  %v896_v30 = vadd.f32 %v895_v37, %v894_v14  ;;  %v905_v63 = vsel %vm765_vm0, %v903_v42, 0.0  ;;  %v966_v35 = vadd.f32 %v4352_v40, %v4092_v58 }
 0x134   : > { %5814 = vst [vmem:[#allocation72_spill] sm:$0xff] %v4392_v50  ;;  %v810_v52 = vadd.f32 %v809_v43, %v808_v10  ;;  %v876_v29 = vadd.f32 %v875_v54, %v874_v46  ;;  %v906_v13 = vadd.f32 %v905_v63, %v904_v11  ;;  %v886_v5 = vadd.f32 %v885_v15, %v884_v3 }
 0x135   : > { %5815 = vst [vmem:[#allocation73_spill] sm:$0xff] %v4394_v1  ;;  %v897_v17 = vrot.slane %v896_v30, 2  ;;  %v967_v60 = vadd.f32 %v4358_v26, %v4090_v49  ;;  %3229 = vtanh.f32 %v4343_v56  ;;  %v968_v42 = vmul.f32 %v966_v35, %v3706_v33 }
 0x136   : > { %v4402_v55 = vmul.f32 0.0625, %v810_v52  ;;  %v4404_v7 = vmul.f32 0.0625, %v876_v29  ;;  %v907_v14 = vrot.slane %v906_v13, 4  ;;  %v887_v41 = vrot.slane %v886_v5, 1 }
 0x137   : > { %v898_v62 = vadd.f32 %v897_v17, %v896_v30  ;;  %v969_v23 = vmul.f32 %v967_v60, %v3741_v51  ;;  %v980_v40 = vmul.f32 %v966_v35, %v4280_v57  ;;  %v970_v6 = vsel %vm765_vm0, %v968_v42, 0.0 }
 0x138   : > { %5816 = vst [vmem:[#allocation74_spill] sm:$0xff] %v4402_v55  ;;  %v908_v19 = vadd.f32 %v907_v14, %v906_v13  ;;  %v981_v26 = vmul.f32 %v967_v60, %v4278_v12  ;;  %v992_v56 = vmul.f32 %v966_v35, %v4338_v0  ;;  %v888_v31 = vadd.f32 %v887_v41, %v886_v5 }
 0x139   : > { %v899_v25 = vrot.slane %v898_v62, 1  ;;  %v971_v32 = vsel %vm765_vm0, %v969_v23, 0.0  ;;  %v982_v10 = vsel %vm765_vm0, %v980_v40, 0.0  ;;  %v993_v37 = vmul.f32 %v967_v60, %v4336_v38 }
 0x13a   : > { %v909_v46 = vrot.slane %v908_v19, 2  ;;  %v972_v61 = vadd.f32 %v971_v32, %v970_v6  ;;  %v983_v3 = vsel %vm765_vm0, %v981_v26, 0.0  ;;  %v4416_v11 = vmul.f32 0.0625, %v888_v31 }
 0x13b   : > { %v900_v43 = vadd.f32 %v899_v25, %v898_v62  ;;  %v984_v54 = vadd.f32 %v983_v3, %v982_v10  ;;  %v994_v15 = vsel %vm765_vm0, %v992_v56, 0.0  ;;  %v995_v52 = vsel %vm765_vm0, %v993_v37, 0.0 }
 0x13c   : > { %5817 = vst [vmem:[#allocation75_spill] sm:$0xff] %v4416_v11  ;;  %v910_v30 = vadd.f32 %v909_v46, %v908_v19  ;;  %v973_v63 = vrot.slane %v972_v61, 4  ;;  %v1004_v29 = vmul.f32 %v966_v35, %v4366_v45  ;;  %v996_v17 = vadd.f32 %v995_v52, %v994_v15 }
 0x13d   : > { %v4421_v13 = vmul.f32 0.0625, %v900_v43  ;;  %v985_v5 = vrot.slane %v984_v54, 4  ;;  %v1005_v14 = vmul.f32 %v967_v60, %v4364_v8  ;;  %3231 = vtanh.f32 %v4350_v22 }
 0x13e   : > { %v911_v42 = vrot.slane %v910_v30, 1  ;;  %v974_v41 = vadd.f32 %v973_v63, %v972_v61  ;;  %v1006_v23 = vsel %vm765_vm0, %v1004_v29, 0.0  ;;  %v997_v19 = vrot.slane %v996_v17, 4 }
 0x13f   : > { %5818 = vst [vmem:[#allocation76_spill] sm:$0xff] %v4421_v13  ;;  %v3230_v62 = vpop.eup %3229  ;;  %v986_v40 = vadd.f32 %v985_v5, %v984_v54  ;;  %v1007_v6 = vsel %vm765_vm0, %v1005_v14, 0.0  ;;  %v1144_v35 = vadd.f32 %v4064_v48, %v4332_v18  ;;  %v1145_v10 = vadd.f32 %v4309_v59, %v4334_v20 }
 0x140   : > { %v912_v26 = vadd.f32 %v911_v42, %v910_v30  ;;  %v975_v56 = vrot.slane %v974_v41, 2  ;;  %v1008_v31 = vadd.f32 %v1007_v6, %v1006_v23  ;;  %v1068_v25 = vadd.f32 %v3230_v62, %v4126_v21 }
 0x141   : > { %v987_v60 = vrot.slane %v986_v40, 2  ;;  %v998_v32 = vadd.f32 %v997_v19, %v996_v17  ;;  %v1150_v22 = vadd.f32 %v4314_v16, %v1144_v35  ;;  %v1151_v42 = vadd.f32 %v4319_v44, %v1145_v10 }
 0x142   : > { %v4433_v46 = vmul.f32 0.0625, %v912_v26  ;;  %v976_v61 = vadd.f32 %v975_v56, %v974_v41  ;;  %v1009_v3 = vrot.slane %v1008_v31, 4  ;;  %v1070_v37 = vmul.f32 %v1068_v25, %v3706_v33 }
 0x143   : > { %v988_v43 = vadd.f32 %v987_v60, %v986_v40  ;;  %v999_v48 = vrot.slane %v998_v32, 2  ;;  %v1082_v18 = vmul.f32 %v1068_v25, %v4280_v57  ;;  %v1094_v54 = vmul.f32 %v1068_v25, %v4338_v0 }
 0x144   : > { %5819 = vst [vmem:[#allocation77_spill] sm:$0xff] %v4433_v46  ;;  %v977_v15 = vrot.slane %v976_v61, 1  ;;  %v1010_v30 = vadd.f32 %v1009_v3, %v1008_v31  ;;  %v1072_v63 = vsel %vm765_vm0, %v1070_v37, 0.0  ;;  %v1106_v59 = vmul.f32 %v1068_v25, %v4366_v45 }
 0x145   : > { %v989_v16 = vrot.slane %v988_v43, 1  ;;  %v1000_v20 = vadd.f32 %v999_v48, %v998_v32  ;;  %v1084_v52 = vsel %vm765_vm0, %v1082_v18, 0.0  ;;  %v1096_v29 = vsel %vm765_vm0, %v1094_v54, 0.0 }
 0x146   : > { %v978_v5 = vadd.f32 %v977_v15, %v976_v61  ;;  %v1011_v17 = vrot.slane %v1010_v30, 2  ;;  %v1108_v14 = vsel %vm765_vm0, %v1106_v59, 0.0  ;;  %v1156_v62 = vadd.f32 %v4324_v28, %v1150_v22 }
 0x147   : > { %v990_v41 = vadd.f32 %v989_v16, %v988_v43  ;;  %v1001_v23 = vrot.slane %v1000_v20, 1  ;;  %v5822_v40 = vstv %s5820_s30  ;;  %v3232_v6 = vpop.eup %3231  ;;  %v1157_v56 = vadd.f32 %v4329_v53, %v1151_v42  ;;  %s4771_s30 = sld [smem:[#allocation2 + $0x486]] }
 0x148   : > { %v1160_v19 = vmul.f32 %v5822_v40, %v4208_v39  ;;  %v4448_v35 = vmul.f32 0.0625, %v978_v5  ;;  %v1012_v26 = vadd.f32 %v1011_v17, %v1010_v30  ;;  %v5823_v31 = vmov %v5822_v40 }
 0x149   : > { %v1161_v25 = vmul.f32 %v5823_v31, %v4206_v2  ;;  %v4454_v44 = vmul.f32 0.0625, %v990_v41  ;;  %v1002_v60 = vadd.f32 %v1001_v23, %v1000_v20  ;;  %v1069_v32 = vadd.f32 %v3232_v6, %v4124_v36  ;;  %v5832_v23 = vld [vmem:[#allocation61_spill] sm:$0xff]  ;;  %v5835_v31 = vld [vmem:[#allocation62_spill] sm:$0xff] }
 0x14a   : > { %v1162_v28 = vadd.f32 %v1160_v19, %v1156_v62  ;;  %v1013_v10 = vrot.slane %v1012_v26, 1  ;;  %v5826_v61 = vstv %s5821_s12  ;;  %v5830_v59 = vstv %s5824_s19  ;;  %s4773_s12 = sld [smem:[#allocation2 + $0x487]]  ;;  %s4792_s19 = sld [smem:[#allocation2 + $0x488]] }
 0x14b   : > { %5825 = vst [vmem:[#allocation78_spill] sm:$0xff] %v4454_v44  ;;  %v1163_v22 = vadd.f32 %v1161_v25, %v1157_v56  ;;  %v1226_v3 = vmul.f32 %v5826_v61, %v4034_v24  ;;  %v5827_v37 = vmov %v5826_v61  ;;  %v4463_v53 = vmul.f32 0.0625, %v1002_v60  ;;  %v5880_v44 = vld [vmem:[#allocation69_spill] sm:$0xff] }
 0x14c   : > { %v1227_v43 = vmul.f32 %v5827_v37, %v4032_v9  ;;  %v1071_v48 = vmul.f32 %v1069_v32, %v3741_v51  ;;  %v1083_v18 = vmul.f32 %v1069_v32, %v4278_v12  ;;  %v1095_v54 = vmul.f32 %v1069_v32, %v4336_v38 }
 0x14d   : > { %5828 = vst [vmem:[#allocation79_spill] sm:$0xff] %v4463_v53  ;;  %v1014_v15 = vadd.f32 %v1013_v10, %v1012_v26  ;;  %v1107_v30 = vmul.f32 %v1069_v32, %v4364_v8  ;;  %v1166_v16 = vadd.f32 %v5830_v59, %v1162_v28  ;;  %v5831_v20 = vmov %v5830_v59 }
 0x14e   : > { %v1167_v5 = vadd.f32 %v5831_v20, %v1163_v22  ;;  %v1073_v17 = vsel %vm765_vm0, %v1071_v48, 0.0  ;;  %v1085_v42 = vsel %vm765_vm0, %v1083_v18, 0.0  ;;  %v1097_v41 = vsel %vm765_vm0, %v1095_v54, 0.0 }
 0x14f   : > { %v1228_v62 = vadd.f32 %v1226_v3, %v5832_v23  ;;  %v4477_v40 = vmul.f32 0.0625, %v1014_v15  ;;  %v1074_v19 = vadd.f32 %v1073_v17, %v1072_v63  ;;  %v1086_v6 = vadd.f32 %v1085_v42, %v1084_v52 }
 0x150   : > { %v1098_v26 = vadd.f32 %v1097_v41, %v1096_v29  ;;  %v1109_v56 = vsel %vm765_vm0, %v1107_v30, 0.0  ;;  %3233 = vtanh.f32 %v1166_v16  ;;  %v1229_v25 = vadd.f32 %v1227_v43, %v5835_v31  ;;  %v5841_v16 = vld [vmem:[#allocation67_spill] sm:$0xff] }
 0x151   : > { %5834 = vst [vmem:[#allocation61_spill] sm:$0xff] %v4477_v40  ;;  %v5836_v60 = vstv %s5829_s24  ;;  %v1075_v28 = vrot.slane %v1074_v19, 4  ;;  %v1087_v10 = vrot.slane %v1086_v6, 4  ;;  %v1110_v61 = vadd.f32 %v1109_v56, %v1108_v14  ;;  %s4794_s24 = sld [smem:[#allocation2 + $0x500]] }
 0x152   : > { %v1232_v32 = vmul.f32 %v5836_v60, %v4092_v58  ;;  %v1099_v22 = vrot.slane %v1098_v26, 4  ;;  %3235 = vtanh.f32 %v1167_v5  ;;  %v5838_v3 = vmov %v5836_v60 }
 0x153   : > { %v1233_v63 = vmul.f32 %v5838_v3, %v4090_v49  ;;  %v5839_v29 = vstv %s5833_s15  ;;  %v1076_v48 = vadd.f32 %v1075_v28, %v1074_v19  ;;  %v1088_v43 = vadd.f32 %v1087_v10, %v1086_v6  ;;  %s4815_s15 = sld [smem:[#allocation2 + $0x501]] }
 0x154   : > { %v1234_v52 = vadd.f32 %v1232_v32, %v1228_v62  ;;  %v1238_v37 = vmul.f32 %v5839_v29, %v4126_v21  ;;  %v1100_v18 = vadd.f32 %v1099_v22, %v1098_v26  ;;  %v1111_v54 = vrot.slane %v1110_v61, 4 }
 0x155   : > { %v1235_v15 = vadd.f32 %v1233_v63, %v1229_v25  ;;  %v5840_v30 = vmov %v5839_v29  ;;  %v5842_v20 = vstv %s5837_s13  ;;  %v1077_v17 = vrot.slane %v1076_v48, 2  ;;  %s4817_s13 = sld [smem:[#allocation2 + $0x502]] }
 0x156   : > { %v1239_v59 = vmul.f32 %v5840_v30, %v4124_v36  ;;  %v1240_v14 = vadd.f32 %v1238_v37, %v1234_v52  ;;  %v1244_v5 = vmul.f32 %v5842_v20, %v5841_v16  ;;  %v1089_v42 = vrot.slane %v1088_v43, 2 }
 0x157   : > { %v1101_v41 = vrot.slane %v1100_v18, 2  ;;  %v1112_v23 = vadd.f32 %v1111_v54, %v1110_v61  ;;  %v5843_v19 = vmov %v5842_v20  ;;  %v5844_v56 = vstv %s3864_s25  ;;  %v5846_v61 = vld [vmem:[#allocation71_spill] sm:$0xff]  ;;  %s4547_s25 = sld [smem:[#allocation2 + $0x305]] }
 0x158   : > { %v1241_v62 = vadd.f32 %v1239_v59, %v1235_v15  ;;  %v1245_v6 = vmul.f32 %v5843_v19, %v4004_v34  ;;  %v1246_v26 = vadd.f32 %v1244_v5, %v1240_v14  ;;  %v1250_v31 = vmul.f32 %v5844_v56, %v4158_v27 }
 0x159   : > { %v1078_v25 = vadd.f32 %v1077_v17, %v1076_v48  ;;  %v1090_v60 = vadd.f32 %v1089_v42, %v1088_v43  ;;  %v1102_v32 = vadd.f32 %v1101_v41, %v1100_v18  ;;  %v1113_v28 = vrot.slane %v1112_v23, 2  ;;  %v5848_v48 = vld [vmem:[#allocation70_spill] sm:$0xff] }
 0x15a   : > { %v1247_v10 = vadd.f32 %v1245_v6, %v1241_v62  ;;  %v5845_v22 = vmov %v5844_v56  ;;  %v1252_v63 = vadd.f32 %v1250_v31, %v1246_v26  ;;  %v5847_v52 = vstv %s3888_s29  ;;  %v3234_v59 = vpop.eup %3233  ;;  %s4620_s29 = sld [smem:[#allocation2 + $0x384]] }
 0x15b   : > { %v1251_v3 = vmul.f32 %v5845_v22, %v4156_v4  ;;  %v1256_v29 = vmul.f32 %v5847_v52, %v5846_v61  ;;  %v1079_v37 = vrot.slane %v1078_v25, 1  ;;  %v1091_v54 = vrot.slane %v1090_v60, 1 }
 0x15c   : > { %v1103_v15 = vrot.slane %v1102_v32, 1  ;;  %v1114_v30 = vadd.f32 %v1113_v28, %v1112_v23  ;;  %v5849_v20 = vmov %v5847_v52  ;;  %v5850_v5 = vstv %s3897_s6  ;;  %v3236_v6 = vpop.eup %3235  ;;  %s4618_s6 = sld [smem:[#allocation2 + $0x383]] }
 0x15d   : > { %v1253_v14 = vadd.f32 %v1251_v3, %v1247_v10  ;;  %v1257_v43 = vmul.f32 %v5849_v20, %v5848_v48  ;;  %v1258_v18 = vadd.f32 %v1256_v29, %v1252_v63  ;;  %v1262_v17 = vmul.f32 %v5850_v5, %v4208_v39 }
 0x15e   : > { %v1080_v42 = vadd.f32 %v1079_v37, %v1078_v25  ;;  %v1092_v41 = vadd.f32 %v1091_v54, %v1090_v60  ;;  %v1104_v62 = vadd.f32 %v1103_v15, %v1102_v32  ;;  %v1115_v19 = vrot.slane %v1114_v30, 1 }
 0x15f   : > { %v1170_v26 = vadd.f32 %v3234_v59, %v5841_v16  ;;  %v1259_v56 = vadd.f32 %v1257_v43, %v1253_v14  ;;  %v5851_v23 = vmov %v5850_v5  ;;  %v1264_v28 = vadd.f32 %v1262_v17, %v1258_v18 }
 0x160   : > { %v1263_v31 = vmul.f32 %v5851_v23, %v4206_v2  ;;  %v4518_v10 = vmul.f32 0.0625, %v1080_v42  ;;  %v4520_v22 = vmul.f32 0.0625, %v1092_v41  ;;  %v4522_v3 = vmul.f32 0.0625, %v1104_v62 }
 0x161   : > { %v1116_v63 = vadd.f32 %v1115_v19, %v1114_v30  ;;  %v1171_v25 = vadd.f32 %v3236_v6, %v4004_v34  ;;  %v1172_v60 = vmul.f32 %v1170_v26, %v3706_v33  ;;  %v1184_v32 = vmul.f32 %v1170_v26, %v4280_v57 }
 0x162   : > { %5852 = vst [vmem:[#allocation62_spill] sm:$0xff] %v4520_v22  ;;  %5853 = vst [vmem:[#allocation67_spill] sm:$0xff] %v4522_v3  ;;  %v1196_v52 = vmul.f32 %v1170_v26, %v4338_v0  ;;  %v1208_v37 = vmul.f32 %v1170_v26, %v4366_v45  ;;  %v1265_v54 = vadd.f32 %v1263_v31, %v1259_v56  ;;  %v5855_v15 = vstv %s3928_s20  ;;  %s4629_s20 = sld [smem:[#allocation2 + $0x385]]  ;;  %v5879_v22 = vld [vmem:[#allocation68_spill] sm:$0xff] }
 0x163   : > { %v4528_v29 = vmul.f32 0.0625, %v1116_v63  ;;  %v1268_v59 = vadd.f32 %v5855_v15, %v1264_v28  ;;  %v1173_v14 = vmul.f32 %v1171_v25, %v3741_v51  ;;  %v1174_v30 = vsel %vm765_vm0, %v1172_v60, 0.0 }
 0x164   : > { %v1185_v20 = vmul.f32 %v1171_v25, %v4278_v12  ;;  %v1186_v43 = vsel %vm765_vm0, %v1184_v32, 0.0  ;;  %v1197_v18 = vmul.f32 %v1171_v25, %v4336_v38  ;;  %v1198_v5 = vsel %vm765_vm0, %v1196_v52, 0.0 }
 0x165   : > { %5854 = vst [vmem:[#allocation71_spill] sm:$0xff] %v4528_v29  ;;  %v1209_v17 = vmul.f32 %v1171_v25, %v4364_v8  ;;  %v1210_v42 = vsel %vm765_vm0, %v1208_v37, 0.0  ;;  %v1175_v41 = vsel %vm765_vm0, %v1173_v14, 0.0  ;;  %v5856_v19 = vmov %v5855_v15 }
 0x166   : > { %v1187_v62 = vsel %vm765_vm0, %v1185_v20, 0.0  ;;  %v1269_v6 = vadd.f32 %v5856_v19, %v1265_v54  ;;  %3237 = vtanh.f32 %v1268_v59  ;;  %v1176_v26 = vadd.f32 %v1175_v41, %v1174_v30  ;;  %v5860_v20 = vld [vmem:[#allocation63_spill] sm:$0xff]  ;;  %v5862_v41 = vld [vmem:[#allocation64_spill] sm:$0xff] }
 0x167   : > { %v1188_v56 = vadd.f32 %v1187_v62, %v1186_v43  ;;  %v1199_v23 = vsel %vm765_vm0, %v1197_v18, 0.0  ;;  %v1211_v31 = vsel %vm765_vm0, %v1209_v17, 0.0  ;;  %v5857_v25 = vstv %s3852_s28  ;;  %s4599_s28 = sld [smem:[#allocation2 + $0x308]] }
 0x168   : > { %v1200_v28 = vadd.f32 %v1199_v23, %v1198_v5  ;;  %v1212_v63 = vadd.f32 %v1211_v31, %v1210_v42  ;;  %3239 = vtanh.f32 %v1269_v6  ;;  %v1328_v60 = vmul.f32 %v5857_v25, %v4034_v24 }
 0x169   : > { %v1177_v32 = vrot.slane %v1176_v26, 4  ;;  %v1189_v52 = vrot.slane %v1188_v56, 4  ;;  %v5858_v37 = vmov %v5857_v25  ;;  %v5859_v15 = vstv %s3899_s2  ;;  %s4578_s2 = sld [smem:[#allocation2 + $0x306]] }
 0x16a   : > { %v1329_v54 = vmul.f32 %v5858_v37, %v4032_v9  ;;  %v1334_v59 = vmul.f32 %v5859_v15, %v4092_v58  ;;  %v1201_v14 = vrot.slane %v1200_v28, 4  ;;  %v1213_v30 = vrot.slane %v1212_v63, 4 }
 0x16b   : > { %v1330_v43 = vadd.f32 %v1328_v60, %v5860_v20  ;;  %v5861_v18 = vmov %v5859_v15  ;;  %v1178_v17 = vadd.f32 %v1177_v32, %v1176_v26  ;;  %v1190_v42 = vadd.f32 %v1189_v52, %v1188_v56 }
 0x16c   : > { %v1335_v5 = vmul.f32 %v5861_v18, %v4090_v49  ;;  %v1331_v62 = vadd.f32 %v1329_v54, %v5862_v41  ;;  %v5863_v19 = vstv %s3910_s27  ;;  %v1202_v23 = vadd.f32 %v1201_v14, %v1200_v28  ;;  %s4583_s27 = sld [smem:[#allocation2 + $0x307]] }
 0x16d   : > { %v1340_v6 = vmul.f32 %v5863_v19, %v4126_v21  ;;  %v1214_v31 = vadd.f32 %v1213_v30, %v1212_v63  ;;  %v1336_v25 = vadd.f32 %v1334_v59, %v1330_v43  ;;  %v5864_v37 = vmov %v5863_v19 }
 0x16e   : > { %v1341_v15 = vmul.f32 %v5864_v37, %v4124_v36  ;;  %v1179_v29 = vrot.slane %v1178_v17, 2  ;;  %v1191_v60 = vrot.slane %v1190_v42, 2  ;;  %v1337_v20 = vadd.f32 %v1335_v5, %v1331_v62 }
 0x16f   : > { %v5865_v18 = vstv %s3857_s22  ;;  %v1203_v26 = vrot.slane %v1202_v23, 2  ;;  %v1215_v56 = vrot.slane %v1214_v31, 2  ;;  %v1342_v32 = vadd.f32 %v1340_v6, %v1336_v25  ;;  %s4614_s22 = sld [smem:[#allocation2 + $0x382]] }
 0x170   : > { %v1346_v40 = vmul.f32 %v5865_v18, %v5841_v16  ;;  %v5866_v52 = vmov %v5865_v18  ;;  %v1180_v41 = vadd.f32 %v1179_v29, %v1178_v17  ;;  %v1192_v19 = vadd.f32 %v1191_v60, %v1190_v42  ;;  %v3238_v59 = vpop.eup %3237 }
 0x171   : > { %v1347_v54 = vmul.f32 %v5866_v52, %v4004_v34  ;;  %v1343_v28 = vadd.f32 %v1341_v15, %v1337_v20  ;;  %v1351_v63 = vstv %s4547_s25  ;;  %v1204_v14 = vadd.f32 %v1203_v26, %v1202_v23  ;;  %s4826_s25 = sld [smem:[#allocation2 + $0x503]] }
 0x172   : > { %v1216_v30 = vadd.f32 %v1215_v56, %v1214_v31  ;;  %v1348_v43 = vadd.f32 %v1346_v40, %v1342_v32  ;;  %v1352_v37 = vmul.f32 %v1351_v63, %v4158_v27  ;;  %v1181_v5 = vrot.slane %v1180_v41, 1  ;;  %v3240_v6 = vpop.eup %3239 }
 0x173   : > { %v1193_v62 = vrot.slane %v1192_v19, 1  ;;  %v1272_v18 = vadd.f32 %v3238_v59, %v4158_v27  ;;  %v1349_v55 = vadd.f32 %v1347_v54, %v1343_v28  ;;  %v1205_v25 = vrot.slane %v1204_v14, 1 }
 0x174   : > { %v1217_v52 = vrot.slane %v1216_v30, 1  ;;  %v1353_v29 = vmul.f32 %v1351_v63, %v4156_v4  ;;  %v1354_v17 = vadd.f32 %v1352_v37, %v1348_v43  ;;  %v1182_v42 = vadd.f32 %v1181_v5, %v1180_v41 }
 0x175   : > { %v1194_v15 = vadd.f32 %v1193_v62, %v1192_v19  ;;  %v1273_v23 = vadd.f32 %v3240_v6, %v4156_v4  ;;  %v1274_v40 = vmul.f32 %v1272_v18, %v3706_v33  ;;  %v1206_v31 = vadd.f32 %v1205_v25, %v1204_v14 }
 0x176   : > { %v1218_v60 = vadd.f32 %v1217_v52, %v1216_v30  ;;  %v1286_v20 = vmul.f32 %v1272_v18, %v4280_v57  ;;  %v1298_v26 = vmul.f32 %v1272_v18, %v4338_v0  ;;  %v4587_v56 = vmul.f32 0.0625, %v1182_v42 }
 0x177   : > { %v4589_v32 = vmul.f32 0.0625, %v1194_v15  ;;  %v1275_v54 = vmul.f32 %v1273_v23, %v3741_v51  ;;  %v1276_v41 = vsel %vm765_vm0, %v1274_v40, 0.0  ;;  %v4593_v19 = vmul.f32 0.0625, %v1206_v31 }
 0x178   : > { %5867 = vst [vmem:[#allocation70_spill] sm:$0xff] %v4587_v56  ;;  %v4595_v28 = vmul.f32 0.0625, %v1218_v60  ;;  %v1287_v63 = vmul.f32 %v1273_v23, %v4278_v12  ;;  %v1288_v59 = vsel %vm765_vm0, %v1286_v20, 0.0  ;;  %v1299_v30 = vmul.f32 %v1273_v23, %v4336_v38 }
 0x179   : > { %5868 = vst [vmem:[#allocation63_spill] sm:$0xff] %v4589_v32  ;;  %5869 = vst [vmem:[#allocation64_spill] sm:$0xff] %v4593_v19  ;;  %v1277_v14 = vsel %vm765_vm0, %v1275_v54, 0.0  ;;  %v1300_v43 = vsel %vm765_vm0, %v1298_v26, 0.0  ;;  %v1310_v37 = vmul.f32 %v1272_v18, %v4366_v45  ;;  %v1311_v6 = vmul.f32 %v1273_v23, %v4364_v8 }
 0x17a   : > { %5870 = vst [vmem:[#allocation80_spill] sm:$0xff] %v4595_v28  ;;  %v1278_v5 = vadd.f32 %v1277_v14, %v1276_v41  ;;  %v1289_v62 = vsel %vm765_vm0, %v1287_v63, 0.0  ;;  %v1355_v25 = vadd.f32 %v1353_v29, %v1349_v55  ;;  %v1301_v42 = vsel %vm765_vm0, %v1299_v30, 0.0 }
 0x17b   : > { %v1290_v52 = vadd.f32 %v1289_v62, %v1288_v59  ;;  %v1312_v15 = vsel %vm765_vm0, %v1310_v37, 0.0  ;;  %v1357_v40 = vstv %s4578_s2  ;;  %v1302_v60 = vadd.f32 %v1301_v42, %v1300_v43  ;;  %s4830_s2 = sld [smem:[#allocation2 + $0x504]] }
 0x17c   : > { %v1279_v31 = vrot.slane %v1278_v5, 4  ;;  %v1313_v20 = vsel %vm765_vm0, %v1311_v6, 0.0  ;;  %v1358_v26 = vmul.f32 %v1357_v40, %v5846_v61  ;;  %v1359_v41 = vmul.f32 %v1357_v40, %v5848_v48 }
 0x17d   : > { %v1291_v18 = vrot.slane %v1290_v52, 4  ;;  %v1314_v54 = vadd.f32 %v1313_v20, %v1312_v15  ;;  %v1363_v63 = vstv %s4583_s27  ;;  %v1303_v29 = vrot.slane %v1302_v60, 4  ;;  %s4835_s27 = sld [smem:[#allocation2 + $0x505]] }
 0x17e   : > { %v1280_v55 = vadd.f32 %v1279_v31, %v1278_v5  ;;  %v1360_v23 = vadd.f32 %v1358_v26, %v1354_v17  ;;  %v1364_v59 = vmul.f32 %v1363_v63, %v4208_v39  ;;  %v1361_v43 = vadd.f32 %v1359_v41, %v1355_v25 }
 0x17f   : > { %v1292_v14 = vadd.f32 %v1291_v18, %v1290_v52  ;;  %v1315_v30 = vrot.slane %v1314_v54, 4  ;;  %v1365_v37 = vmul.f32 %v1363_v63, %v4206_v2  ;;  %v1304_v6 = vadd.f32 %v1303_v29, %v1302_v60  ;;  %v5873_v29 = vld [vmem:[#allocation65_spill] sm:$0xff] }
 0x180   : > { %v1281_v62 = vrot.slane %v1280_v55, 2  ;;  %v1366_v42 = vadd.f32 %v1364_v59, %v1360_v23  ;;  %v1369_v15 = vstv %s4599_s28  ;;  %v5871_v17 = vstv %s3915_s8  ;;  %s4637_s8 = sld [smem:[#allocation2 + $0x388]]  ;;  %s4837_s28 = sld [smem:[#allocation2 + $0x506]] }
 0x181   : > { %v1293_v5 = vrot.slane %v1292_v14, 2  ;;  %v1316_v40 = vadd.f32 %v1315_v30, %v1314_v54  ;;  %v1367_v31 = vadd.f32 %v1365_v37, %v1361_v43  ;;  %v1430_v20 = vmul.f32 %v5871_v17, %v4034_v24  ;;  %v5874_v30 = vld [vmem:[#allocation66_spill] sm:$0xff] }
 0x182   : > { %v1282_v52 = vadd.f32 %v1281_v62, %v1280_v55  ;;  %v1305_v26 = vrot.slane %v1304_v6, 2  ;;  %v1370_v18 = vadd.f32 %v1369_v15, %v1366_v42  ;;  %v5872_v25 = vmov %v5871_v17 }
 0x183   : > { %v1431_v41 = vmul.f32 %v5872_v25, %v4032_v9  ;;  %v1294_v63 = vadd.f32 %v1293_v5, %v1292_v14  ;;  %v1317_v28 = vrot.slane %v1316_v40, 2  ;;  %v1371_v60 = vadd.f32 %v1369_v15, %v1367_v31 }
 0x184   : > { %v1432_v23 = vadd.f32 %v1430_v20, %v5873_v29  ;;  %v1283_v54 = vrot.slane %v1282_v52, 1  ;;  %v1306_v59 = vadd.f32 %v1305_v26, %v1304_v6  ;;  %3241 = vtanh.f32 %v1370_v18 }
 0x185   : > { %v1433_v55 = vadd.f32 %v1431_v41, %v5874_v30  ;;  %v1295_v43 = vrot.slane %v1294_v63, 1  ;;  %v1318_v37 = vadd.f32 %v1317_v28, %v1316_v40  ;;  %3243 = vtanh.f32 %v1371_v60 }
 0x186   : > { %v1435_v14 = vstv %s4614_s22  ;;  %v1284_v62 = vadd.f32 %v1283_v54, %v1282_v52  ;;  %v1307_v42 = vrot.slane %v1306_v59, 1  ;;  %v1441_v17 = vstv %s4618_s6  ;;  %s4841_s22 = sld [smem:[#allocation2 + $0x507]]  ;;  %s4843_s6 = sld [smem:[#allocation2 + $0x508]] }
 0x187   : > { %v1436_v15 = vmul.f32 %v1435_v14, %v4092_v58  ;;  %v1437_v5 = vmul.f32 %v1435_v14, %v4090_v49  ;;  %v1296_v6 = vadd.f32 %v1295_v43, %v1294_v63  ;;  %v1319_v31 = vrot.slane %v1318_v37, 1 }
 0x188   : > { %v1447_v20 = vstv %s4620_s29  ;;  %v4648_v26 = vmul.f32 0.0625, %v1284_v62  ;;  %v1308_v28 = vadd.f32 %v1307_v42, %v1306_v59  ;;  %v1442_v41 = vmul.f32 %v1441_v17, %v4126_v21  ;;  %s4847_s29 = sld [smem:[#allocation2 + $0x580]] }
 0x189   : > { %v1438_v40 = vadd.f32 %v1436_v15, %v1432_v23  ;;  %v1439_v52 = vadd.f32 %v1437_v5, %v1433_v55  ;;  %v4650_v18 = vmul.f32 0.0625, %v1296_v6  ;;  %v1320_v25 = vadd.f32 %v1319_v31, %v1318_v37 }
 0x18a   : > { %5875 = vst [vmem:[#allocation65_spill] sm:$0xff] %v4648_v26  ;;  %v1443_v60 = vmul.f32 %v1441_v17, %v4124_v36  ;;  %v4654_v29 = vmul.f32 0.0625, %v1308_v28  ;;  %v1448_v63 = vmul.f32 %v1447_v20, %v5841_v16  ;;  %v1449_v54 = vmul.f32 %v1447_v20, %v4004_v34 }
 0x18b   : > { %5876 = vst [vmem:[#allocation66_spill] sm:$0xff] %v4650_v18  ;;  %v1453_v30 = vstv %s4629_s20  ;;  %v4659_v59 = vmul.f32 0.0625, %v1320_v25  ;;  %v1444_v23 = vadd.f32 %v1442_v41, %v1438_v40  ;;  %v1459_v14 = vstv %s4632_s4  ;;  %s4849_s20 = sld [smem:[#allocation2 + $0x581]]  ;;  %s4886_s4 = sld [smem:[#allocation2 + $0x584]] }
 0x18c   : > { %5877 = vst [vmem:[#allocation81_spill] sm:$0xff] %v4654_v29  ;;  %v1445_v55 = vadd.f32 %v1443_v60, %v1439_v52  ;;  %v1454_v43 = vmul.f32 %v1453_v30, %v4158_v27  ;;  %v1455_v37 = vmul.f32 %v1453_v30, %v4156_v4  ;;  %v1465_v62 = vstv %s4635_s5  ;;  %s4892_s5 = sld [smem:[#allocation2 + $0x582]] }
 0x18d   : > { %5878 = vst [vmem:[#allocation82_spill] sm:$0xff] %v4659_v59  ;;  %v1471_v42 = vstv %s4637_s8  ;;  %v1450_v15 = vadd.f32 %v1448_v63, %v1444_v23  ;;  %v1460_v6 = vmul.f32 %v1459_v14, %v5846_v61  ;;  %v1461_v31 = vmul.f32 %v1459_v14, %v5848_v48  ;;  %s4898_s8 = sld [smem:[#allocation2 + $0x583]] }
 0x18e   : > { %v1451_v5 = vadd.f32 %v1449_v54, %v1445_v55  ;;  %v3242_v17 = vpop.eup %3241  ;;  %v1466_v20 = vmul.f32 %v1465_v62, %v4208_v39  ;;  %v1467_v28 = vmul.f32 %v1465_v62, %v4206_v2  ;;  %v1531_v40 = vstv %s4642_s9  ;;  %s4904_s9 = sld [smem:[#allocation2 + $0x585]] }
 0x18f   : > { %v1537_v52 = vstv %s4644_s26  ;;  %v3244_v25 = vpop.eup %3243  ;;  %v1374_v41 = vadd.f32 %v3242_v17, %v5846_v61  ;;  %v1456_v60 = vadd.f32 %v1454_v43, %v1450_v15  ;;  %v1532_v59 = vmul.f32 %v1531_v40, %v4034_v24  ;;  %s4909_s26 = sld [smem:[#allocation2 + $0x586]] }
 0x190   : > { %v1457_v30 = vadd.f32 %v1455_v37, %v1451_v5  ;;  %v1375_v63 = vadd.f32 %v3244_v25, %v5848_v48  ;;  %v1533_v54 = vmul.f32 %v1531_v40, %v4032_v9  ;;  %v1538_v23 = vmul.f32 %v1537_v52, %v4092_v58 }
 0x191   : > { %v1539_v55 = vmul.f32 %v1537_v52, %v4090_v49  ;;  %v1376_v14 = vmul.f32 %v1374_v41, %v3706_v33  ;;  %v1388_v62 = vmul.f32 %v1374_v41, %v4280_v57  ;;  %v1400_v46 = vmul.f32 %v1374_v41, %v4338_v0 }
 0x192   : > { %v1412_v17 = vmul.f32 %v1374_v41, %v4366_v45  ;;  %v1377_v43 = vmul.f32 %v1375_v63, %v3741_v51  ;;  %v1389_v37 = vmul.f32 %v1375_v63, %v4278_v12  ;;  %v1401_v15 = vmul.f32 %v1375_v63, %v4336_v38 }
 0x193   : > { %v1413_v5 = vmul.f32 %v1375_v63, %v4364_v8  ;;  %v1378_v40 = vsel %vm765_vm0, %v1376_v14, 0.0  ;;  %v1390_v52 = vsel %vm765_vm0, %v1388_v62, 0.0  ;;  %v1402_v25 = vsel %vm765_vm0, %v1400_v46, 0.0 }
 0x194   : > { %v1414_v41 = vsel %vm765_vm0, %v1412_v17, 0.0  ;;  %v1379_v29 = vsel %vm765_vm0, %v1377_v43, 0.0  ;;  %v1391_v19 = vsel %vm765_vm0, %v1389_v37, 0.0  ;;  %v1403_v3 = vsel %vm765_vm0, %v1401_v15, 0.0 }
 0x195   : > { %v1415_v63 = vsel %vm765_vm0, %v1413_v5, 0.0  ;;  %v1380_v18 = vadd.f32 %v1379_v29, %v1378_v40  ;;  %v1392_v53 = vadd.f32 %v1391_v19, %v1390_v52  ;;  %v1404_v32 = vadd.f32 %v1403_v3, %v1402_v25 }
 0x196   : > { %v1416_v1 = vadd.f32 %v1415_v63, %v1414_v41  ;;  %v1462_v13 = vadd.f32 %v1460_v6, %v1456_v60  ;;  %v1463_v14 = vadd.f32 %v1461_v31, %v1457_v30  ;;  %v1534_v62 = vadd.f32 %v1532_v59, %v5879_v22 }
 0x197   : > { %v1535_v46 = vadd.f32 %v1533_v54, %v5880_v44  ;;  %v1381_v50 = vrot.slane %v1380_v18, 4  ;;  %v1393_v17 = vrot.slane %v1392_v53, 4  ;;  %v1405_v43 = vrot.slane %v1404_v32, 4 }
 0x198   : > { %v1417_v37 = vrot.slane %v1416_v1, 4  ;;  %v1468_v11 = vadd.f32 %v1466_v20, %v1462_v13  ;;  %v1469_v15 = vadd.f32 %v1467_v28, %v1463_v14  ;;  %v1540_v26 = vadd.f32 %v1538_v23, %v1534_v62 }
 0x199   : > { %v1541_v5 = vadd.f32 %v1539_v55, %v1535_v46  ;;  %v1382_v3 = vadd.f32 %v1381_v50, %v1380_v18  ;;  %v1394_v19 = vadd.f32 %v1393_v17, %v1392_v53  ;;  %v1406_v29 = vadd.f32 %v1405_v43, %v1404_v32 }
 0x19a   : > { %v1418_v22 = vadd.f32 %v1417_v37, %v1416_v1  ;;  %v1472_v59 = vadd.f32 %v1471_v42, %v1468_v11  ;;  %v1473_v44 = vadd.f32 %v1471_v42, %v1469_v15  ;;  %v1543_v6 = vstv %s4686_s7  ;;  %s4911_s7 = sld [smem:[#allocation2 + $0x600]] }
 0x19b   : > { %v1549_v31 = vstv %s4688_s23  ;;  %v1383_v60 = vrot.slane %v1382_v3, 2  ;;  %v1395_v30 = vrot.slane %v1394_v19, 2  ;;  %v1407_v54 = vrot.slane %v1406_v29, 2  ;;  %s4913_s23 = sld [smem:[#allocation2 + $0x587]] }
 0x19c   : > { %v1419_v40 = vrot.slane %v1418_v22, 2  ;;  %3245 = vtanh.f32 %v1472_v59  ;;  %v1544_v13 = vmul.f32 %v1543_v6, %v4126_v21  ;;  %v1545_v20 = vmul.f32 %v1543_v6, %v4124_v36 }
 0x19d   : > { %v1550_v28 = vmul.f32 %v1549_v31, %v5841_v16  ;;  %v1384_v50 = vadd.f32 %v1383_v60, %v1382_v3  ;;  %v1396_v1 = vadd.f32 %v1395_v30, %v1394_v19  ;;  %v1408_v11 = vadd.f32 %v1407_v54, %v1406_v29 }
 0x19e   : > { %v1420_v53 = vadd.f32 %v1419_v40, %v1418_v22  ;;  %3247 = vtanh.f32 %v1473_v44  ;;  %v1546_v32 = vadd.f32 %v1544_v13, %v1540_v26  ;;  %v1547_v18 = vadd.f32 %v1545_v20, %v1541_v5 }
 0x19f   : > { %v1551_v42 = vmul.f32 %v1549_v31, %v4004_v34  ;;  %v1385_v23 = vrot.slane %v1384_v50, 1  ;;  %v1397_v55 = vrot.slane %v1396_v1, 1  ;;  %v1409_v52 = vrot.slane %v1408_v11, 1 }
 0x1a0   : > { %v1421_v25 = vrot.slane %v1420_v53, 1  ;;  %v1552_v41 = vadd.f32 %v1550_v28, %v1546_v32  ;;  %v1555_v14 = vstv %s4700_s1  ;;  %v1561_v62 = vstv %s4702_s10  ;;  %s4915_s1 = sld [smem:[#allocation2 + $0x588]]  ;;  %s4922_s10 = sld [smem:[#allocation2 + $0x601]] }
 0x1a1   : > { %v1553_v63 = vadd.f32 %v1551_v42, %v1547_v18  ;;  %v1386_v46 = vadd.f32 %v1385_v23, %v1384_v50  ;;  %v1398_v17 = vadd.f32 %v1397_v55, %v1396_v1  ;;  %v1410_v43 = vadd.f32 %v1409_v52, %v1408_v11  ;;  %v5885_v1 = vld [vmem:[#allocation59_spill] sm:$0xff] }
 0x1a2   : > { %v1422_v26 = vadd.f32 %v1421_v25, %v1420_v53  ;;  %v1556_v37 = vmul.f32 %v1555_v14, %v4158_v27  ;;  %v1557_v15 = vmul.f32 %v1555_v14, %v4156_v4  ;;  %v1562_v5 = vmul.f32 %v1561_v62, %v5846_v61  ;;  %v5886_v53 = vld [vmem:[#allocation60_spill] sm:$0xff] }
 0x1a3   : > { %v1563_v3 = vmul.f32 %v1561_v62, %v5848_v48  ;;  %v4726_v19 = vmul.f32 0.0625, %v1386_v46  ;;  %v4728_v29 = vmul.f32 0.0625, %v1398_v17  ;;  %v4730_v22 = vmul.f32 0.0625, %v1410_v43 }
 0x1a4   : > { %v4732_v59 = vmul.f32 0.0625, %v1422_v26  ;;  %v1558_v44 = vadd.f32 %v1556_v37, %v1552_v41  ;;  %v1559_v6 = vadd.f32 %v1557_v15, %v1553_v63  ;;  %v1567_v31 = vstv %s4709_s11  ;;  %s4952_s11 = sld [smem:[#allocation2 + $0x602]] }
 0x1a5   : > { %5881 = vst [vmem:[#allocation68_spill] sm:$0xff] %v4726_v19  ;;  %5882 = vst [vmem:[#allocation69_spill] sm:$0xff] %v4728_v29  ;;  %v1573_v60 = vstv %s4711_s18  ;;  %v1568_v30 = vmul.f32 %v1567_v31, %v4208_v39  ;;  %v1569_v54 = vmul.f32 %v1567_v31, %v4206_v2  ;;  %v1629_v40 = vstv %s4713_s21  ;;  %s4960_s18 = sld [smem:[#allocation2 + $0x603]]  ;;  %s4962_s21 = sld [smem:[#allocation2 + $0x604]] }
 0x1a6   : > { %5883 = vst [vmem:[#allocation83_spill] sm:$0xff] %v4730_v22  ;;  %5884 = vst [vmem:[#allocation84_spill] sm:$0xff] %v4732_v59  ;;  %v1633_v13 = vstv %s4715_s3  ;;  %v3246_v20 = vpop.eup %3245  ;;  %v1564_v28 = vadd.f32 %v1562_v5, %v1558_v44  ;;  %v1565_v50 = vadd.f32 %v1563_v3, %v1559_v6  ;;  %v1630_v11 = vmul.f32 %v1629_v40, %v5885_v1  ;;  %s4973_s3 = sld [smem:[#allocation2 + $0x605]] }
 0x1a7   : > { %v1631_v32 = vmul.f32 %v1629_v40, %v5886_v53  ;;  %v1476_v18 = vadd.f32 %v3246_v20, %v4208_v39  ;;  %v1634_v42 = vmul.f32 %v1633_v13, %v4034_v24  ;;  %v1635_v23 = vmul.f32 %v1633_v13, %v4032_v9 }
 0x1a8   : > { %v1639_v55 = vstv %s4718_s14  ;;  %v3248_v52 = vpop.eup %3247  ;;  %v1570_v25 = vadd.f32 %v1568_v30, %v1564_v28  ;;  %v1571_v41 = vadd.f32 %v1569_v54, %v1565_v50  ;;  %s4975_s14 = sld [smem:[#allocation2 + $0x606]] }
 0x1a9   : > { %v1640_v63 = vmul.f32 %v1639_v55, %v4092_v58  ;;  %v1641_v14 = vmul.f32 %v1639_v55, %v4090_v49  ;;  %v1477_v62 = vadd.f32 %v3248_v52, %v4206_v2  ;;  %v1478_v46 = vmul.f32 %v1476_v18, %v3706_v33 }
 0x1aa   : > { %v1490_v17 = vmul.f32 %v1476_v18, %v4280_v57  ;;  %v1502_v43 = vmul.f32 %v1476_v18, %v4338_v0  ;;  %v1514_v26 = vmul.f32 %v1476_v18, %v4366_v45  ;;  %v1574_v37 = vadd.f32 %v1573_v60, %v1570_v25 }
 0x1ab   : > { %v1575_v15 = vadd.f32 %v1573_v60, %v1571_v41  ;;  %v1636_v5 = vadd.f32 %v1634_v42, %v1630_v11  ;;  %v1479_v3 = vmul.f32 %v1477_v62, %v3741_v51  ;;  %v1480_v44 = vsel %vm765_vm0, %v1478_v46, 0.0 }
 0x1ac   : > { %v1491_v6 = vmul.f32 %v1477_v62, %v4278_v12  ;;  %v1492_v31 = vsel %vm765_vm0, %v1490_v17, 0.0  ;;  %v1503_v30 = vmul.f32 %v1477_v62, %v4336_v38  ;;  %v1504_v54 = vsel %vm765_vm0, %v1502_v43, 0.0 }
 0x1ad   : > { %v1515_v40 = vmul.f32 %v1477_v62, %v4364_v8  ;;  %v1516_v60 = vsel %vm765_vm0, %v1514_v26, 0.0  ;;  %v1481_v13 = vsel %vm765_vm0, %v1479_v3, 0.0  ;;  %3249 = vtanh.f32 %v1574_v37 }
 0x1ae   : > { %v1493_v20 = vsel %vm765_vm0, %v1491_v6, 0.0  ;;  %v1637_v28 = vadd.f32 %v1635_v23, %v1631_v32  ;;  %v1482_v50 = vadd.f32 %v1481_v13, %v1480_v44  ;;  %v1505_v18 = vsel %vm765_vm0, %v1503_v30, 0.0 }
 0x1af   : > { %v1494_v11 = vadd.f32 %v1493_v20, %v1492_v31  ;;  %v1517_v42 = vsel %vm765_vm0, %v1515_v40, 0.0  ;;  %v1506_v55 = vadd.f32 %v1505_v18, %v1504_v54  ;;  %3251 = vtanh.f32 %v1575_v15 }
 0x1b0   : > { %v1518_v52 = vadd.f32 %v1517_v42, %v1516_v60  ;;  %v1642_v25 = vadd.f32 %v1640_v63, %v1636_v5  ;;  %v1483_v41 = vrot.slane %v1482_v50, 4  ;;  %v1643_v46 = vadd.f32 %v1641_v14, %v1637_v28 }
 0x1b1   : > { %v1495_v62 = vrot.slane %v1494_v11, 4  ;;  %v1645_v32 = vstv %s4748_s0  ;;  %v1507_v23 = vrot.slane %v1506_v55, 4  ;;  %v1651_v44 = vstv %s4755_s16  ;;  %s4992_s0 = sld [smem:[#allocation2 + $0x607]]  ;;  %s5010_s16 = sld [smem:[#allocation2 + $0x608]] }
 0x1b2   : > { %v1519_v17 = vrot.slane %v1518_v52, 4  ;;  %v1646_v43 = vmul.f32 %v1645_v32, %v4126_v21  ;;  %v1647_v26 = vmul.f32 %v1645_v32, %v4124_v36  ;;  %v1484_v37 = vadd.f32 %v1483_v41, %v1482_v50 }
 0x1b3   : > { %v1496_v3 = vadd.f32 %v1495_v62, %v1494_v11  ;;  %v1657_v6 = vstv %s4757_s17  ;;  %v1508_v15 = vadd.f32 %v1507_v23, %v1506_v55  ;;  %v1652_v14 = vmul.f32 %v1651_v44, %v5841_v16  ;;  %s5016_s17 = sld [smem:[#allocation2 + $0x680]] }
 0x1b4   : > { %v1520_v63 = vadd.f32 %v1519_v17, %v1518_v52  ;;  %v1648_v5 = vadd.f32 %v1646_v43, %v1642_v25  ;;  %v1649_v31 = vadd.f32 %v1647_v26, %v1643_v46  ;;  %v1485_v30 = vrot.slane %v1484_v37, 2 }
 0x1b5   : > { %v1497_v54 = vrot.slane %v1496_v3, 2  ;;  %v1653_v40 = vmul.f32 %v1651_v44, %v4004_v34  ;;  %v1509_v60 = vrot.slane %v1508_v15, 2  ;;  %v1658_v20 = vmul.f32 %v1657_v6, %v4158_v27 }
 0x1b6   : > { %v1521_v13 = vrot.slane %v1520_v63, 2  ;;  %v1659_v28 = vmul.f32 %v1657_v6, %v4156_v4  ;;  %v1486_v50 = vadd.f32 %v1485_v30, %v1484_v37  ;;  %v1654_v18 = vadd.f32 %v1652_v14, %v1648_v5 }
 0x1b7   : > { %v1498_v11 = vadd.f32 %v1497_v54, %v1496_v3  ;;  %v1655_v42 = vadd.f32 %v1653_v40, %v1649_v31  ;;  %v3250_v55 = vpop.eup %3249  ;;  %v1510_v52 = vadd.f32 %v1509_v60, %v1508_v15  ;;  %v1663_v41 = vstv %s4771_s30  ;;  %s5022_s30 = sld [smem:[#allocation2 + $0x681]] }
 0x1b8   : > { %v1522_v25 = vadd.f32 %v1521_v13, %v1520_v63  ;;  %v1669_v62 = vstv %s4773_s12  ;;  %v1487_v46 = vrot.slane %v1486_v50, 1  ;;  %v1578_v23 = vadd.f32 %v3250_v55, %v5885_v1  ;;  %s5029_s12 = sld [smem:[#allocation2 + $0x682]] }
 0x1b9   : > { %v1499_v32 = vrot.slane %v1498_v11, 1  ;;  %v1660_v17 = vadd.f32 %v1658_v20, %v1654_v18  ;;  %v3252_v43 = vpop.eup %3251  ;;  %v1511_v26 = vrot.slane %v1510_v52, 1  ;;  %v1661_v59 = vadd.f32 %v1659_v28, %v1655_v42 }
 0x1ba   : > { %v1523_v44 = vrot.slane %v1522_v25, 1  ;;  %v1664_v6 = vmul.f32 %v1663_v41, %v5846_v61  ;;  %v1488_v37 = vadd.f32 %v1487_v46, %v1486_v50  ;;  %v1579_v5 = vadd.f32 %v3252_v43, %v5886_v53 }
 0x1bb   : > { %v1500_v3 = vadd.f32 %v1499_v32, %v1498_v11  ;;  %v1580_v15 = vmul.f32 %v1578_v23, %v3706_v33  ;;  %v1512_v63 = vadd.f32 %v1511_v26, %v1510_v52  ;;  %v1592_v30 = vmul.f32 %v1578_v23, %v4280_v57 }
 0x1bc   : > { %v1524_v31 = vadd.f32 %v1523_v44, %v1522_v25  ;;  %v1604_v54 = vmul.f32 %v1578_v23, %v4338_v0  ;;  %v4796_v14 = vmul.f32 0.0625, %v1488_v37  ;;  %v1581_v60 = vmul.f32 %v1579_v5, %v3741_v51 }
 0x1bd   : > { %v4798_v40 = vmul.f32 0.0625, %v1500_v3  ;;  %v1582_v13 = vsel %vm765_vm0, %v1580_v15, 0.0  ;;  %v4802_v20 = vmul.f32 0.0625, %v1512_v63  ;;  %v1593_v50 = vmul.f32 %v1579_v5, %v4278_v12 }
 0x1be   : > { %5887 = vst [vmem:[#allocation59_spill] sm:$0xff] %v4796_v14  ;;  %v4804_v28 = vmul.f32 0.0625, %v1524_v31  ;;  %v1594_v11 = vsel %vm765_vm0, %v1592_v30, 0.0  ;;  %v1583_v18 = vsel %vm765_vm0, %v1581_v60, 0.0  ;;  %v1605_v42 = vmul.f32 %v1579_v5, %v4336_v38 }
 0x1bf   : > { %5888 = vst [vmem:[#allocation60_spill] sm:$0xff] %v4798_v40  ;;  %5889 = vst [vmem:[#allocation85_spill] sm:$0xff] %v4802_v20  ;;  %v1606_v55 = vsel %vm765_vm0, %v1604_v54, 0.0  ;;  %v1616_v52 = vmul.f32 %v1578_v23, %v4366_v45  ;;  %v1584_v25 = vadd.f32 %v1583_v18, %v1582_v13  ;;  %v1595_v46 = vsel %vm765_vm0, %v1593_v50, 0.0 }
 0x1c0   : > { %5890 = vst [vmem:[#allocation86_spill] sm:$0xff] %v4804_v28  ;;  %v1617_v32 = vmul.f32 %v1579_v5, %v4364_v8  ;;  %v1665_v43 = vmul.f32 %v1663_v41, %v5848_v48  ;;  %v1596_v26 = vadd.f32 %v1595_v46, %v1594_v11  ;;  %v1607_v44 = vsel %vm765_vm0, %v1605_v42, 0.0 }
 0x1c1   : > { %v1618_v37 = vsel %vm765_vm0, %v1616_v52, 0.0  ;;  %v1666_v3 = vadd.f32 %v1664_v6, %v1660_v17  ;;  %v1585_v23 = vrot.slane %v1584_v25, 4  ;;  %v1608_v15 = vadd.f32 %v1607_v44, %v1606_v55 }
 0x1c2   : > { %v1619_v63 = vsel %vm765_vm0, %v1617_v32, 0.0  ;;  %v1667_v31 = vadd.f32 %v1665_v43, %v1661_v59  ;;  %v1597_v5 = vrot.slane %v1596_v26, 4  ;;  %v1670_v41 = vmul.f32 %v1669_v62, %v4208_v39 }
 0x1c3   : > { %v1620_v30 = vadd.f32 %v1619_v63, %v1618_v37  ;;  %v1671_v54 = vmul.f32 %v1669_v62, %v4206_v2  ;;  %v1586_v60 = vadd.f32 %v1585_v23, %v1584_v25  ;;  %v1609_v13 = vrot.slane %v1608_v15, 4 }
 0x1c4   : > { %v1675_v50 = vstv %s4792_s19  ;;  %v1731_v11 = vstv %s4794_s24  ;;  %v1598_v18 = vadd.f32 %v1597_v5, %v1596_v26  ;;  %v1672_v17 = vadd.f32 %v1670_v41, %v1666_v3  ;;  %s5033_s19 = sld [smem:[#allocation2 + $0x683]]  ;;  %s5035_s24 = sld [smem:[#allocation2 + $0x684]] }
 0x1c5   : > { %v1621_v42 = vrot.slane %v1620_v30, 4  ;;  %v1673_v6 = vadd.f32 %v1671_v54, %v1667_v31  ;;  %v1587_v55 = vrot.slane %v1586_v60, 2  ;;  %v1610_v59 = vadd.f32 %v1609_v13, %v1608_v15 }
 0x1c6   : > { %v1732_v52 = vmul.f32 %v1731_v11, %v5885_v1  ;;  %v1733_v46 = vmul.f32 %v1731_v11, %v5886_v53  ;;  %v1599_v32 = vrot.slane %v1598_v18, 2  ;;  %v1676_v25 = vadd.f32 %v1675_v50, %v1672_v17 }
 0x1c7   : > { %v1622_v62 = vadd.f32 %v1621_v42, %v1620_v30  ;;  %v1677_v43 = vadd.f32 %v1675_v50, %v1673_v6  ;;  %v1588_v26 = vadd.f32 %v1587_v55, %v1586_v60  ;;  %v1611_v44 = vrot.slane %v1610_v59, 2 }
 0x1c8   : > { %v1735_v37 = vstv %s4815_s15  ;;  %v1741_v23 = vstv %s4817_s13  ;;  %v1600_v3 = vadd.f32 %v1599_v32, %v1598_v18  ;;  %3253 = vtanh.f32 %v1676_v25  ;;  %s5039_s15 = sld [smem:[#allocation2 + $0x685]]  ;;  %s5042_s13 = sld [smem:[#allocation2 + $0x686]] }
 0x1c9   : > { %v1623_v63 = vrot.slane %v1622_v62, 2  ;;  %v1736_v31 = vmul.f32 %v1735_v37, %v4034_v24  ;;  %v1589_v15 = vrot.slane %v1588_v26, 1  ;;  %v1612_v5 = vadd.f32 %v1611_v44, %v1610_v59 }
 0x1ca   : > { %3255 = vtanh.f32 %v1677_v43  ;;  %v1737_v30 = vmul.f32 %v1735_v37, %v4032_v9  ;;  %v1601_v41 = vrot.slane %v1600_v3, 1  ;;  %v1742_v13 = vmul.f32 %v1741_v23, %v4092_v58 }
 0x1cb   : > { %v1624_v54 = vadd.f32 %v1623_v63, %v1622_v62  ;;  %v1738_v60 = vadd.f32 %v1736_v31, %v1732_v52  ;;  %v1590_v50 = vadd.f32 %v1589_v15, %v1588_v26  ;;  %v1613_v11 = vrot.slane %v1612_v5, 1 }
 0x1cc   : > { %v1739_v18 = vadd.f32 %v1737_v30, %v1733_v46  ;;  %v1743_v42 = vmul.f32 %v1741_v23, %v4090_v49  ;;  %v1602_v17 = vadd.f32 %v1601_v41, %v1600_v3  ;;  %v1747_v59 = vstv %s4826_s25  ;;  %s5046_s25 = sld [smem:[#allocation2 + $0x687]] }
 0x1cd   : > { %v1625_v6 = vrot.slane %v1624_v54, 1  ;;  %v1744_v55 = vadd.f32 %v1742_v13, %v1738_v60  ;;  %v4851_v52 = vmul.f32 0.0625, %v1590_v50  ;;  %v1614_v32 = vadd.f32 %v1613_v11, %v1612_v5 }
 0x1ce   : > { %v1745_v62 = vadd.f32 %v1743_v42, %v1739_v18  ;;  %v1748_v25 = vmul.f32 %v1747_v59, %v4126_v21  ;;  %v4854_v43 = vmul.f32 0.0625, %v1602_v17  ;;  %v1749_v26 = vmul.f32 %v1747_v59, %v4124_v36 }
 0x1cf   : > { %5891 = vst [vmem:[#allocation87_spill] sm:$0xff] %v4851_v52  ;;  %v1626_v46 = vadd.f32 %v1625_v6, %v1624_v54  ;;  %v1753_v44 = vstv %s4830_s2  ;;  %v4858_v37 = vmul.f32 0.0625, %v1614_v32  ;;  %v1759_v5 = vstv %s4835_s27  ;;  %s5048_s2 = sld [smem:[#allocation2 + $0x688]] }
 0x1d0   : > { %5892 = vst [vmem:[#allocation88_spill] sm:$0xff] %v4854_v43  ;;  %v1750_v23 = vadd.f32 %v1748_v25, %v1744_v55  ;;  %v1754_v3 = vmul.f32 %v1753_v44, %v5841_v16  ;;  %v1755_v63 = vmul.f32 %v1753_v44, %v4004_v34  ;;  %v1751_v15 = vadd.f32 %v1749_v26, %v1745_v62  ;;  %s5050_s27 = sld [smem:[#allocation2 + $0x700]] }
 0x1d1   : > { %5893 = vst [vmem:[#allocation89_spill] sm:$0xff] %v4858_v37  ;;  %v4862_v31 = vmul.f32 0.0625, %v1626_v46  ;;  %v1765_v30 = vstv %s4837_s28  ;;  %v1760_v54 = vmul.f32 %v1759_v5, %v4158_v27  ;;  %v1761_v60 = vmul.f32 %v1759_v5, %v4156_v4  ;;  %s5053_s28 = sld [smem:[#allocation2 + $0x701]] }
 0x1d2   : > { %v1756_v41 = vadd.f32 %v1754_v3, %v1750_v23  ;;  %v1766_v13 = vmul.f32 %v1765_v30, %v5846_v61  ;;  %v3254_v50 = vpop.eup %3253  ;;  %v1757_v11 = vadd.f32 %v1755_v63, %v1751_v15  ;;  %v1767_v18 = vmul.f32 %v1765_v30, %v5848_v48 }
 0x1d3   : > { %5894 = vst [vmem:[#allocation90_spill] sm:$0xff] %v4862_v31  ;;  %v1771_v42 = vstv %s4841_s22  ;;  %v1777_v17 = vstv %s4843_s6  ;;  %v1680_v55 = vadd.f32 %v3254_v50, %v4034_v24  ;;  %v1833_v26 = vstv %s4847_s29  ;;  %s5055_s22 = sld [smem:[#allocation2 + $0x702]]  ;;  %s5100_s6 = sld [smem:[#allocation2 + $0x704]] }
 0x1d4   : > { %v3256_v6 = vpop.eup %3255  ;;  %v1762_v59 = vadd.f32 %v1760_v54, %v1756_v41  ;;  %v1772_v32 = vmul.f32 %v1771_v42, %v4208_v39  ;;  %v1773_v62 = vmul.f32 %v1771_v42, %v4206_v2  ;;  %v1763_v46 = vadd.f32 %v1761_v60, %v1757_v11  ;;  %s5106_s29 = sld [smem:[#allocation2 + $0x703]] }
 0x1d5   : > { %v1681_v25 = vadd.f32 %v3256_v6, %v4032_v9  ;;  %v1837_v44 = vstv %s4849_s20  ;;  %v1682_v23 = vmul.f32 %v1680_v55, %v3706_v33  ;;  %v1694_v3 = vmul.f32 %v1680_v55, %v4280_v57  ;;  %s5112_s20 = sld [smem:[#allocation2 + $0x705]] }
 0x1d6   : > { %v1706_v63 = vmul.f32 %v1680_v55, %v4338_v0  ;;  %v1718_v15 = vmul.f32 %v1680_v55, %v4366_v45  ;;  %v1768_v22 = vadd.f32 %v1766_v13, %v1762_v59  ;;  %v1835_v37 = vmul.f32 %v1833_v26, %v5886_v53 }
 0x1d7   : > { %v1683_v5 = vmul.f32 %v1681_v25, %v3741_v51  ;;  %v1695_v30 = vmul.f32 %v1681_v25, %v4278_v12  ;;  %v1707_v41 = vmul.f32 %v1681_v25, %v4336_v38  ;;  %v1719_v54 = vmul.f32 %v1681_v25, %v4364_v8 }
 0x1d8   : > { %v1684_v60 = vsel %vm765_vm0, %v1682_v23, 0.0  ;;  %v1696_v50 = vsel %vm765_vm0, %v1694_v3, 0.0  ;;  %v1708_v11 = vsel %vm765_vm0, %v1706_v63, 0.0  ;;  %v1720_v42 = vsel %vm765_vm0, %v1718_v15, 0.0 }
 0x1d9   : > { %v1685_v6 = vsel %vm765_vm0, %v1683_v5, 0.0  ;;  %v1697_v55 = vsel %vm765_vm0, %v1695_v30, 0.0  ;;  %v1709_v28 = vsel %vm765_vm0, %v1707_v41, 0.0  ;;  %v1721_v25 = vsel %vm765_vm0, %v1719_v54, 0.0 }
 0x1da   : > { %v1686_v20 = vadd.f32 %v1685_v6, %v1684_v60  ;;  %v1698_v23 = vadd.f32 %v1697_v55, %v1696_v50  ;;  %v1710_v31 = vadd.f32 %v1709_v28, %v1708_v11  ;;  %v1722_v3 = vadd.f32 %v1721_v25, %v1720_v42 }
 0x1db   : > { %v1769_v63 = vadd.f32 %v1767_v18, %v1763_v46  ;;  %v1834_v15 = vmul.f32 %v1833_v26, %v5885_v1  ;;  %v1774_v43 = vadd.f32 %v1772_v32, %v1768_v22  ;;  %v1838_v54 = vmul.f32 %v1837_v44, %v4034_v24 }
 0x1dc   : > { %v1687_v40 = vrot.slane %v1686_v20, 4  ;;  %v1699_v5 = vrot.slane %v1698_v23, 4  ;;  %v1711_v29 = vrot.slane %v1710_v31, 4  ;;  %v1723_v30 = vrot.slane %v1722_v3, 4 }
 0x1dd   : > { %v1775_v41 = vadd.f32 %v1773_v62, %v1769_v63  ;;  %v1839_v60 = vmul.f32 %v1837_v44, %v4032_v9  ;;  %v1778_v46 = vadd.f32 %v1777_v17, %v1774_v43  ;;  %v1840_v26 = vadd.f32 %v1838_v54, %v1834_v15 }
 0x1de   : > { %v1688_v28 = vadd.f32 %v1687_v40, %v1686_v20  ;;  %v1700_v13 = vadd.f32 %v1699_v5, %v1698_v23  ;;  %v1712_v18 = vadd.f32 %v1711_v29, %v1710_v31  ;;  %v1724_v59 = vadd.f32 %v1723_v30, %v1722_v3 }
 0x1df   : > { %v1779_v50 = vadd.f32 %v1777_v17, %v1775_v41  ;;  %v1841_v11 = vadd.f32 %v1839_v60, %v1835_v37  ;;  %3257 = vtanh.f32 %v1778_v46  ;;  %v1843_v6 = vstv %s4892_s5  ;;  %s5121_s5 = sld [smem:[#allocation2 + $0x707]] }
 0x1e0   : > { %v1689_v42 = vrot.slane %v1688_v28, 2  ;;  %v1701_v22 = vrot.slane %v1700_v13, 2  ;;  %v1713_v32 = vrot.slane %v1712_v18, 2  ;;  %v1725_v62 = vrot.slane %v1724_v59, 2 }
 0x1e1   : > { %v1849_v55 = vstv %s4898_s8  ;;  %v1855_v44 = vstv %s4886_s4  ;;  %3259 = vtanh.f32 %v1779_v50  ;;  %v1844_v37 = vmul.f32 %v1843_v6, %v4092_v58  ;;  %s5116_s4 = sld [smem:[#allocation2 + $0x706]]  ;;  %s5123_s8 = sld [smem:[#allocation2 + $0x780]] }
 0x1e2   : > { %v1690_v29 = vadd.f32 %v1689_v42, %v1688_v28  ;;  %v1702_v40 = vadd.f32 %v1701_v22, %v1700_v13  ;;  %v1714_v20 = vadd.f32 %v1713_v32, %v1712_v18  ;;  %v1726_v43 = vadd.f32 %v1725_v62, %v1724_v59 }
 0x1e3   : > { %v1845_v31 = vmul.f32 %v1843_v6, %v4090_v49  ;;  %v1850_v17 = vmul.f32 %v1849_v55, %v4126_v21  ;;  %v1846_v15 = vadd.f32 %v1844_v37, %v1840_v26  ;;  %v1851_v30 = vmul.f32 %v1849_v55, %v4124_v36 }
 0x1e4   : > { %v1691_v25 = vrot.slane %v1690_v29, 1  ;;  %v1703_v23 = vrot.slane %v1702_v40, 1  ;;  %v1715_v3 = vrot.slane %v1714_v20, 1  ;;  %v1727_v63 = vrot.slane %v1726_v43, 1 }
 0x1e5   : > { %v1847_v5 = vadd.f32 %v1845_v31, %v1841_v11  ;;  %v1856_v41 = vmul.f32 %v1855_v44, %v5841_v16  ;;  %v1852_v18 = vadd.f32 %v1850_v17, %v1846_v15  ;;  %v1857_v46 = vmul.f32 %v1855_v44, %v4004_v34 }
 0x1e6   : > { %v1692_v54 = vadd.f32 %v1691_v25, %v1690_v29  ;;  %v1704_v60 = vadd.f32 %v1703_v23, %v1702_v40  ;;  %v1716_v28 = vadd.f32 %v1715_v3, %v1714_v20  ;;  %v1728_v13 = vadd.f32 %v1727_v63, %v1726_v43 }
 0x1e7   : > { %v1853_v59 = vadd.f32 %v1851_v30, %v1847_v5  ;;  %v1861_v50 = vstv %s4904_s9  ;;  %v1858_v32 = vadd.f32 %v1856_v41, %v1852_v18  ;;  %v1867_v29 = vstv %s4909_s26  ;;  %s5125_s9 = sld [smem:[#allocation2 + $0x708]]  ;;  %s5127_s26 = sld [smem:[#allocation2 + $0x781]] }
 0x1e8   : > { %v4926_v26 = vmul.f32 0.0625, %v1692_v54  ;;  %v4928_v11 = vmul.f32 0.0625, %v1704_v60  ;;  %v4930_v42 = vmul.f32 0.0625, %v1716_v28  ;;  %v4932_v22 = vmul.f32 0.0625, %v1728_v13 }
 0x1e9   : > { %v1859_v62 = vadd.f32 %v1857_v46, %v1853_v59  ;;  %v1862_v6 = vmul.f32 %v1861_v50, %v4158_v27  ;;  %v1863_v55 = vmul.f32 %v1861_v50, %v4156_v4  ;;  %v1873_v40 = vstv %s4913_s23  ;;  %v3258_v43 = vpop.eup %3257  ;;  %s5160_s23 = sld [smem:[#allocation2 + $0x783]] }
 0x1ea   : > { %5895 = vst [vmem:[#allocation91_spill] sm:$0xff] %v4926_v26  ;;  %5896 = vst [vmem:[#allocation92_spill] sm:$0xff] %v4928_v11  ;;  %v1879_v20 = vstv %s4915_s1  ;;  %v1935_v44 = vstv %s4911_s7  ;;  %v1868_v17 = vmul.f32 %v1867_v29, %v5846_v61  ;;  %v1869_v25 = vmul.f32 %v1867_v29, %v5848_v48  ;;  %s5134_s7 = sld [smem:[#allocation2 + $0x782]]  ;;  %s5171_s1 = sld [smem:[#allocation2 + $0x784]] }
 0x1eb   : > { %5897 = vst [vmem:[#allocation93_spill] sm:$0xff] %v4930_v42  ;;  %5898 = vst [vmem:[#allocation94_spill] sm:$0xff] %v4932_v22  ;;  %v1864_v37 = vadd.f32 %v1862_v6, %v1858_v32  ;;  %v1865_v31 = vadd.f32 %v1863_v55, %v1859_v62  ;;  %v1782_v23 = vadd.f32 %v3258_v43, %v4092_v58  ;;  %v3260_v5 = vpop.eup %3259  ;;  %v1939_v60 = vstv %s4922_s10  ;;  %s5179_s10 = sld [smem:[#allocation2 + $0x785]] }
 0x1ec   : > { %v1874_v3 = vmul.f32 %v1873_v40, %v4208_v39  ;;  %v1875_v63 = vmul.f32 %v1873_v40, %v4206_v2  ;;  %v1936_v15 = vmul.f32 %v1935_v44, %v5885_v1  ;;  %v1937_v54 = vmul.f32 %v1935_v44, %v5886_v53 }
 0x1ed   : > { %v1870_v30 = vadd.f32 %v1868_v17, %v1864_v37  ;;  %v1871_v41 = vadd.f32 %v1869_v25, %v1865_v31  ;;  %v1783_v28 = vadd.f32 %v3260_v5, %v4090_v49  ;;  %v1784_v13 = vmul.f32 %v1782_v23, %v3706_v33 }
 0x1ee   : > { %v1796_v18 = vmul.f32 %v1782_v23, %v4280_v57  ;;  %v1808_v59 = vmul.f32 %v1782_v23, %v4338_v0  ;;  %v1820_v46 = vmul.f32 %v1782_v23, %v4366_v45  ;;  %v1940_v62 = vmul.f32 %v1939_v60, %v4034_v24 }
 0x1ef   : > { %v1876_v50 = vadd.f32 %v1874_v3, %v1870_v30  ;;  %v1877_v32 = vadd.f32 %v1875_v63, %v1871_v41  ;;  %v1785_v6 = vmul.f32 %v1783_v28, %v3741_v51  ;;  %v1786_v55 = vsel %vm765_vm0, %v1784_v13, 0.0 }
 0x1f0   : > { %v1797_v29 = vmul.f32 %v1783_v28, %v4278_v12  ;;  %v1798_v40 = vsel %vm765_vm0, %v1796_v18, 0.0  ;;  %v1809_v44 = vmul.f32 %v1783_v28, %v4336_v38  ;;  %v1810_v43 = vsel %vm765_vm0, %v1808_v59, 0.0 }
 0x1f1   : > { %v1821_v37 = vmul.f32 %v1783_v28, %v4364_v8  ;;  %v1822_v31 = vsel %vm765_vm0, %v1820_v46, 0.0  ;;  %v1787_v17 = vsel %vm765_vm0, %v1785_v6, 0.0  ;;  %v1880_v23 = vadd.f32 %v1879_v20, %v1876_v50 }
 0x1f2   : > { %v1799_v25 = vsel %vm765_vm0, %v1797_v29, 0.0  ;;  %v1881_v3 = vadd.f32 %v1879_v20, %v1877_v32  ;;  %v1788_v63 = vadd.f32 %v1787_v17, %v1786_v55  ;;  %v1811_v30 = vsel %vm765_vm0, %v1809_v44, 0.0 }
 0x1f3   : > { %v1800_v5 = vadd.f32 %v1799_v25, %v1798_v40  ;;  %v1823_v41 = vsel %vm765_vm0, %v1821_v37, 0.0  ;;  %v1812_v13 = vadd.f32 %v1811_v30, %v1810_v43  ;;  %3261 = vtanh.f32 %v1880_v23 }
 0x1f4   : > { %v1824_v18 = vadd.f32 %v1823_v41, %v1822_v31  ;;  %v1941_v28 = vmul.f32 %v1939_v60, %v4032_v9  ;;  %v1789_v59 = vrot.slane %v1788_v63, 4  ;;  %3263 = vtanh.f32 %v1881_v3 }
 0x1f5   : > { %v1801_v46 = vrot.slane %v1800_v5, 4  ;;  %v1942_v6 = vadd.f32 %v1940_v62, %v1936_v15  ;;  %v1813_v20 = vrot.slane %v1812_v13, 4  ;;  %v1945_v55 = vstv %s4952_s11  ;;  %s5187_s11 = sld [smem:[#allocation2 + $0x786]] }
 0x1f6   : > { %v1825_v50 = vrot.slane %v1824_v18, 4  ;;  %v1943_v32 = vadd.f32 %v1941_v28, %v1937_v54  ;;  %v1790_v29 = vadd.f32 %v1789_v59, %v1788_v63  ;;  %v1946_v44 = vmul.f32 %v1945_v55, %v4092_v58 }
 0x1f7   : > { %v1802_v40 = vadd.f32 %v1801_v46, %v1800_v5  ;;  %v1947_v60 = vmul.f32 %v1945_v55, %v4090_v49  ;;  %v1814_v43 = vadd.f32 %v1813_v20, %v1812_v13  ;;  %v1951_v31 = vstv %s4960_s18  ;;  %s5200_s18 = sld [smem:[#allocation2 + $0x787]] }
 0x1f8   : > { %v1826_v37 = vadd.f32 %v1825_v50, %v1824_v18  ;;  %v1957_v17 = vstv %s4962_s21  ;;  %v1791_v25 = vrot.slane %v1790_v29, 2  ;;  %v1948_v62 = vadd.f32 %v1946_v44, %v1942_v6  ;;  %s5210_s21 = sld [smem:[#allocation2 + $0x788]] }
 0x1f9   : > { %v1803_v15 = vrot.slane %v1802_v40, 2  ;;  %v1949_v23 = vadd.f32 %v1947_v60, %v1943_v32  ;;  %v1815_v3 = vrot.slane %v1814_v43, 2  ;;  %v1952_v54 = vmul.f32 %v1951_v31, %v4126_v21 }
 0x1fa   : > { %v1827_v30 = vrot.slane %v1826_v37, 2  ;;  %v1953_v63 = vmul.f32 %v1951_v31, %v4124_v36  ;;  %v1792_v5 = vadd.f32 %v1791_v25, %v1790_v29  ;;  %v1958_v28 = vmul.f32 %v1957_v17, %v5841_v16 }
 0x1fb   : > { %v1804_v41 = vadd.f32 %v1803_v15, %v1802_v40  ;;  %v1959_v13 = vmul.f32 %v1957_v17, %v4004_v34  ;;  %v1816_v18 = vadd.f32 %v1815_v3, %v1814_v43  ;;  %v1954_v46 = vadd.f32 %v1952_v54, %v1948_v62 }
 0x1fc   : > { %v1828_v59 = vadd.f32 %v1827_v30, %v1826_v37  ;;  %v1955_v20 = vadd.f32 %v1953_v63, %v1949_v23  ;;  %v1793_v6 = vrot.slane %v1792_v5, 1  ;;  %v1963_v32 = vstv %s4973_s3  ;;  %s5951_s3 = sld [smem:[#allocation18_spill]] }
 0x1fd   : > { %v1805_v50 = vrot.slane %v1804_v41, 1  ;;  %v1969_v55 = vstv %s4975_s14  ;;  %v3262_v44 = vpop.eup %3261  ;;  %v1817_v60 = vrot.slane %v1816_v18, 1  ;;  %v1960_v42 = vadd.f32 %v1958_v28, %v1954_v46 }
 0x1fe   : > { %v1829_v22 = vrot.slane %v1828_v59, 1  ;;  %v1961_v11 = vadd.f32 %v1959_v13, %v1955_v20  ;;  %v3264_v31 = vpop.eup %3263  ;;  %v1794_v29 = vadd.f32 %v1793_v6, %v1792_v5  ;;  %v1884_v25 = vadd.f32 %v3262_v44, %v4126_v21 }
 0x1ff   : > { %v1806_v40 = vadd.f32 %v1805_v50, %v1804_v41  ;;  %v1964_v17 = vmul.f32 %v1963_v32, %v4158_v27  ;;  %v1818_v43 = vadd.f32 %v1817_v60, %v1816_v18  ;;  %v1885_v15 = vadd.f32 %v3264_v31, %v4124_v36 }
 0x200   : > { %v1830_v37 = vadd.f32 %v1829_v22, %v1828_v59  ;;  %v1965_v62 = vmul.f32 %v1963_v32, %v4156_v4  ;;  %v4994_v23 = vmul.f32 0.0625, %v1794_v29  ;;  %v1886_v30 = vmul.f32 %v1884_v25, %v3706_v33 }
 0x201   : > { %v4996_v3 = vmul.f32 0.0625, %v1806_v40  ;;  %v1898_v54 = vmul.f32 %v1884_v25, %v4280_v57  ;;  %v5000_v63 = vmul.f32 0.0625, %v1818_v43  ;;  %v1887_v22 = vmul.f32 %v1885_v15, %v3741_v51 }
 0x202   : > { %5899 = vst [vmem:[#allocation95_spill] sm:$0xff] %v4994_v23  ;;  %v5002_v5 = vmul.f32 0.0625, %v1830_v37  ;;  %v1899_v41 = vmul.f32 %v1885_v15, %v4278_v12  ;;  %v1888_v28 = vsel %vm765_vm0, %v1886_v30, 0.0  ;;  %v1910_v18 = vmul.f32 %v1884_v25, %v4338_v0  ;;  %s3100_s14 = smul.u32 48, %s5951_s3 }
 0x203   : > { %5900 = vst [vmem:[#allocation96_spill] sm:$0xff] %v4996_v3  ;;  %5901 = vst [vmem:[#allocation97_spill] sm:$0xff] %v5000_v63  ;;  %v1900_v13 = vsel %vm765_vm0, %v1898_v54, 0.0  ;;  %v1911_v59 = vmul.f32 %v1885_v15, %v4336_v38  ;;  %v1889_v46 = vsel %vm765_vm0, %v1887_v22, 0.0  ;;  %v1922_v6 = vmul.f32 %v1884_v25, %v4366_v45 }
 0x204   : > { %5902 = vst [vmem:[#allocation98_spill] sm:$0xff] %v5002_v5  ;;  %v1901_v20 = vsel %vm765_vm0, %v1899_v41, 0.0  ;;  %v1923_v50 = vmul.f32 %v1885_v15, %v4364_v8  ;;  %v1890_v32 = vadd.f32 %v1889_v46, %v1888_v28  ;;  %v1912_v60 = vsel %vm765_vm0, %v1910_v18, 0.0 }
 0x205   : > { %v1902_v44 = vadd.f32 %v1901_v20, %v1900_v13  ;;  %v1913_v31 = vsel %vm765_vm0, %v1911_v59, 0.0  ;;  %v1924_v40 = vsel %vm765_vm0, %v1922_v6, 0.0  ;;  %v1966_v37 = vadd.f32 %v1964_v17, %v1960_v42 }
 0x206   : > { %v1914_v29 = vadd.f32 %v1913_v31, %v1912_v60  ;;  %v1925_v43 = vsel %vm765_vm0, %v1923_v50, 0.0  ;;  %v1891_v30 = vrot.slane %v1890_v32, 4  ;;  %v1967_v22 = vadd.f32 %v1965_v62, %v1961_v11 }
 0x207   : > { %v1903_v54 = vrot.slane %v1902_v44, 4  ;;  %v1926_v25 = vadd.f32 %v1925_v43, %v1924_v40  ;;  %v1970_v41 = vmul.f32 %v1969_v55, %v5846_v61  ;;  %v1971_v28 = vmul.f32 %v1969_v55, %v5848_v48 }
 0x208   : > { %v1915_v15 = vrot.slane %v1914_v29, 4  ;;  %v1975_v13 = vstv %s4992_s0  ;;  %v1892_v18 = vadd.f32 %v1891_v30, %v1890_v32  ;;  %v1981_v31 = vstv %s5010_s16 }
 0x209   : > { %v1904_v59 = vadd.f32 %v1903_v54, %v1902_v44  ;;  %v1927_v46 = vrot.slane %v1926_v25, 4  ;;  %v1976_v20 = vmul.f32 %v1975_v13, %v4208_v39  ;;  %v1972_v17 = vadd.f32 %v1970_v41, %v1966_v37 }
 0x20a   : > { %v1916_v42 = vadd.f32 %v1915_v15, %v1914_v29  ;;  %v1973_v6 = vadd.f32 %v1971_v28, %v1967_v22  ;;  %v1977_v11 = vmul.f32 %v1975_v13, %v4206_v2  ;;  %v1893_v62 = vrot.slane %v1892_v18, 2 }
 0x20b   : > { %v1905_v50 = vrot.slane %v1904_v59, 2  ;;  %v1928_v60 = vadd.f32 %v1927_v46, %v1926_v25  ;;  %v1978_v55 = vadd.f32 %v1976_v20, %v1972_v17  ;;  %v2037_v32 = vstv %s5016_s17  ;;  %s5952_s17 = sld [smem:[#allocation105_spill]] }
 0x20c   : > { %v1917_v40 = vrot.slane %v1916_v42, 2  ;;  %v1979_v43 = vadd.f32 %v1977_v11, %v1973_v6  ;;  %v1894_v44 = vadd.f32 %v1893_v62, %v1892_v18  ;;  %v2038_v30 = vmul.f32 %v2037_v32, %v5885_v1 }
 0x20d   : > { %v1906_v29 = vadd.f32 %v1905_v50, %v1904_v59  ;;  %v1929_v37 = vrot.slane %v1928_v60, 2  ;;  %v1982_v22 = vadd.f32 %v1981_v31, %v1978_v55  ;;  %v2039_v25 = vmul.f32 %v2037_v32, %v5886_v53 }
 0x20e   : > { %v1918_v54 = vadd.f32 %v1917_v40, %v1916_v42  ;;  %v1983_v15 = vadd.f32 %v1981_v31, %v1979_v43  ;;  %v1895_v41 = vrot.slane %v1894_v44, 1  ;;  %v2041_v46 = vstv %s5022_s30 }
 0x20f   : > { %v1907_v28 = vrot.slane %v1906_v29, 1  ;;  %v1930_v13 = vadd.f32 %v1929_v37, %v1928_v60  ;;  %3265 = vtanh.f32 %v1982_v22  ;;  %v2042_v18 = vmul.f32 %v2041_v46, %v4034_v24 }
 0x210   : > { %v1919_v20 = vrot.slane %v1918_v54, 1  ;;  %v2043_v59 = vmul.f32 %v2041_v46, %v4032_v9  ;;  %v1896_v42 = vadd.f32 %v1895_v41, %v1894_v44  ;;  %3267 = vtanh.f32 %v1983_v15 }
 0x211   : > { %v1908_v17 = vadd.f32 %v1907_v28, %v1906_v29  ;;  %v1931_v6 = vrot.slane %v1930_v13, 1  ;;  %v2044_v62 = vadd.f32 %v2042_v18, %v2038_v30  ;;  %v2047_v60 = vstv %s5029_s12  ;;  %s5427_s30 = scalar_lea.vmem %s5952_s17, %s3100_s14  ;;  %s5954_s12 = sld [smem:[#allocation9_spill]] }
 0x212   : > { %v1920_v11 = vadd.f32 %v1919_v20, %v1918_v54  ;;  %v2045_v50 = vadd.f32 %v2043_v59, %v2039_v25  ;;  %v5057_v31 = vmul.f32 0.0625, %v1896_v42  ;;  %v2048_v43 = vmul.f32 %v2047_v60, %v4092_v58 }
 0x213   : > { %v5059_v40 = vmul.f32 0.0625, %v1908_v17  ;;  %v1932_v55 = vadd.f32 %v1931_v6, %v1930_v13  ;;  %v2049_v44 = vmul.f32 %v2047_v60, %v4090_v49  ;;  %v2053_v29 = vstv %s5033_s19  ;;  %s5955_s19 = sld [smem:[#allocation11_spill]] }
 0x214   : > { %5903 = vst [vmem:[#allocation99_spill] sm:$0xff] %v5057_v31  ;;  %v5062_v32 = vmul.f32 0.0625, %v1920_v11  ;;  %v2059_v37 = vstv %s5035_s24  ;;  %v2050_v54 = vadd.f32 %v2048_v43, %v2044_v62  ;;  %v2054_v22 = vmul.f32 %v2053_v29, %v4126_v21 }
 0x215   : > { %5904 = vst [vmem:[#allocation100_spill] sm:$0xff] %v5059_v40  ;;  %v5067_v30 = vmul.f32 0.0625, %v1932_v55  ;;  %v2055_v15 = vmul.f32 %v2053_v29, %v4124_v36  ;;  %v2051_v25 = vadd.f32 %v2049_v44, %v2045_v50  ;;  %v2060_v41 = vmul.f32 %v2059_v37, %v5841_v16 }
 0x216   : > { %5905 = vst [vmem:[#allocation101_spill] sm:$0xff] %v5062_v32  ;;  %v2061_v28 = vmul.f32 %v2059_v37, %v4004_v34  ;;  %v2065_v13 = vstv %s5039_s15  ;;  %v2056_v46 = vadd.f32 %v2054_v22, %v2050_v54  ;;  %v2071_v59 = vstv %s5042_s13 }
 0x217   : > { %5906 = vst [vmem:[#allocation102_spill] sm:$0xff] %v5067_v30  ;;  %v2066_v20 = vmul.f32 %v2065_v13, %v4158_v27  ;;  %v2067_v18 = vmul.f32 %v2065_v13, %v4156_v4  ;;  %v2057_v42 = vadd.f32 %v2055_v15, %v2051_v25  ;;  %v2072_v17 = vmul.f32 %v2071_v59, %v5846_v61  ;;  %s256_s24 = sand.u32 1, %s5954_s12  }
 0x218   : > { %v2073_v6 = vmul.f32 %v2071_v59, %v5848_v48  ;;  %v2077_v11 = vstv %s5046_s25  ;;  %v2062_v62 = vadd.f32 %v2060_v41, %v2056_v46  ;;  %v2083_v55 = vstv %s5048_s2  ;;  %s257_s25 = scalar_lea.vmem [#allocation5], %s256_s24 }
 0x219   : > { %v2078_v50 = vmul.f32 %v2077_v11, %v4208_v39  ;;  %v2079_v60 = vmul.f32 %v2077_v11, %v4206_v2  ;;  %v3266_v43 = vpop.eup %3265  ;;  %v2063_v44 = vadd.f32 %v2061_v28, %v2057_v42  ;;  %v2139_v29 = vstv %s5050_s27  ;;  %s3035_s13 = sshll.u32 %s5955_s19, 4  ;;  %s2759_s2 = sshll.u32 %s257_s25, 4  ;;  %s5471_s2 = int_to_ptr.vmem [resolvable:$true] %s2759_s2 }
 0x21a   : > { %v2143_v37 = vstv %s5053_s28  ;;  %v2149_v54 = vstv %s5055_s22  ;;  %v3268_v22 = vpop.eup %3267  ;;  %v1986_v13 = vadd.f32 %v3266_v43, %v5841_v16  ;;  %v2068_v15 = vadd.f32 %v2066_v20, %v2062_v62  ;;  %s5957_s22 = sld [smem:[#allocation107_spill]] }
 0x21b   : > { %v2140_v25 = vmul.f32 %v2139_v29, %v5885_v1  ;;  %v2141_v59 = vmul.f32 %v2139_v29, %v5886_v53  ;;  %v1987_v41 = vadd.f32 %v3268_v22, %v4004_v34  ;;  %v2069_v46 = vadd.f32 %v2067_v18, %v2063_v44 }
 0x21c   : > { %v2144_v30 = vmul.f32 %v2143_v37, %v4034_v24  ;;  %v2145_v11 = vmul.f32 %v2143_v37, %v4032_v9  ;;  %v1988_v28 = vmul.f32 %v1986_v13, %v3706_v33  ;;  %v2000_v42 = vmul.f32 %v1986_v13, %v4280_v57 }
 0x21d   : > { %v2012_v5 = vmul.f32 %v1986_v13, %v4338_v0  ;;  %v2024_v43 = vmul.f32 %v1986_v13, %v4366_v45  ;;  %v1989_v20 = vmul.f32 %v1987_v41, %v3741_v51  ;;  %v2001_v62 = vmul.f32 %v1987_v41, %v4278_v12 }
 0x21e   : > { %v2013_v29 = vmul.f32 %v1987_v41, %v4336_v38  ;;  %v2025_v18 = vmul.f32 %v1987_v41, %v4364_v8  ;;  %v1990_v44 = vsel %vm765_vm0, %v1988_v28, 0.0  ;;  %v2002_v37 = vsel %vm765_vm0, %v2000_v42, 0.0 }
 0x21f   : > { %v2014_v22 = vsel %vm765_vm0, %v2012_v5, 0.0  ;;  %v2026_v32 = vsel %vm765_vm0, %v2024_v43, 0.0  ;;  %v1991_v13 = vsel %vm765_vm0, %v1989_v20, 0.0  ;;  %v2003_v63 = vsel %vm765_vm0, %v2001_v62, 0.0 }
 0x220   : > { %v2015_v40 = vsel %vm765_vm0, %v2013_v29, 0.0  ;;  %v2027_v41 = vsel %vm765_vm0, %v2025_v18, 0.0  ;;  %v1992_v3 = vadd.f32 %v1991_v13, %v1990_v44  ;;  %v2004_v28 = vadd.f32 %v2003_v63, %v2002_v37 }
 0x221   : > { %v2016_v31 = vadd.f32 %v2015_v40, %v2014_v22  ;;  %v2028_v42 = vadd.f32 %v2027_v41, %v2026_v32  ;;  %v2074_v23 = vadd.f32 %v2072_v17, %v2068_v15  ;;  %v2075_v5 = vadd.f32 %v2073_v6, %v2069_v46 }
 0x222   : > { %v2146_v52 = vadd.f32 %v2144_v30, %v2140_v25  ;;  %v2147_v43 = vadd.f32 %v2145_v11, %v2141_v59  ;;  %v1993_v26 = vrot.slane %v1992_v3, 4  ;;  %v2005_v14 = vrot.slane %v2004_v28, 4 }
 0x223   : > { %v2017_v19 = vrot.slane %v2016_v31, 4  ;;  %v2029_v20 = vrot.slane %v2028_v42, 4  ;;  %v2080_v56 = vadd.f32 %v2078_v50, %v2074_v23  ;;  %v2081_v62 = vadd.f32 %v2079_v60, %v2075_v5 }
 0x224   : > { %v2150_v29 = vmul.f32 %v2149_v54, %v4092_v58  ;;  %v2151_v18 = vmul.f32 %v2149_v54, %v4090_v49  ;;  %v1994_v44 = vadd.f32 %v1993_v26, %v1992_v3  ;;  %v2006_v63 = vadd.f32 %v2005_v14, %v2004_v28 }
 0x225   : > { %v2018_v40 = vadd.f32 %v2017_v19, %v2016_v31  ;;  %v2030_v32 = vadd.f32 %v2029_v20, %v2028_v42  ;;  %v2084_v17 = vadd.f32 %v2083_v55, %v2080_v56  ;;  %v2085_v30 = vadd.f32 %v2083_v55, %v2081_v62 }
 0x226   : > { %v2152_v6 = vadd.f32 %v2150_v29, %v2146_v52  ;;  %v2153_v15 = vadd.f32 %v2151_v18, %v2147_v43  ;;  %v1995_v25 = vrot.slane %v1994_v44, 2  ;;  %v2007_v23 = vrot.slane %v2006_v63, 2 }
 0x227   : > { %v2019_v50 = vrot.slane %v2018_v40, 2  ;;  %v2031_v60 = vrot.slane %v2030_v32, 2  ;;  %3269 = vtanh.f32 %v2084_v17  ;;  %v2155_v59 = vstv %s5106_s29  ;;  %s2746_s29 = scalar_lea.sflag [#allocation3], %s256_s24 }
 0x228   : > { %v2161_v46 = vstv %s5100_s6  ;;  %v2167_v54 = vstv %s5112_s20  ;;  %v1996_v19 = vadd.f32 %v1995_v25, %v1994_v44  ;;  %v2008_v14 = vadd.f32 %v2007_v23, %v2006_v63  ;;  %s5469_s6 = scalar_lea.hbm %s5957_s22, %s3035_s13  ;;  %s3304_s20 = scalar_lea.vmem %s5471_s2, 16 }
 0x229   : > { %v2020_v56 = vadd.f32 %v2019_v50, %v2018_v40  ;;  %v2032_v26 = vadd.f32 %v2031_v60, %v2030_v32  ;;  %3271 = vtanh.f32 %v2085_v30  ;;  %v2156_v52 = vmul.f32 %v2155_v59, %v4126_v21  ;;  %p3305_p10 = scmp.ne.s32.totalorder %s5471_s2, %s3304_s20 }
 0x22a   : > { %v2157_v3 = vmul.f32 %v2155_v59, %v4124_v36  ;;  %v2162_v31 = vmul.f32 %v2161_v46, %v5841_v16  ;;  %v1997_v55 = vrot.slane %v1996_v19, 1  ;;  %v2009_v11 = vrot.slane %v2008_v14, 1 }
 0x22b   : > { %v2021_v37 = vrot.slane %v2020_v56, 1  ;;  %v2033_v22 = vrot.slane %v2032_v26, 1  ;;  %v2158_v13 = vadd.f32 %v2156_v52, %v2152_v6  ;;  %v2163_v28 = vmul.f32 %v2161_v46, %v4004_v34  ;;  %p3306_p11 = pnand %p3305_p10, %p3461_p4 }
 0x22c   : > { %v2159_v41 = vadd.f32 %v2157_v3, %v2153_v15  ;;  %v2168_v42 = vmul.f32 %v2167_v54, %v4158_v27  ;;  %v1998_v5 = vadd.f32 %v1997_v55, %v1996_v19  ;;  %v2010_v43 = vadd.f32 %v2009_v11, %v2008_v14 }
 0x22d   : > { %v2022_v20 = vadd.f32 %v2021_v37, %v2020_v56  ;;  %v2034_v62 = vadd.f32 %v2033_v22, %v2032_v26  ;;  %v2164_v29 = vadd.f32 %v2162_v31, %v2158_v13  ;;  %v2169_v44 = vmul.f32 %v2167_v54, %v4156_v4  ;;  %p3307_p13 = pneg %p3306_p11 }
 0x22e   : > { %v2165_v18 = vadd.f32 %v2163_v28, %v2159_v41  ;;  %v2173_v63 = vstv %s5116_s4  ;;  %v5138_v40 = vmul.f32 0.0625, %v1998_v5  ;;  %v5140_v32 = vmul.f32 0.0625, %v2010_v43  ;;  %s3395_s4 = smov [#allocation5]  }
 0x22f   : > { %v5142_v17 = vmul.f32 0.0625, %v2022_v20  ;;  %v5144_v30 = vmul.f32 0.0625, %v2034_v62  ;;  %v2170_v6 = vadd.f32 %v2168_v42, %v2164_v29  ;;  %v2174_v25 = vmul.f32 %v2173_v63, %v5846_v61 }
 0x230   : > { %v2171_v15 = vadd.f32 %v2169_v44, %v2165_v18  ;;  %v2175_v23 = vmul.f32 %v2173_v63, %v5848_v48  ;;  %v2179_v50 = vstv %s5121_s5  ;;  %v2185_v60 = vstv %s5125_s9  ;;  %s3308_s5 = sshll.u32 %s3395_s4, 4  ;;  %s3309_s5 = int_to_ptr.vmem [resolvable:$false] %s3308_s5 }
 0x231   : > { %v2241_v59 = vstv %s5123_s8  ;;  %v2245_v46 = vstv %s5127_s26  ;;  %v3270_v54 = vpop.eup %3269  ;;  %v2176_v19 = vadd.f32 %v2174_v25, %v2170_v6  ;;  %v2180_v56 = vmul.f32 %v2179_v50, %v4208_v39  ;;  %s3310_s8 = scalar_lea.vmem %s3309_s5, 32  ;;  %p3311_p0 = scmp.lt.s32.totalorder %s5471_s2, %s3309_s5 }
 0x232   : > { %v2177_v14 = vadd.f32 %v2175_v23, %v2171_v15  ;;  %v2181_v26 = vmul.f32 %v2179_v50, %v4206_v2  ;;  %v2088_v52 = vadd.f32 %v3270_v54, %v4158_v27  ;;  %v2242_v3 = vmul.f32 %v2241_v59, %v5885_v1  ;;  %p3312_p1 = scmp.lt.s32.totalorder %s3310_s8, %s3304_s20 }
 0x233   : > { %v2243_v31 = vmul.f32 %v2241_v59, %v5886_v53  ;;  %v2246_v55 = vmul.f32 %v2245_v46, %v4034_v24  ;;  %v3272_v11 = vpop.eup %3271  ;;  %v2182_v37 = vadd.f32 %v2180_v56, %v2176_v19  ;;  %v2247_v13 = vmul.f32 %v2245_v46, %v4032_v9 }
 0x234   : > { %v2183_v22 = vadd.f32 %v2181_v26, %v2177_v14  ;;  %v2251_v41 = vstv %s5134_s7  ;;  %v2089_v28 = vadd.f32 %v3272_v11, %v4156_v4  ;;  %v2090_v42 = vmul.f32 %v2088_v52, %v3706_v33  ;;  %p3313_p2 = por %p3312_p1, %p3311_p0 }
 0x235   : > { %v2102_v5 = vmul.f32 %v2088_v52, %v4280_v57  ;;  %v2114_v1 = vmul.f32 %v2088_v52, %v4338_v0  ;;  %v2126_v53 = vmul.f32 %v2088_v52, %v4366_v45  ;;  %v2186_v43 = vadd.f32 %v2185_v60, %v2182_v37 }
 0x236   : > { %v2187_v24 = vadd.f32 %v2185_v60, %v2183_v22  ;;  %v2248_v20 = vadd.f32 %v2246_v55, %v2242_v3  ;;  %v2091_v62 = vmul.f32 %v2089_v28, %v3741_v51  ;;  %v2092_v9 = vsel %vm765_vm0, %v2090_v42, 0.0  ;;  %p3314_p3 = pnand %p3313_p2, %p3307_p13 }
 0x237   : > { %v2103_v29 = vmul.f32 %v2089_v28, %v4278_v12  ;;  %v2104_v18 = vsel %vm765_vm0, %v2102_v5, 0.0  ;;  %v2115_v44 = vmul.f32 %v2089_v28, %v4336_v38  ;;  %v2116_v63 = vsel %vm765_vm0, %v2114_v1, 0.0 }
 0x238   : > { %v2127_v6 = vmul.f32 %v2089_v28, %v4364_v8  ;;  %v2128_v15 = vsel %vm765_vm0, %v2126_v53, 0.0  ;;  %v2093_v25 = vsel %vm765_vm0, %v2091_v62, 0.0  ;;  %3273 = vtanh.f32 %v2186_v43 }
 0x239   : > { %v2105_v23 = vsel %vm765_vm0, %v2103_v29, 0.0  ;;  %v2249_v50 = vadd.f32 %v2247_v13, %v2243_v31  ;;  %v2094_v60 = vadd.f32 %v2093_v25, %v2092_v9  ;;  %v2117_v46 = vsel %vm765_vm0, %v2115_v44, 0.0 }
 0x23a   : > { %v2106_v59 = vadd.f32 %v2105_v23, %v2104_v18  ;;  %v2129_v54 = vsel %vm765_vm0, %v2127_v6, 0.0  ;;  %v2118_v19 = vadd.f32 %v2117_v46, %v2116_v63  ;;  %3275 = vtanh.f32 %v2187_v24 }
 0x23b   : > { %v2130_v14 = vadd.f32 %v2129_v54, %v2128_v15  ;;  %v2252_v56 = vmul.f32 %v2251_v41, %v4092_v58  ;;  %v2095_v26 = vrot.slane %v2094_v60, 4  ;;  %v2253_v3 = vmul.f32 %v2251_v41, %v4090_v49 }
 0x23c   : > { %v2107_v52 = vrot.slane %v2106_v59, 4  ;;  %v2257_v55 = vstv %s5160_s23  ;;  %v2119_v31 = vrot.slane %v2118_v19, 4  ;;  %v2263_v43 = vstv %s5171_s1 }
 0x23d   : > { %v2131_v11 = vrot.slane %v2130_v14, 4  ;;  %v2254_v37 = vadd.f32 %v2252_v56, %v2248_v20  ;;  %v2258_v22 = vmul.f32 %v2257_v55, %v4126_v21  ;;  %v2096_v13 = vadd.f32 %v2095_v26, %v2094_v60 }
 0x23e   : > { %v2108_v28 = vadd.f32 %v2107_v52, %v2106_v59  ;;  %v2255_v42 = vadd.f32 %v2253_v3, %v2249_v50  ;;  %v2259_v5 = vmul.f32 %v2257_v55, %v4124_v36  ;;  %v2120_v58 = vadd.f32 %v2119_v31, %v2118_v19 }
 0x23f   : > { %v2132_v1 = vadd.f32 %v2131_v11, %v2130_v14  ;;  %v2260_v53 = vadd.f32 %v2258_v22, %v2254_v37  ;;  %v2097_v24 = vrot.slane %v2096_v13, 2  ;;  %v2264_v62 = vmul.f32 %v2263_v43, %v5841_v16 }
 0x240   : > { %v2109_v49 = vrot.slane %v2108_v28, 2  ;;  %v2261_v41 = vadd.f32 %v2259_v5, %v2255_v42  ;;  %v2121_v20 = vrot.slane %v2120_v58, 2  ;;  %v2265_v21 = vmul.f32 %v2263_v43, %v4004_v34 }
 0x241   : > { %v2133_v9 = vrot.slane %v2132_v1, 2  ;;  %v2269_v29 = vstv %s5179_s10  ;;  %v2098_v18 = vadd.f32 %v2097_v24, %v2096_v13  ;;  %v2266_v63 = vadd.f32 %v2264_v62, %v2260_v53 }
 0x242   : > { %v2110_v44 = vadd.f32 %v2109_v49, %v2108_v28  ;;  %v2270_v36 = vmul.f32 %v2269_v29, %v4158_v27  ;;  %v3274_v6 = vpop.eup %3273  ;;  %v2122_v15 = vadd.f32 %v2121_v20, %v2120_v58  ;;  %v2267_v23 = vadd.f32 %v2265_v21, %v2261_v41 }
 0x243   : > { %v2134_v25 = vadd.f32 %v2133_v9, %v2132_v1  ;;  %v2271_v50 = vmul.f32 %v2269_v29, %v4156_v4  ;;  %v2099_v60 = vrot.slane %v2098_v18, 1  ;;  %v2190_v16 = vadd.f32 %v3274_v6, %v5846_v61 }
 0x244   : > { %v2111_v59 = vrot.slane %v2110_v44, 1  ;;  %v2272_v46 = vadd.f32 %v2270_v36, %v2266_v63  ;;  %v3276_v54 = vpop.eup %3275  ;;  %v2123_v34 = vrot.slane %v2122_v15, 1  ;;  %v2275_v56 = vstv %s5187_s11 }
 0x245   : > { %v2135_v19 = vrot.slane %v2134_v25, 1  ;;  %v2273_v14 = vadd.f32 %v2271_v50, %v2267_v23  ;;  %v2100_v26 = vadd.f32 %v2099_v60, %v2098_v18  ;;  %v2191_v27 = vadd.f32 %v3276_v54, %v5848_v48 }
 0x246   : > { %v2112_v52 = vadd.f32 %v2111_v59, %v2110_v44  ;;  %v2192_v3 = vmul.f32 %v2190_v16, %v3706_v33  ;;  %v2124_v55 = vadd.f32 %v2123_v34, %v2122_v15  ;;  %v2204_v31 = vmul.f32 %v2190_v16, %v4280_v57 }
 0x247   : > { %v2136_v4 = vadd.f32 %v2135_v19, %v2134_v25  ;;  %v2216_v11 = vmul.f32 %v2190_v16, %v4338_v0  ;;  %v5204_v37 = vmul.f32 0.0625, %v2100_v26  ;;  %v2193_v13 = vmul.f32 %v2191_v27, %v3741_v51 }
 0x248   : > { %v5206_v22 = vmul.f32 0.0625, %v2112_v52  ;;  %v2194_v28 = vsel %vm765_vm0, %v2192_v3, 0.0  ;;  %v5212_v42 = vmul.f32 0.0625, %v2124_v55  ;;  %v2205_v58 = vmul.f32 %v2191_v27, %v4278_v12 }
 0x249   : > { %v5214_v5 = vmul.f32 0.0625, %v2136_v4  ;;  %v2206_v1 = vsel %vm765_vm0, %v2204_v31, 0.0  ;;  %v2195_v53 = vsel %vm765_vm0, %v2193_v13, 0.0  ;;  %v2217_v43 = vmul.f32 %v2191_v27, %v4336_v38 }
 0x24a   : > { %v2218_v24 = vsel %vm765_vm0, %v2216_v11, 0.0  ;;  %v2228_v49 = vmul.f32 %v2190_v16, %v4366_v45  ;;  %v2196_v41 = vadd.f32 %v2195_v53, %v2194_v28  ;;  %v2207_v62 = vsel %vm765_vm0, %v2205_v58, 0.0 }
 0x24b   : > { %v2229_v20 = vmul.f32 %v2191_v27, %v4364_v8  ;;  %v2276_v9 = vmul.f32 %v2275_v56, %v5846_v61  ;;  %v2208_v21 = vadd.f32 %v2207_v62, %v2206_v1  ;;  %v2219_v29 = vsel %vm765_vm0, %v2217_v43, 0.0 }
 0x24c   : > { %v2230_v18 = vsel %vm765_vm0, %v2228_v49, 0.0  ;;  %v2277_v44 = vmul.f32 %v2275_v56, %v5848_v48  ;;  %v2197_v63 = vrot.slane %v2196_v41, 4  ;;  %v2220_v36 = vadd.f32 %v2219_v29, %v2218_v24 }
 0x24d   : > { %v2231_v6 = vsel %vm765_vm0, %v2229_v20, 0.0  ;;  %v2278_v15 = vadd.f32 %v2276_v9, %v2272_v46  ;;  %v2209_v25 = vrot.slane %v2208_v21, 4  ;;  %v2281_v60 = vstv %s5200_s18 }
 0x24e   : > { %v2232_v23 = vadd.f32 %v2231_v6, %v2230_v18  ;;  %v2279_v50 = vadd.f32 %v2277_v44, %v2273_v14  ;;  %v2198_v59 = vadd.f32 %v2197_v63, %v2196_v41  ;;  %v2221_v16 = vrot.slane %v2220_v36, 4  ;;  %v5907_v41 = vld [vmem:[#allocation70_spill] sm:$0xff]  ;;  %v5909_v44 = vld [vmem:[#allocation68_spill] sm:$0xff]  ;;  %v5910_v6 = vld [vmem:[#allocation59_spill] sm:$0xff] }
 0x24f   : > { %v2282_v61 = vmul.f32 %v2281_v60, %v4208_v39  ;;  %v2283_v54 = vmul.f32 %v2281_v60, %v4206_v2  ;;  %v2210_v34 = vadd.f32 %v2209_v25, %v2208_v21  ;;  %v2287_v26 = vstv %s5210_s21  ;;  %v5911_v25 = vld [vmem:[#allocation91_spill] sm:$0xff] }
 0x250   : > { %v2233_v19 = vrot.slane %v2232_v23, 4  ;;  %v2199_v48 = vrot.slane %v2198_v59, 2  ;;  %v2222_v56 = vadd.f32 %v2221_v16, %v2220_v36  ;;  %v2343_v14 = vsel %vm2342_vm1, %v4390_v47, %v4404_v7 }
 0x251   : > { %v2284_v52 = vadd.f32 %v2282_v61, %v2278_v15  ;;  %v2285_v27 = vadd.f32 %v2283_v54, %v2279_v50  ;;  %v2211_v3 = vrot.slane %v2210_v34, 2  ;;  %v2345_v58 = vsel %vm2344_vm2, %v2343_v14, %v4448_v35  ;;  %v5908_v35 = vld [vmem:[#allocation65_spill] sm:$0xff]  ;;  %v5914_v61 = vld [vmem:[#allocation75_spill] sm:$0xff]  ;;  %v5915_v54 = vld [vmem:[#allocation72_spill] sm:$0xff] }
 0x252   : > { %v2234_v46 = vadd.f32 %v2233_v19, %v2232_v23  ;;  %v2200_v55 = vadd.f32 %v2199_v48, %v2198_v59  ;;  %v2223_v4 = vrot.slane %v2222_v56, 2  ;;  %v2347_v43 = vsel %vm2346_vm3, %v2345_v58, %v4518_v10  ;;  %v5912_v23 = vld [vmem:[#allocation87_spill] sm:$0xff]  ;;  %v5916_v19 = vld [vmem:[#allocation92_spill] sm:$0xff] }
 0x253   : > { %v2288_v31 = vadd.f32 %v2287_v26, %v2284_v52  ;;  %v2289_v11 = vadd.f32 %v2287_v26, %v2285_v27  ;;  %v2212_v13 = vadd.f32 %v2211_v3, %v2210_v34  ;;  %v2349_v62 = vsel %vm2348_vm4, %v2347_v43, %v5907_v41  ;;  %v5913_v59 = vld [vmem:[#allocation95_spill] sm:$0xff]  ;;  %v5917_v26 = vld [vmem:[#allocation88_spill] sm:$0xff]  ;;  %v5919_v3 = vld [vmem:[#allocation78_spill] sm:$0xff] }
 0x254   : > { %v2235_v28 = vrot.slane %v2234_v46, 2  ;;  %v2201_v1 = vrot.slane %v2200_v55, 1  ;;  %v2224_v53 = vadd.f32 %v2223_v4, %v2222_v56  ;;  %v2351_v21 = vsel %vm2350_vm5, %v2349_v62, %v5908_v35  ;;  %v5918_v52 = vld [vmem:[#allocation99_spill] sm:$0xff]  ;;  %v5920_v14 = vld [vmem:[#allocation96_spill] sm:$0xff] }
 0x255   : > { %3277 = vtanh.f32 %v2288_v31  ;;  %v2213_v24 = vrot.slane %v2212_v13, 1  ;;  %v2353_v10 = vsel %vm2352_vm6, %v2351_v21, %v5909_v44  ;;  %v2356_v50 = vsel %vm2342_vm1, %v5912_v23, %v5911_v25  ;;  %v5921_v31 = vld [vmem:[#allocation62_spill] sm:$0xff]  ;;  %v5923_v58 = vld [vmem:[#allocation76_spill] sm:$0xff] }
 0x256   : > { %v2236_v49 = vadd.f32 %v2235_v28, %v2234_v46  ;;  %3279 = vtanh.f32 %v2289_v11  ;;  %v2202_v47 = vadd.f32 %v2201_v1, %v2200_v55  ;;  %v2225_v7 = vrot.slane %v2224_v53, 1  ;;  %v5924_v1 = vld [vmem:[#allocation73_spill] sm:$0xff]  ;;  %v5931_v23 = vld [vmem:[#allocation60_spill] sm:$0xff] }
 0x257   : > { %v2214_v20 = vadd.f32 %v2213_v24, %v2212_v13  ;;  %v5248_v15 = vsel %vm2354_vm7, %v2353_v10, %v5910_v6  ;;  %v2357_v16 = vsel %vm2344_vm2, %v2356_v50, %v5913_v59  ;;  %v2363_v34 = vsel %vm2342_vm1, %v5915_v54, %v5914_v61  ;;  %v5922_v13 = vld [vmem:[#allocation100_spill] sm:$0xff]  ;;  %v5925_v24 = vld [vmem:[#allocation63_spill] sm:$0xff]  ;;  %v5932_v50 = vld [vmem:[#allocation81_spill] sm:$0xff] }
 0x258   : > { %v2237_v9 = vrot.slane %v2236_v49, 1  ;;  %v2203_v29 = vmul.f32 0.0625, %v2202_v47  ;;  %v2226_v18 = vadd.f32 %v2225_v7, %v2224_v53  ;;  %v2370_v48 = vsel %vm2342_vm1, %v5917_v26, %v5916_v19 }
 0x259   : > { %v2215_v63 = vmul.f32 0.0625, %v2214_v20  ;;  %v2358_v27 = vsel %vm2346_vm3, %v2357_v16, %v5918_v52  ;;  %v2364_v46 = vsel %vm2344_vm2, %v2363_v34, %v5919_v3  ;;  %v2371_v55 = vsel %vm2344_vm2, %v2370_v48, %v5920_v14  ;;  %v5927_v20 = vld [vmem:[#allocation66_spill] sm:$0xff]  ;;  %v5933_v16 = vld [vmem:[#allocation93_spill] sm:$0xff] }
 0x25a   : > { %v2238_v36 = vadd.f32 %v2237_v9, %v2236_v49  ;;  %v5253_v60 = vmul.f32 0.0625, %v2226_v18  ;;  %v2359_v4 = vsel %vm2348_vm4, %v2358_v27, %v5138_v40  ;;  %v2365_v11 = vsel %vm2346_vm3, %v2364_v46, %v5921_v31  ;;  %v5926_v40 = vld [vmem:[#allocation79_spill] sm:$0xff]  ;;  %v5936_v31 = vld [vmem:[#allocation97_spill] sm:$0xff] }
 0x25b   : > { %v2372_v28 = vsel %vm2346_vm3, %v2371_v55, %v5922_v13  ;;  %v2377_v53 = vsel %vm2342_vm1, %v5924_v1, %v5923_v58  ;;  %v2360_v43 = vsel %vm2350_vm5, %v2359_v4, %v5204_v37  ;;  %v2366_v49 = vsel %vm2348_vm4, %v2365_v11, %v5925_v24  ;;  %v5928_v37 = vld [vmem:[#allocation67_spill] sm:$0xff]  ;;  %v5937_v13 = vld [vmem:[#allocation77_spill] sm:$0xff]  ;;  %v5939_v1 = vld [vmem:[#allocation94_spill] sm:$0xff] }
 0x25c   : > { %v5263_v56 = vmul.f32 0.0625, %v2238_v36  ;;  %v2373_v47 = vsel %vm2348_vm4, %v2372_v28, %v5140_v32  ;;  %v2378_v7 = vsel %vm2344_vm2, %v2377_v53, %v5926_v40  ;;  %v5289_v62 = vsel %vm2352_vm6, %v2360_v43, %v2203_v29  ;;  %v5929_v32 = vld [vmem:[#allocation69_spill] sm:$0xff]  ;;  %v5930_v29 = vld [vmem:[#allocation64_spill] sm:$0xff]  ;;  %v5935_v55 = vld [vmem:[#allocation83_spill] sm:$0xff] }
 0x25d   : > { %v2367_v9 = vsel %vm2350_vm5, %v2366_v49, %v5927_v20  ;;  %v2374_v35 = vsel %vm2350_vm5, %v2373_v47, %v5206_v22  ;;  %v2379_v21 = vsel %vm2346_vm3, %v2378_v7, %v5928_v37  ;;  %v5938_v28 = vld [vmem:[#allocation74_spill] sm:$0xff]  ;;  %v5941_v7 = vld [vmem:[#allocation85_spill] sm:$0xff] }
 0x25e   : > { %v2368_v10 = vsel %vm2352_vm6, %v2367_v9, %v5929_v32  ;;  %v5301_v36 = vsel %vm2352_vm6, %v2374_v35, %v2215_v63  ;;  %v2380_v6 = vsel %vm2348_vm4, %v2379_v21, %v5930_v29  ;;  %v2391_v58 = vsel %vm2342_vm1, %v5938_v28, %v5937_v13  ;;  %v5940_v53 = vld [vmem:[#allocation90_spill] sm:$0xff]  ;;  %v5942_v20 = vld [vmem:[#allocation101_spill] sm:$0xff] }
 0x25f   : > { %v3278_v41 = vpop.eup %3277  ;;  %v5308_v22 = vsel %vm2354_vm7, %v2368_v10, %v5931_v23  ;;  %v2381_v59 = vsel %vm2350_vm5, %v2380_v6, %v5932_v50  ;;  %v2398_v43 = vsel %vm2342_vm1, %v5940_v53, %v5939_v1  ;;  %v5943_v35 = vld [vmem:[#allocation61_spill] sm:$0xff]  ;;  %v5944_v21 = vld [vmem:[#allocation98_spill] sm:$0xff] }
 0x260   : > { %v3280_v18 = vpop.eup %3279  ;;  %v2292_v44 = vadd.f32 %v3278_v41, %v4208_v39  ;;  %v5934_v39 = vld [vmem:[#allocation89_spill] sm:$0xff]  ;;  %v2382_v4 = vsel %vm2352_vm6, %v2381_v59, %v5935_v55  ;;  %v2392_v37 = vsel %vm2344_vm2, %v2391_v58, %v5943_v35  ;;  %v5946_v50 = vld [vmem:[#allocation102_spill] sm:$0xff] }
 0x261   : > { %v2293_v25 = vadd.f32 %v3280_v18, %v4206_v2  ;;  %v2384_v61 = vsel %vm2342_vm1, %v5934_v39, %v5933_v16  ;;  %v5343_v41 = vsel %vm2354_vm7, %v2382_v4, %v5941_v7  ;;  %v2399_v18 = vsel %vm2344_vm2, %v2398_v43, %v5944_v21  ;;  %v5950_v13 = vld [vmem:[#allocation86_spill] sm:$0xff] }
 0x262   : > { %v2294_v54 = vmul.f32 %v2292_v44, %v3706_v33  ;;  %v2306_v63 = vmul.f32 %v2292_v44, %v4280_v57  ;;  %v2318_v34 = vmul.f32 %v2292_v44, %v4338_v0  ;;  %v2330_v19 = vmul.f32 %v2292_v44, %v4366_v45 }
 0x263   : > { %v2295_v2 = vmul.f32 %v2293_v25, %v3741_v51  ;;  %v2307_v26 = vmul.f32 %v2293_v25, %v4278_v12  ;;  %v2319_v48 = vmul.f32 %v2293_v25, %v4336_v38  ;;  %v2331_v52 = vmul.f32 %v2293_v25, %v4364_v8  ;;  %v5945_v25 = vld [vmem:[#allocation71_spill] sm:$0xff] }
 0x264   : > { %v2296_v27 = vsel %vm765_vm0, %v2294_v54, 0.0  ;;  %v2308_v3 = vsel %vm765_vm0, %v2306_v63, 0.0  ;;  %v2320_v33 = vsel %vm765_vm0, %v2318_v34, 0.0  ;;  %v2332_v57 = vsel %vm765_vm0, %v2330_v19, 0.0  ;;  %v5947_v19 = vld [vmem:[#allocation80_spill] sm:$0xff] }
 0x265   : > { %v2297_v0 = vsel %vm765_vm0, %v2295_v2, 0.0  ;;  %v2309_v45 = vsel %vm765_vm0, %v2307_v26, 0.0  ;;  %v2321_v51 = vsel %vm765_vm0, %v2319_v48, 0.0  ;;  %v2333_v12 = vsel %vm765_vm0, %v2331_v52, 0.0 }
 0x266   : > { %v2298_v46 = vadd.f32 %v2297_v0, %v2296_v27  ;;  %v2310_v38 = vadd.f32 %v2309_v45, %v2308_v3  ;;  %v2322_v14 = vadd.f32 %v2321_v51, %v2320_v33  ;;  %v2334_v8 = vadd.f32 %v2333_v12, %v2332_v57  ;;  %v5948_v57 = vld [vmem:[#allocation82_spill] sm:$0xff] }
 0x267   : > { %v2385_v11 = vsel %vm2344_vm2, %v2384_v61, %v5936_v31  ;;  %v2393_v23 = vsel %vm2346_vm3, %v2392_v37, %v5945_v25  ;;  %v2400_v59 = vsel %vm2346_vm3, %v2399_v18, %v5946_v50  ;;  %v2405_v16 = vlaneseq }
 0x268   : > { %v2299_v24 = vrot.slane %v2298_v46, 4  ;;  %v2311_v49 = vrot.slane %v2310_v38, 4  ;;  %v2323_v47 = vrot.slane %v2322_v14, 4  ;;  %v2335_v40 = vrot.slane %v2334_v8, 4 }
 0x269   : > { %v2386_v9 = vsel %vm2346_vm3, %v2385_v11, %v5942_v20  ;;  %v2394_v2 = vsel %vm2348_vm4, %v2393_v23, %v5947_v19  ;;  %v5363_v26 = vshrl.u32 %v2405_v16, 7 }
 0x26a   : > { %v2300_v44 = vadd.f32 %v2299_v24, %v2298_v46  ;;  %v2312_v32 = vadd.f32 %v2311_v49, %v2310_v38  ;;  %v2324_v10 = vadd.f32 %v2323_v47, %v2322_v14  ;;  %v2336_v29 = vadd.f32 %v2335_v40, %v2334_v8  ;;  %v5949_v38 = vld [vmem:[#allocation84_spill] sm:$0xff] }
 0x26b   : > { %v2387_v6 = vsel %vm2348_vm4, %v2386_v9, %v5142_v17  ;;  %v2401_v17 = vsel %vm2348_vm4, %v2400_v59, %v5144_v30  ;;  %v2395_v0 = vsel %vm2350_vm5, %v2394_v2, %v5948_v57  ;;  %v2407_v45 = vsub.s32 0, %v5363_v26 }
 0x26c   : > { %v2301_v39 = vrot.slane %v2300_v44, 2  ;;  %v2313_v61 = vrot.slane %v2312_v32, 2  ;;  %v2325_v54 = vrot.slane %v2324_v10, 2  ;;  %v2337_v63 = vrot.slane %v2336_v29, 2 }
 0x26d   : > { %v2388_v34 = vsel %vm2350_vm5, %v2387_v6, %v5212_v42  ;;  %v2402_v42 = vsel %vm2350_vm5, %v2401_v17, %v5214_v5  ;;  %v2396_v14 = vsel %vm2352_vm6, %v2395_v0, %v5949_v38  ;;  %v2414_v55 = vrot.slane %v5308_v22, %v2407_v45 }
 0x26e   : > { %v2302_v48 = vadd.f32 %v2301_v39, %v2300_v44  ;;  %v2314_v52 = vadd.f32 %v2313_v61, %v2312_v32  ;;  %v2326_v27 = vadd.f32 %v2325_v54, %v2324_v10  ;;  %v2338_v3 = vadd.f32 %v2337_v63, %v2336_v29 }
 0x26f   : > { %v2389_v33 = vsel %vm2352_vm6, %v2388_v34, %v5253_v60  ;;  %v2403_v8 = vsel %vm2352_vm6, %v2402_v42, %v5263_v56  ;;  %v2408_v60 = vrot.slane %v5248_v15, %v2407_v45  ;;  %v5380_v28 = vsel %vm2354_vm7, %v2396_v14, %v5950_v13 }
 0x270   : > { %v2303_v51 = vrot.slane %v2302_v48, 1  ;;  %v2315_v12 = vrot.slane %v2314_v52, 1  ;;  %v2327_v30 = vrot.slane %v2326_v27, 1  ;;  %v2339_v46 = vrot.slane %v2338_v3, 1 }
 0x271   : > { %v2409_v58 = vmul.f32 %v2408_v60, %v5248_v15  ;;  %v2415_v1 = vmul.f32 %v2414_v55, %v5308_v22  ;;  %v2422_v53 = vrot.slane %v5343_v41, %v2407_v45  ;;  %v2430_v7 = vrot.slane %v5380_v28, %v2407_v45 }
 0x272   : > { %v2304_v4 = vadd.f32 %v2303_v51, %v2302_v48  ;;  %v2316_v31 = vadd.f32 %v2315_v12, %v2314_v52  ;;  %v2328_v11 = vadd.f32 %v2327_v30, %v2326_v27  ;;  %v2340_v5 = vadd.f32 %v2339_v46, %v2338_v3 }
 0x273   : > { %v2417_v47 = vadd.f32 %v2415_v1, %v2409_v58  ;;  %v2423_v40 = vmul.f32 %v2422_v53, %v5343_v41  ;;  %v2437_v20 = vsub.s32 1, %v5363_v26  ;;  %v2467_v59 = vsub.s32 2, %v5363_v26 }
 0x274   : > { %v2305_v43 = vmul.f32 0.0625, %v2304_v4  ;;  %v2317_v56 = vmul.f32 0.0625, %v2316_v31  ;;  %v2329_v24 = vmul.f32 0.0625, %v2328_v11  ;;  %v2341_v49 = vmul.f32 0.0625, %v2340_v5  ;;  %v2525_v31 = vld [vmem:[%s5427_s30] sm:$0xff] }
 0x275   : > { %v2425_v10 = vadd.f32 %v2423_v40, %v2417_v47  ;;  %v2444_v6 = vrot.slane %v5308_v22, %v2437_v20  ;;  %v2452_v23 = vrot.slane %v5343_v41, %v2437_v20  ;;  %v2460_v50 = vrot.slane %v5380_v28, %v2437_v20  ;;  %3069 = vmatprep.mubr.msk.f32.mxu0 %vm2541_vm8, %v2525_v31 }
 0x276   : > { %v5390_v9 = vsel %vm2354_vm7, %v5289_v62, %v2305_v43  ;;  %v5394_v35 = vsel %vm2354_vm7, %v5301_v36, %v2317_v56  ;;  %v5397_v37 = vsel %vm2354_vm7, %v2389_v33, %v2329_v24  ;;  %v5400_v21 = vsel %vm2354_vm7, %v2403_v8, %v2341_v49  ;;  %v2526_v24 = vld [vmem:[%s5427_s30 + $0x8] sm:$0xff] }
 0x277   : > { %v2410_v18 = vmul.f32 %v2408_v60, %v5390_v9  ;;  %v2416_v44 = vmul.f32 %v2414_v55, %v5394_v35  ;;  %v2424_v32 = vmul.f32 %v2422_v53, %v5397_v37  ;;  %v2431_v62 = vmul.f32 %v2430_v7, %v5380_v28 }
 0x278   : > { %v2432_v29 = vmul.f32 %v2430_v7, %v5400_v21  ;;  %v2438_v36 = vrot.slane %v5248_v15, %v2437_v20  ;;  %v2445_v54 = vmul.f32 %v2444_v6, %v5308_v22  ;;  %v2446_v34 = vmul.f32 %v2444_v6, %v5394_v35 }
 0x279   : > { %v2418_v25 = vadd.f32 %v2416_v44, %v2410_v18  ;;  %v2433_v16 = vadd.f32 %v2431_v62, %v2425_v10  ;;  %v2453_v19 = vmul.f32 %v2452_v23, %v5343_v41  ;;  %v2454_v2 = vmul.f32 %v2452_v23, %v5397_v37 }
 0x27a   : > { %v2439_v39 = vmul.f32 %v2438_v36, %v5248_v15  ;;  %v2440_v61 = vmul.f32 %v2438_v36, %v5390_v9  ;;  %v2461_v48 = vmul.f32 %v2460_v50, %v5380_v28  ;;  %v2462_v52 = vmul.f32 %v2460_v50, %v5400_v21 }
 0x27b   : > { %v2426_v63 = vadd.f32 %v2424_v32, %v2418_v25  ;;  %v2468_v27 = vrot.slane %v5248_v15, %v2467_v59  ;;  %v2474_v57 = vrot.slane %v5308_v22, %v2467_v59  ;;  %v2482_v0 = vrot.slane %v5343_v41, %v2467_v59 }
 0x27c   : > { %v2447_v17 = vadd.f32 %v2445_v54, %v2439_v39  ;;  %v2448_v33 = vadd.f32 %v2446_v34, %v2440_v61  ;;  %v2490_v12 = vrot.slane %v5380_v28, %v2467_v59  ;;  %v2497_v1 = vsub.s32 3, %v5363_v26  ;;  %v2530_v54 = vld [vmem:[%s5427_s30 + $0x28] sm:$0xff] }
 0x27d   : > { %v2434_v3 = vadd.f32 %v2432_v29, %v2426_v63  ;;  %v2469_v45 = vmul.f32 %v2468_v27, %v5248_v15  ;;  %v2470_v51 = vmul.f32 %v2468_v27, %v5390_v9  ;;  %v2475_v38 = vmul.f32 %v2474_v57, %v5308_v22 }
 0x27e   : > { %v2455_v42 = vadd.f32 %v2453_v19, %v2447_v17  ;;  %v2456_v46 = vadd.f32 %v2454_v2, %v2448_v33  ;;  %v2476_v14 = vmul.f32 %v2474_v57, %v5394_v35  ;;  %v2483_v60 = vmul.f32 %v2482_v0, %v5343_v41 }
 0x27f   : > { %v3079_v30 = vpack.c.bf16 %v2434_v3, %v2433_v16  ;;  %v2484_v55 = vmul.f32 %v2482_v0, %v5397_v37  ;;  %v2491_v4 = vmul.f32 %v2490_v12, %v5380_v28  ;;  %v2477_v5 = vadd.f32 %v2475_v38, %v2469_v45 }
 0x280   : > { %v2463_v8 = vadd.f32 %v2461_v48, %v2455_v42  ;;  %v2464_v11 = vadd.f32 %v2462_v52, %v2456_v46  ;;  %v2478_v13 = vadd.f32 %v2476_v14, %v2470_v51  ;;  %v2492_v58 = vmul.f32 %v2490_v12, %v5400_v21 }
 0x281   : > { %3080 = vmatprep.subr.bf16.mxu0 %v3079_v30  ;;  %v2485_v43 = vadd.f32 %v2483_v60, %v2477_v5  ;;  %v3392_v49 = vmov 64   ;;  %v2498_v47 = vrot.slane %v5248_v15, %v2497_v1  ;;  %v2504_v40 = vrot.slane %v5308_v22, %v2497_v1 }
 0x282   : > { %3082 = vmatpush3.bf16.msra.mxu0 %v3079_v30  ;;  %v3083_v53 = vpack.c.bf16 %v2464_v11, %v2463_v8  ;;  %v2486_v56 = vadd.f32 %v2484_v55, %v2478_v13  ;;  %3176 = vset.pattern.permute.xlu1 %v3392_v49  ;;  %v2512_v7 = vrot.slane %v5343_v41, %v2497_v1  ;;  %v5953_v39 = vmov 0  }
 0x283   : > { %v2520_v20 = vrot.slane %v5380_v28, %v2497_v1  ;;  %2538 = vperm.xlu1 %3176, %v2526_v24   ;;  %v2493_v26 = vadd.f32 %v2491_v4, %v2485_v43  ;;  %3175 = vset.pattern.permute.xlu0 %v3392_v49  ;;  %v2499_v44 = vmul.f32 %v2498_v47, %v5248_v15  ;;  %v3394_v61 = vmov 1  }
 0x284   : > { %3084 = vmatprep.subr.bf16.mxu0 %v3083_v53  ;;  %v2494_v18 = vadd.f32 %v2492_v58, %v2486_v56  ;;  %v2500_v32 = vmul.f32 %v2498_v47, %v5390_v9  ;;  %v2505_v10 = vmul.f32 %v2504_v40, %v5308_v22  ;;  %v2506_v62 = vmul.f32 %v2504_v40, %v5394_v35 }
 0x285   : > { %v2513_v36 = vmul.f32 %v2512_v7, %v5343_v41  ;;  %v2514_v6 = vmul.f32 %v2512_v7, %v5397_v37  ;;  %2533 = vperm.xlu0 %3175, %v2525_v31   ;;  %v2521_v50 = vmul.f32 %v2520_v20, %v5380_v28  ;;  %v2522_v15 = vmul.f32 %v2520_v20, %v5400_v21  ;;  %v2527_v41 = vld [vmem:[%s5427_s30 + $0x10] sm:$0xff]  ;;  %v2528_v28 = vld [vmem:[%s5427_s30 + $0x18] sm:$0xff]  ;;  %v2529_v21 = vld [vmem:[%s5427_s30 + $0x20] sm:$0xff] }
 0x286   : > { %3086 = vmatpush3.bf16.msra.mxu0 %v3083_v53  ;;  %v3087_v29 = vpack.c.bf16 %v2494_v18, %v2493_v26  ;;  %v2507_v25 = vadd.f32 %v2505_v10, %v2499_v44  ;;  %v2508_v23 = vadd.f32 %v2506_v62, %v2500_v32  ;;  %3076 = vmatprep.mubr.msk.f32.mxu1 %vm2633_vm9, %v2527_v41  ;;  %v3393_v37 = vmov 16  }
 0x287   : > { %3177 = vset.pattern.permute.xlu1 %v3393_v37 }
 0x288   : > { %3088 = vmatprep.subr.bf16.mxu0 %v3087_v29  ;;  %v2515_v9 = vadd.f32 %v2513_v36, %v2507_v25  ;;  %v2516_v22 = vadd.f32 %v2514_v6, %v2508_v23  ;;  %2625 = vperm.xlu1 %3177, %v2527_v41  }
 0x289   : > { %3178 = vset.pattern.permute.xlu0 %v3393_v37 }
 0x28a   : > { %3090 = vmatpush3.bf16.msra.mxu0 %v3087_v29  ;;  %v2523_v35 = vadd.f32 %v2521_v50, %v2515_v9  ;;  %v2524_v59 = vadd.f32 %v2522_v15, %v2516_v22  ;;  %2630 = vperm.xlu0 %3178, %v2528_v28  }
 0x28c   : > { %v3091_v16 = vpack.c.bf16 %v2524_v59, %v2523_v35  ;;  %3179 = vset.pattern.permute.xlu1 %v5953_v39 }
 0x28d   : > { %2719 = vperm.xlu1 %3179, %v2529_v21  }
 0x28e   : > { %3092 = vmatprep.subr.bf16.mxu0 %v3091_v16  ;;  %3180 = vset.pattern.permute.xlu0 %v3394_v61 }
 0x28f   : > { %3094 = vmatpush3.bf16.msra.mxu0 %v3091_v16  ;;  %2739 = vperm.xlu0 %3180, %v2529_v21  }
 0x291   : > { %2724 = vperm.xlu1 %3179, %v2530_v54  }
 0x292   : > { %3070 = vmatmul.mubr.msk.f32.vlgmr.msra.gmra.mrb[0].mxu0 %vm2541_vm8, %v2526_v24 }
 0x302   : > { %v2539_v63 = vpop.permute.xlu1 %2538 }
 0x304   : > { %v2534_v34 = vpop.permute.xlu0 %2533 }
 0x307   : > { %v2626_v57 = vpop.permute.xlu1 %2625 }
 0x309   : > { %v2631_v33 = vpop.permute.xlu0 %2630 }
 0x30c   : > { %v2720_v12 = vpop.permute.xlu1 %2719 }
 0x30e   : > { %v2740_v43 = vpop.permute.xlu0 %2739 }
 0x310   : > { %v2725_v8 = vpop.permute.xlu1 %2724 }
 0x365   : > { %v3071_v19 = vpop.f32.mrb[0].mxu0 }
 0x366   : > { %v2618_v2 = vadd.f32 %v3071_v19, %v2539_v63  ;;  %v2612_v17 = vpop.f32.mrb[1].mxu0 }
 0x367   : > { %v2613_v48 = vadd.f32 %v2612_v17, %v2534_v34 }
 0x368   : > { %3281 = vtanh.f32 %v2618_v2 }
 0x369   : > { %3283 = vtanh.f32 %v2613_v48 }
 0x372   : > { %v3282_v52 = vpop.eup %3281 }
 0x373   : > { %v3284_v27 = vpop.eup %3283 }
 0x374   : > { %v3095_v3 = vpack.c.bf16 %v3282_v52, %v3284_v27 }
 0x376   : > { %3096 = vmatprep.subr.bf16.mxu1 %v3095_v3 }
 0x377   : > { %3098 = vmatpush3.bf16.msra.mxu1 %v3095_v3 }
 0x37a   : > { %3077 = vmatmul.mubr.msk.f32.vlgmr.msra.gmra.mrb[0].mxu1 %vm2633_vm9, %v2528_v28 }
 0x44d   : > { %v3078_v0 = vpop.f32.mrb[0].mxu1 }
 0x44e   : > { %v2710_v42 = vadd.f32 %v3078_v0, %v2631_v33  ;;  %v2704_v45 = vpop.f32.mrb[1].mxu1 }
 0x44f   : > { %v2705_v51 = vadd.f32 %v2704_v45, %v2626_v57 }
 0x450   : > { %3285 = vtanh.f32 %v2710_v42 }
 0x451   : > { %3287 = vtanh.f32 %v2705_v51 }
 0x45a   : > { %v3286_v30 = vpop.eup %3285 }
 0x45b   : > { %v3288_v46 = vpop.eup %3287  ;;  %v2716_v38 = vadd.f32 %v3286_v30, %v3282_v52 }
 0x45c   : > { %v2715_v14 = vadd.f32 %v3288_v46, %v3284_v27 }
 0x45d   : > { %v2728_v60 = vmul.f32 %v2725_v8, %v2716_v38 }
 0x45e   : > { %v2727_v55 = vmul.f32 %v2720_v12, %v2715_v14 }
 0x45f   : > { %v2730_v4 = vsel %vm765_vm0, %v2728_v60, 0.0 }
 0x460   : > { %v2729_v31 = vsel %vm765_vm0, %v2727_v55, 0.0 }
 0x461   : > { %v2731_v11 = vadd.f32 %v2730_v4, %v2729_v31 }
 0x463   : > { %v2732_v5 = vrot.slane %v2731_v11, 4 }
 0x465   : > { %v2733_v13 = vadd.f32 %v2732_v5, %v2731_v11 }
 0x467   : > { %v2734_v58 = vrot.slane %v2733_v13, 2 }
 0x469   : > { %v2735_v1 = vadd.f32 %v2734_v58, %v2733_v13 }
 0x46b   : > { %v2736_v53 = vrot.slane %v2735_v1, 1 }
 0x46d   : > { %v2737_v56 = vadd.f32 %v2736_v53, %v2735_v1 }
 0x46f   : > { %v2742_v24 = vadd.f32 %v2740_v43, %v2737_v56 }
 0x471   : > { %2744 = vst.msk [vmem:[%s257_s25] sm:$0x1] %vm2743_vm10, %v2742_v24 }
 0x472   : > { %3317 = shalt.err (!%p3314_p3)
}
 0x473   : > { %s3318_s9 = scalar_lea.hbm %s5469_s6, 16  ;;  %s3322_s23 = scalar_lea.hbm %s5957_s22, 32 }
 0x474   : > { %p3319_p5 = scmp.ne.s32.totalorder %s5469_s6, %s3318_s9  ;;  %p3323_p9 = scmp.lt.u32.totalorder %s5469_s6, %s5957_s22 }
 0x475   : > { %p3324_p12 = scmp.lt.u32.totalorder %s3322_s23, %s3318_s9  ;;  %p3326_p11 = scmp.lt.u32.totalorder %s3318_s9, %s5469_s6 }
 0x476   : > { %p3320_p6 = pnand %p3319_p5, %p3461_p4 }
 0x477   : > { %p3325_p10 = por %p3324_p12, %p3323_p9 }
 0x478   : > { %p3321_p7 = pneg %p3320_p6 }
 0x479   : > { %p3327_p13 = por %p3326_p11, %p3325_p10 }
 0x47b   : > { %p3328_p0 = pnand %p3327_p13, %p3321_p7 }
 0x47d   : > { %3331 = shalt.err (!%p3328_p0)
}
 0x47e   : > { %3105 = dma.vmem_to_hbm [thread:$0]  (%p3461_p4), %s5471_s2, 16, %s5469_s6, %s2746_s29  }
 0x47f PF: > { %s5958_s11 = sld [smem:[#allocation13_spill]]  ;;  %s5959_s18 = sld [smem:[#allocation8_spill]] }
 0x485   : > { %p3117_p1 = scmp.ge.s32.totalorder %s5958_s11, 2  ;;  %s2771_s3 = sand.u32 1, %s5959_s18  }
 0x486   : > { %s2772_s14 = scalar_lea.sflag [#allocation3], %s2771_s3 }
 0x487   : > { %p3112_p2 = pnand %p3117_p1, %p3468_p8 }
 0x489   : > { %3361 = dma.done.wait (!%p3112_p2), %s2772_s14, 16  }
 0x48a   : > { %3363 = vsyncadd (!%p3112_p2), %s2772_s14, 4294967280  ;;  %s18_s20 = sadd.s32 1, %s5958_s11   ;;  %s5961_s15 = sld [smem:[#allocation9_spill]] }
 0x48b   : > { %p15_p3 = scmp.ge.s32.totalorder %s18_s20, 4   ;;  %s5962_s16 = sld [smem:[#allocation10_spill]] }
 0x48c   : > { %s5963_s17 = sld [smem:[#allocation17_spill]]  ;;  %s5964_s18 = sld [smem:[#allocation12_spill]] }
 0x48d   : > { %s5965_s19 = sld [smem:[#allocation14_spill]]  ;;  %17 = sbr.rel (!%p15_p3) target bundleno = 11 (0xb), region = 82 }
 0x494   :  { %2776 = vsyncpa [#allocation3], 1 }
 0x495   :  { %2778 = vsyncpa [#allocation3 + $0x1], 1 }
 0x496   :  { %2779 = vsyncpa [#allocation4], 1 }
 0x497   :  { %2781 = vsyncpa [#allocation4 + $0x1], 1 }

</bundles_post_ra>
